<compile_context>
chip_gen: v5e
topology: v5e:2x2
jax: 0.10.0
libtpu: 0.0.40
codegen_flags: <defaults>
</compile_context>

<pallas_src>
import numpy as np
import jax
import jax.numpy as jnp
from jax.experimental import pallas as pl
from jax.experimental.pallas import tpu as pltpu

LRELU_SLOPE = 0.2
BN_EPS = 0.8  # nn.BatchNorm1d(out_size, 0.8) -> second positional arg is eps

NOISE_DIM, LABEL_DIM = 100, 10
BRANCH_DIM = 100                 # output width of both input branches
NOISE_PAD = LABEL_PAD = BRANCH_PAD = 128
H1, H2, H3 = 256, 512, 1024


def _round_up(n, m):
    return ((n + m - 1) // m) * m


# --------------------------- shared math helpers ----------------------------
# (pure jnp/lax -> usable both inside the Pallas kernel and in the reference)

def _lrelu(y):
    return jnp.where(y > 0, y, LRELU_SLOPE * y)


def _bn(y, g, b):
    # BatchNorm1d training mode: batch mean, biased variance, eps = 0.8.
    m = jnp.mean(y, axis=0, keepdims=True)
    v = jnp.mean(jnp.square(y - m), axis=0, keepdims=True)
    return (y - m) * jax.lax.rsqrt(v + BN_EPS) * g + b


def _dot(x, w):
    # bf16 MXU inputs, f32 accumulation.
    return jnp.dot(x.astype(jnp.bfloat16), w, preferred_element_type=jnp.float32)


# ------------------------------ Pallas kernel -------------------------------

def generator_kernel(noise_ref, labels_ref,
                     nw_ref, nb_ref, lw_ref, lb_ref,
                     w1n_ref, w1l_ref, b1_ref, g1_ref, be1_ref,
                     w2_ref, b2_ref, g2_ref, be2_ref,
                     w3_ref, b3_ref, g3_ref, be3_ref,
                     w4_ref, b4_ref,
                     out_ref):
    # Input branches: Linear + LeakyReLU(0.2)
    a = _lrelu(_dot(noise_ref[...], nw_ref[...]) + nb_ref[...])
    b = _lrelu(_dot(labels_ref[...], lw_ref[...]) + lb_ref[...])

    # concat(a, b) @ W1  ==  a @ W1_noise_half + b @ W1_label_half
    h = _dot(a, w1n_ref[...]) + _dot(b, w1l_ref[...]) + b1_ref[...]
    h = _lrelu(_bn(h, g1_ref[...], be1_ref[...]))

    h = _lrelu(_bn(_dot(h, w2_ref[...]) + b2_ref[...], g2_ref[...], be2_ref[...]))
    h = _lrelu(_bn(_dot(h, w3_ref[...]) + b3_ref[...], g3_ref[...], be3_ref[...]))

    # Output head: Linear + Tanh (lane-dense padded output, sliced in wrapper)
    out_ref[...] = jnp.tanh(_dot(h, w4_ref[...]) + b4_ref[...])


# ------------------------------ kernel wrapper -------------------------------

def _full_spec(shape):
    # full-array block, trivial index map (works with the empty grid)
    return pl.BlockSpec(shape, lambda *_, n=len(shape): (0,) * n)


def generator_forward_pallas(params, noise, labels, img_shape):
    batch = noise.shape[0]
    out_dim = int(np.prod(img_shape))
    out_pad = params["l4_w"].shape[1]

    # pad small lane dims once at the boundary (zero columns -> exact)
    noise_p = jnp.pad(noise, ((0, 0), (0, NOISE_PAD - NOISE_DIM)))
    labels_p = jnp.pad(labels, ((0, 0), (0, LABEL_PAD - LABEL_DIM)))

    args = (noise_p, labels_p,
            params["noise_w"], params["noise_b"],
            params["label_w"], params["label_b"],
            params["l1_w_noise"], params["l1_w_label"], params["l1_b"],
            params["bn1_g"], params["bn1_b"],
            params["l2_w"], params["l2_b"], params["bn2_g"], params["bn2_b"],
            params["l3_w"], params["l3_b"], params["bn3_g"], params["bn3_b"],
            params["l4_w"], params["l4_b"])

    # advisory cost hint for XLA scheduling around the custom call
    flops = 2 * batch * (NOISE_PAD * BRANCH_PAD + LABEL_PAD * BRANCH_PAD
                         + 2 * BRANCH_PAD * H1 + H1 * H2 + H2 * H3
                         + H3 * out_pad)
    param_bytes = sum(int(np.prod(p.shape)) * p.dtype.itemsize for p in args[2:])
    io_bytes = (noise_p.size + labels_p.size + batch * out_pad) * 4

    out = pl.pallas_call(
        generator_kernel,
        out_shape=jax.ShapeDtypeStruct((batch, out_pad), jnp.float32),
        in_specs=[_full_spec(a.shape) for a in args],
        out_specs=_full_spec((batch, out_pad)),
        cost_estimate=pl.CostEstimate(
            flops=int(flops),
            transcendentals=int(batch * out_pad + 3 * (H1 + H2 + H3)),
            bytes_accessed=int(param_bytes + io_bytes)),
        compiler_params=pltpu.CompilerParams(vmem_limit_bytes=32 * 1024 * 1024),
    )(*args)

    # slice off the lane padding, then NCHW reshape (same as torch .view)
    return out[:, :out_dim].reshape((-1,) + tuple(img_shape))


# ------------------------- parameter initialization -------------------------

def _torch_linear_init(key, in_f, out_f, in_pad, out_pad, w_dtype=jnp.bfloat16):
    """PyTorch-style Linear init; weight stored (in, out), zero-padded & bf16."""
    kw, kb = jax.random.split(key)
    bound = 1.0 / np.sqrt(in_f)
    w = jax.random.uniform(kw, (in_f, out_f), jnp.float32, -bound, bound)
    b = jax.random.uniform(kb, (out_f,), jnp.float32, -bound, bound)
    w = jnp.pad(w, ((0, in_pad - in_f), (0, out_pad - out_f))).astype(w_dtype)
    b = jnp.pad(b, (0, out_pad - out_f)).reshape(1, out_pad)
    return w, b


def _init_bn(out_f):
    # PyTorch BatchNorm1d default: weight=1, bias=0
    return jnp.ones((1, out_f), jnp.float32), jnp.zeros((1, out_f), jnp.float32)


def init_generator_params(key, img_shape, w_dtype=jnp.bfloat16):
    out_dim = int(np.prod(img_shape))
    out_pad = _round_up(out_dim, 128)          # 784 -> 896 (lane-dense output)
    keys = jax.random.split(key, 6)
    p = {}
    p["noise_w"], p["noise_b"] = _torch_linear_init(
        keys[0], NOISE_DIM, BRANCH_DIM, NOISE_PAD, BRANCH_PAD, w_dtype)
    p["label_w"], p["label_b"] = _torch_linear_init(
        keys[1], LABEL_DIM, BRANCH_DIM, LABEL_PAD, BRANCH_PAD, w_dtype)

    # Linear(200, 256): init as one weight, split rows into noise/label halves
    kw, kb = jax.random.split(keys[2])
    bound = 1.0 / np.sqrt(2 * BRANCH_DIM)
    w1 = jax.random.uniform(kw, (2 * BRANCH_DIM, H1), jnp.float32, -bound, bound)
    b1 = jax.random.uniform(kb, (H1,), jnp.float32, -bound, bound)
    pad_rows = ((0, BRANCH_PAD - BRANCH_DIM), (0, 0))
    p["l1_w_noise"] = jnp.pad(w1[:BRANCH_DIM], pad_rows).astype(w_dtype)
    p["l1_w_label"] = jnp.pad(w1[BRANCH_DIM:], pad_rows).astype(w_dtype)
    p["l1_b"] = b1.reshape(1, H1)
    p["bn1_g"], p["bn1_b"] = _init_bn(H1)

    p["l2_w"], p["l2_b"] = _torch_linear_init(keys[3], H1, H2, H1, H2, w_dtype)
    p["bn2_g"], p["bn2_b"] = _init_bn(H2)
    p["l3_w"], p["l3_b"] = _torch_linear_init(keys[4], H2, H3, H2, H3, w_dtype)
    p["bn3_g"], p["bn3_b"] = _init_bn(H3)
    p["l4_w"], p["l4_b"] = _torch_linear_init(keys[5], H3, out_dim, H3, out_pad, w_dtype)
    return p


# ------------------------------ pure-JAX reference ---------------------------

def generator_forward_ref(params, noise, labels, img_shape):
    out_dim = int(np.prod(img_shape))
    noise_p = jnp.pad(noise, ((0, 0), (0, NOISE_PAD - NOISE_DIM)))
    labels_p = jnp.pad(labels, ((0, 0), (0, LABEL_PAD - LABEL_DIM)))

    a = _lrelu(_dot(noise_p, params["noise_w"]) + params["noise_b"])
    b = _lrelu(_dot(labels_p, params["label_w"]) + params["label_b"])
    h = _dot(a, params["l1_w_noise"]) + _dot(b, params["l1_w_label"]) + params["l1_b"]
    h = _lrelu(_bn(h, params["bn1_g"], params["bn1_b"]))
    h = _lrelu(_bn(_dot(h, params["l2_w"]) + params["l2_b"],
                   params["bn2_g"], params["bn2_b"]))
    h = _lrelu(_bn(_dot(h, params["l3_w"]) + params["l3_b"],
                   params["bn3_g"], params["bn3_b"]))
    img = jnp.tanh(_dot(h, params["l4_w"]) + params["l4_b"])
    return img[:, :out_dim].reshape((-1,) + tuple(img_shape))


# ----------------------------------- main ------------------------------------

if __name__ == "__main__":
    img_shape = (1, 28, 28)   # config.img_shape (MNIST-style)
    batch = 8

    key = jax.random.PRNGKey(0)
    k_params, k_noise, k_labels = jax.random.split(key, 3)

    params = init_generator_params(k_params, img_shape)
    noise = jax.random.normal(k_noise, (batch, NOISE_DIM), jnp.float32)
    label_ids = jax.random.randint(k_labels, (batch,), 0, LABEL_DIM)
    labels = jax.nn.one_hot(label_ids, LABEL_DIM, dtype=jnp.float32)

    out = generator_forward_pallas(params, noise, labels, img_shape)
    out = jax.block_until_ready(out)

    ref = generator_forward_ref(params, noise, labels, img_shape)
    ref = jax.block_until_ready(ref)

    assert out.shape == (batch,) + img_shape, out.shape
    np.testing.assert_allclose(np.asarray(out), np.asarray(ref),
                               rtol=2e-3, atol=2e-3)
    print("KERNEL_OK")
</pallas_src>

<mosaic_0001>
module attributes {stable_mosaic.version = 11 : i64} {
  func.func @generator_kernel(%arg0: memref<8x128xf32, #tpu.memory_space<vmem>>, %arg1: memref<8x128xf32, #tpu.memory_space<vmem>>, %arg2: memref<128x128xbf16, #tpu.memory_space<vmem>>, %arg3: memref<1x128xf32, #tpu.memory_space<vmem>>, %arg4: memref<128x128xbf16, #tpu.memory_space<vmem>>, %arg5: memref<1x128xf32, #tpu.memory_space<vmem>>, %arg6: memref<128x256xbf16, #tpu.memory_space<vmem>>, %arg7: memref<128x256xbf16, #tpu.memory_space<vmem>>, %arg8: memref<1x256xf32, #tpu.memory_space<vmem>>, %arg9: memref<1x256xf32, #tpu.memory_space<vmem>>, %arg10: memref<1x256xf32, #tpu.memory_space<vmem>>, %arg11: memref<256x512xbf16, #tpu.memory_space<vmem>>, %arg12: memref<1x512xf32, #tpu.memory_space<vmem>>, %arg13: memref<1x512xf32, #tpu.memory_space<vmem>>, %arg14: memref<1x512xf32, #tpu.memory_space<vmem>>, %arg15: memref<512x1024xbf16, #tpu.memory_space<vmem>>, %arg16: memref<1x1024xf32, #tpu.memory_space<vmem>>, %arg17: memref<1x1024xf32, #tpu.memory_space<vmem>>, %arg18: memref<1x1024xf32, #tpu.memory_space<vmem>>, %arg19: memref<1024x896xbf16, #tpu.memory_space<vmem>>, %arg20: memref<1x896xf32, #tpu.memory_space<vmem>>, %arg21: memref<8x896xf32, #tpu.memory_space<vmem>>) attributes {dimension_semantics = [], scalar_prefetch = 0 : i64, scratch_operands = 0 : i64, tpu.core_type = #tpu.core_type<tc>} {
    %c0 = arith.constant 0 : index
    %c0_0 = arith.constant 0 : index
    %0 = vector.load %arg0[%c0, %c0_0] : memref<8x128xf32, #tpu.memory_space<vmem>>, vector<8x128xf32>
    %c0_1 = arith.constant 0 : index
    %c0_2 = arith.constant 0 : index
    %1 = vector.load %arg2[%c0_1, %c0_2] : memref<128x128xbf16, #tpu.memory_space<vmem>>, vector<128x128xbf16>
    %2 = arith.truncf %0 : vector<8x128xf32> to vector<8x128xbf16>
    %cst = arith.constant dense<0.000000e+00> : vector<8x128xf32>
    %3 = tpu.matmul %2, %1, %cst {dimension_numbers = #tpu.dot_dimension_numbers<[1], [0], [0], [1], [0, 0, 1, 1], [], []>} : vector<8x128xbf16>, vector<128x128xbf16>, vector<8x128xf32> -> vector<8x128xf32>
    %c0_3 = arith.constant 0 : index
    %c0_4 = arith.constant 0 : index
    %4 = vector.load %arg3[%c0_3, %c0_4] : memref<1x128xf32, #tpu.memory_space<vmem>>, vector<1x128xf32>
    %5 = vector.broadcast %4 : vector<1x128xf32> to vector<8x128xf32>
    %6 = arith.addf %3, %5 : vector<8x128xf32>
    %cst_5 = arith.constant 0.000000e+00 : f32
    %7 = vector.broadcast %cst_5 : f32 to vector<8x128xf32>
    %8 = arith.cmpf ogt, %6, %7 : vector<8x128xf32>
    %cst_6 = arith.constant 2.000000e-01 : f32
    %9 = vector.broadcast %cst_6 : f32 to vector<8x128xf32>
    %10 = arith.mulf %9, %6 : vector<8x128xf32>
    %11 = arith.select %8, %6, %10 : vector<8x128xi1>, vector<8x128xf32>
    %c0_7 = arith.constant 0 : index
    %c0_8 = arith.constant 0 : index
    %12 = vector.load %arg1[%c0_7, %c0_8] : memref<8x128xf32, #tpu.memory_space<vmem>>, vector<8x128xf32>
    %c0_9 = arith.constant 0 : index
    %c0_10 = arith.constant 0 : index
    %13 = vector.load %arg4[%c0_9, %c0_10] : memref<128x128xbf16, #tpu.memory_space<vmem>>, vector<128x128xbf16>
    %14 = arith.truncf %12 : vector<8x128xf32> to vector<8x128xbf16>
    %cst_11 = arith.constant dense<0.000000e+00> : vector<8x128xf32>
    %15 = tpu.matmul %14, %13, %cst_11 {dimension_numbers = #tpu.dot_dimension_numbers<[1], [0], [0], [1], [0, 0, 1, 1], [], []>} : vector<8x128xbf16>, vector<128x128xbf16>, vector<8x128xf32> -> vector<8x128xf32>
    %c0_12 = arith.constant 0 : index
    %c0_13 = arith.constant 0 : index
    %16 = vector.load %arg5[%c0_12, %c0_13] : memref<1x128xf32, #tpu.memory_space<vmem>>, vector<1x128xf32>
    %17 = vector.broadcast %16 : vector<1x128xf32> to vector<8x128xf32>
    %18 = arith.addf %15, %17 : vector<8x128xf32>
    %cst_14 = arith.constant 0.000000e+00 : f32
    %19 = vector.broadcast %cst_14 : f32 to vector<8x128xf32>
    %20 = arith.cmpf ogt, %18, %19 : vector<8x128xf32>
    %cst_15 = arith.constant 2.000000e-01 : f32
    %21 = vector.broadcast %cst_15 : f32 to vector<8x128xf32>
    %22 = arith.mulf %21, %18 : vector<8x128xf32>
    %23 = arith.select %20, %18, %22 : vector<8x128xi1>, vector<8x128xf32>
    %c0_16 = arith.constant 0 : index
    %c0_17 = arith.constant 0 : index
    %24 = vector.load %arg6[%c0_16, %c0_17] : memref<128x256xbf16, #tpu.memory_space<vmem>>, vector<128x256xbf16>
    %25 = arith.truncf %11 : vector<8x128xf32> to vector<8x128xbf16>
    %cst_18 = arith.constant dense<0.000000e+00> : vector<8x256xf32>
    %26 = tpu.matmul %25, %24, %cst_18 {dimension_numbers = #tpu.dot_dimension_numbers<[1], [0], [0], [1], [0, 0, 1, 1], [], []>} : vector<8x128xbf16>, vector<128x256xbf16>, vector<8x256xf32> -> vector<8x256xf32>
    %c0_19 = arith.constant 0 : index
    %c0_20 = arith.constant 0 : index
    %27 = vector.load %arg7[%c0_19, %c0_20] : memref<128x256xbf16, #tpu.memory_space<vmem>>, vector<128x256xbf16>
    %28 = arith.truncf %23 : vector<8x128xf32> to vector<8x128xbf16>
    %cst_21 = arith.constant dense<0.000000e+00> : vector<8x256xf32>
    %29 = tpu.matmul %28, %27, %cst_21 {dimension_numbers = #tpu.dot_dimension_numbers<[1], [0], [0], [1], [0, 0, 1, 1], [], []>} : vector<8x128xbf16>, vector<128x256xbf16>, vector<8x256xf32> -> vector<8x256xf32>
    %30 = arith.addf %26, %29 : vector<8x256xf32>
    %c0_22 = arith.constant 0 : index
    %c0_23 = arith.constant 0 : index
    %31 = vector.load %arg8[%c0_22, %c0_23] : memref<1x256xf32, #tpu.memory_space<vmem>>, vector<1x256xf32>
    %32 = vector.broadcast %31 : vector<1x256xf32> to vector<8x256xf32>
    %33 = arith.addf %30, %32 : vector<8x256xf32>
    %c0_24 = arith.constant 0 : index
    %c0_25 = arith.constant 0 : index
    %34 = vector.load %arg9[%c0_24, %c0_25] : memref<1x256xf32, #tpu.memory_space<vmem>>, vector<1x256xf32>
    %c0_26 = arith.constant 0 : index
    %c0_27 = arith.constant 0 : index
    %35 = vector.load %arg10[%c0_26, %c0_27] : memref<1x256xf32, #tpu.memory_space<vmem>>, vector<1x256xf32>
    %cst_28 = arith.constant dense<0.000000e+00> : vector<256xf32>
    %36 = vector.multi_reduction <add>, %33, %cst_28 [0] : vector<8x256xf32> to vector<256xf32>
    %37 = vector.shape_cast %36 : vector<256xf32> to vector<1x256xf32>
    %cst_29 = arith.constant 8.000000e+00 : f32
    %38 = vector.broadcast %cst_29 : f32 to vector<1x256xf32>
    %39 = arith.divf %37, %38 : vector<1x256xf32>
    %40 = vector.broadcast %39 : vector<1x256xf32> to vector<8x256xf32>
    %41 = arith.subf %33, %40 : vector<8x256xf32>
    %42 = arith.mulf %41, %41 : vector<8x256xf32>
    %cst_30 = arith.constant dense<0.000000e+00> : vector<256xf32>
    %43 = vector.multi_reduction <add>, %42, %cst_30 [0] : vector<8x256xf32> to vector<256xf32>
    %44 = vector.shape_cast %43 : vector<256xf32> to vector<1x256xf32>
    %cst_31 = arith.constant 8.000000e+00 : f32
    %45 = vector.broadcast %cst_31 : f32 to vector<1x256xf32>
    %46 = arith.divf %44, %45 : vector<1x256xf32>
    %47 = vector.broadcast %39 : vector<1x256xf32> to vector<8x256xf32>
    %48 = arith.subf %33, %47 : vector<8x256xf32>
    %cst_32 = arith.constant 8.000000e-01 : f32
    %49 = vector.broadcast %cst_32 : f32 to vector<1x256xf32>
    %50 = arith.addf %46, %49 : vector<1x256xf32>
    %51 = math.rsqrt %50 : vector<1x256xf32>
    %52 = vector.broadcast %51 : vector<1x256xf32> to vector<8x256xf32>
    %53 = arith.mulf %48, %52 : vector<8x256xf32>
    %54 = vector.broadcast %34 : vector<1x256xf32> to vector<8x256xf32>
    %55 = arith.mulf %53, %54 : vector<8x256xf32>
    %56 = vector.broadcast %35 : vector<1x256xf32> to vector<8x256xf32>
    %57 = arith.addf %55, %56 : vector<8x256xf32>
    %cst_33 = arith.constant 0.000000e+00 : f32
    %58 = vector.broadcast %cst_33 : f32 to vector<8x256xf32>
    %59 = arith.cmpf ogt, %57, %58 : vector<8x256xf32>
    %cst_34 = arith.constant 2.000000e-01 : f32
    %60 = vector.broadcast %cst_34 : f32 to vector<8x256xf32>
    %61 = arith.mulf %60, %57 : vector<8x256xf32>
    %62 = arith.select %59, %57, %61 : vector<8x256xi1>, vector<8x256xf32>
    %c0_35 = arith.constant 0 : index
    %c0_36 = arith.constant 0 : index
    %63 = vector.load %arg11[%c0_35, %c0_36] : memref<256x512xbf16, #tpu.memory_space<vmem>>, vector<256x512xbf16>
    %64 = arith.truncf %62 : vector<8x256xf32> to vector<8x256xbf16>
    %cst_37 = arith.constant dense<0.000000e+00> : vector<8x512xf32>
    %65 = tpu.matmul %64, %63, %cst_37 {dimension_numbers = #tpu.dot_dimension_numbers<[1], [0], [0], [1], [0, 0, 1, 1], [], []>} : vector<8x256xbf16>, vector<256x512xbf16>, vector<8x512xf32> -> vector<8x512xf32>
    %c0_38 = arith.constant 0 : index
    %c0_39 = arith.constant 0 : index
    %66 = vector.load %arg12[%c0_38, %c0_39] : memref<1x512xf32, #tpu.memory_space<vmem>>, vector<1x512xf32>
    %67 = vector.broadcast %66 : vector<1x512xf32> to vector<8x512xf32>
    %68 = arith.addf %65, %67 : vector<8x512xf32>
    %c0_40 = arith.constant 0 : index
    %c0_41 = arith.constant 0 : index
    %69 = vector.load %arg13[%c0_40, %c0_41] : memref<1x512xf32, #tpu.memory_space<vmem>>, vector<1x512xf32>
    %c0_42 = arith.constant 0 : index
    %c0_43 = arith.constant 0 : index
    %70 = vector.load %arg14[%c0_42, %c0_43] : memref<1x512xf32, #tpu.memory_space<vmem>>, vector<1x512xf32>
    %cst_44 = arith.constant dense<0.000000e+00> : vector<512xf32>
    %71 = vector.multi_reduction <add>, %68, %cst_44 [0] : vector<8x512xf32> to vector<512xf32>
    %72 = vector.shape_cast %71 : vector<512xf32> to vector<1x512xf32>
    %cst_45 = arith.constant 8.000000e+00 : f32
    %73 = vector.broadcast %cst_45 : f32 to vector<1x512xf32>
    %74 = arith.divf %72, %73 : vector<1x512xf32>
    %75 = vector.broadcast %74 : vector<1x512xf32> to vector<8x512xf32>
    %76 = arith.subf %68, %75 : vector<8x512xf32>
    %77 = arith.mulf %76, %76 : vector<8x512xf32>
    %cst_46 = arith.constant dense<0.000000e+00> : vector<512xf32>
    %78 = vector.multi_reduction <add>, %77, %cst_46 [0] : vector<8x512xf32> to vector<512xf32>
    %79 = vector.shape_cast %78 : vector<512xf32> to vector<1x512xf32>
    %cst_47 = arith.constant 8.000000e+00 : f32
    %80 = vector.broadcast %cst_47 : f32 to vector<1x512xf32>
    %81 = arith.divf %79, %80 : vector<1x512xf32>
    %82 = vector.broadcast %74 : vector<1x512xf32> to vector<8x512xf32>
    %83 = arith.subf %68, %82 : vector<8x512xf32>
    %cst_48 = arith.constant 8.000000e-01 : f32
    %84 = vector.broadcast %cst_48 : f32 to vector<1x512xf32>
    %85 = arith.addf %81, %84 : vector<1x512xf32>
    %86 = math.rsqrt %85 : vector<1x512xf32>
    %87 = vector.broadcast %86 : vector<1x512xf32> to vector<8x512xf32>
    %88 = arith.mulf %83, %87 : vector<8x512xf32>
    %89 = vector.broadcast %69 : vector<1x512xf32> to vector<8x512xf32>
    %90 = arith.mulf %88, %89 : vector<8x512xf32>
    %91 = vector.broadcast %70 : vector<1x512xf32> to vector<8x512xf32>
    %92 = arith.addf %90, %91 : vector<8x512xf32>
    %cst_49 = arith.constant 0.000000e+00 : f32
    %93 = vector.broadcast %cst_49 : f32 to vector<8x512xf32>
    %94 = arith.cmpf ogt, %92, %93 : vector<8x512xf32>
    %cst_50 = arith.constant 2.000000e-01 : f32
    %95 = vector.broadcast %cst_50 : f32 to vector<8x512xf32>
    %96 = arith.mulf %95, %92 : vector<8x512xf32>
    %97 = arith.select %94, %92, %96 : vector<8x512xi1>, vector<8x512xf32>
    %c0_51 = arith.constant 0 : index
    %c0_52 = arith.constant 0 : index
    %98 = vector.load %arg15[%c0_51, %c0_52] : memref<512x1024xbf16, #tpu.memory_space<vmem>>, vector<512x1024xbf16>
    %99 = arith.truncf %97 : vector<8x512xf32> to vector<8x512xbf16>
    %cst_53 = arith.constant dense<0.000000e+00> : vector<8x1024xf32>
    %100 = tpu.matmul %99, %98, %cst_53 {dimension_numbers = #tpu.dot_dimension_numbers<[1], [0], [0], [1], [0, 0, 1, 1], [], []>} : vector<8x512xbf16>, vector<512x1024xbf16>, vector<8x1024xf32> -> vector<8x1024xf32>
    %c0_54 = arith.constant 0 : index
    %c0_55 = arith.constant 0 : index
    %101 = vector.load %arg16[%c0_54, %c0_55] : memref<1x1024xf32, #tpu.memory_space<vmem>>, vector<1x1024xf32>
    %102 = vector.broadcast %101 : vector<1x1024xf32> to vector<8x1024xf32>
    %103 = arith.addf %100, %102 : vector<8x1024xf32>
    %c0_56 = arith.constant 0 : index
    %c0_57 = arith.constant 0 : index
    %104 = vector.load %arg17[%c0_56, %c0_57] : memref<1x1024xf32, #tpu.memory_space<vmem>>, vector<1x1024xf32>
    %c0_58 = arith.constant 0 : index
    %c0_59 = arith.constant 0 : index
    %105 = vector.load %arg18[%c0_58, %c0_59] : memref<1x1024xf32, #tpu.memory_space<vmem>>, vector<1x1024xf32>
    %cst_60 = arith.constant dense<0.000000e+00> : vector<1024xf32>
    %106 = vector.multi_reduction <add>, %103, %cst_60 [0] : vector<8x1024xf32> to vector<1024xf32>
    %107 = vector.shape_cast %106 : vector<1024xf32> to vector<1x1024xf32>
    %cst_61 = arith.constant 8.000000e+00 : f32
    %108 = vector.broadcast %cst_61 : f32 to vector<1x1024xf32>
    %109 = arith.divf %107, %108 : vector<1x1024xf32>
    %110 = vector.broadcast %109 : vector<1x1024xf32> to vector<8x1024xf32>
    %111 = arith.subf %103, %110 : vector<8x1024xf32>
    %112 = arith.mulf %111, %111 : vector<8x1024xf32>
    %cst_62 = arith.constant dense<0.000000e+00> : vector<1024xf32>
    %113 = vector.multi_reduction <add>, %112, %cst_62 [0] : vector<8x1024xf32> to vector<1024xf32>
    %114 = vector.shape_cast %113 : vector<1024xf32> to vector<1x1024xf32>
    %cst_63 = arith.constant 8.000000e+00 : f32
    %115 = vector.broadcast %cst_63 : f32 to vector<1x1024xf32>
    %116 = arith.divf %114, %115 : vector<1x1024xf32>
    %117 = vector.broadcast %109 : vector<1x1024xf32> to vector<8x1024xf32>
    %118 = arith.subf %103, %117 : vector<8x1024xf32>
    %cst_64 = arith.constant 8.000000e-01 : f32
    %119 = vector.broadcast %cst_64 : f32 to vector<1x1024xf32>
    %120 = arith.addf %116, %119 : vector<1x1024xf32>
    %121 = math.rsqrt %120 : vector<1x1024xf32>
    %122 = vector.broadcast %121 : vector<1x1024xf32> to vector<8x1024xf32>
    %123 = arith.mulf %118, %122 : vector<8x1024xf32>
    %124 = vector.broadcast %104 : vector<1x1024xf32> to vector<8x1024xf32>
    %125 = arith.mulf %123, %124 : vector<8x1024xf32>
    %126 = vector.broadcast %105 : vector<1x1024xf32> to vector<8x1024xf32>
    %127 = arith.addf %125, %126 : vector<8x1024xf32>
    %cst_65 = arith.constant 0.000000e+00 : f32
    %128 = vector.broadcast %cst_65 : f32 to vector<8x1024xf32>
    %129 = arith.cmpf ogt, %127, %128 : vector<8x1024xf32>
    %cst_66 = arith.constant 2.000000e-01 : f32
    %130 = vector.broadcast %cst_66 : f32 to vector<8x1024xf32>
    %131 = arith.mulf %130, %127 : vector<8x1024xf32>
    %132 = arith.select %129, %127, %131 : vector<8x1024xi1>, vector<8x1024xf32>
    %c0_67 = arith.constant 0 : index
    %c0_68 = arith.constant 0 : index
    %133 = vector.load %arg19[%c0_67, %c0_68] : memref<1024x896xbf16, #tpu.memory_space<vmem>>, vector<1024x896xbf16>
    %134 = arith.truncf %132 : vector<8x1024xf32> to vector<8x1024xbf16>
    %cst_69 = arith.constant dense<0.000000e+00> : vector<8x896xf32>
    %135 = tpu.matmul %134, %133, %cst_69 {dimension_numbers = #tpu.dot_dimension_numbers<[1], [0], [0], [1], [0, 0, 1, 1], [], []>} : vector<8x1024xbf16>, vector<1024x896xbf16>, vector<8x896xf32> -> vector<8x896xf32>
    %c0_70 = arith.constant 0 : index
    %c0_71 = arith.constant 0 : index
    %136 = vector.load %arg20[%c0_70, %c0_71] : memref<1x896xf32, #tpu.memory_space<vmem>>, vector<1x896xf32>
    %137 = vector.broadcast %136 : vector<1x896xf32> to vector<8x896xf32>
    %138 = arith.addf %135, %137 : vector<8x896xf32>
    %139 = math.tanh %138 : vector<8x896xf32>
    %c0_72 = arith.constant 0 : index
    %c0_73 = arith.constant 0 : index
    %140 = vector.load %arg21[%c0_72, %c0_73] : memref<8x896xf32, #tpu.memory_space<vmem>>, vector<8x896xf32>
    tpu.vector_store %arg21[%c0_72, %c0_73], %139 {strides = array<i32>} : memref<8x896xf32, #tpu.memory_space<vmem>>, vector<8x896xf32>,
    return
  }
}

</mosaic_0001>

<bundles_post_ra>
// kernel: tpu_custom_call.1
= control target key start
LH: loop header
LB: loop body
LE: loop exit
PB: predicated region body
PF: predicated region fallthrough
CT: control target
= control target key end

     0   :  { %s12887_s0 = inlined_call_operand.hbm [shape: f32[8,128], index: 0, kind: input, shape index: {}]   ;;  %s12888_s1 = inlined_call_operand.hbm [shape: f32[8,128], index: 1, kind: input, shape index: {}]   ;;  %s12889_s2 = inlined_call_operand.hbm [shape: bf16[128,128], index: 2, kind: input, shape index: {}]   ;;  %s12890_s3 = inlined_call_operand.hbm [shape: f32[1,128], index: 3, kind: input, shape index: {}]   ;;  %s12891_s4 = inlined_call_operand.hbm [shape: bf16[128,128], index: 4, kind: input, shape index: {}]   ;;  %s12892_s5 = inlined_call_operand.hbm [shape: f32[1,128], index: 5, kind: input, shape index: {}]   ;;  %s12893_s6 = inlined_call_operand.hbm [shape: bf16[128,256], index: 6, kind: input, shape index: {}]   ;;  %s12894_s7 = inlined_call_operand.hbm [shape: bf16[128,256], index: 7, kind: input, shape index: {}]   ;;  %s12895_s8 = inlined_call_operand.hbm [shape: f32[1,256], index: 8, kind: input, shape index: {}]   ;;  %s12896_s9 = inlined_call_operand.hbm [shape: f32[1,256], index: 9, kind: input, shape index: {}]   ;;  %s12897_s10 = inlined_call_operand.hbm [shape: f32[1,256], index: 10, kind: input, shape index: {}]   ;;  %s12898_s11 = inlined_call_operand.hbm [shape: bf16[256,512], index: 11, kind: input, shape index: {}]   ;;  %s12899_s12 = inlined_call_operand.hbm [shape: f32[1,512], index: 12, kind: input, shape index: {}]   ;;  %s12900_s13 = inlined_call_operand.hbm [shape: f32[1,512], index: 13, kind: input, shape index: {}]   ;;  %s12901_s14 = inlined_call_operand.hbm [shape: f32[1,512], index: 14, kind: input, shape index: {}]   ;;  %s12902_s15 = inlined_call_operand.hbm [shape: bf16[512,1024], index: 15, kind: input, shape index: {}]   ;;  %s12903_s16 = inlined_call_operand.hbm [shape: f32[1,1024], index: 16, kind: input, shape index: {}]   ;;  %s12904_s17 = inlined_call_operand.hbm [shape: f32[1,1024], index: 17, kind: input, shape index: {}]   ;;  %s12905_s18 = inlined_call_operand.hbm [shape: f32[1,1024], index: 18, kind: input, shape index: {}]   ;;  %s12906_s19 = inlined_call_operand.hbm [shape: bf16[1024,896], index: 19, kind: input, shape index: {}]   ;;  %s12907_s20 = inlined_call_operand.hbm [shape: f32[1,896], index: 20, kind: input, shape index: {}]   ;;  %s12908_s21 = inlined_call_operand.hbm [shape: f32[8,896], index: 21, kind: output, shape index: {}]  }
   0x1   :  { %12909 = sst [smem:[#allocation48_spill]] %s12887_s0 }
   0x2   :  { %12910 = sst [smem:[#allocation49_spill]] %s12888_s1 }
   0x3   :  { %12911 = sst [smem:[#allocation50_spill]] %s12889_s2 }
   0x4   :  { %12912 = sst [smem:[#allocation51_spill]] %s12890_s3 }
   0x5   :  { %12913 = sst [smem:[#allocation52_spill]] %s12891_s4 }
   0x6   :  { %12914 = sst [smem:[#allocation53_spill]] %s12892_s5 }
   0x7   :  { %12915 = sst [smem:[#allocation54_spill]] %s12907_s20 }
   0x8   :  { %12916 = sst [smem:[#allocation55_spill]] %s12908_s21 }
   0x9   :  { %26 = vsyncpa [#allocation3], 0 }
   0xa   :  { %27 = vsyncpa [#allocation6], 0 }
   0xb   :  { %28 = vsyncpa [#allocation9], 0 }
   0xc   :  { %29 = vsyncpa [#allocation12], 0 }
   0xd   :  { %30 = vsyncpa [#allocation15], 0 }
   0xe   :  { %31 = vsyncpa [#allocation18], 0 }
   0xf   :  { %32 = vsyncpa [#allocation21], 0 }
  0x10   :  { %33 = vsyncpa [#allocation24], 0 }
  0x11   :  { %34 = vsyncpa [#allocation27], 0 }
  0x12   :  { %35 = vsyncpa [#allocation30], 0 }
  0x13   :  { %36 = vsyncpa [#allocation33], 0  ;;  %s12917_s26 = sld [smem:[#allocation49_spill]] }
  0x19   :  { %s54_s27 = sshll.u32 %s12917_s26, 4  ;;  %s55_s27 = int_to_ptr.hbm [resolvable:$true] %s54_s27 }
  0x1a   :  { %37 = vsyncpa [#allocation4], 0  ;;  %s12129_s3 = smov [#allocation5]   ;;  %s12918_s4 = sld [smem:[#allocation51_spill]] }
  0x1b   :  { %s56_s28 = sshll.u32 %s12129_s3, 4  ;;  %s12130_s5 = smov [#allocation8]   ;;  %s57_s28 = int_to_ptr.vmem [resolvable:$true] %s56_s28 }
  0x1c   :  { %59 = dma.hbm_to_vmem [thread:$0]  %s55_s27, 128, %s57_s28, [#allocation6]  }
  0x1d   :  { %s80_s22 = sshll.u32 %s12130_s5, 4  ;;  %s12919_s24 = sld [smem:[#allocation53_spill]]  ;;  %s81_s22 = int_to_ptr.vmem [resolvable:$true] %s80_s22 }
  0x1e   :  { %s12131_s2 = smov [#allocation11]   ;;  %s125_s20 = sshll.u32 %s12894_s7, 4  ;;  %s126_s20 = int_to_ptr.hbm [resolvable:$true] %s125_s20 }
  0x1f   :  { %s104_s25 = sshll.u32 %s12131_s2, 4  ;;  %s12132_s27 = smov [#allocation14]   ;;  %s105_s25 = int_to_ptr.vmem [resolvable:$true] %s104_s25 }
  0x20   :  { %s78_s30 = sshll.u32 %s12918_s4, 4  ;;  %s127_s28 = sshll.u32 %s12132_s27, 4  ;;  %s79_s30 = int_to_ptr.hbm [resolvable:$true] %s78_s30  ;;  %s128_s28 = int_to_ptr.vmem [resolvable:$true] %s127_s28 }
  0x21   :  { %83 = dma.hbm_to_vmem [thread:$0]  %s79_s30, 16, %s81_s22, [#allocation9]  }
  0x22   :  { %s150_s4 = sshll.u32 %s12896_s9, 4  ;;  %s12133_s5 = smov 128   ;;  %s151_s4 = int_to_ptr.hbm [resolvable:$true] %s150_s4 }
  0x23   :  { %s102_s21 = sshll.u32 %s12919_s24, 4  ;;  %s12134_s23 = smov 8   ;;  %s103_s21 = int_to_ptr.hbm [resolvable:$true] %s102_s21 }
  0x24   :  { %107 = dma.hbm_to_vmem [thread:$0]  %s103_s21, 16, %s105_s25, [#allocation12]  }
  0x25   :  { %133 = dma.hbm_to_vmem [thread:$0]  %s126_s20, 2048, %s128_s28, [#allocation15], %s12133_s5, %s12133_s5, %s12134_s23  }
  0x26   :  { %s171_s7 = sshll.u32 %s12898_s11, 4  ;;  %s12135_s21 = smov [#allocation17]   ;;  %s172_s7 = int_to_ptr.hbm [resolvable:$true] %s171_s7 }
  0x27   :  { %s152_s1 = sshll.u32 %s12135_s21, 4  ;;  %s12136_s24 = smov [#allocation20]   ;;  %s153_s1 = int_to_ptr.vmem [resolvable:$true] %s152_s1 }
  0x28   :  { %155 = dma.hbm_to_vmem [thread:$0]  %s151_s4, 32, %s153_s1, [#allocation18]  }
  0x29   :  { %s173_s2 = sshll.u32 %s12136_s24, 4  ;;  %s12137_s9 = smov 256   ;;  %s174_s2 = int_to_ptr.vmem [resolvable:$true] %s173_s2 }
  0x2a   :  { %s12138_s25 = smov 16   ;;  %s196_s27 = sshll.u32 %s12900_s13, 4  ;;  %s197_s27 = int_to_ptr.hbm [resolvable:$true] %s196_s27 }
  0x2b   :  { %179 = dma.hbm_to_vmem [thread:$0]  %s172_s7, 8192, %s174_s2, [#allocation21], %s12137_s9, %s12137_s9, %s12138_s25  }
  0x2c   :  { %s12139_s20 = smov [#allocation23]   ;;  %s217_s0 = sshll.u32 %s12902_s15, 4  ;;  %s218_s0 = int_to_ptr.hbm [resolvable:$true] %s217_s0 }
  0x2d   :  { %s198_s28 = sshll.u32 %s12139_s20, 4  ;;  %s12140_s4 = smov [#allocation26]   ;;  %s199_s28 = int_to_ptr.vmem [resolvable:$true] %s198_s28 }
  0x2e   :  { %201 = dma.hbm_to_vmem [thread:$0]  %s197_s27, 64, %s199_s28, [#allocation24]  }
  0x2f   :  { %s219_s30 = sshll.u32 %s12140_s4, 4  ;;  %s12141_s22 = smov 512   ;;  %s220_s30 = int_to_ptr.vmem [resolvable:$true] %s219_s30 }
  0x30   :  { %s12142_s21 = smov 32   ;;  %s242_s13 = sshll.u32 %s12904_s17, 4  ;;  %s243_s13 = int_to_ptr.hbm [resolvable:$true] %s242_s13 }
  0x31   :  { %225 = dma.hbm_to_vmem [thread:$0]  %s218_s0, 32768, %s220_s30, [#allocation27], %s12141_s22, %s12141_s22, %s12142_s21  }
  0x32   :  { %s12143_s24 = smov [#allocation29]   ;;  %s263_s15 = sshll.u32 %s12906_s19, 4  ;;  %s264_s15 = int_to_ptr.hbm [resolvable:$true] %s263_s15 }
  0x33   :  { %s244_s2 = sshll.u32 %s12143_s24, 4  ;;  %s12144_s26 = smov [#allocation32]   ;;  %s245_s2 = int_to_ptr.vmem [resolvable:$true] %s244_s2 }
  0x34   :  { %247 = dma.hbm_to_vmem [thread:$0]  %s243_s13, 128, %s245_s2, [#allocation30]  }
  0x35   :  { %s265_s3 = sshll.u32 %s12144_s26, 4  ;;  %s12145_s27 = smov 448   ;;  %s266_s3 = int_to_ptr.vmem [resolvable:$true] %s265_s3 }
  0x36   :  { %s12146_s20 = smov 28   ;;  %s12920_s29 = sld [smem:[#allocation48_spill]] }
  0x37   :  { %271 = dma.hbm_to_vmem [thread:$0]  %s264_s15, 57344, %s266_s3, [#allocation33], %s12145_s27, %s12145_s27, %s12146_s20  }
  0x38   :  { %s12147_s0 = smov [#allocation2]   ;;  %s12921_s21 = sld [smem:[#allocation50_spill]] }
  0x39   :  { %s45_s4 = sshll.u32 %s12147_s0, 4  ;;  %s12148_s7 = smov [#allocation7]   ;;  %s46_s4 = int_to_ptr.vmem [resolvable:$true] %s45_s4 }
  0x3a   :  { %s66_s1 = sshll.u32 %s12148_s7, 4  ;;  %s12149_s13 = smov 64   ;;  %s67_s1 = int_to_ptr.vmem [resolvable:$true] %s66_s1 }
  0x3b   :  { %s12150_s24 = smov 4   ;;  %s12922_s25 = sld [smem:[#allocation52_spill]] }
  0x3c   :  { %s43_s17 = sshll.u32 %s12920_s29, 4  ;;  %s12151_s26 = smov [#allocation10]   ;;  %s44_s17 = int_to_ptr.hbm [resolvable:$true] %s43_s17 }
  0x3d   :  { %48 = dma.hbm_to_vmem [thread:$0]  %s44_s17, 128, %s46_s4, [#allocation3]  }
  0x3e   :  { %s64_s19 = sshll.u32 %s12921_s21, 4  ;;  %s90_s3 = sshll.u32 %s12151_s26, 4  ;;  %s65_s19 = int_to_ptr.hbm [resolvable:$true] %s64_s19  ;;  %s91_s3 = int_to_ptr.vmem [resolvable:$true] %s90_s3 }
  0x3f   :  { %72 = dma.hbm_to_vmem [thread:$0]  %s65_s19, 1024, %s67_s1, [#allocation6], %s12149_s13, %s12149_s13, %s12150_s24  }
  0x40   :  { %s112_s28 = sshll.u32 %s12893_s6, 4  ;;  %s12152_s11 = smov [#allocation13]   ;;  %s113_s28 = int_to_ptr.hbm [resolvable:$true] %s112_s28 }
  0x41   :  { %s88_s15 = sshll.u32 %s12922_s25, 4  ;;  %s114_s29 = sshll.u32 %s12152_s11, 4  ;;  %s89_s15 = int_to_ptr.hbm [resolvable:$true] %s88_s15  ;;  %s115_s29 = int_to_ptr.vmem [resolvable:$true] %s114_s29 }
  0x42   :  { %96 = dma.hbm_to_vmem [thread:$0]  %s89_s15, 1024, %s91_s3, [#allocation9], %s12149_s13, %s12149_s13, %s12150_s24  }
  0x43   :  { %s139_s4 = sshll.u32 %s12895_s8, 4  ;;  %s161_s21 = sshll.u32 %s12897_s10, 4  ;;  %s140_s4 = int_to_ptr.hbm [resolvable:$true] %s139_s4  ;;  %s162_s21 = int_to_ptr.hbm [resolvable:$true] %s161_s21 }
  0x44   :  { %120 = dma.hbm_to_vmem [thread:$0]  %s113_s28, 2048, %s115_s29, [#allocation12], %s12133_s5, %s12133_s5, %s12134_s23  }
  0x45   :  { %s12153_s19 = smov [#allocation16]   ;;  %s12154_s7 = smov [#allocation19]  }
  0x46   :  { %s141_s6 = sshll.u32 %s12153_s19, 4  ;;  %s163_s1 = sshll.u32 %s12154_s7, 4  ;;  %s142_s6 = int_to_ptr.vmem [resolvable:$true] %s141_s6  ;;  %s164_s1 = int_to_ptr.vmem [resolvable:$true] %s163_s1 }
  0x47   :  { %144 = dma.hbm_to_vmem [thread:$0]  %s140_s4, 32, %s142_s6, [#allocation15]  }
  0x48   :  { %s185_s8 = sshll.u32 %s12899_s12, 4  ;;  %s207_s23 = sshll.u32 %s12901_s14, 4  ;;  %s186_s8 = int_to_ptr.hbm [resolvable:$true] %s185_s8  ;;  %s208_s23 = int_to_ptr.hbm [resolvable:$true] %s207_s23 }
  0x49   :  { %166 = dma.hbm_to_vmem [thread:$0]  %s162_s21, 32, %s164_s1, [#allocation18]  }
  0x4a   :  { %s12155_s9 = smov [#allocation22]   ;;  %s12156_s25 = smov [#allocation25]  }
  0x4b   :  { %s187_s10 = sshll.u32 %s12155_s9, 4  ;;  %s209_s15 = sshll.u32 %s12156_s25, 4  ;;  %s188_s10 = int_to_ptr.vmem [resolvable:$true] %s187_s10  ;;  %s210_s15 = int_to_ptr.vmem [resolvable:$true] %s209_s15 }
  0x4c   :  { %190 = dma.hbm_to_vmem [thread:$0]  %s186_s8, 64, %s188_s10, [#allocation21]  }
  0x4d   :  { %s231_s27 = sshll.u32 %s12903_s16, 4  ;;  %s253_s28 = sshll.u32 %s12905_s18, 4  ;;  %s232_s27 = int_to_ptr.hbm [resolvable:$true] %s231_s27  ;;  %s254_s28 = int_to_ptr.hbm [resolvable:$true] %s253_s28 }
  0x4e   :  { %212 = dma.hbm_to_vmem [thread:$0]  %s208_s23, 64, %s210_s15, [#allocation24]  }
  0x4f   :  { %s12157_s11 = smov [#allocation28]   ;;  %s12158_s29 = smov [#allocation31]  }
  0x50   :  { %s233_s14 = sshll.u32 %s12157_s11, 4  ;;  %s255_s17 = sshll.u32 %s12158_s29, 4  ;;  %s234_s14 = int_to_ptr.vmem [resolvable:$true] %s233_s14  ;;  %s256_s17 = int_to_ptr.vmem [resolvable:$true] %s255_s17 }
  0x51   :  { %236 = dma.hbm_to_vmem [thread:$0]  %s232_s27, 128, %s234_s14, [#allocation27]  }
  0x52   :  { %s12923_s30 = sld [smem:[#allocation54_spill]]  ;;  %s12159_s16 = smov [#allocation34]  }
  0x53   :  { %258 = dma.hbm_to_vmem [thread:$0]  %s254_s28, 128, %s256_s17, [#allocation30]  }
  0x54   :  { %s279_s21 = sshll.u32 %s12159_s16, 4  ;;  %s280_s21 = int_to_ptr.vmem [resolvable:$true] %s279_s21 }
  0x58   :  { %s277_s22 = sshll.u32 %s12923_s30, 4  ;;  %s278_s22 = int_to_ptr.hbm [resolvable:$true] %s277_s22 }
  0x59   :  { %282 = dma.hbm_to_vmem [thread:$0]  %s278_s22, 112, %s280_s21, [#allocation33]  }
  0x5a   :  { %12105 = dma.done.wait [#allocation3], 128  }
  0x5b   :  { %12106 = vsyncadd [#allocation3], 4294967168 }
  0x5c   :  { %12107 = dma.done.wait [#allocation6], 1152  }
  0x5d   :  { %12108 = vsyncadd [#allocation6], 4294966144 }
  0x5e   :  { %12109 = dma.done.wait [#allocation9], 1040  }
  0x5f   :  { %12110 = vsyncadd [#allocation9], 4294966256 }
  0x60   :  { %12111 = dma.done.wait [#allocation12], 2064  }
  0x61   :  { %12112 = vsyncadd [#allocation12], 4294965232 }
  0x62   :  { %12113 = dma.done.wait [#allocation15], 2080  }
  0x63   :  { %12114 = vsyncadd [#allocation15], 4294965216 }
  0x64   :  { %12115 = dma.done.wait [#allocation18], 64  }
  0x65   :  { %12116 = vsyncadd [#allocation18], 4294967232 }
  0x66   :  { %12117 = dma.done.wait [#allocation21], 8256  }
  0x67   :  { %12118 = vsyncadd [#allocation21], 4294959040 }
  0x68   :  { %12119 = dma.done.wait [#allocation24], 128  }
  0x69   :  { %12120 = vsyncadd [#allocation24], 4294967168 }
  0x6a   :  { %12121 = dma.done.wait [#allocation27], 32896  }
  0x6b   :  { %12122 = vsyncadd [#allocation27], 4294934400 }
  0x6c   :  { %12123 = dma.done.wait [#allocation30], 256  }
  0x6d   :  { %12124 = vsyncadd [#allocation30], 4294967040 }
  0x6e   :  { %12125 = dma.done.wait [#allocation33], 57456  }
  0x6f   :  { %12126 = vsyncadd [#allocation33], 4294909840  ;;  %v10684_v0 = vld [vmem:[#allocation7 + $0x38] sm:$0xff]  ;;  %v10683_v2 = vld [vmem:[#allocation7 + $0x30] sm:$0xff]  ;;  %s12161_s18 = smov [#allocation35]   ;;  %s12924_s1 = sld [smem:[#allocation55_spill]] }
  0x70   :  { %v10692_v1 = vld [vmem:[#allocation10 + $0x38] sm:$0xff]  ;;  %437 = vmatpush.bf16.msra.mxu0 %v10684_v0  ;;  %v10691_v3 = vld [vmem:[#allocation10 + $0x30] sm:$0xff]  ;;  %v10682_v4 = vld [vmem:[#allocation7 + $0x28] sm:$0xff]  ;;  %s7391_s19 = sshll.u32 %s12161_s18, 4  ;;  %s7392_s19 = int_to_ptr.vmem [resolvable:$true] %s7391_s19 }
  0x71   :  { %523 = vmatpush.bf16.msra.mxu1 %v10692_v1  ;;  %v10690_v5 = vld [vmem:[#allocation10 + $0x28] sm:$0xff]  ;;  %v7535_v6 = vld [vmem:[#allocation14 + $0x70] sm:$0xf]  ;;  %v10724_v7 = vld [vmem:[#allocation14 + $0x74] sm:$0xf0] }
  0x72   :  { %v10723_v8 = vld [vmem:[#allocation14 + $0x74] sm:$0xf]  ;;  %v7536_v9 = vor.u32 %v10724_v7, %v7535_v6  ;;  %v7537_v10 = vld [vmem:[#allocation14 + $0x78] sm:$0xf0]  ;;  %v7527_v12 = vld [vmem:[#allocation14 + $0x60] sm:$0xf] }
  0x73   :  { %v7540_v11 = vor.u32 %v10723_v8, %v7537_v10  ;;  %v10722_v13 = vld [vmem:[#allocation14 + $0x64] sm:$0xf0]  ;;  %v10721_v14 = vld [vmem:[#allocation14 + $0x64] sm:$0xf]  ;;  %v7529_v15 = vld [vmem:[#allocation14 + $0x68] sm:$0xf0] }
  0x74   :  { %438 = vmatpush.bf16.msra.mxu0 %v10683_v2  ;;  %653 = vmatpush.bf16.msra.mxu2 %v7536_v9  ;;  %v10681_v16 = vld [vmem:[#allocation7 + $0x20] sm:$0xff]  ;;  %v7528_v18 = vor.u32 %v10722_v13, %v7527_v12  ;;  %v7532_v19 = vor.u32 %v10721_v14, %v7529_v15  ;;  %v7519_v20 = vld [vmem:[#allocation14 + $0x50] sm:$0xf]  ;;  %v10720_v21 = vld [vmem:[#allocation14 + $0x54] sm:$0xf0] }
  0x75   :  { %524 = vmatpush.bf16.msra.mxu1 %v10691_v3  ;;  %v10689_v17 = vld [vmem:[#allocation10 + $0x20] sm:$0xff]  ;;  %666 = vmatpush.bf16.msra.mxu3 %v7540_v11  ;;  %v10719_v22 = vld [vmem:[#allocation14 + $0x54] sm:$0xf]  ;;  %v7520_v25 = vor.u32 %v10720_v21, %v7519_v20  ;;  %v10718_v28 = vld [vmem:[#allocation14 + $0x44] sm:$0xf0]  ;;  %s7393_s13 = sshll.u32 %s12924_s1, 4  ;;  %s7394_s13 = int_to_ptr.hbm [resolvable:$true] %s7393_s13 }
  0x76   :  { %v7521_v23 = vld [vmem:[#allocation14 + $0x58] sm:$0xf0]  ;;  %v10680_v24 = vld [vmem:[#allocation7 + $0x18] sm:$0xff]  ;;  %v7511_v27 = vld [vmem:[#allocation14 + $0x40] sm:$0xf] }
  0x77   :  { %v10688_v26 = vld [vmem:[#allocation10 + $0x18] sm:$0xff]  ;;  %v7524_v29 = vor.u32 %v10719_v22, %v7521_v23  ;;  %v10717_v30 = vld [vmem:[#allocation14 + $0x44] sm:$0xf]  ;;  %v7513_v31 = vld [vmem:[#allocation14 + $0x48] sm:$0xf0]  ;;  %v7512_v33 = vor.u32 %v10718_v28, %v7511_v27 }
  0x78   :  { %439 = vmatpush.bf16.msra.mxu0 %v10682_v4  ;;  %654 = vmatpush.bf16.msra.mxu2 %v7528_v18  ;;  %v10679_v32 = vld [vmem:[#allocation7 + $0x10] sm:$0xff]  ;;  %v10716_v36 = vld [vmem:[#allocation14 + $0x34] sm:$0xf0]  ;;  %v7516_v37 = vor.u32 %v10717_v30, %v7513_v31  ;;  %v10715_v38 = vld [vmem:[#allocation14 + $0x34] sm:$0xf] }
  0x79   :  { %525 = vmatpush.bf16.msra.mxu1 %v10690_v5  ;;  %667 = vmatpush.bf16.msra.mxu3 %v7532_v19  ;;  %v10687_v34 = vld [vmem:[#allocation10 + $0x10] sm:$0xff]  ;;  %v7505_v39 = vld [vmem:[#allocation14 + $0x38] sm:$0xf0]  ;;  %v10678_v40 = vld [vmem:[#allocation7 + $0x8] sm:$0xff] }
  0x7a   :  { %v7503_v35 = vld [vmem:[#allocation14 + $0x30] sm:$0xf]  ;;  %v10686_v41 = vld [vmem:[#allocation10 + $0x8] sm:$0xff]  ;;  %v7495_v43 = vld [vmem:[#allocation14 + $0x20] sm:$0xf]  ;;  %v7508_v46 = vor.u32 %v10715_v38, %v7505_v39 }
  0x7b   :  { %v7504_v42 = vor.u32 %v10716_v36, %v7503_v35  ;;  %v10714_v44 = vld [vmem:[#allocation14 + $0x24] sm:$0xf0]  ;;  %v7599_v45 = vld [vmem:[#allocation13 + $0x70] sm:$0xf]  ;;  %v10708_v47 = vld [vmem:[#allocation13 + $0x74] sm:$0xf0] }
  0x7c   :  { %440 = vmatpush.bf16.msra.mxu0 %v10681_v16  ;;  %655 = vmatpush.bf16.msra.mxu2 %v7520_v25  ;;  %v10707_v48 = vld [vmem:[#allocation13 + $0x74] sm:$0xf]  ;;  %v7601_v49 = vld [vmem:[#allocation13 + $0x78] sm:$0xf0]  ;;  %v7496_v51 = vor.u32 %v10714_v44, %v7495_v43  ;;  %v10713_v52 = vld [vmem:[#allocation14 + $0x24] sm:$0xf]  ;;  %v7600_v57 = vor.u32 %v10708_v47, %v7599_v45 }
  0x7d   :  { %526 = vmatpush.bf16.msra.mxu1 %v10689_v17  ;;  %668 = vmatpush.bf16.msra.mxu3 %v7524_v29  ;;  %v10677_v50 = vld [vmem:[#allocation7] sm:$0xff]  ;;  %v7497_v53 = vld [vmem:[#allocation14 + $0x28] sm:$0xf0]  ;;  %v453_v56 = vld [vmem:[#allocation5] sm:$0xff]  ;;  %v7604_v58 = vor.u32 %v10707_v48, %v7601_v49 }
  0x7e   :  { %v10685_v54 = vld [vmem:[#allocation10] sm:$0xff]  ;;  %v367_v55 = vld [vmem:[#allocation2] sm:$0xff]  ;;  %v10706_v60 = vld [vmem:[#allocation13 + $0x64] sm:$0xf0]  ;;  %v7500_v63 = vor.u32 %v10713_v52, %v7497_v53  ;;  %v470_v1 = vpack.c.bf16 %v453_v56, %v453_v56 }
  0x7f   :  { %v7591_v59 = vld [vmem:[#allocation13 + $0x60] sm:$0xf]  ;;  %v10705_v61 = vld [vmem:[#allocation13 + $0x64] sm:$0xf]  ;;  %v7593_v62 = vld [vmem:[#allocation13 + $0x68] sm:$0xf0]  ;;  %v384_v0 = vpack.c.bf16 %v367_v55, %v367_v55 }
  0x80   :  { %441 = vmatpush.bf16.msra.mxu0 %v10680_v24  ;;  %656 = vmatpush.bf16.msra.mxu2 %v7512_v33  ;;  %v7592_v2 = vor.u32 %v10706_v60, %v7591_v59  ;;  %v7596_v3 = vor.u32 %v10705_v61, %v7593_v62  ;;  %v7583_v4 = vld [vmem:[#allocation13 + $0x50] sm:$0xf]  ;;  %v10704_v5 = vld [vmem:[#allocation13 + $0x54] sm:$0xf0]  ;;  %v10703_v6 = vld [vmem:[#allocation13 + $0x54] sm:$0xf] }
  0x81   :  { %527 = vmatpush.bf16.msra.mxu1 %v10688_v26  ;;  %669 = vmatpush.bf16.msra.mxu3 %v7516_v37  ;;  %v7585_v7 = vld [vmem:[#allocation13 + $0x58] sm:$0xf0]  ;;  %v7584_v8 = vor.u32 %v10704_v5, %v7583_v4  ;;  %v7575_v10 = vld [vmem:[#allocation13 + $0x40] sm:$0xf]  ;;  %v10702_v11 = vld [vmem:[#allocation13 + $0x44] sm:$0xf0] }
  0x82   :  { %v7588_v9 = vor.u32 %v10703_v6, %v7585_v7  ;;  %v10701_v12 = vld [vmem:[#allocation13 + $0x44] sm:$0xf]  ;;  %v7577_v13 = vld [vmem:[#allocation13 + $0x48] sm:$0xf0]  ;;  %v7576_v14 = vor.u32 %v10702_v11, %v7575_v10  ;;  %v7567_v16 = vld [vmem:[#allocation13 + $0x30] sm:$0xf] }
  0x83   :  { %v7580_v15 = vor.u32 %v10701_v12, %v7577_v13  ;;  %v10700_v17 = vld [vmem:[#allocation13 + $0x34] sm:$0xf0]  ;;  %v10699_v18 = vld [vmem:[#allocation13 + $0x34] sm:$0xf]  ;;  %v7569_v19 = vld [vmem:[#allocation13 + $0x38] sm:$0xf0] }
  0x84   :  { %442 = vmatpush.bf16.msra.mxu0 %v10679_v32  ;;  %657 = vmatpush.bf16.msra.mxu2 %v7504_v42  ;;  %v7568_v20 = vor.u32 %v10700_v17, %v7567_v16  ;;  %v7572_v21 = vor.u32 %v10699_v18, %v7569_v19  ;;  %v7559_v22 = vld [vmem:[#allocation13 + $0x20] sm:$0xf]  ;;  %v10698_v23 = vld [vmem:[#allocation13 + $0x24] sm:$0xf0]  ;;  %v10697_v24 = vld [vmem:[#allocation13 + $0x24] sm:$0xf] }
  0x85   :  { %528 = vmatpush.bf16.msra.mxu1 %v10687_v34  ;;  %670 = vmatpush.bf16.msra.mxu3 %v7508_v46  ;;  %v7561_v25 = vld [vmem:[#allocation13 + $0x28] sm:$0xf0]  ;;  %v7560_v26 = vor.u32 %v10698_v23, %v7559_v22  ;;  %v7487_v28 = vld [vmem:[#allocation14 + $0x10] sm:$0xf]  ;;  %v10712_v29 = vld [vmem:[#allocation14 + $0x14] sm:$0xf0] }
  0x86   :  { %v7564_v27 = vor.u32 %v10697_v24, %v7561_v25  ;;  %v10711_v30 = vld [vmem:[#allocation14 + $0x14] sm:$0xf]  ;;  %v7488_v31 = vor.u32 %v10712_v29, %v7487_v28  ;;  %v7489_v32 = vld [vmem:[#allocation14 + $0x18] sm:$0xf0]  ;;  %v7551_v33 = vld [vmem:[#allocation13 + $0x10] sm:$0xf] }
  0x87   :  { %v7492_v34 = vor.u32 %v10711_v30, %v7489_v32  ;;  %v10696_v35 = vld [vmem:[#allocation13 + $0x14] sm:$0xf0]  ;;  %v10695_v36 = vld [vmem:[#allocation13 + $0x14] sm:$0xf]  ;;  %v7553_v37 = vld [vmem:[#allocation13 + $0x18] sm:$0xf0] }
  0x88   :  { %443 = vmatpush.bf16.msra.mxu0 %v10678_v40  ;;  %658 = vmatpush.bf16.msra.mxu2 %v7496_v51  ;;  %v7552_v38 = vor.u32 %v10696_v35, %v7551_v33  ;;  %v7556_v39 = vor.u32 %v10695_v36, %v7553_v37  ;;  %v7479_v40 = vld [vmem:[#allocation14] sm:$0xf]  ;;  %v10709_v42 = vld [vmem:[#allocation14 + $0x4] sm:$0xf]  ;;  %v7481_v44 = vld [vmem:[#allocation14 + $0x8] sm:$0xf0] }
  0x89   :  { %529 = vmatpush.bf16.msra.mxu1 %v10686_v41  ;;  %671 = vmatpush.bf16.msra.mxu3 %v7500_v63  ;;  %v10710_v41 = vld [vmem:[#allocation14 + $0x4] sm:$0xf0]  ;;  %v7543_v45 = vld [vmem:[#allocation13] sm:$0xf]  ;;  %v7484_v47 = vor.u32 %v10709_v42, %v7481_v44  ;;  %v10693_v49 = vld [vmem:[#allocation13 + $0x4] sm:$0xf] }
  0x8a   :  { %v7480_v43 = vor.u32 %v10710_v41, %v7479_v40  ;;  %v10694_v46 = vld [vmem:[#allocation13 + $0x4] sm:$0xf0]  ;;  %v11526_v52 = vld [vmem:[#allocation8] ss:$0 sm:$0xff]  ;;  %v11527_v53 = vld [vmem:[#allocation11] ss:$0 sm:$0xff] }
  0x8b   :  { %v7544_v48 = vor.u32 %v10694_v46, %v7543_v45  ;;  %v10755_v4 = vld [vmem:[#allocation20 + $0xec] sm:$0xf0]  ;;  %v7847_v5 = vld [vmem:[#allocation20 + $0x1e0] sm:$0xf]  ;;  %v10785_v12 = vld [vmem:[#allocation20 + $0x1e4] sm:$0xf] }
  0x8c   :  { %444 = vmatpush.bf16.msra.mxu0 %v10677_v50  ;;  %659 = vmatpush.bf16.msra.mxu2 %v7488_v31  ;;  %v7545_v50 = vld [vmem:[#allocation13 + $0x8] sm:$0xf0]  ;;  %v10787_v7 = vld [vmem:[#allocation20 + $0x1ec] sm:$0xf0]  ;;  %v7849_v13 = vld [vmem:[#allocation20 + $0x1f0] sm:$0xf0] }
  0x8d   :  { %530 = vmatpush.bf16.msra.mxu1 %v10685_v54  ;;  %672 = vmatpush.bf16.msra.mxu3 %v7492_v34  ;;  %v7548_v51 = vor.u32 %v10693_v49, %v7545_v50  ;;  %v7848_v10 = vor.u32 %v10787_v7, %v7847_v5  ;;  %v7703_v17 = vld [vmem:[#allocation20 + $0xc0] sm:$0xf]  ;;  %v10751_v18 = vld [vmem:[#allocation20 + $0xcc] sm:$0xf0]  ;;  %v10749_v24 = vld [vmem:[#allocation20 + $0xc4] sm:$0xf] }
  0x8e   :  { %v7831_v19 = vld [vmem:[#allocation20 + $0x1c0] sm:$0xf]  ;;  %v7704_v22 = vor.u32 %v10751_v18, %v7703_v17  ;;  %v10783_v23 = vld [vmem:[#allocation20 + $0x1cc] sm:$0xf0]  ;;  %v7705_v25 = vld [vmem:[#allocation20 + $0xd0] sm:$0xf0] }
  0x8f   :  { %445 = vmatmul.bf16.vlgmr.msra.gmra.mxu0 %v384_v0  ;;  %v10781_v28 = vld [vmem:[#allocation20 + $0x1c4] sm:$0xf]  ;;  %v7833_v29 = vld [vmem:[#allocation20 + $0x1d0] sm:$0xf0]  ;;  %v7687_v34 = vld [vmem:[#allocation20 + $0xa0] sm:$0xf] }
  0x90   :  { %759 = vmatpush.bf16.msrb.mxu0 %v7600_v57  ;;  %531 = vmatmul.bf16.vlgmr.msra.gmra.mxu1 %v470_v1  ;;  %v7836_v33 = vor.u32 %v10781_v28, %v7833_v29  ;;  %v10747_v35 = vld [vmem:[#allocation20 + $0xac] sm:$0xf0]  ;;  %v7815_v36 = vld [vmem:[#allocation20 + $0x1a0] sm:$0xf]  ;;  %v7689_v40 = vld [vmem:[#allocation20 + $0xb0] sm:$0xf0] }
  0x91   :  { %772 = vmatpush.bf16.msrb.mxu1 %v7604_v58  ;;  %660 = vmatpush.bf16.msra.mxu2 %v7480_v43  ;;  %v7688_v37 = vor.u32 %v10747_v35, %v7687_v34  ;;  %v10777_v45 = vld [vmem:[#allocation20 + $0x1a4] sm:$0xf]  ;;  %v7817_v46 = vld [vmem:[#allocation20 + $0x1b0] sm:$0xf0]  ;;  %v10739_v7 = vld [vmem:[#allocation20 + $0x6c] sm:$0xf0] }
  0x92   :  { %673 = vmatpush.bf16.msra.mxu3 %v7484_v47  ;;  %v7820_v50 = vor.u32 %v10777_v45, %v7817_v46  ;;  %v7767_v28 = vld [vmem:[#allocation20 + $0x140] sm:$0xf]  ;;  %v7641_v34 = vld [vmem:[#allocation20 + $0x50] sm:$0xf0] }
  0x93   :  { %v7751_v45 = vld [vmem:[#allocation20 + $0x120] sm:$0xf] }
  0x94   :  { %760 = vmatpush.bf16.msrb.mxu0 %v7592_v2  ;;  %v12160_v2 = vmov 8.0  }
  0x95   :  { %773 = vmatpush.bf16.msrb.mxu1 %v7596_v3  ;;  %11528 = vrcp.f32 %v12160_v2  ;;  %v7719_v3 = vld [vmem:[#allocation20 + $0xe0] sm:$0xf] }
  0x96   :  { %v7720_v6 = vor.u32 %v10755_v4, %v7719_v3  ;;  %1287 = vmatpush.bf16.msrb.mxu3 %v7848_v10 }
  0x98   :  { %761 = vmatpush.bf16.msrb.mxu0 %v7584_v8  ;;  %v10753_v8 = vld [vmem:[#allocation20 + $0xe4] sm:$0xf]  ;;  %1274 = vmatpush.bf16.msrb.mxu2 %v7720_v6  ;;  %v7655_v6 = vld [vmem:[#allocation20 + $0x60] sm:$0xf] }
  0x99   :  { %774 = vmatpush.bf16.msrb.mxu1 %v7588_v9  ;;  %v7721_v9 = vld [vmem:[#allocation20 + $0xf0] sm:$0xf0] }
  0x9a   :  { %v7724_v11 = vor.u32 %v10753_v8, %v7721_v9  ;;  %v7783_v8 = vld [vmem:[#allocation20 + $0x160] sm:$0xf] }
  0x9b   :  { %v12341_v16 = vpop.eup %11528 }
  0x9c   :  { %762 = vmatpush.bf16.msrb.mxu0 %v7576_v14  ;;  %v785_v14 = vld [vmem:[#allocation16] sm:$0x3]  ;;  %v808_v31 = vmul.f32 8.0, %v12341_v16  ;;  %1275 = vmatpush.bf16.msrb.mxu2 %v7704_v22  ;;  %vm812_vm2 = vweird.f32 %v12341_v16 }
  0x9d   :  { %775 = vmatpush.bf16.msrb.mxu1 %v7580_v15  ;;  %v7852_v15 = vor.u32 %v10785_v12, %v7849_v13  ;;  %v787_v30 = vperm.slane %v785_v14, 0  ;;  %v788_v32 = vperm.slane %v785_v14, 1  ;;  %v10771_v12 = vld [vmem:[#allocation20 + $0x16c] sm:$0xf0]  ;;  %v10737_v13 = vld [vmem:[#allocation20 + $0x64] sm:$0xf] }
  0x9e   :  { %v7657_v14 = vld [vmem:[#allocation20 + $0x70] sm:$0xf0]  ;;  %v7784_v18 = vor.u32 %v10771_v12, %v7783_v8  ;;  %v7855_v12 = vld [vmem:[#allocation20 + $0x1e8] sm:$0xf] }
  0x9f   :  { %v7737_v8 = vld [vmem:[#allocation20 + $0x110] sm:$0xf0] }
  0xa0   :  { %763 = vmatpush.bf16.msrb.mxu0 %v7568_v20  ;;  %1276 = vmatpush.bf16.msrb.mxu2 %v7688_v37  ;;  %v10765_v37 = vld [vmem:[#allocation20 + $0x144] sm:$0xf] }
  0xa1   :  { %776 = vmatpush.bf16.msrb.mxu1 %v7572_v21 }
  0xa4   :  { %764 = vmatpush.bf16.msrb.mxu0 %v7560_v26  ;;  %v7832_v26 = vor.u32 %v10783_v23, %v7831_v19  ;;  %v7660_v19 = vor.u32 %v10737_v13, %v7657_v14  ;;  %v10788_v13 = vld [vmem:[#allocation20 + $0x1f4] sm:$0xf0] }
  0xa5   :  { %777 = vmatpush.bf16.msrb.mxu1 %v7564_v27  ;;  %v7708_v27 = vor.u32 %v10749_v24, %v7705_v25 }
  0xa6   :  { %1288 = vmatpush.bf16.msrb.mxu3 %v7832_v26  ;;  %v7639_v26 = vld [vmem:[#allocation20 + $0x40] sm:$0xf] }
  0xa8   :  { %765 = vmatpush.bf16.msrb.mxu0 %v7552_v38  ;;  %v10779_v38 = vld [vmem:[#allocation20 + $0x1ac] sm:$0xf0] }
  0xa9   :  { %778 = vmatpush.bf16.msrb.mxu1 %v7556_v39  ;;  %v10745_v39 = vld [vmem:[#allocation20 + $0xa4] sm:$0xf]  ;;  %v7816_v43 = vor.u32 %v10779_v38, %v7815_v36  ;;  %v7769_v38 = vld [vmem:[#allocation20 + $0x150] sm:$0xf0] }
  0xaa   :  { %v7692_v44 = vor.u32 %v10745_v39, %v7689_v40 }
  0xab   :  { %1289 = vmatpush.bf16.msrb.mxu3 %v7816_v43  ;;  %v7623_v43 = vld [vmem:[#allocation20 + $0x20] sm:$0xf] }
  0xac   :  { %766 = vmatpush.bf16.msrb.mxu0 %v7544_v48  ;;  %v809_v48 = vsub.f32 1.0, %v808_v31 }
  0xad   :  { %779 = vmatpush.bf16.msrb.mxu1 %v7548_v51  ;;  %v7671_v51 = vld [vmem:[#allocation20 + $0x80] sm:$0xf] }
  0xae   :  { %v810_v5 = vmul.f32 %v12341_v16, %v809_v48 }
  0xb0   :  { %1300 = vmatpush.bf16.msra.mxu0 %v7724_v11  ;;  %v7656_v11 = vor.u32 %v10739_v7, %v7655_v6  ;;  %v811_v25 = vadd.f32 %v12341_v16, %v810_v5  ;;  %v10757_v7 = vld [vmem:[#allocation20 + $0x104] sm:$0xf] }
  0xb1   :  { %1313 = vmatpush.bf16.msra.mxu1 %v7852_v15 }
  0xb4   :  { %1301 = vmatpush.bf16.msra.mxu0 %v7708_v27  ;;  %v10735_v27 = vld [vmem:[#allocation20 + $0x4c] sm:$0xf0] }
  0xb5   :  { %1314 = vmatpush.bf16.msra.mxu1 %v7836_v33  ;;  %v7640_v31 = vor.u32 %v10735_v27, %v7639_v26  ;;  %v10733_v33 = vld [vmem:[#allocation20 + $0x44] sm:$0xf]  ;;  %v10752_v26 = vld [vmem:[#allocation20 + $0xd4] sm:$0xf0]  ;;  %v7839_v27 = vld [vmem:[#allocation20 + $0x1c8] sm:$0xf] }
  0xb6   :  { %v7644_v36 = vor.u32 %v10733_v33, %v7641_v34  ;;  %v7713_v33 = vld [vmem:[#allocation20 + $0xd8] sm:$0xf0] }
  0xb8   :  { %1302 = vmatpush.bf16.msra.mxu0 %v7692_v44  ;;  %v10731_v44 = vld [vmem:[#allocation20 + $0x2c] sm:$0xf0] }
  0xb9   :  { %1315 = vmatpush.bf16.msra.mxu1 %v7820_v50  ;;  %v7624_v48 = vor.u32 %v10731_v44, %v7623_v43  ;;  %v10729_v50 = vld [vmem:[#allocation20 + $0x24] sm:$0xf]  ;;  %v10748_v43 = vld [vmem:[#allocation20 + $0xb4] sm:$0xf0] }
 0x10c   :  { %v446_v54 = vpop.f32.mrf.mxu0 }
 0x10d   :  { %v532_v55 = vpop.f32.mrf.mxu1  ;;  %v447_v56 = vadd.f32 %v11526_v52, %v446_v54  ;;  %v10743_v52 = vld [vmem:[#allocation20 + $0x8c] sm:$0xf0] }
 0x10e   :  { %v533_v57 = vadd.f32 %v11527_v53, %v532_v55  ;;  %v7799_v53 = vld [vmem:[#allocation20 + $0x180] sm:$0xf] }
 0x10f   :  { %vm450_vm0 = vcmp.gt.f32.partialorder %v447_v56, 0.0  ;;  %v451_v58 = vmul.f32 0.2, %v447_v56 }
 0x110   :  { %v537_v59 = vmul.f32 0.2, %v533_v57  ;;  %vm536_vm1 = vcmp.gt.f32.partialorder %v533_v57, 0.0 }
 0x111   :  { %v452_v61 = vsel %vm450_vm0, %v447_v56, %v451_v58  ;;  %v7672_v58 = vor.u32 %v10743_v52, %v7671_v51  ;;  %v7625_v51 = vld [vmem:[#allocation20 + $0x30] sm:$0xf0] }
 0x112   :  { %v538_v60 = vsel %vm536_vm1, %v533_v57, %v537_v59  ;;  %v555_v63 = vpack.c.bf16 %v452_v61, %v452_v61  ;;  %v10775_v59 = vld [vmem:[#allocation20 + $0x18c] sm:$0xf0]  ;;  %v7673_v61 = vld [vmem:[#allocation20 + $0x90] sm:$0xf0] }
 0x113   :  { %v572_v62 = vpack.c.bf16 %v538_v60, %v538_v60  ;;  %v10741_v60 = vld [vmem:[#allocation20 + $0x84] sm:$0xf]  ;;  %1277 = vmatpush.bf16.msrb.mxu2 %v7672_v58 }
 0x114   :  { %v448_v0 = vpop.f32.mrf.mxu0  ;;  %767 = vmatmul.bf16.vlgmr.msrb.gmra.mxu0 %v555_v63  ;;  %780 = vmatmul.bf16.vlgmr.msrb.gmra.mxu1 %v555_v63  ;;  %v7676_v63 = vor.u32 %v10741_v60, %v7673_v61  ;;  %v7607_v60 = vld [vmem:[#allocation20] sm:$0xf]  ;;  %v10727_v61 = vld [vmem:[#allocation20 + $0xc] sm:$0xf0] }
 0x115   :  { %v534_v1 = vpop.f32.mrf.mxu1  ;;  %661 = vmatmul.bf16.vlgmr.msra.gmra.mxu2 %v572_v62  ;;  %674 = vmatmul.bf16.vlgmr.msra.gmra.mxu3 %v572_v62  ;;  %v7800_v62 = vor.u32 %v10775_v59, %v7799_v53  ;;  %v10773_v0 = vld [vmem:[#allocation20 + $0x184] sm:$0xf]  ;;  %v7628_v53 = vor.u32 %v10729_v50, %v7625_v51  ;;  %v7697_v51 = vld [vmem:[#allocation20 + $0xb8] sm:$0xf0] }
 0x116   :  { %v7801_v1 = vld [vmem:[#allocation20 + $0x190] sm:$0xf0]  ;;  %1303 = vmatpush.bf16.msra.mxu0 %v7676_v63 }
 0x117   :  { %v7804_v4 = vor.u32 %v10773_v0, %v7801_v1  ;;  %1290 = vmatpush.bf16.msrb.mxu3 %v7800_v62  ;;  %1278 = vmatpush.bf16.msrb.mxu2 %v7656_v11  ;;  %v7735_v62 = vld [vmem:[#allocation20 + $0x100] sm:$0xf]  ;;  %v7608_v1 = vor.u32 %v10727_v61, %v7607_v60  ;;  %v7740_v11 = vor.u32 %v10757_v7, %v7737_v8 }
 0x119   :  { %1316 = vmatpush.bf16.msra.mxu1 %v7804_v4  ;;  %v7609_v4 = vld [vmem:[#allocation20 + $0x10] sm:$0xf0] }
 0x11a   :  { %1304 = vmatpush.bf16.msra.mxu0 %v7660_v19  ;;  %v10786_v19 = vld [vmem:[#allocation20 + $0x1ec] sm:$0xf] }
 0x11b   :  { %1291 = vmatpush.bf16.msrb.mxu3 %v7784_v18  ;;  %1279 = vmatpush.bf16.msrb.mxu2 %v7640_v31  ;;  %v7729_v18 = vld [vmem:[#allocation20 + $0xf8] sm:$0xf0] }
 0x11e   :  { %1305 = vmatpush.bf16.msra.mxu0 %v7644_v36  ;;  %v10782_v36 = vld [vmem:[#allocation20 + $0x1cc] sm:$0xf] }
 0x11f   :  { %1280 = vmatpush.bf16.msrb.mxu2 %v7624_v48 }
 0x122   :  { %1306 = vmatpush.bf16.msra.mxu0 %v7628_v53  ;;  %v7825_v53 = vld [vmem:[#allocation20 + $0x1b8] sm:$0xf0] }
 0x123   :  { %1281 = vmatpush.bf16.msrb.mxu2 %v7608_v1  ;;  %v10742_v1 = vld [vmem:[#allocation20 + $0x8c] sm:$0xf] }
 0x191   :  { %v768_v20 = vpop.f32.mrf.mxu0  ;;  %v781_v21 = vpop.f32.mrf.mxu1 }
 0x198   :  { %v662_v41 = vpop.f32.mrf.mxu2  ;;  %v675_v42 = vpop.f32.mrf.mxu3 }
 0x199   :  { %v769_v47 = vadd.f32 %v768_v20, %v662_v41  ;;  %v782_v49 = vadd.f32 %v781_v21, %v675_v42  ;;  %v770_v56 = vpop.f32.mrf.mxu0  ;;  %v783_v57 = vpop.f32.mrf.mxu1  ;;  %v10769_v20 = vld [vmem:[#allocation20 + $0x164] sm:$0xf]  ;;  %v7785_v21 = vld [vmem:[#allocation20 + $0x170] sm:$0xf0]  ;;  %v7772_v41 = vor.u32 %v10765_v37, %v7769_v38  ;;  %v12356_v42 = vsel %vm812_vm2, %v12341_v16, %v811_v25  ;;  %v7841_v37 = vld [vmem:[#allocation20 + $0x1d8] sm:$0xf0] }
 0x19a   :  { %v7788_v24 = vor.u32 %v10769_v20, %v7785_v21  ;;  %v10761_v56 = vld [vmem:[#allocation20 + $0x124] sm:$0xf]  ;;  %v7753_v57 = vld [vmem:[#allocation20 + $0x130] sm:$0xf0] }
 0x19b   :  { %v12344_v54 = vadd.f32 %v787_v30, %v769_v47  ;;  %v12346_v55 = vadd.f32 %v788_v32, %v782_v49  ;;  %v10767_v32 = vld [vmem:[#allocation20 + $0x14c] sm:$0xf0]  ;;  %v7756_v59 = vor.u32 %v10761_v56, %v7753_v57 }
 0x19c   :  { %1317 = vmatpush.bf16.msra.mxu1 %v7788_v24  ;;  %v7768_v35 = vor.u32 %v10767_v32, %v7767_v28  ;;  %v10763_v49 = vld [vmem:[#allocation20 + $0x12c] sm:$0xf0]  ;;  %v7711_v24 = vld [vmem:[#allocation20 + $0xc8] sm:$0xf]  ;;  %v10784_v28 = vld [vmem:[#allocation20 + $0x1d4] sm:$0xf0] }
 0x19d   :  { %v795_v2 = vrot.slane %v12344_v54, 4  ;;  %v801_v3 = vrot.slane %v12346_v55, 4  ;;  %v7752_v52 = vor.u32 %v10763_v49, %v7751_v45  ;;  %v7712_v31 = vor.u32 %v10752_v26, %v7711_v24  ;;  %v10750_v32 = vld [vmem:[#allocation20 + $0xcc] sm:$0xf]  ;;  %v7823_v45 = vld [vmem:[#allocation20 + $0x1a8] sm:$0xf] }
 0x19e   :  { %1292 = vmatpush.bf16.msrb.mxu3 %v7768_v35  ;;  %v7840_v34 = vor.u32 %v10784_v28, %v7839_v27  ;;  %v7716_v35 = vor.u32 %v10750_v32, %v7713_v33  ;;  %v7793_v24 = vld [vmem:[#allocation20 + $0x178] sm:$0xf0]  ;;  %v10736_v26 = vld [vmem:[#allocation20 + $0x54] sm:$0xf0]  ;;  %v7775_v28 = vld [vmem:[#allocation20 + $0x148] sm:$0xf] }
 0x19f   :  { %v796_v9 = vadd.f32 %v795_v2, %v12344_v54  ;;  %v802_v10 = vadd.f32 %v801_v3, %v12346_v55  ;;  %v10759_v2 = vld [vmem:[#allocation20 + $0x10c] sm:$0xf0]  ;;  %v10725_v3 = vld [vmem:[#allocation20 + $0x4] sm:$0xf]  ;;  %v7649_v33 = vld [vmem:[#allocation20 + $0x58] sm:$0xf0] }
 0x1a0   :  { %v664_v15 = vpop.f32.mrf.mxu2  ;;  %v677_v17 = vpop.f32.mrf.mxu3  ;;  %1318 = vmatpush.bf16.msra.mxu1 %v7772_v41  ;;  %v7736_v5 = vor.u32 %v10759_v2, %v7735_v62  ;;  %v7612_v6 = vor.u32 %v10725_v3, %v7609_v4  ;;  %v7695_v41 = vld [vmem:[#allocation20 + $0xa8] sm:$0xf]  ;;  %v10776_v62 = vld [vmem:[#allocation20 + $0x194] sm:$0xf0]  ;;  %v7681_v4 = vld [vmem:[#allocation20 + $0x98] sm:$0xf0] }
 0x1a1   :  { %v797_v22 = vrot.slane %v796_v9, 2  ;;  %v803_v23 = vrot.slane %v802_v10, 2  ;;  %v7856_v15 = vor.u32 %v10788_v13, %v7855_v12  ;;  %v10754_v17 = vld [vmem:[#allocation20 + $0xec] sm:$0xf]  ;;  %v7696_v44 = vor.u32 %v10748_v43, %v7695_v41  ;;  %v10740_v12 = vld [vmem:[#allocation20 + $0x74] sm:$0xf0] }
 0x1a2   :  { %1293 = vmatpush.bf16.msrb.mxu3 %v7752_v52  ;;  %1307 = vmatpush.bf16.msra.mxu0 %v7612_v6  ;;  %v10778_v52 = vld [vmem:[#allocation20 + $0x1ac] sm:$0xf]  ;;  %v7809_v6 = vld [vmem:[#allocation20 + $0x198] sm:$0xf0]  ;;  %v7791_v13 = vld [vmem:[#allocation20 + $0x168] sm:$0xf] }
 0x1a3   :  { %v798_v29 = vadd.f32 %v797_v22, %v796_v9  ;;  %v804_v30 = vadd.f32 %v803_v23, %v802_v10  ;;  %v7727_v9 = vld [vmem:[#allocation20 + $0xe8] sm:$0xf]  ;;  %v7732_v22 = vor.u32 %v10754_v17, %v7729_v18  ;;  %v7857_v23 = vld [vmem:[#allocation20 + $0x1f8] sm:$0xf0]  ;;  %v7828_v57 = vor.u32 %v10778_v52, %v7825_v53  ;;  %v10738_v17 = vld [vmem:[#allocation20 + $0x6c] sm:$0xf] }
 0x1a4   :  { %1319 = vmatpush.bf16.msra.mxu1 %v7756_v59  ;;  %v7860_v25 = vor.u32 %v10786_v19, %v7857_v23  ;;  %v7807_v59 = vld [vmem:[#allocation20 + $0x188] sm:$0xf]  ;;  %v7665_v18 = vld [vmem:[#allocation20 + $0x78] sm:$0xf0]  ;;  %v10770_v23 = vld [vmem:[#allocation20 + $0x16c] sm:$0xf] }
 0x1a5   :  { %v799_v39 = vrot.slane %v798_v29, 1  ;;  %v805_v40 = vrot.slane %v804_v30, 1  ;;  %v7808_v3 = vor.u32 %v10776_v62, %v7807_v59  ;;  %v7796_v27 = vor.u32 %v10770_v23, %v7793_v24  ;;  %v10764_v41 = vld [vmem:[#allocation20 + $0x134] sm:$0xf0]  ;;  %v10730_v43 = vld [vmem:[#allocation20 + $0x2c] sm:$0xf] }
 0x1a6   :  { %1294 = vmatpush.bf16.msrb.mxu3 %v7736_v5  ;;  %1352 = vmatpush.bf16.msrb.mxu0 %v7732_v22  ;;  %v10774_v5 = vld [vmem:[#allocation20 + $0x18c] sm:$0xf]  ;;  %v7668_v22 = vor.u32 %v10738_v17, %v7665_v18  ;;  %v10728_v52 = vld [vmem:[#allocation20 + $0x14] sm:$0xf0]  ;;  %v7743_v53 = vld [vmem:[#allocation20 + $0x108] sm:$0xf] }
 0x1a7   :  { %v800_v46 = vadd.f32 %v799_v39, %v798_v29  ;;  %v806_v47 = vadd.f32 %v805_v40, %v804_v30  ;;  %v7844_v40 = vor.u32 %v10782_v36, %v7841_v37  ;;  %v7631_v37 = vld [vmem:[#allocation20 + $0x28] sm:$0xf]  ;;  %v10726_v59 = vld [vmem:[#allocation20 + $0xc] sm:$0xf] }
 0x1a8   :  { %1320 = vmatpush.bf16.msra.mxu1 %v7740_v11  ;;  %v10758_v62 = vld [vmem:[#allocation20 + $0x10c] sm:$0xf] }
 0x1a9   :  { %v814_v58 = vmul.f32 %v12356_v42, %v800_v46  ;;  %v815_v16 = vmul.f32 %v12356_v42, %v806_v47  ;;  %v10780_v46 = vld [vmem:[#allocation20 + $0x1b4] sm:$0xf0]  ;;  %v10746_v47 = vld [vmem:[#allocation20 + $0xac] sm:$0xf] }
 0x1aa   :  { %1339 = vmatpush.bf16.msra.mxu3 %v7856_v15  ;;  %1353 = vmatpush.bf16.msrb.mxu0 %v7716_v35  ;;  %v7824_v50 = vor.u32 %v10780_v46, %v7823_v45  ;;  %v7700_v56 = vor.u32 %v10746_v47, %v7697_v51  ;;  %v10772_v15 = vld [vmem:[#allocation20 + $0x174] sm:$0xf0]  ;;  %v7777_v35 = vld [vmem:[#allocation20 + $0x158] sm:$0xf0]  ;;  %v10762_v45 = vld [vmem:[#allocation20 + $0x12c] sm:$0xf] }
 0x1ab   :  { %v12361_v63 = vsub.f32 %v12344_v54, %v814_v58  ;;  %v12364_v0 = vsub.f32 %v12346_v55, %v815_v16  ;;  %v10756_v55 = vld [vmem:[#allocation20 + $0xf4] sm:$0xf0]  ;;  %v7679_v58 = vld [vmem:[#allocation20 + $0x88] sm:$0xf]  ;;  %v7761_v46 = vld [vmem:[#allocation20 + $0x138] sm:$0xf0] }
 0x1ac   :  { %v7728_v14 = vor.u32 %v10756_v55, %v7727_v9  ;;  %1365 = vmatpush.bf16.msrb.mxu1 %v7860_v25  ;;  %v10744_v16 = vld [vmem:[#allocation20 + $0x94] sm:$0xf0]  ;;  %v7684_v9 = vor.u32 %v10742_v1, %v7681_v4  ;;  %v7663_v55 = vld [vmem:[#allocation20 + $0x68] sm:$0xf]  ;;  %v7745_v1 = vld [vmem:[#allocation20 + $0x118] sm:$0xf0] }
 0x1ad   :  { %v818_v10 = vmul.f32 %v12361_v63, %v12361_v63  ;;  %v819_v54 = vmul.f32 %v12364_v0, %v12364_v0  ;;  %v7680_v2 = vor.u32 %v10744_v16, %v7679_v58  ;;  %v7647_v25 = vld [vmem:[#allocation20 + $0x48] sm:$0xf]  ;;  %v7764_v16 = vor.u32 %v10762_v45, %v7761_v46  ;;  %v10841_v45 = vld [vmem:[#allocation26 + $0x19c] sm:$0xf0] }
 0x1ae   :  { %1326 = vmatpush.bf16.msra.mxu2 %v7728_v14  ;;  %1340 = vmatpush.bf16.msra.mxu3 %v7840_v34  ;;  %v7664_v14 = vor.u32 %v10740_v12, %v7663_v55  ;;  %v10766_v34 = vld [vmem:[#allocation20 + $0x14c] sm:$0xf]  ;;  %v794_v12 = vld [vmem:[#allocation19] sm:$0x3] }
 0x1af   :  { %v820_v20 = vrot.slane %v818_v10, 4  ;;  %v826_v21 = vrot.slane %v819_v54, 4  ;;  %1354 = vmatpush.bf16.msrb.mxu0 %v7700_v56  ;;  %v10760_v56 = vld [vmem:[#allocation20 + $0x114] sm:$0xf0]  ;;  %v867_v24 = vperm.slane %v794_v12, 1 }
 0x1b0   :  { %1366 = vmatpush.bf16.msrb.mxu1 %v7844_v40  ;;  %v7780_v40 = vor.u32 %v10766_v34, %v7777_v35  ;;  %v7744_v4 = vor.u32 %v10760_v56, %v7743_v53  ;;  %v8311_v34 = vld [vmem:[#allocation26 + $0x380] sm:$0xf] }
 0x1b1   :  { %v821_v29 = vadd.f32 %v820_v20, %v818_v10  ;;  %v827_v30 = vadd.f32 %v826_v21, %v819_v54  ;;  %v7812_v10 = vor.u32 %v10774_v5, %v7809_v6  ;;  %v7792_v21 = vor.u32 %v10772_v15, %v7791_v13  ;;  %v10905_v35 = vld [vmem:[#allocation26 + $0x39c] sm:$0xf0] }
 0x1b2   :  { %1327 = vmatpush.bf16.msra.mxu2 %v7712_v31  ;;  %1341 = vmatpush.bf16.msra.mxu3 %v7824_v50  ;;  %v7648_v31 = vor.u32 %v10736_v26, %v7647_v25  ;;  %v8215_v56 = vld [vmem:[#allocation26 + $0x2c0] sm:$0xf] }
 0x1b3   :  { %v822_v38 = vrot.slane %v821_v29, 2  ;;  %v828_v39 = vrot.slane %v827_v30, 2  ;;  %1355 = vmatpush.bf16.msrb.mxu0 %v7684_v9 }
 0x1b4   :  { %1367 = vmatpush.bf16.msrb.mxu1 %v7828_v57 }
 0x1b5   :  { %v823_v48 = vadd.f32 %v822_v38, %v821_v29  ;;  %v829_v49 = vadd.f32 %v828_v39, %v827_v30  ;;  %v10768_v29 = vld [vmem:[#allocation20 + $0x154] sm:$0xf0]  ;;  %v10734_v30 = vld [vmem:[#allocation20 + $0x4c] sm:$0xf]  ;;  %v7759_v39 = vld [vmem:[#allocation20 + $0x128] sm:$0xf] }
 0x1b6   :  { %1328 = vmatpush.bf16.msra.mxu2 %v7696_v44  ;;  %1342 = vmatpush.bf16.msra.mxu3 %v7808_v3  ;;  %v7776_v32 = vor.u32 %v10768_v29, %v7775_v28  ;;  %v7652_v36 = vor.u32 %v10734_v30, %v7649_v33  ;;  %v10732_v38 = vld [vmem:[#allocation20 + $0x34] sm:$0xf0]  ;;  %v7633_v44 = vld [vmem:[#allocation20 + $0x38] sm:$0xf0] }
 0x1b7   :  { %v824_v60 = vrot.slane %v823_v48, 1  ;;  %v830_v61 = vrot.slane %v829_v49, 1  ;;  %1356 = vmatpush.bf16.msrb.mxu0 %v7668_v22  ;;  %v7632_v47 = vor.u32 %v10732_v38, %v7631_v37  ;;  %v7636_v51 = vor.u32 %v10730_v43, %v7633_v44  ;;  %v8087_v37 = vld [vmem:[#allocation26 + $0x1c0] sm:$0xf] }
 0x1b8   :  { %1368 = vmatpush.bf16.msrb.mxu1 %v7812_v10  ;;  %v793_v10 = vld [vmem:[#allocation17] sm:$0x3]  ;;  %v866_v22 = vperm.slane %v794_v12, 0  ;;  %v10849_v38 = vld [vmem:[#allocation26 + $0x1dc] sm:$0xf0] }
 0x1b9   :  { %v825_v7 = vadd.f32 %v824_v60, %v823_v48  ;;  %v831_v8 = vadd.f32 %v830_v61, %v829_v49  ;;  %v7760_v48 = vor.u32 %v10764_v41, %v7759_v39  ;;  %v7615_v49 = vld [vmem:[#allocation20 + $0x8] sm:$0xf]  ;;  %v7617_v60 = vld [vmem:[#allocation20 + $0x18] sm:$0xf0]  ;;  %v859_v13 = vperm.slane %v793_v10, 0 }
 0x1ba   :  { %1329 = vmatpush.bf16.msra.mxu2 %v7680_v2  ;;  %1343 = vmatpush.bf16.msra.mxu3 %v7792_v21  ;;  %v7616_v3 = vor.u32 %v10728_v52, %v7615_v49  ;;  %v7620_v6 = vor.u32 %v10726_v59, %v7617_v60  ;;  %v860_v17 = vperm.slane %v793_v10, 1  ;;  %v8088_v39 = vor.u32 %v10849_v38, %v8087_v37  ;;  %v10897_v41 = vld [vmem:[#allocation26 + $0x35c] sm:$0xf0]  ;;  %v12384_v52 = vld [vmem:[#allocation22] sm:$0xf] }
 0x1bb   :  { %v832_v54 = vmul.f32 %v825_v7, %v12356_v42  ;;  %v833_v11 = vmul.f32 %v831_v8, %v12356_v42  ;;  %1357 = vmatpush.bf16.msrb.mxu0 %v7652_v36  ;;  %v7748_v8 = vor.u32 %v10758_v62, %v7745_v1  ;;  %v8312_v36 = vor.u32 %v10905_v35, %v8311_v34  ;;  %v8055_v44 = vld [vmem:[#allocation26 + $0x180] sm:$0xf] }
 0x1bc   :  { %1369 = vmatpush.bf16.msrb.mxu1 %v7796_v27  ;;  %v8056_v46 = vor.u32 %v10841_v45, %v8055_v44  ;;  %v11041_v59 = vld [vmem:[#allocation26 + $0x7dc] sm:$0xf0]  ;;  %v947_v1 = vperm.slane %v12384_v52, 1 }
 0x1bd   :  { %v12372_v19 = vadd.f32 0.8, %v832_v54  ;;  %v12374_v20 = vadd.f32 0.8, %v833_v11  ;;  %v10825_v62 = vld [vmem:[#allocation26 + $0x11c] sm:$0xf0] }
 0x1be   :  { %1330 = vmatpush.bf16.msra.mxu2 %v7664_v14  ;;  %1344 = vmatpush.bf16.msra.mxu3 %v7776_v32  ;;  %v10817_v10 = vld [vmem:[#allocation26 + $0xdc] sm:$0xf0] }
 0x1bf   :  { %11530 = vrsqrt.f32 %v12372_v19  ;;  %1358 = vmatpush.bf16.msrb.mxu0 %v7636_v51  ;;  %vm842_vm5 = vweird.f32 %v12372_v19  ;;  %vm852_vm7 = vweird.f32 %v12374_v20  ;;  %v10833_v51 = vld [vmem:[#allocation26 + $0x15c] sm:$0xf0] }
 0x1c0   :  { %11532 = vrsqrt.f32 %v12374_v20  ;;  %1370 = vmatpush.bf16.msrb.mxu1 %v7780_v40  ;;  %v8279_v40 = vld [vmem:[#allocation26 + $0x340] sm:$0xf] }
 0x1c1   :  { %v8280_v43 = vor.u32 %v10897_v41, %v8279_v40  ;;  %v10977_v12 = vld [vmem:[#allocation26 + $0x5dc] sm:$0xf0]  ;;  %v8345_v41 = vld [vmem:[#allocation26 + $0x3e0] sm:$0xf0] }
 0x1c2   :  { %1331 = vmatpush.bf16.msra.mxu2 %v7648_v31  ;;  %1345 = vmatpush.bf16.msra.mxu3 %v7760_v48  ;;  %v10889_v48 = vld [vmem:[#allocation26 + $0x31c] sm:$0xf0] }
 0x1c3   :  { %1359 = vmatpush.bf16.msrb.mxu0 %v7620_v6  ;;  %v8759_v34 = vld [vmem:[#allocation26 + $0x700] sm:$0xf] }
 0x1c4   :  { %1371 = vmatpush.bf16.msrb.mxu1 %v7764_v16  ;;  %v11017_v35 = vld [vmem:[#allocation26 + $0x71c] sm:$0xf0] }
 0x1c5   :  { %v11531_v50 = vpop.eup %11530  ;;  %v8760_v40 = vor.u32 %v11017_v35, %v8759_v34  ;;  %v10801_v44 = vld [vmem:[#allocation26 + $0x5c] sm:$0xf0]  ;;  %v948_v35 = vperm.slane %v12384_v52, 2 }
 0x1c6   :  { %v11533_v57 = vpop.eup %11532  ;;  %v837_v58 = vmul.f32 %v11531_v50, %v12372_v19  ;;  %1332 = vmatpush.bf16.msra.mxu2 %v7632_v47  ;;  %vm843_vm3 = vweird.f32 %v11531_v50  ;;  %1346 = vmatpush.bf16.msra.mxu3 %v7744_v4  ;;  %v8247_v47 = vld [vmem:[#allocation26 + $0x300] sm:$0xf] }
 0x1c7   :  { %v847_v61 = vmul.f32 %v11533_v57, %v12374_v20  ;;  %vm853_vm4 = vweird.f32 %v11533_v57  ;;  %vm844_vm6 = vmor %vm842_vm5, %vm843_vm3  ;;  %v8248_v49 = vor.u32 %v10889_v48, %v8247_v47  ;;  %v10873_v4 = vld [vmem:[#allocation26 + $0x29c] sm:$0xf0] }
 0x1c8   :  { %v838_v2 = vmul.f32 %v11531_v50, %v837_v58  ;;  %1372 = vmatpush.bf16.msrb.mxu1 %v7748_v8  ;;  %vm854_vm8 = vmor %vm852_vm7, %vm853_vm4  ;;  %v8855_v58 = vld [vmem:[#allocation26 + $0x7c0] sm:$0xf] }
 0x1c9   :  { %v848_v5 = vmul.f32 %v11533_v57, %v847_v61  ;;  %v8856_v60 = vor.u32 %v11041_v59, %v8855_v58  ;;  %v7991_v61 = vld [vmem:[#allocation26 + $0x100] sm:$0xf]  ;;  %v10901_v59 = vld [vmem:[#allocation26 + $0x384] sm:$0xf] }
 0x1ca   :  { %v839_v7 = vmul.f32 0.5, %v838_v2  ;;  %1333 = vmatpush.bf16.msra.mxu2 %v7616_v3  ;;  %v7992_v2 = vor.u32 %v10825_v62, %v7991_v61  ;;  %v8183_v3 = vld [vmem:[#allocation26 + $0x280] sm:$0xf] }
 0x1cb   :  { %v849_v9 = vmul.f32 0.5, %v848_v5  ;;  %v8823_v5 = vld [vmem:[#allocation26 + $0x780] sm:$0xf]  ;;  %v8184_v6 = vor.u32 %v10873_v4, %v8183_v3 }
 0x1cc   :  { %v840_v54 = vsub.f32 1.5, %v839_v7  ;;  %v11033_v7 = vld [vmem:[#allocation26 + $0x79c] sm:$0xf0] }
 0x1cd   :  { %v850_v11 = vsub.f32 1.5, %v849_v9  ;;  %v8824_v8 = vor.u32 %v11033_v7, %v8823_v5  ;;  %v7959_v9 = vld [vmem:[#allocation26 + $0xc0] sm:$0xf]  ;;  %v10845_v7 = vld [vmem:[#allocation26 + $0x1c4] sm:$0xf] }
 0x1ce   :  { %v841_v55 = vmul.f32 %v11531_v50, %v840_v54  ;;  %v8599_v54 = vld [vmem:[#allocation26 + $0x5c0] sm:$0xf] }
 0x1cf   :  { %v851_v14 = vmul.f32 %v11533_v57, %v850_v11  ;;  %v8535_v48 = vld [vmem:[#allocation26 + $0x540] sm:$0xf] }
 0x1d0   :  { %v845_v15 = vsel %vm844_vm6, %v11531_v50, %v841_v55  ;;  %v8023_v50 = vld [vmem:[#allocation26 + $0x140] sm:$0xf]  ;;  %v7960_v55 = vor.u32 %v10817_v10, %v7959_v9  ;;  %v949_v10 = vperm.slane %v12384_v52, 3 }
 0x1d1   :  { %v856_v18 = vmul.f32 %v845_v15, %v12361_v63  ;;  %v855_v21 = vsel %vm854_vm8, %v11533_v57, %v851_v14  ;;  %v8343_v63 = vld [vmem:[#allocation26 + $0x3c0] sm:$0xf]  ;;  %v8024_v53 = vor.u32 %v10833_v51, %v8023_v50  ;;  %v8600_v15 = vor.u32 %v10977_v12, %v8599_v54 }
 0x1d2   :  { %v857_v23 = vmul.f32 %v855_v21, %v12364_v0  ;;  %v10913_v0 = vld [vmem:[#allocation26 + $0x3dc] sm:$0xf0] }
 0x1d3   :  { %v863_v25 = vmul.f32 %v859_v13, %v856_v18  ;;  %v8344_v33 = vor.u32 %v10913_v0, %v8343_v63  ;;  %v10881_v57 = vld [vmem:[#allocation26 + $0x2dc] sm:$0xf0] }
 0x1d4   :  { %v864_v26 = vmul.f32 %v860_v17, %v857_v23  ;;  %v8216_v16 = vor.u32 %v10881_v57, %v8215_v56  ;;  %v8151_v17 = vld [vmem:[#allocation26 + $0x240] sm:$0xf] }
 0x1d5   :  { %v870_v19 = vadd.f32 %v866_v22, %v863_v25  ;;  %v10865_v18 = vld [vmem:[#allocation26 + $0x25c] sm:$0xf0]  ;;  %v946_v22 = vperm.slane %v12384_v52, 0 }
 0x1d6   :  { %v871_v27 = vadd.f32 %v867_v24, %v864_v26  ;;  %v8791_v21 = vld [vmem:[#allocation26 + $0x740] sm:$0xf]  ;;  %v8152_v23 = vor.u32 %v10865_v18, %v8151_v17  ;;  %v8281_v17 = vld [vmem:[#allocation26 + $0x360] sm:$0xf0] }
 0x1d7   :  { %vm872_vm9 = vcmp.gt.f32.partialorder %v870_v19, 0.0  ;;  %v874_v28 = vmul.f32 0.2, %v870_v19  ;;  %v11025_v24 = vld [vmem:[#allocation26 + $0x75c] sm:$0xf0] }
 0x1d8   :  { %vm873_vm10 = vcmp.gt.f32.partialorder %v871_v27, 0.0  ;;  %v875_v29 = vmul.f32 0.2, %v871_v27  ;;  %v8792_v26 = vor.u32 %v11025_v24, %v8791_v21  ;;  %v10857_v63 = vld [vmem:[#allocation26 + $0x21c] sm:$0xf0] }
 0x1d9   :  { %v876_v30 = vsel %vm872_vm9, %v870_v19, %v874_v28  ;;  %v7927_v19 = vld [vmem:[#allocation26 + $0x80] sm:$0xf] }
 0x1da   :  { %v942_v20 = vpack.c.bf16 %v876_v30, %v876_v30  ;;  %v877_v31 = vsel %vm873_vm10, %v871_v27, %v875_v29  ;;  %v10809_v27 = vld [vmem:[#allocation26 + $0x9c] sm:$0xf0] }
 0x1db   :  { %v943_v32 = vpack.c.bf16 %v877_v31, %v877_v31  ;;  %v8567_v28 = vld [vmem:[#allocation26 + $0x580] sm:$0xf]  ;;  %v7928_v29 = vor.u32 %v10809_v27, %v7927_v19 }
 0x1dc   :  { %1282 = vmatmul.bf16.vlgmr.msrb.gmra.mxu2 %v942_v20  ;;  %1308 = vmatmul.bf16.vlgmr.msra.gmra.mxu0 %v942_v20  ;;  %v10969_v30 = vld [vmem:[#allocation26 + $0x59c] sm:$0xf0] }
 0x1dd   :  { %1295 = vmatmul.bf16.vlgmr.msrb.gmra.mxu3 %v943_v32  ;;  %1321 = vmatmul.bf16.vlgmr.msra.gmra.mxu1 %v943_v32  ;;  %v8568_v31 = vor.u32 %v10969_v30, %v8567_v28  ;;  %v8727_v57 = vld [vmem:[#allocation26 + $0x6c0] sm:$0xf]  ;;  %v8057_v30 = vld [vmem:[#allocation26 + $0x1a0] sm:$0xf0] }
 0x1de   :  { %3101 = vmatpush.bf16.msrb.mxu3 %v8344_v33  ;;  %3088 = vmatpush.bf16.msrb.mxu2 %v8088_v39  ;;  %v11009_v58 = vld [vmem:[#allocation26 + $0x6dc] sm:$0xf0] }
 0x1df   :  { %3127 = vmatpush.bf16.msra.mxu1 %v8856_v60  ;;  %3114 = vmatpush.bf16.msra.mxu0 %v8600_v15  ;;  %v8313_v60 = vld [vmem:[#allocation26 + $0x3a0] sm:$0xf0]  ;;  %v10793_v3 = vld [vmem:[#allocation26 + $0x1c] sm:$0xf0] }
 0x1e0   :  { %v8503_v5 = vld [vmem:[#allocation26 + $0x500] sm:$0xf]  ;;  %v10893_v15 = vld [vmem:[#allocation26 + $0x344] sm:$0xf] }
 0x1e1   :  { %v8284_v24 = vor.u32 %v10893_v15, %v8281_v17  ;;  %v10945_v19 = vld [vmem:[#allocation26 + $0x4dc] sm:$0xf0] }
 0x1e2   :  { %3102 = vmatpush.bf16.msrb.mxu3 %v8312_v36  ;;  %3089 = vmatpush.bf16.msrb.mxu2 %v8056_v46  ;;  %v10909_v36 = vld [vmem:[#allocation26 + $0x3c4] sm:$0xf]  ;;  %v10993_v34 = vld [vmem:[#allocation26 + $0x65c] sm:$0xf0] }
 0x1e3   :  { %3128 = vmatpush.bf16.msra.mxu1 %v8824_v8  ;;  %3115 = vmatpush.bf16.msra.mxu0 %v8568_v31  ;;  %v8348_v46 = vor.u32 %v10909_v36, %v8345_v41 }
 0x1e6   :  { %3103 = vmatpush.bf16.msrb.mxu3 %v8280_v43  ;;  %3090 = vmatpush.bf16.msrb.mxu2 %v8024_v53  ;;  %v7895_v43 = vld [vmem:[#allocation26 + $0x40] sm:$0xf] }
 0x1e7   :  { %3129 = vmatpush.bf16.msra.mxu1 %v8792_v26  ;;  %v7896_v47 = vor.u32 %v10801_v44, %v7895_v43  ;;  %v8471_v26 = vld [vmem:[#allocation26 + $0x4c0] sm:$0xf] }
 0x1e8   :  { %v8472_v28 = vor.u32 %v10945_v19, %v8471_v26  ;;  %v8439_v44 = vld [vmem:[#allocation26 + $0x480] sm:$0xf]  ;;  %v8825_v19 = vld [vmem:[#allocation26 + $0x7a0] sm:$0xf0] }
 0x1ea   :  { %3104 = vmatpush.bf16.msrb.mxu3 %v8248_v49  ;;  %3091 = vmatpush.bf16.msrb.mxu2 %v7992_v2  ;;  %v10961_v49 = vld [vmem:[#allocation26 + $0x55c] sm:$0xf0] }
 0x1eb   :  { %3130 = vmatpush.bf16.msra.mxu1 %v8760_v40  ;;  %v8536_v56 = vor.u32 %v10961_v49, %v8535_v48  ;;  %v7863_v2 = vld [vmem:[#allocation26] sm:$0xf]  ;;  %v8025_v48 = vld [vmem:[#allocation26 + $0x160] sm:$0xf0] }
 0x1ec   :  { %1334 = vmatmul.bf16.vlgmr.msra.gmra.mxu2 %v942_v20  ;;  %1360 = vmatmul.bf16.vlgmr.msrb.gmra.mxu0 %v942_v20  ;;  %v7864_v4 = vor.u32 %v10793_v3, %v7863_v2 }
 0x1ed   :  { %1347 = vmatmul.bf16.vlgmr.msra.gmra.mxu3 %v943_v32  ;;  %1373 = vmatmul.bf16.vlgmr.msrb.gmra.mxu1 %v943_v32  ;;  %v8119_v32 = vld [vmem:[#allocation26 + $0x200] sm:$0xf] }
 0x1ee   :  { %3105 = vmatpush.bf16.msrb.mxu3 %v8216_v16  ;;  %3092 = vmatpush.bf16.msrb.mxu2 %v7960_v55  ;;  %v8120_v33 = vor.u32 %v10857_v63, %v8119_v32  ;;  %v8728_v16 = vor.u32 %v11009_v58, %v8727_v57  ;;  %v8695_v55 = vld [vmem:[#allocation26 + $0x680] sm:$0xf] }
 0x1ef   :  { %3116 = vmatpush.bf16.msra.mxu0 %v8536_v56  ;;  %v10985_v56 = vld [vmem:[#allocation26 + $0x61c] sm:$0xf0] }
 0x1f0   :  { %3131 = vmatpush.bf16.msra.mxu1 %v8728_v16  ;;  %v10877_v16 = vld [vmem:[#allocation26 + $0x2c4] sm:$0xf] }
 0x1f2   :  { %3106 = vmatpush.bf16.msrb.mxu3 %v8184_v6  ;;  %3093 = vmatpush.bf16.msrb.mxu2 %v7928_v29  ;;  %v10953_v6 = vld [vmem:[#allocation26 + $0x51c] sm:$0xf0]  ;;  %v10837_v29 = vld [vmem:[#allocation26 + $0x184] sm:$0xf] }
 0x1f3   :  { %v8504_v54 = vor.u32 %v10953_v6, %v8503_v5  ;;  %v8407_v5 = vld [vmem:[#allocation26 + $0x440] sm:$0xf] }
 0x1f5   :  { %3117 = vmatpush.bf16.msra.mxu0 %v8504_v54  ;;  %v7993_v54 = vld [vmem:[#allocation26 + $0x120] sm:$0xf0] }
 0x1f6   :  { %3107 = vmatpush.bf16.msrb.mxu3 %v8152_v23  ;;  %3094 = vmatpush.bf16.msrb.mxu2 %v7896_v47  ;;  %v10829_v47 = vld [vmem:[#allocation26 + $0x144] sm:$0xf] }
 0x1f9   :  { %3118 = vmatpush.bf16.msra.mxu0 %v8472_v28 }
 0x1fa   :  { %3108 = vmatpush.bf16.msrb.mxu3 %v8120_v33  ;;  %3095 = vmatpush.bf16.msrb.mxu2 %v7864_v4  ;;  %v8663_v33 = vld [vmem:[#allocation26 + $0x640] sm:$0xf]  ;;  %v8857_v4 = vld [vmem:[#allocation26 + $0x7e0] sm:$0xf0] }
 0x1fb   :  { %v8664_v36 = vor.u32 %v10993_v34, %v8663_v33  ;;  %v7961_v33 = vld [vmem:[#allocation26 + $0xe0] sm:$0xf0] }
 0x1fc   :  { %v10973_v34 = vld [vmem:[#allocation26 + $0x5c4] sm:$0xf] }
 0x1fe   :  { %3153 = vmatpush.bf16.msra.mxu3 %v8348_v46 }
 0x259   :  { %v1309_v11 = vpop.f32.mrf.mxu0 }
 0x25a   :  { %v1310_v13 = vadd.f32 %v1309_v11, %v947_v1  ;;  %v1322_v14 = vpop.f32.mrf.mxu1  ;;  %v8316_v1 = vor.u32 %v10901_v59, %v8313_v60  ;;  %v8089_v11 = vld [vmem:[#allocation26 + $0x1e0] sm:$0xf0] }
 0x25b   :  { %v8217_v59 = vld [vmem:[#allocation26 + $0x2e0] sm:$0xf0] }
 0x25c   :  { %v12388_v25 = vadd.f32 %v1322_v14, %v1310_v13  ;;  %3154 = vmatpush.bf16.msra.mxu3 %v8316_v1  ;;  %v8092_v13 = vor.u32 %v10845_v7, %v8089_v11  ;;  %v11001_v14 = vld [vmem:[#allocation26 + $0x69c] sm:$0xf0]  ;;  %v11037_v60 = vld [vmem:[#allocation26 + $0x7c4] sm:$0xf]  ;;  %v8220_v7 = vor.u32 %v10877_v16, %v8217_v59 }
 0x25d   :  { %v8696_v23 = vor.u32 %v11001_v14, %v8695_v55 }
 0x25e   :  { %v1386_v20 = vrot.slane %v12388_v25, 4  ;;  %3140 = vmatpush.bf16.msra.mxu2 %v8092_v13 }
 0x25f   :  { %v1283_v0 = vpop.f32.mrf.mxu2  ;;  %3132 = vmatpush.bf16.msra.mxu1 %v8696_v23 }
 0x260   :  { %v1387_v37 = vadd.f32 %v1386_v20, %v12388_v25  ;;  %v1284_v38 = vadd.f32 %v1283_v0, %v946_v22  ;;  %v1296_v39 = vpop.f32.mrf.mxu3  ;;  %v8060_v0 = vor.u32 %v10837_v29, %v8057_v30  ;;  %3155 = vmatpush.bf16.msra.mxu3 %v8284_v24  ;;  %v10921_v30 = vld [vmem:[#allocation26 + $0x41c] sm:$0xf0] }
 0x261   :  { %v1311_v45 = vpop.f32.mrf.mxu0 }
 0x262   :  { %v1388_v50 = vrot.slane %v1387_v37, 2  ;;  %v12392_v51 = vadd.f32 %v1296_v39, %v1284_v38  ;;  %v1324_v53 = vpop.f32.mrf.mxu1  ;;  %v8249_v38 = vld [vmem:[#allocation26 + $0x320] sm:$0xf0]  ;;  %v10937_v45 = vld [vmem:[#allocation26 + $0x49c] sm:$0xf0]  ;;  %3141 = vmatpush.bf16.msra.mxu2 %v8060_v0 }
 0x263   :  { %v8440_v46 = vor.u32 %v10937_v45, %v8439_v44  ;;  %3133 = vmatpush.bf16.msra.mxu1 %v8664_v36  ;;  %v8631_v53 = vld [vmem:[#allocation26 + $0x600] sm:$0xf] }
 0x264   :  { %v1389_v61 = vadd.f32 %v1388_v50, %v1387_v37  ;;  %v1380_v62 = vrot.slane %v12392_v51, 4  ;;  %v10885_v37 = vld [vmem:[#allocation26 + $0x304] sm:$0xf]  ;;  %v8632_v58 = vor.u32 %v10985_v56, %v8631_v53 }
 0x265   :  { %v8252_v43 = vor.u32 %v10885_v37, %v8249_v38  ;;  %3119 = vmatpush.bf16.msra.mxu0 %v8440_v46  ;;  %v8601_v38 = vld [vmem:[#allocation26 + $0x5e0] sm:$0xf0] }
 0x266   :  { %v1390_v8 = vrot.slane %v1389_v61, 1  ;;  %v1381_v9 = vadd.f32 %v1380_v62, %v12392_v51  ;;  %v10805_v56 = vld [vmem:[#allocation26 + $0x84] sm:$0xf] }
 0x267   :  { %v1285_v12 = vpop.f32.mrf.mxu2  ;;  %3156 = vmatpush.bf16.msra.mxu3 %v8252_v43  ;;  %3134 = vmatpush.bf16.msra.mxu1 %v8632_v58  ;;  %v8153_v43 = vld [vmem:[#allocation26 + $0x260] sm:$0xf0] }
 0x268   :  { %v1391_v18 = vadd.f32 %v1390_v8, %v1389_v61  ;;  %v1382_v21 = vrot.slane %v1381_v9, 2  ;;  %v1298_v22 = vpop.f32.mrf.mxu3  ;;  %v8860_v8 = vor.u32 %v11037_v60, %v8857_v4  ;;  %v8121_v4 = vld [vmem:[#allocation26 + $0x220] sm:$0xf0] }
 0x269   :  { %v1361_v27 = vpop.f32.mrf.mxu0  ;;  %v11029_v22 = vld [vmem:[#allocation26 + $0x784] sm:$0xf] }
 0x26a   :  { %v1405_v20 = vmul.f32 %v1391_v18, %v12356_v42  ;;  %v1383_v31 = vadd.f32 %v1382_v21, %v1381_v9  ;;  %v1362_v32 = vadd.f32 %v1361_v27, %v949_v10  ;;  %v1374_v63 = vpop.f32.mrf.mxu1  ;;  %v10929_v9 = vld [vmem:[#allocation26 + $0x45c] sm:$0xf0]  ;;  %v10821_v10 = vld [vmem:[#allocation26 + $0x104] sm:$0xf]  ;;  %v8828_v29 = vor.u32 %v11029_v22, %v8825_v19 }
 0x26b   :  { %3157 = vmatpush.bf16.msra.mxu3 %v8220_v7  ;;  %3179 = vmatpush.bf16.msrb.mxu1 %v8860_v8  ;;  %v8408_v15 = vor.u32 %v10929_v9, %v8407_v5  ;;  %v7996_v17 = vor.u32 %v10821_v10, %v7993_v54  ;;  %v10869_v18 = vld [vmem:[#allocation26 + $0x284] sm:$0xf] }
 0x26c   :  { %v12400_v39 = vsub.f32 %v12388_v25, %v1405_v20  ;;  %v1384_v40 = vrot.slane %v1383_v31, 1  ;;  %v12402_v41 = vadd.f32 %v1374_v63, %v1362_v32  ;;  %v8028_v25 = vor.u32 %v10829_v47, %v8025_v48  ;;  %v8185_v21 = vld [vmem:[#allocation26 + $0x2a0] sm:$0xf0] }
 0x26d   :  { %3120 = vmatpush.bf16.msra.mxu0 %v8408_v15  ;;  %v8188_v28 = vor.u32 %v10869_v18, %v8185_v21  ;;  %v10813_v20 = vld [vmem:[#allocation26 + $0xc4] sm:$0xf]  ;;  %v8604_v48 = vor.u32 %v10973_v34, %v8601_v38 }
 0x26e   :  { %v1413_v52 = vmul.f32 %v12400_v39, %v12400_v39  ;;  %v1385_v49 = vadd.f32 %v1384_v40, %v1383_v31  ;;  %v1398_v50 = vrot.slane %v12402_v41, 4  ;;  %3142 = vmatpush.bf16.msra.mxu2 %v8028_v25  ;;  %v7964_v37 = vor.u32 %v10813_v20, %v7961_v33  ;;  %v10861_v40 = vld [vmem:[#allocation26 + $0x244] sm:$0xf] }
 0x26f   :  { %v1335_v57 = vpop.f32.mrf.mxu2  ;;  %3158 = vmatpush.bf16.msra.mxu3 %v8188_v28  ;;  %3180 = vmatpush.bf16.msrb.mxu1 %v8828_v29  ;;  %v8156_v25 = vor.u32 %v10861_v40, %v8153_v43  ;;  %v11013_v9 = vld [vmem:[#allocation26 + $0x704] sm:$0xf] }
 0x270   :  { %v1422_v61 = vrot.slane %v1413_v52, 4  ;;  %v1404_v62 = vmul.f32 %v1385_v49, %v12356_v42  ;;  %v1399_v1 = vadd.f32 %v1398_v50, %v12402_v41  ;;  %v1336_v2 = vadd.f32 %v1335_v57, %v948_v35  ;;  %v1348_v3 = vpop.f32.mrf.mxu3  ;;  %v8793_v49 = vld [vmem:[#allocation26 + $0x760] sm:$0xf0] }
 0x271   :  { %v1363_v6 = vpop.f32.mrf.mxu0  ;;  %v7929_v57 = vld [vmem:[#allocation26 + $0xa0] sm:$0xf0] }
 0x272   :  { %v1423_v11 = vadd.f32 %v1422_v61, %v1413_v52  ;;  %v12410_v55 = vsub.f32 %v12392_v51, %v1404_v62  ;;  %v1400_v12 = vrot.slane %v1399_v1, 2  ;;  %v1376_v13 = vpop.f32.mrf.mxu1  ;;  %v12412_v14 = vadd.f32 %v1348_v3, %v1336_v2  ;;  %v8375_v51 = vld [vmem:[#allocation26 + $0x400] sm:$0xf]  ;;  %3143 = vmatpush.bf16.msra.mxu2 %v7996_v17  ;;  %v11021_v52 = vld [vmem:[#allocation26 + $0x744] sm:$0xf] }
 0x273   :  { %v8376_v0 = vor.u32 %v10921_v30, %v8375_v51  ;;  %v8796_v53 = vor.u32 %v11021_v52, %v8793_v49  ;;  %v7932_v60 = vor.u32 %v10805_v56, %v7929_v57  ;;  %v10965_v61 = vld [vmem:[#allocation26 + $0x584] sm:$0xf]  ;;  %3159 = vmatpush.bf16.msra.mxu3 %v8156_v25 }
 0x274   :  { %v1424_v23 = vrot.slane %v1423_v11, 2  ;;  %v1412_v24 = vmul.f32 %v12410_v55, %v12410_v55  ;;  %v1401_v26 = vadd.f32 %v1400_v12, %v1399_v1  ;;  %v1392_v27 = vrot.slane %v12412_v14, 4  ;;  %v8569_v62 = vld [vmem:[#allocation26 + $0x5a0] sm:$0xf0] }
 0x275   :  { %3121 = vmatpush.bf16.msra.mxu0 %v8376_v0  ;;  %3181 = vmatpush.bf16.msrb.mxu1 %v8796_v53  ;;  %v8572_v2 = vor.u32 %v10965_v61, %v8569_v62  ;;  %v10853_v3 = vld [vmem:[#allocation26 + $0x204] sm:$0xf] }
 0x276   :  { %v1425_v31 = vadd.f32 %v1424_v23, %v1423_v11  ;;  %v1416_v32 = vrot.slane %v1412_v24, 4  ;;  %v1402_v63 = vrot.slane %v1401_v26, 1  ;;  %v1393_v35 = vadd.f32 %v1392_v27, %v12412_v14  ;;  %3144 = vmatpush.bf16.msra.mxu2 %v7964_v37  ;;  %v8761_v10 = vld [vmem:[#allocation26 + $0x720] sm:$0xf0] }
 0x277   :  { %v1337_v36 = vpop.f32.mrf.mxu2  ;;  %v8124_v8 = vor.u32 %v10853_v3, %v8121_v4  ;;  %v8764_v11 = vor.u32 %v11013_v9, %v8761_v10  ;;  %v10797_v12 = vld [vmem:[#allocation26 + $0x44] sm:$0xf] }
 0x278   :  { %v1426_v44 = vrot.slane %v1425_v31, 1  ;;  %v1417_v45 = vadd.f32 %v1416_v32, %v1412_v24  ;;  %v1403_v46 = vadd.f32 %v1402_v63, %v1401_v26  ;;  %v1350_v47 = vpop.f32.mrf.mxu3  ;;  %v1394_v50 = vrot.slane %v1393_v35, 2  ;;  %v7897_v18 = vld [vmem:[#allocation26 + $0x60] sm:$0xf0] }
 0x279   :  { %3166 = vmatpush.bf16.msrb.mxu0 %v8604_v48  ;;  %3160 = vmatpush.bf16.msra.mxu3 %v8124_v8  ;;  %v10957_v22 = vld [vmem:[#allocation26 + $0x544] sm:$0xf] }
 0x27a   :  { %v1427_v58 = vadd.f32 %v1426_v44, %v1425_v31  ;;  %v1418_v16 = vrot.slane %v1417_v45, 2  ;;  %v1407_v59 = vmul.f32 %v1403_v46, %v12356_v42  ;;  %v1395_v1 = vadd.f32 %v1394_v50, %v1393_v35  ;;  %3145 = vmatpush.bf16.msra.mxu2 %v7932_v60  ;;  %3182 = vmatpush.bf16.msrb.mxu1 %v8764_v11  ;;  %v8537_v23 = vld [vmem:[#allocation26 + $0x560] sm:$0xf0] }
 0x27b   :  { %v11005_v24 = vld [vmem:[#allocation26 + $0x6c4] sm:$0xf]  ;;  %v8540_v28 = vor.u32 %v10957_v22, %v8537_v23 }
 0x27c   :  { %v1441_v5 = vmul.f32 %v1427_v58, %v12356_v42  ;;  %v1419_v6 = vadd.f32 %v1418_v16, %v1417_v45  ;;  %v12421_v7 = vsub.f32 %v12402_v41, %v1407_v59  ;;  %v1396_v54 = vrot.slane %v1395_v1, 1  ;;  %v8729_v51 = vld [vmem:[#allocation26 + $0x6e0] sm:$0xf0] }
 0x27d   :  { %3167 = vmatpush.bf16.msrb.mxu0 %v8572_v2  ;;  %v7900_v41 = vor.u32 %v10797_v12, %v7897_v18  ;;  %v8732_v29 = vor.u32 %v11005_v24, %v8729_v51  ;;  %v10789_v30 = vld [vmem:[#allocation26 + $0x4] sm:$0xf] }
 0x27e   :  { %v12423_v13 = vadd.f32 0.8, %v1441_v5  ;;  %v1420_v15 = vrot.slane %v1419_v6, 1  ;;  %v1415_v17 = vmul.f32 %v12421_v7, %v12421_v7  ;;  %v1397_v21 = vadd.f32 %v1396_v54, %v1395_v1  ;;  %v7865_v20 = vld [vmem:[#allocation26 + $0x20] sm:$0xf0] }
 0x27f   :  { %3146 = vmatpush.bf16.msra.mxu2 %v7900_v41  ;;  %v10949_v63 = vld [vmem:[#allocation26 + $0x504] sm:$0xf]  ;;  %3183 = vmatpush.bf16.msrb.mxu1 %v8732_v29  ;;  %v7868_v34 = vor.u32 %v10789_v30, %v7865_v20 }
 0x280   :  { %11534 = vrsqrt.f32 %v12423_v13  ;;  %v1421_v26 = vadd.f32 %v1420_v15, %v1419_v6  ;;  %v1434_v19 = vrot.slane %v1415_v17, 4  ;;  %v1406_v27 = vmul.f32 %v1397_v21, %v12356_v42  ;;  %v8505_v0 = vld [vmem:[#allocation26 + $0x520] sm:$0xf0]  ;;  %v12440_v6 = vld [vmem:[#allocation23] sm:$0xf] }
 0x281   :  { %3168 = vmatpush.bf16.msrb.mxu0 %v8540_v28  ;;  %v8508_v35 = vor.u32 %v10949_v63, %v8505_v0  ;;  %v10997_v36 = vld [vmem:[#allocation26 + $0x684] sm:$0xf]  ;;  %vm1464_vm12 = vweird.f32 %v12423_v13  ;;  %v1494_v23 = vperm.slane %v12440_v6, 1 }
 0x282   :  { %v1440_v31 = vmul.f32 %v1421_v26, %v12356_v42  ;;  %v1435_v32 = vadd.f32 %v1434_v19, %v1415_v17  ;;  %v12431_v33 = vsub.f32 %v12412_v14, %v1406_v27  ;;  %v8697_v40 = vld [vmem:[#allocation26 + $0x6a0] sm:$0xf0]  ;;  %v12446_v17 = vld [vmem:[#allocation25] sm:$0xf] }
 0x283   :  { %3147 = vmatpush.bf16.msra.mxu2 %v7868_v34  ;;  %v8700_v44 = vor.u32 %v10997_v36, %v8697_v40  ;;  %v10941_v45 = vld [vmem:[#allocation26 + $0x4c4] sm:$0xf]  ;;  %v1507_v27 = vperm.slane %v12446_v17, 1  ;;  %v10914_v40 = vld [vmem:[#allocation26 + $0x3e4] sm:$0xf0] }
 0x284   :  { %v12433_v37 = vadd.f32 0.8, %v1440_v31  ;;  %v1436_v38 = vrot.slane %v1435_v32, 2  ;;  %v1414_v43 = vmul.f32 %v12431_v33, %v12431_v33  ;;  %v8473_v47 = vld [vmem:[#allocation26 + $0x4e0] sm:$0xf0] }
 0x285   :  { %3169 = vmatpush.bf16.msrb.mxu0 %v8508_v35  ;;  %3184 = vmatpush.bf16.msrb.mxu1 %v8700_v44  ;;  %v8476_v49 = vor.u32 %v10941_v45, %v8473_v47  ;;  %v10989_v50 = vld [vmem:[#allocation26 + $0x644] sm:$0xf] }
 0x286   :  { %v11535_v46 = vpop.eup %11534  ;;  %11536 = vrsqrt.f32 %v12433_v37  ;;  %v1437_v14 = vadd.f32 %v1436_v38, %v1435_v32  ;;  %v1428_v52 = vrot.slane %v1414_v43, 4  ;;  %v8665_v25 = vld [vmem:[#allocation26 + $0x660] sm:$0xf0]  ;;  %vm1454_vm15 = vweird.f32 %v12433_v37  ;;  %v8351_v38 = vld [vmem:[#allocation26 + $0x3c8] sm:$0xf] }
 0x287   :  { %v1459_v48 = vmul.f32 %v11535_v46, %v12423_v13  ;;  %v8668_v56 = vor.u32 %v10989_v50, %v8665_v25  ;;  %v10933_v16 = vld [vmem:[#allocation26 + $0x484] sm:$0xf]  ;;  %vm1465_vm11 = vweird.f32 %v11535_v46  ;;  %v8352_v47 = vor.u32 %v10914_v40, %v8351_v38  ;;  %v10906_v50 = vld [vmem:[#allocation26 + $0x3a4] sm:$0xf0] }
 0x288   :  { %v1438_v53 = vrot.slane %v1437_v14, 1  ;;  %v1429_v58 = vadd.f32 %v1428_v52, %v1414_v43  ;;  %v8441_v59 = vld [vmem:[#allocation26 + $0x4a0] sm:$0xf0]  ;;  %vm1466_vm13 = vmor %vm1464_vm12, %vm1465_vm11  ;;  %v8191_v40 = vld [vmem:[#allocation26 + $0x288] sm:$0xf] }
 0x289   :  { %v1460_v57 = vmul.f32 %v11535_v46, %v1459_v48  ;;  %3170 = vmatpush.bf16.msrb.mxu0 %v8476_v49  ;;  %3185 = vmatpush.bf16.msrb.mxu1 %v8668_v56  ;;  %v8444_v1 = vor.u32 %v10933_v16, %v8441_v59  ;;  %v10981_v2 = vld [vmem:[#allocation26 + $0x604] sm:$0xf]  ;;  %v8319_v49 = vld [vmem:[#allocation26 + $0x388] sm:$0xf] }
 0x28a   :  { %v1439_v60 = vadd.f32 %v1438_v53, %v1437_v14  ;;  %v1430_v62 = vrot.slane %v1429_v58, 2  ;;  %v8633_v5 = vld [vmem:[#allocation26 + $0x620] sm:$0xf0]  ;;  %v8320_v59 = vor.u32 %v10906_v50, %v8319_v49 }
 0x28b   :  { %v1461_v61 = vmul.f32 0.5, %v1460_v57  ;;  %v8636_v11 = vor.u32 %v10981_v2, %v8633_v5  ;;  %v10925_v12 = vld [vmem:[#allocation26 + $0x444] sm:$0xf]  ;;  %v8095_v57 = vld [vmem:[#allocation26 + $0x1c8] sm:$0xf]  ;;  %v1496_v2 = vperm.slane %v12440_v6, 3 }
 0x28c   :  { %v11537_v3 = vpop.eup %11536  ;;  %v1443_v4 = vmul.f32 %v1439_v60, %v12356_v42  ;;  %v1431_v10 = vadd.f32 %v1430_v62, %v1429_v58  ;;  %v8409_v15 = vld [vmem:[#allocation26 + $0x460] sm:$0xf0]  ;;  %v10850_v58 = vld [vmem:[#allocation26 + $0x1e4] sm:$0xf0] }
 0x28d   :  { %v1462_v8 = vsub.f32 1.5, %v1461_v61  ;;  %v1449_v9 = vmul.f32 %v11537_v3, %v12433_v37  ;;  %3171 = vmatpush.bf16.msrb.mxu0 %v8444_v1  ;;  %v8412_v22 = vor.u32 %v10925_v12, %v8409_v15  ;;  %3186 = vmatpush.bf16.msrb.mxu1 %v8636_v11  ;;  %v10917_v19 = vld [vmem:[#allocation26 + $0x404] sm:$0xf]  ;;  %vm1455_vm14 = vweird.f32 %v11537_v3  ;;  %v8287_v61 = vld [vmem:[#allocation26 + $0x348] sm:$0xf] }
 0x28e   :  { %v12444_v54 = vadd.f32 0.8, %v1443_v4  ;;  %v1432_v41 = vrot.slane %v1431_v10, 1  ;;  %v8377_v28 = vld [vmem:[#allocation26 + $0x420] sm:$0xf0]  ;;  %vm1456_vm0 = vmor %vm1454_vm15, %vm1455_vm14  ;;  %v1506_v37 = vperm.slane %v12446_v17, 0  ;;  %v8096_v4 = vor.u32 %v10850_v58, %v8095_v57 }
 0x28f   :  { %v1463_v18 = vmul.f32 %v11535_v46, %v1462_v8  ;;  %v1450_v21 = vmul.f32 %v11537_v3, %v1449_v9  ;;  %v8380_v20 = vor.u32 %v10917_v19, %v8377_v28  ;;  %v10898_v62 = vld [vmem:[#allocation26 + $0x364] sm:$0xf0]  ;;  %v1509_v12 = vperm.slane %v12446_v17, 3 }
 0x290   :  { %11538 = vrsqrt.f32 %v12444_v54  ;;  %v1433_v26 = vadd.f32 %v1432_v41, %v1431_v10  ;;  %vm1484_vm4 = vweird.f32 %v12444_v54  ;;  %v8063_v9 = vld [vmem:[#allocation26 + $0x188] sm:$0xf]  ;;  %v1495_v28 = vperm.slane %v12440_v6, 2 }
 0x291   :  { %v1467_v24 = vsel %vm1466_vm13, %v11535_v46, %v1463_v18  ;;  %v1451_v13 = vmul.f32 0.5, %v1450_v21  ;;  %3172 = vmatpush.bf16.msrb.mxu0 %v8412_v22  ;;  %v10842_v10 = vld [vmem:[#allocation26 + $0x1a4] sm:$0xf0] }
 0x292   :  { %v1489_v51 = vmul.f32 %v1467_v24, %v12400_v39  ;;  %v1442_v30 = vmul.f32 %v1433_v26, %v12356_v42  ;;  %v1493_v39 = vperm.slane %v12440_v6, 0  ;;  %v8255_v18 = vld [vmem:[#allocation26 + $0x308] sm:$0xf] }
 0x293   :  { %v1452_v29 = vsub.f32 1.5, %v1451_v13  ;;  %v10890_v21 = vld [vmem:[#allocation26 + $0x324] sm:$0xf0] }
 0x294   :  { %v1502_v31 = vmul.f32 %v1494_v23, %v1489_v51  ;;  %v12454_v63 = vadd.f32 0.8, %v1442_v30  ;;  %v8064_v23 = vor.u32 %v10842_v10, %v8063_v9  ;;  %v8031_v24 = vld [vmem:[#allocation26 + $0x148] sm:$0xf] }
 0x295   :  { %v1453_v32 = vmul.f32 %v11537_v3, %v1452_v29  ;;  %3173 = vmatpush.bf16.msrb.mxu0 %v8380_v20  ;;  %v10834_v13 = vld [vmem:[#allocation26 + $0x164] sm:$0xf0] }
 0x296   :  { %v11539_v0 = vpop.eup %11538  ;;  %v1515_v34 = vadd.f32 %v1507_v27, %v1502_v31  ;;  %11540 = vrsqrt.f32 %v12454_v63  ;;  %vm1474_vm7 = vweird.f32 %v12454_v63  ;;  %v8223_v51 = vld [vmem:[#allocation26 + $0x2c8] sm:$0xf] }
 0x297   :  { %v1457_v35 = vsel %vm1456_vm0, %v11537_v3, %v1453_v32  ;;  %v1479_v36 = vmul.f32 %v11539_v0, %v12444_v54  ;;  %vm1485_vm2 = vweird.f32 %v11539_v0  ;;  %v8288_v54 = vor.u32 %v10898_v62, %v8287_v61  ;;  %v10882_v27 = vld [vmem:[#allocation26 + $0x2e4] sm:$0xf0] }
 0x298   :  { %vm1519_vm1 = vcmp.gt.f32.partialorder %v1515_v34, 0.0  ;;  %v1523_v43 = vmul.f32 0.2, %v1515_v34  ;;  %v1488_v44 = vmul.f32 %v1457_v35, %v12410_v55  ;;  %vm1486_vm5 = vmor %vm1484_vm4, %vm1485_vm2  ;;  %v8863_v29 = vld [vmem:[#allocation26 + $0x7c8] sm:$0xf]  ;;  %v8032_v32 = vor.u32 %v10834_v13, %v8031_v24 }
 0x299   :  { %v1480_v45 = vmul.f32 %v11539_v0, %v1479_v36  ;;  %v11042_v30 = vld [vmem:[#allocation26 + $0x7e4] sm:$0xf0]  ;;  %v8224_v36 = vor.u32 %v10882_v27, %v8223_v51  ;;  %v10902_v27 = vld [vmem:[#allocation26 + $0x38c] sm:$0xf] }
 0x29a   :  { %v1527_v46 = vsel %vm1519_vm1, %v1515_v34, %v1523_v43  ;;  %v1501_v14 = vmul.f32 %v1493_v39, %v1488_v44  ;;  %v1508_v34 = vperm.slane %v12446_v17, 2  ;;  %v7999_v39 = vld [vmem:[#allocation26 + $0x108] sm:$0xf]  ;;  %v8864_v38 = vor.u32 %v11042_v30, %v8863_v29 }
 0x29b   :  { %v12461_v48 = vpack.c.bf16 %v1527_v46, %v1527_v46  ;;  %v1481_v52 = vmul.f32 0.5, %v1480_v45  ;;  %v10874_v44 = vld [vmem:[#allocation26 + $0x2a4] sm:$0xf0] }
 0x29c   :  { %v1514_v25 = vadd.f32 %v1506_v37, %v1501_v14  ;;  %v11541_v53 = vpop.eup %11540  ;;  %v8831_v37 = vld [vmem:[#allocation26 + $0x788] sm:$0xf]  ;;  %v8192_v49 = vor.u32 %v10874_v44, %v8191_v40  ;;  %v10894_v40 = vld [vmem:[#allocation26 + $0x34c] sm:$0xf] }
 0x29d   :  { %v1482_v56 = vsub.f32 1.5, %v1481_v52  ;;  %3109 = vmatmul.bf16.vlgmr.msrb.gmra.mxu3 %v12461_v48  ;;  %v1469_v16 = vmul.f32 %v11541_v53, %v12454_v63  ;;  %vm1475_vm6 = vweird.f32 %v11541_v53  ;;  %v10826_v63 = vld [vmem:[#allocation26 + $0x124] sm:$0xf0] }
 0x29e   :  { %vm1518_vm3 = vcmp.gt.f32.partialorder %v1514_v25, 0.0  ;;  %v1522_v55 = vmul.f32 0.2, %v1514_v25  ;;  %3205 = vmatpush.bf16.msrb.mxu3 %v8352_v47  ;;  %vm1476_vm8 = vmor %vm1474_vm7, %vm1475_vm6  ;;  %v11034_v45 = vld [vmem:[#allocation26 + $0x7a4] sm:$0xf0]  ;;  %v8000_v46 = vor.u32 %v10826_v63, %v7999_v39 }
 0x29f   :  { %v1483_v60 = vmul.f32 %v11539_v0, %v1482_v56  ;;  %v1470_v3 = vmul.f32 %v11541_v53, %v1469_v16  ;;  %v7967_v14 = vld [vmem:[#allocation26 + $0xc8] sm:$0xf]  ;;  %v8832_v50 = vor.u32 %v11034_v45, %v8831_v37  ;;  %v8097_v39 = vld [vmem:[#allocation26 + $0x1e8] sm:$0xf0] }
 0x2a0   :  { %v1526_v1 = vsel %vm1518_vm3, %v1514_v25, %v1522_v55  ;;  %v8607_v17 = vld [vmem:[#allocation26 + $0x5c8] sm:$0xf] }
 0x2a1   :  { %v12467_v5 = vpack.c.bf16 %v1526_v1, %v1526_v1  ;;  %v1487_v8 = vsel %vm1486_vm5, %v11539_v0, %v1483_v60  ;;  %v1471_v15 = vmul.f32 0.5, %v1470_v3  ;;  %v10978_v52 = vld [vmem:[#allocation26 + $0x5e4] sm:$0xf0] }
 0x2a2   :  { %v1491_v11 = vmul.f32 %v1487_v8, %v12421_v7  ;;  %3206 = vmatpush.bf16.msrb.mxu3 %v8320_v59  ;;  %v8256_v7 = vor.u32 %v10890_v21, %v8255_v18  ;;  %v8159_v25 = vld [vmem:[#allocation26 + $0x248] sm:$0xf]  ;;  %v8608_v59 = vor.u32 %v10978_v52, %v8607_v17 }
 0x2a3   :  { %3096 = vmatmul.bf16.vlgmr.msrb.gmra.mxu2 %v12467_v5  ;;  %v1472_v22 = vsub.f32 1.5, %v1471_v15  ;;  %v8799_v56 = vld [vmem:[#allocation26 + $0x748] sm:$0xf]  ;;  %v10910_v15 = vld [vmem:[#allocation26 + $0x3cc] sm:$0xf] }
 0x2a4   :  { %v1504_v41 = vmul.f32 %v1496_v2, %v1491_v11  ;;  %3192 = vmatpush.bf16.msrb.mxu2 %v8096_v4  ;;  %v11026_v58 = vld [vmem:[#allocation26 + $0x764] sm:$0xf0] }
 0x2a5   :  { %v1473_v19 = vmul.f32 %v11541_v53, %v1472_v22  ;;  %v7935_v60 = vld [vmem:[#allocation26 + $0x88] sm:$0xf]  ;;  %v8800_v2 = vor.u32 %v11026_v58, %v8799_v56 }
 0x2a6   :  { %v1517_v26 = vadd.f32 %v1509_v12, %v1504_v41  ;;  %3207 = vmatpush.bf16.msrb.mxu3 %v8288_v54  ;;  %v10810_v61 = vld [vmem:[#allocation26 + $0xa4] sm:$0xf0]  ;;  %v8353_v54 = vld [vmem:[#allocation26 + $0x3e8] sm:$0xf0] }
 0x2a7   :  { %v1477_v31 = vsel %vm1476_vm8, %v11541_v53, %v1473_v19  ;;  %v10866_v53 = vld [vmem:[#allocation26 + $0x264] sm:$0xf0]  ;;  %v7936_v12 = vor.u32 %v10810_v61, %v7935_v60 }
 0x2a8   :  { %vm1521_vm9 = vcmp.gt.f32.partialorder %v1517_v26, 0.0  ;;  %v1525_v20 = vmul.f32 0.2, %v1517_v26  ;;  %3193 = vmatpush.bf16.msrb.mxu2 %v8064_v23  ;;  %v1490_v0 = vmul.f32 %v1477_v31, %v12431_v33  ;;  %v10818_v33 = vld [vmem:[#allocation26 + $0xe4] sm:$0xf0]  ;;  %v8160_v1 = vor.u32 %v10866_v53, %v8159_v25 }
 0x2a9   :  { %v7968_v55 = vor.u32 %v10818_v33, %v7967_v14  ;;  %v8575_v3 = vld [vmem:[#allocation26 + $0x588] sm:$0xf]  ;;  %v8065_v33 = vld [vmem:[#allocation26 + $0x1a8] sm:$0xf0] }
 0x2aa   :  { %v1529_v35 = vsel %vm1521_vm9, %v1517_v26, %v1525_v20  ;;  %3208 = vmatpush.bf16.msrb.mxu3 %v8256_v7  ;;  %v1503_v6 = vmul.f32 %v1495_v28, %v1490_v0  ;;  %v10970_v4 = vld [vmem:[#allocation26 + $0x5a4] sm:$0xf0]  ;;  %v8356_v26 = vor.u32 %v10910_v15, %v8353_v54  ;;  %v8321_v28 = vld [vmem:[#allocation26 + $0x3a8] sm:$0xf0] }
 0x2ab   :  { %v12476_v43 = vpack.c.bf16 %v1529_v35, %v1529_v35  ;;  %v8127_v8 = vld [vmem:[#allocation26 + $0x208] sm:$0xf]  ;;  %v8576_v18 = vor.u32 %v10970_v4, %v8575_v3  ;;  %v8324_v63 = vor.u32 %v10902_v27, %v8321_v28  ;;  %v8257_v25 = vld [vmem:[#allocation26 + $0x328] sm:$0xf0] }
 0x2ac   :  { %3194 = vmatpush.bf16.msrb.mxu2 %v8032_v32  ;;  %v1516_v47 = vadd.f32 %v1508_v34, %v1503_v6  ;;  %v10858_v9 = vld [vmem:[#allocation26 + $0x224] sm:$0xf0]  ;;  %v10846_v34 = vld [vmem:[#allocation26 + $0x1cc] sm:$0xf] }
 0x2ad   :  { %3135 = vmatmul.bf16.vlgmr.msra.gmra.mxu1 %v12476_v43  ;;  %3161 = vmatmul.bf16.vlgmr.msra.gmra.mxu3 %v12461_v48  ;;  %v8767_v10 = vld [vmem:[#allocation26 + $0x708] sm:$0xf]  ;;  %v8128_v22 = vor.u32 %v10858_v9, %v8127_v8  ;;  %v8289_v6 = vld [vmem:[#allocation26 + $0x368] sm:$0xf0]  ;;  %v8100_v37 = vor.u32 %v10846_v34, %v8097_v39 }
 0x2ae   :  { %3209 = vmatpush.bf16.msrb.mxu3 %v8224_v36  ;;  %3231 = vmatpush.bf16.msra.mxu1 %v8864_v38  ;;  %vm1520_vm10 = vcmp.gt.f32.partialorder %v1516_v47, 0.0  ;;  %v1524_v57 = vmul.f32 0.2, %v1516_v47  ;;  %v11018_v11 = vld [vmem:[#allocation26 + $0x724] sm:$0xf0]  ;;  %v8292_v17 = vor.u32 %v10894_v40, %v8289_v6 }
 0x2af   :  { %v7903_v21 = vld [vmem:[#allocation26 + $0x48] sm:$0xf]  ;;  %v8768_v23 = vor.u32 %v11018_v11, %v8767_v10  ;;  %v8225_v3 = vld [vmem:[#allocation26 + $0x2e8] sm:$0xf0] }
 0x2b0   :  { %3195 = vmatpush.bf16.msrb.mxu2 %v8000_v46  ;;  %v1528_v16 = vsel %vm1520_vm10, %v1516_v47, %v1524_v57  ;;  %v10802_v41 = vld [vmem:[#allocation26 + $0x64] sm:$0xf0]  ;;  %v10838_v47 = vld [vmem:[#allocation26 + $0x18c] sm:$0xf] }
 0x2b1   :  { %v12480_v62 = vpack.c.bf16 %v1528_v16, %v1528_v16  ;;  %v8543_v24 = vld [vmem:[#allocation26 + $0x548] sm:$0xf]  ;;  %v7904_v51 = vor.u32 %v10802_v41, %v7903_v21  ;;  %v8068_v56 = vor.u32 %v10838_v47, %v8065_v33  ;;  %v10830_v16 = vld [vmem:[#allocation26 + $0x14c] sm:$0xf] }
 0x2b2   :  { %3210 = vmatpush.bf16.msrb.mxu3 %v8192_v49  ;;  %3232 = vmatpush.bf16.msra.mxu1 %v8832_v50  ;;  %v10962_v13 = vld [vmem:[#allocation26 + $0x564] sm:$0xf0]  ;;  %v10886_v50 = vld [vmem:[#allocation26 + $0x30c] sm:$0xf] }
 0x2b3   :  { %3148 = vmatmul.bf16.vlgmr.msra.gmra.mxu2 %v12467_v5  ;;  %3122 = vmatmul.bf16.vlgmr.msra.gmra.mxu0 %v12480_v62  ;;  %v8735_v19 = vld [vmem:[#allocation26 + $0x6c8] sm:$0xf]  ;;  %v8544_v29 = vor.u32 %v10962_v13, %v8543_v24  ;;  %v8260_v60 = vor.u32 %v10886_v50, %v8257_v25  ;;  %v11038_v4 = vld [vmem:[#allocation26 + $0x7cc] sm:$0xf] }
 0x2b4   :  { %3196 = vmatpush.bf16.msrb.mxu2 %v7968_v55  ;;  %3218 = vmatpush.bf16.msra.mxu0 %v8608_v59  ;;  %v11010_v7 = vld [vmem:[#allocation26 + $0x6e4] sm:$0xf0]  ;;  %v8033_v59 = vld [vmem:[#allocation26 + $0x168] sm:$0xf0] }
 0x2b5   :  { %v7871_v30 = vld [vmem:[#allocation26 + $0x8] sm:$0xf]  ;;  %v8736_v32 = vor.u32 %v11010_v7, %v8735_v19  ;;  %v8865_v8 = vld [vmem:[#allocation26 + $0x7e8] sm:$0xf0]  ;;  %v8036_v10 = vor.u32 %v10830_v16, %v8033_v59 }
 0x2b6   :  { %3211 = vmatpush.bf16.msrb.mxu3 %v8160_v1  ;;  %3233 = vmatpush.bf16.msra.mxu1 %v8800_v2  ;;  %v10794_v20 = vld [vmem:[#allocation26 + $0x24] sm:$0xf0]  ;;  %v10878_v2 = vld [vmem:[#allocation26 + $0x2cc] sm:$0xf]  ;;  %v8868_v41 = vor.u32 %v11038_v4, %v8865_v8 }
 0x2b7   :  { %v8511_v31 = vld [vmem:[#allocation26 + $0x508] sm:$0xf]  ;;  %v7872_v38 = vor.u32 %v10794_v20, %v7871_v30  ;;  %v10822_v54 = vld [vmem:[#allocation26 + $0x10c] sm:$0xf]  ;;  %v8228_v21 = vor.u32 %v10878_v2, %v8225_v3  ;;  %v10907_v2 = vld [vmem:[#allocation26 + $0x3ac] sm:$0xf0] }
 0x2b8   :  { %3197 = vmatpush.bf16.msrb.mxu2 %v7936_v12  ;;  %3219 = vmatpush.bf16.msra.mxu0 %v8576_v18  ;;  %v10954_v0 = vld [vmem:[#allocation26 + $0x524] sm:$0xf0]  ;;  %v8001_v18 = vld [vmem:[#allocation26 + $0x128] sm:$0xf0] }
 0x2b9   :  { %v8703_v35 = vld [vmem:[#allocation26 + $0x688] sm:$0xf]  ;;  %v8512_v44 = vor.u32 %v10954_v0, %v8511_v31  ;;  %v11030_v24 = vld [vmem:[#allocation26 + $0x78c] sm:$0xf]  ;;  %v8004_v19 = vor.u32 %v10822_v54, %v8001_v18 }
 0x2ba   :  { %3212 = vmatpush.bf16.msrb.mxu3 %v8128_v22  ;;  %3234 = vmatpush.bf16.msra.mxu1 %v8768_v23  ;;  %v11002_v36 = vld [vmem:[#allocation26 + $0x6a4] sm:$0xf0]  ;;  %v10870_v22 = vld [vmem:[#allocation26 + $0x28c] sm:$0xf] }
 0x2bb   :  { %v8479_v45 = vld [vmem:[#allocation26 + $0x4c8] sm:$0xf]  ;;  %v8704_v46 = vor.u32 %v11002_v36, %v8703_v35  ;;  %v8193_v23 = vld [vmem:[#allocation26 + $0x2a8] sm:$0xf0] }
 0x2bc   :  { %3198 = vmatpush.bf16.msrb.mxu2 %v7904_v51  ;;  %3220 = vmatpush.bf16.msra.mxu0 %v8544_v29  ;;  %v10946_v14 = vld [vmem:[#allocation26 + $0x4e4] sm:$0xf0]  ;;  %v8833_v13 = vld [vmem:[#allocation26 + $0x7a8] sm:$0xf0]  ;;  %v8196_v29 = vor.u32 %v10870_v22, %v8193_v23  ;;  %v8295_v22 = vld [vmem:[#allocation26 + $0x350] sm:$0xf] }
 0x2bd   :  { %3187 = vmatmul.bf16.vlgmr.msrb.gmra.mxu1 %v12476_v43  ;;  %3213 = vmatmul.bf16.vlgmr.msrb.gmra.mxu3 %v12461_v48  ;;  %v8671_v52 = vld [vmem:[#allocation26 + $0x648] sm:$0xf]  ;;  %v8480_v53 = vor.u32 %v10946_v14, %v8479_v45  ;;  %v10814_v27 = vld [vmem:[#allocation26 + $0xcc] sm:$0xf]  ;;  %v8836_v30 = vor.u32 %v11030_v24, %v8833_v13  ;;  %v10899_v23 = vld [vmem:[#allocation26 + $0x36c] sm:$0xf0] }
 0x2be   :  { %3257 = vmatpush.bf16.msra.mxu3 %v8356_v26  ;;  %3235 = vmatpush.bf16.msra.mxu1 %v8736_v32  ;;  %v10994_v49 = vld [vmem:[#allocation26 + $0x664] sm:$0xf0]  ;;  %v7969_v28 = vld [vmem:[#allocation26 + $0xe8] sm:$0xf0] }
 0x2bf   :  { %v8447_v57 = vld [vmem:[#allocation26 + $0x488] sm:$0xf]  ;;  %v8672_v58 = vor.u32 %v10994_v49, %v8671_v52  ;;  %v10974_v20 = vld [vmem:[#allocation26 + $0x5cc] sm:$0xf]  ;;  %v7972_v35 = vor.u32 %v10814_v27, %v7969_v28  ;;  %v8359_v52 = vld [vmem:[#allocation26 + $0x3d0] sm:$0xf]  ;;  %v8296_v28 = vor.u32 %v10899_v23, %v8295_v22 }
 0x2c0   :  { %3199 = vmatpush.bf16.msrb.mxu2 %v7872_v38  ;;  %3221 = vmatpush.bf16.msra.mxu0 %v8512_v44  ;;  %v10938_v55 = vld [vmem:[#allocation26 + $0x4a4] sm:$0xf0]  ;;  %v8609_v31 = vld [vmem:[#allocation26 + $0x5e8] sm:$0xf0]  ;;  %v10915_v49 = vld [vmem:[#allocation26 + $0x3ec] sm:$0xf0] }
 0x2c1   :  { %v8639_v61 = vld [vmem:[#allocation26 + $0x608] sm:$0xf]  ;;  %v8448_v9 = vor.u32 %v10938_v55, %v8447_v57  ;;  %v10862_v32 = vld [vmem:[#allocation26 + $0x24c] sm:$0xf]  ;;  %v8612_v36 = vor.u32 %v10974_v20, %v8609_v31  ;;  %v8360_v16 = vor.u32 %v10915_v49, %v8359_v52  ;;  %v10843_v27 = vld [vmem:[#allocation26 + $0x1ac] sm:$0xf0] }
 0x2c2   :  { %3258 = vmatpush.bf16.msra.mxu3 %v8324_v63  ;;  %3236 = vmatpush.bf16.msra.mxu1 %v8704_v46  ;;  %v10986_v1 = vld [vmem:[#allocation26 + $0x624] sm:$0xf0]  ;;  %v8161_v0 = vld [vmem:[#allocation26 + $0x268] sm:$0xf0]  ;;  %v8263_v20 = vld [vmem:[#allocation26 + $0x310] sm:$0xf] }
 0x2c3   :  { %3200 = vmatmul.bf16.vlgmr.msrb.gmra.mxu2 %v12467_v5  ;;  %3174 = vmatmul.bf16.vlgmr.msrb.gmra.mxu0 %v12480_v62  ;;  %v8415_v11 = vld [vmem:[#allocation26 + $0x448] sm:$0xf]  ;;  %v8640_v12 = vor.u32 %v10986_v1, %v8639_v61  ;;  %v11022_v34 = vld [vmem:[#allocation26 + $0x74c] sm:$0xf]  ;;  %v8164_v6 = vor.u32 %v10862_v32, %v8161_v0  ;;  %v8327_v1 = vld [vmem:[#allocation26 + $0x390] sm:$0xf] }
 0x2c4   :  { %3244 = vmatpush.bf16.msra.mxu2 %v8100_v37  ;;  %3222 = vmatpush.bf16.msra.mxu0 %v8480_v53  ;;  %v10930_v15 = vld [vmem:[#allocation26 + $0x464] sm:$0xf0]  ;;  %v8801_v39 = vld [vmem:[#allocation26 + $0x768] sm:$0xf0]  ;;  %v8328_v54 = vor.u32 %v10907_v2, %v8327_v1  ;;  %v10891_v31 = vld [vmem:[#allocation26 + $0x32c] sm:$0xf0] }
 0x2c5   :  { %v8416_v26 = vor.u32 %v10930_v15, %v8415_v11  ;;  %v8383_v7 = vld [vmem:[#allocation26 + $0x408] sm:$0xf]  ;;  %v10806_v38 = vld [vmem:[#allocation26 + $0x8c] sm:$0xf]  ;;  %v8804_v44 = vor.u32 %v11022_v34, %v8801_v39  ;;  %v10851_v15 = vld [vmem:[#allocation26 + $0x1ec] sm:$0xf0] }
 0x2c6   :  { %3259 = vmatpush.bf16.msra.mxu3 %v8292_v17  ;;  %3237 = vmatpush.bf16.msra.mxu1 %v8672_v58  ;;  %v10922_v51 = vld [vmem:[#allocation26 + $0x424] sm:$0xf0]  ;;  %v7937_v40 = vld [vmem:[#allocation26 + $0xa8] sm:$0xf0]  ;;  %v7975_v1 = vld [vmem:[#allocation26 + $0xd0] sm:$0xf] }
 0x2c7   :  { %v8384_v63 = vor.u32 %v10922_v51, %v8383_v7  ;;  %v10966_v37 = vld [vmem:[#allocation26 + $0x58c] sm:$0xf]  ;;  %v7940_v17 = vor.u32 %v10806_v38, %v7937_v40  ;;  %v8071_v51 = vld [vmem:[#allocation26 + $0x190] sm:$0xf]  ;;  %v8264_v38 = vor.u32 %v10891_v31, %v8263_v20 }
 0x2c8   :  { %3245 = vmatpush.bf16.msra.mxu2 %v8068_v56  ;;  %3223 = vmatpush.bf16.msra.mxu0 %v8448_v9  ;;  %v8577_v45 = vld [vmem:[#allocation26 + $0x5a8] sm:$0xf0]  ;;  %v8072_v0 = vor.u32 %v10843_v27, %v8071_v51  ;;  %v10819_v2 = vld [vmem:[#allocation26 + $0xec] sm:$0xf0] }
 0x2c9   :  { %v10854_v46 = vld [vmem:[#allocation26 + $0x20c] sm:$0xf]  ;;  %v8580_v50 = vor.u32 %v10966_v37, %v8577_v45  ;;  %v10883_v37 = vld [vmem:[#allocation26 + $0x2ec] sm:$0xf0] }
 0x2ca   :  { %3260 = vmatpush.bf16.msra.mxu3 %v8260_v60  ;;  %3238 = vmatpush.bf16.msra.mxu1 %v8640_v12  ;;  %v8129_v14 = vld [vmem:[#allocation26 + $0x228] sm:$0xf0]  ;;  %v8103_v12 = vld [vmem:[#allocation26 + $0x1d0] sm:$0xf] }
 0x2cb   :  { %v11014_v47 = vld [vmem:[#allocation26 + $0x70c] sm:$0xf]  ;;  %v8132_v56 = vor.u32 %v10854_v46, %v8129_v14  ;;  %v8104_v13 = vor.u32 %v10851_v15, %v8103_v12  ;;  %v8871_v45 = vld [vmem:[#allocation26 + $0x7d0] sm:$0xf] }
 0x2cc   :  { %3246 = vmatpush.bf16.msra.mxu2 %v8036_v10  ;;  %3224 = vmatpush.bf16.msra.mxu0 %v8416_v26  ;;  %v8769_v33 = vld [vmem:[#allocation26 + $0x728] sm:$0xf0]  ;;  %v11043_v46 = vld [vmem:[#allocation26 + $0x7ec] sm:$0xf0] }
 0x2cd   :  { %3239 = vmatmul.bf16.vlgmr.msra.gmra.mxu1 %v12476_v43  ;;  %v10798_v25 = vld [vmem:[#allocation26 + $0x4c] sm:$0xf]  ;;  %v8772_v57 = vor.u32 %v11014_v47, %v8769_v33  ;;  %v8807_v12 = vld [vmem:[#allocation26 + $0x750] sm:$0xf] }
 0x2ce   :  { %3261 = vmatpush.bf16.msra.mxu3 %v8228_v21  ;;  %3283 = vmatpush.bf16.msrb.mxu1 %v8868_v41  ;;  %v7905_v53 = vld [vmem:[#allocation26 + $0x68] sm:$0xf0]  ;;  %v11027_v15 = vld [vmem:[#allocation26 + $0x76c] sm:$0xf0] }
 0x2cf   :  { %v10958_v58 = vld [vmem:[#allocation26 + $0x54c] sm:$0xf]  ;;  %v7908_v61 = vor.u32 %v10798_v25, %v7905_v53  ;;  %v8007_v25 = vld [vmem:[#allocation26 + $0x110] sm:$0xf] }
 0x2d0   :  { %3247 = vmatpush.bf16.msra.mxu2 %v8004_v19  ;;  %3225 = vmatpush.bf16.msra.mxu0 %v8384_v63  ;;  %v8545_v55 = vld [vmem:[#allocation26 + $0x568] sm:$0xf0]  ;;  %v10827_v53 = vld [vmem:[#allocation26 + $0x12c] sm:$0xf0] }
 0x2d1   :  { %v11006_v59 = vld [vmem:[#allocation26 + $0x6cc] sm:$0xf]  ;;  %v8548_v3 = vor.u32 %v10958_v58, %v8545_v55  ;;  %v8839_v58 = vld [vmem:[#allocation26 + $0x790] sm:$0xf] }
 0x2d2   :  { %3262 = vmatpush.bf16.msra.mxu3 %v8196_v29  ;;  %3284 = vmatpush.bf16.msrb.mxu1 %v8836_v30  ;;  %v8737_v60 = vld [vmem:[#allocation26 + $0x6e8] sm:$0xf0]  ;;  %v11035_v55 = vld [vmem:[#allocation26 + $0x7ac] sm:$0xf0] }
 0x2d3   :  { %3226 = vmatmul.bf16.vlgmr.msra.gmra.mxu0 %v12480_v62  ;;  %v10790_v4 = vld [vmem:[#allocation26 + $0xc] sm:$0xf]  ;;  %v8740_v10 = vor.u32 %v11006_v59, %v8737_v60  ;;  %v8008_v60 = vor.u32 %v10827_v53, %v8007_v25  ;;  %v10811_v22 = vld [vmem:[#allocation26 + $0xac] sm:$0xf0]  ;;  %v10895_v53 = vld [vmem:[#allocation26 + $0x354] sm:$0xf] }
 0x2d4   :  { %3248 = vmatpush.bf16.msra.mxu2 %v7972_v35  ;;  %3270 = vmatpush.bf16.msrb.mxu0 %v8612_v36  ;;  %v7873_v8 = vld [vmem:[#allocation26 + $0x28] sm:$0xf0]  ;;  %v8039_v35 = vld [vmem:[#allocation26 + $0x150] sm:$0xf] }
 0x2d5   :  { %v10950_v9 = vld [vmem:[#allocation26 + $0x50c] sm:$0xf]  ;;  %v7876_v41 = vor.u32 %v10790_v4, %v7873_v8  ;;  %v10835_v36 = vld [vmem:[#allocation26 + $0x16c] sm:$0xf0]  ;;  %v8840_v4 = vor.u32 %v11035_v55, %v8839_v58 }
 0x2d6   :  { %3263 = vmatpush.bf16.msra.mxu3 %v8164_v6  ;;  %3285 = vmatpush.bf16.msrb.mxu1 %v8804_v44  ;;  %v8513_v11 = vld [vmem:[#allocation26 + $0x528] sm:$0xf0]  ;;  %v8231_v44 = vld [vmem:[#allocation26 + $0x2d0] sm:$0xf]  ;;  %v8040_v47 = vor.u32 %v10835_v36, %v8039_v35 }
 0x2d7   :  { %v10998_v18 = vld [vmem:[#allocation26 + $0x68c] sm:$0xf]  ;;  %v8516_v24 = vor.u32 %v10950_v9, %v8513_v11  ;;  %v8232_v49 = vor.u32 %v10883_v37, %v8231_v44  ;;  %v8615_v8 = vld [vmem:[#allocation26 + $0x5d0] sm:$0xf] }
 0x2d8   :  { %3249 = vmatpush.bf16.msra.mxu2 %v7940_v17  ;;  %3271 = vmatpush.bf16.msrb.mxu0 %v8580_v50  ;;  %v8705_v21 = vld [vmem:[#allocation26 + $0x6a8] sm:$0xf0]  ;;  %v8872_v50 = vor.u32 %v11043_v46, %v8871_v45  ;;  %v10979_v9 = vld [vmem:[#allocation26 + $0x5ec] sm:$0xf0] }
 0x2d9   :  { %v10942_v26 = vld [vmem:[#allocation26 + $0x4cc] sm:$0xf]  ;;  %v8708_v19 = vor.u32 %v10998_v18, %v8705_v21  ;;  %v10867_v11 = vld [vmem:[#allocation26 + $0x26c] sm:$0xf0]  ;;  %v7976_v18 = vor.u32 %v10819_v2, %v7975_v1  ;;  %v8616_v21 = vor.u32 %v10979_v9, %v8615_v8  ;;  %v8073_v2 = vld [vmem:[#allocation26 + $0x1b0] sm:$0xf0] }
 0x2da   :  { %3264 = vmatpush.bf16.msra.mxu3 %v8132_v56  ;;  %3286 = vmatpush.bf16.msrb.mxu1 %v8772_v57  ;;  %v8481_v7 = vld [vmem:[#allocation26 + $0x4e8] sm:$0xf0]  ;;  %v8199_v56 = vld [vmem:[#allocation26 + $0x290] sm:$0xf]  ;;  %v10887_v8 = vld [vmem:[#allocation26 + $0x314] sm:$0xf] }
 0x2db   :  { %v10990_v29 = vld [vmem:[#allocation26 + $0x64c] sm:$0xf]  ;;  %v8484_v32 = vor.u32 %v10942_v26, %v8481_v7  ;;  %v10875_v57 = vld [vmem:[#allocation26 + $0x2ac] sm:$0xf0]  ;;  %v8265_v9 = vld [vmem:[#allocation26 + $0x330] sm:$0xf0] }
 0x2dc   :  { %3250 = vmatpush.bf16.msra.mxu2 %v7908_v61  ;;  %3272 = vmatpush.bf16.msrb.mxu0 %v8548_v3  ;;  %v8673_v30 = vld [vmem:[#allocation26 + $0x668] sm:$0xf0]  ;;  %v8200_v3 = vor.u32 %v10875_v57, %v8199_v56  ;;  %v10971_v26 = vld [vmem:[#allocation26 + $0x5ac] sm:$0xf0]  ;;  %v8297_v56 = vld [vmem:[#allocation26 + $0x370] sm:$0xf0] }
 0x2dd   :  { %3265 = vmatmul.bf16.vlgmr.msra.gmra.mxu3 %v12461_v48  ;;  %v10934_v34 = vld [vmem:[#allocation26 + $0x48c] sm:$0xf]  ;;  %v8676_v39 = vor.u32 %v10990_v29, %v8673_v30  ;;  %v10859_v7 = vld [vmem:[#allocation26 + $0x22c] sm:$0xf0]  ;;  %v8361_v29 = vld [vmem:[#allocation26 + $0x3f0] sm:$0xf0]  ;;  %v8300_v1 = vor.u32 %v10895_v53, %v8297_v56 }
 0x2de   :  { %3309 = vmatpush.bf16.msrb.mxu3 %v8360_v16  ;;  %3287 = vmatpush.bf16.msrb.mxu1 %v8740_v10  ;;  %v8449_v63 = vld [vmem:[#allocation26 + $0x4a8] sm:$0xf0]  ;;  %v8167_v10 = vld [vmem:[#allocation26 + $0x250] sm:$0xf]  ;;  %v10807_v53 = vld [vmem:[#allocation26 + $0x94] sm:$0xf] }
 0x2df   :  { %v10982_v40 = vld [vmem:[#allocation26 + $0x60c] sm:$0xf]  ;;  %v8452_v14 = vor.u32 %v10934_v34, %v8449_v63  ;;  %v8168_v23 = vor.u32 %v10867_v11, %v8167_v10  ;;  %v8775_v51 = vld [vmem:[#allocation26 + $0x710] sm:$0xf]  ;;  %v7945_v56 = vld [vmem:[#allocation26 + $0xb0] sm:$0xf0] }
 0x2e0   :  { %3251 = vmatpush.bf16.msra.mxu2 %v7876_v41  ;;  %3273 = vmatpush.bf16.msrb.mxu0 %v8516_v24  ;;  %v8641_v6 = vld [vmem:[#allocation26 + $0x628] sm:$0xf0]  ;;  %v7943_v41 = vld [vmem:[#allocation26 + $0x90] sm:$0xf]  ;;  %v8808_v24 = vor.u32 %v11027_v15, %v8807_v12 }
 0x2e1   :  { %v8644_v33 = vor.u32 %v10982_v40, %v8641_v6  ;;  %v10926_v17 = vld [vmem:[#allocation26 + $0x44c] sm:$0xf]  ;;  %v11019_v27 = vld [vmem:[#allocation26 + $0x72c] sm:$0xf0]  ;;  %v7944_v30 = vor.u32 %v10811_v22, %v7943_v41  ;;  %v10903_v40 = vld [vmem:[#allocation26 + $0x394] sm:$0xf]  ;;  %v8268_v41 = vor.u32 %v10887_v8, %v8265_v9 }
 0x2e2   :  { %3310 = vmatpush.bf16.msrb.mxu3 %v8328_v54  ;;  %3288 = vmatpush.bf16.msrb.mxu1 %v8708_v19  ;;  %v8417_v52 = vld [vmem:[#allocation26 + $0x468] sm:$0xf0]  ;;  %v8135_v19 = vld [vmem:[#allocation26 + $0x210] sm:$0xf]  ;;  %v8329_v6 = vld [vmem:[#allocation26 + $0x3b0] sm:$0xf0] }
 0x2e3   :  { %3252 = vmatmul.bf16.vlgmr.msra.gmra.mxu2 %v12467_v5  ;;  %v8420_v16 = vor.u32 %v10926_v17, %v8417_v52  ;;  %v10918_v59 = vld [vmem:[#allocation26 + $0x40c] sm:$0xf]  ;;  %v7911_v31 = vld [vmem:[#allocation26 + $0x50] sm:$0xf]  ;;  %v10847_v17 = vld [vmem:[#allocation26 + $0x1d4] sm:$0xf]  ;;  %v8332_v52 = vor.u32 %v10903_v40, %v8329_v6 }
 0x2e4   :  { %3296 = vmatpush.bf16.msrb.mxu2 %v8104_v13  ;;  %3274 = vmatpush.bf16.msrb.mxu0 %v8484_v32  ;;  %v8385_v61 = vld [vmem:[#allocation26 + $0x428] sm:$0xf0]  ;;  %v8583_v13 = vld [vmem:[#allocation26 + $0x590] sm:$0xf]  ;;  %v8136_v32 = vor.u32 %v10859_v7, %v8135_v19  ;;  %v8873_v19 = vld [vmem:[#allocation26 + $0x7f0] sm:$0xf0] }
 0x2e5   :  { %v8388_v54 = vor.u32 %v10918_v59, %v8385_v61  ;;  %v8584_v20 = vor.u32 %v10971_v26, %v8583_v13  ;;  %v10803_v34 = vld [vmem:[#allocation26 + $0x6c] sm:$0xf0]  ;;  %v10839_v61 = vld [vmem:[#allocation26 + $0x194] sm:$0xf] }
 0x2e6   :  { %3311 = vmatpush.bf16.msrb.mxu3 %v8296_v28  ;;  %3289 = vmatpush.bf16.msrb.mxu1 %v8676_v39  ;;  %v10911_v28 = vld [vmem:[#allocation26 + $0x3d4] sm:$0xf]  ;;  %v8551_v39 = vld [vmem:[#allocation26 + $0x550] sm:$0xf]  ;;  %v7912_v44 = vor.u32 %v10803_v34, %v7911_v31  ;;  %v8076_v12 = vor.u32 %v10839_v61, %v8073_v2  ;;  %v8367_v2 = vld [vmem:[#allocation26 + $0x3d8] sm:$0xf] }
 0x2e7   :  { %v10963_v63 = vld [vmem:[#allocation26 + $0x56c] sm:$0xf0]  ;;  %v8364_v35 = vor.u32 %v10911_v28, %v8361_v29  ;;  %v8233_v13 = vld [vmem:[#allocation26 + $0x2f0] sm:$0xf0] }
 0x2e8   :  { %3297 = vmatpush.bf16.msrb.mxu2 %v8072_v0  ;;  %3275 = vmatpush.bf16.msrb.mxu0 %v8452_v14  ;;  %v8776_v0 = vor.u32 %v11019_v27, %v8775_v51  ;;  %v8743_v36 = vld [vmem:[#allocation26 + $0x6d0] sm:$0xf]  ;;  %v8552_v37 = vor.u32 %v10963_v63, %v8551_v39  ;;  %v11039_v26 = vld [vmem:[#allocation26 + $0x7d4] sm:$0xf] }
 0x2e9   :  { %v7879_v45 = vld [vmem:[#allocation26 + $0x10] sm:$0xf]  ;;  %v10823_v31 = vld [vmem:[#allocation26 + $0x114] sm:$0xf] }
 0x2ea   :  { %3312 = vmatpush.bf16.msrb.mxu3 %v8264_v38  ;;  %3290 = vmatpush.bf16.msrb.mxu1 %v8644_v33  ;;  %v11011_v38 = vld [vmem:[#allocation26 + $0x6ec] sm:$0xf0]  ;;  %v8201_v34 = vld [vmem:[#allocation26 + $0x2b0] sm:$0xf0] }
 0x2eb   :  { %v10795_v46 = vld [vmem:[#allocation26 + $0x2c] sm:$0xf0]  ;;  %v8744_v14 = vor.u32 %v11011_v38, %v8743_v36  ;;  %v11031_v39 = vld [vmem:[#allocation26 + $0x794] sm:$0xf] }
 0x2ec   :  { %3298 = vmatpush.bf16.msrb.mxu2 %v8040_v47  ;;  %3276 = vmatpush.bf16.msrb.mxu0 %v8420_v16  ;;  %v8519_v47 = vld [vmem:[#allocation26 + $0x510] sm:$0xf]  ;;  %v7880_v57 = vor.u32 %v10795_v46, %v7879_v45  ;;  %v8841_v63 = vld [vmem:[#allocation26 + $0x7b0] sm:$0xf0] }
 0x2ed   :  { %3291 = vmatmul.bf16.vlgmr.msrb.gmra.mxu1 %v12476_v43  ;;  %v10955_v33 = vld [vmem:[#allocation26 + $0x52c] sm:$0xf0]  ;;  %v10815_v6 = vld [vmem:[#allocation26 + $0xd4] sm:$0xf]  ;;  %v8844_v45 = vor.u32 %v11031_v39, %v8841_v63 }
 0x2ee   :  { %3313 = vmatpush.bf16.msrb.mxu3 %v8232_v49  ;;  %3335 = vmatpush.bf16.msra.mxu1 %v8872_v50  ;;  %v8105_v49 = vld [vmem:[#allocation26 + $0x1f0] sm:$0xf0]  ;;  %v8711_v50 = vld [vmem:[#allocation26 + $0x690] sm:$0xf]  ;;  %v8520_v58 = vor.u32 %v10955_v33, %v8519_v47 }
 0x2ef   :  { %v11003_v25 = vld [vmem:[#allocation26 + $0x6ac] sm:$0xf0]  ;;  %v8108_v55 = vor.u32 %v10847_v17, %v8105_v49  ;;  %v10975_v46 = vld [vmem:[#allocation26 + $0x5d4] sm:$0xf] }
 0x2f0   :  { %3299 = vmatpush.bf16.msrb.mxu2 %v8008_v60  ;;  %3277 = vmatpush.bf16.msrb.mxu0 %v8388_v54  ;;  %v8712_v16 = vor.u32 %v11003_v25, %v8711_v50  ;;  %v8487_v59 = vld [vmem:[#allocation26 + $0x4d0] sm:$0xf]  ;;  %v10863_v47 = vld [vmem:[#allocation26 + $0x254] sm:$0xf] }
 0x2f1   :  { %v10947_v60 = vld [vmem:[#allocation26 + $0x4ec] sm:$0xf0]  ;;  %v8169_v33 = vld [vmem:[#allocation26 + $0x270] sm:$0xf0] }
 0x2f2   :  { %3314 = vmatpush.bf16.msrb.mxu3 %v8200_v3  ;;  %3336 = vmatpush.bf16.msra.mxu1 %v8840_v4  ;;  %v8679_v3 = vld [vmem:[#allocation26 + $0x650] sm:$0xf]  ;;  %v8488_v10 = vor.u32 %v10947_v60, %v8487_v59  ;;  %v11023_v17 = vld [vmem:[#allocation26 + $0x754] sm:$0xf] }
 0x2f3   :  { %3278 = vmatmul.bf16.vlgmr.msrb.gmra.mxu0 %v12480_v62  ;;  %v10995_v4 = vld [vmem:[#allocation26 + $0x66c] sm:$0xf0]  ;;  %v10855_v59 = vld [vmem:[#allocation26 + $0x214] sm:$0xf] }
 0x2f4   :  { %3300 = vmatpush.bf16.msrb.mxu2 %v7976_v18  ;;  %3322 = vmatpush.bf16.msra.mxu0 %v8616_v21  ;;  %v8455_v11 = vld [vmem:[#allocation26 + $0x490] sm:$0xf]  ;;  %v8680_v15 = vor.u32 %v10995_v4, %v8679_v3  ;;  %v10831_v18 = vld [vmem:[#allocation26 + $0x154] sm:$0xf]  ;;  %v10916_v3 = vld [vmem:[#allocation26 + $0x3f4] sm:$0xf0]  ;;  %v7948_v4 = vor.u32 %v10807_v53, %v7945_v56 }
 0x2f5   :  { %v10939_v54 = vld [vmem:[#allocation26 + $0x4ac] sm:$0xf0]  ;;  %v8041_v21 = vld [vmem:[#allocation26 + $0x170] sm:$0xf0] }
 0x2f6   :  { %3315 = vmatpush.bf16.msrb.mxu3 %v8168_v23  ;;  %3337 = vmatpush.bf16.msra.mxu1 %v8808_v24  ;;  %v8647_v22 = vld [vmem:[#allocation26 + $0x610] sm:$0xf]  ;;  %v10879_v24 = vld [vmem:[#allocation26 + $0x2d4] sm:$0xf]  ;;  %v8456_v7 = vor.u32 %v10939_v54, %v8455_v11  ;;  %v8044_v51 = vor.u32 %v10831_v18, %v8041_v21  ;;  %v8368_v18 = vor.u32 %v10916_v3, %v8367_v2 }
 0x2f7   :  { %v10987_v23 = vld [vmem:[#allocation26 + $0x62c] sm:$0xf0]  ;;  %v8137_v60 = vld [vmem:[#allocation26 + $0x230] sm:$0xf0] }
 0x2f8   :  { %3301 = vmatpush.bf16.msrb.mxu2 %v7944_v30  ;;  %3323 = vmatpush.bf16.msra.mxu0 %v8584_v20  ;;  %v8648_v27 = vor.u32 %v10987_v23, %v8647_v22  ;;  %v8423_v28 = vld [vmem:[#allocation26 + $0x450] sm:$0xf]  ;;  %v8236_v30 = vor.u32 %v10879_v24, %v8233_v13  ;;  %v8876_v20 = vor.u32 %v11039_v26, %v8873_v19  ;;  %v11015_v61 = vld [vmem:[#allocation26 + $0x714] sm:$0xf]  ;;  %v8335_v22 = vld [vmem:[#allocation26 + $0x398] sm:$0xf] }
 0x2f9   :  { %v10931_v29 = vld [vmem:[#allocation26 + $0x46c] sm:$0xf0]  ;;  %v10799_v9 = vld [vmem:[#allocation26 + $0x54] sm:$0xf]  ;;  %v10908_v23 = vld [vmem:[#allocation26 + $0x3b4] sm:$0xf0] }
 0x2fa   :  { %3316 = vmatpush.bf16.msrb.mxu3 %v8136_v32  ;;  %3338 = vmatpush.bf16.msra.mxu1 %v8776_v0  ;;  %v8009_v32 = vld [vmem:[#allocation26 + $0x130] sm:$0xf0]  ;;  %v8391_v36 = vld [vmem:[#allocation26 + $0x410] sm:$0xf] }
 0x2fb   :  { %v10871_v0 = vld [vmem:[#allocation26 + $0x294] sm:$0xf]  ;;  %v8012_v38 = vor.u32 %v10823_v31, %v8009_v32  ;;  %v10923_v40 = vld [vmem:[#allocation26 + $0x42c] sm:$0xf0]  ;;  %v8303_v32 = vld [vmem:[#allocation26 + $0x358] sm:$0xf] }
 0x2fc   :  { %3302 = vmatpush.bf16.msrb.mxu2 %v7912_v44  ;;  %3324 = vmatpush.bf16.msra.mxu0 %v8552_v37  ;;  %v7977_v44 = vld [vmem:[#allocation26 + $0xf0] sm:$0xf0]  ;;  %v8204_v37 = vor.u32 %v10871_v0, %v8201_v34  ;;  %v8392_v49 = vor.u32 %v10923_v40, %v8391_v36  ;;  %v10900_v0 = vld [vmem:[#allocation26 + $0x374] sm:$0xf0] }
 0x2fd   :  { %3317 = vmatmul.bf16.vlgmr.msrb.gmra.mxu3 %v12461_v48  ;;  %v7980_v50 = vor.u32 %v10815_v6, %v7977_v44  ;;  %v8553_v54 = vld [vmem:[#allocation26 + $0x570] sm:$0xf0]  ;;  %v8079_v40 = vld [vmem:[#allocation26 + $0x198] sm:$0xf]  ;;  %v8304_v6 = vor.u32 %v10900_v0, %v8303_v32 }
 0x2fe   :  { %3361 = vmatpush.bf16.msra.mxu3 %v8364_v35  ;;  %3339 = vmatpush.bf16.msra.mxu1 %v8744_v14  ;;  %v8424_v35 = vor.u32 %v10931_v29, %v8423_v28  ;;  %v8617_v14 = vld [vmem:[#allocation26 + $0x5f0] sm:$0xf0]  ;;  %v8111_v28 = vld [vmem:[#allocation26 + $0x1d8] sm:$0xf]  ;;  %v8336_v29 = vor.u32 %v10908_v23, %v8335_v22 }
 0x2ff   :  { %v8620_v25 = vor.u32 %v10975_v46, %v8617_v14  ;;  %v11007_v21 = vld [vmem:[#allocation26 + $0x6d4] sm:$0xf]  ;;  %v10844_v44 = vld [vmem:[#allocation26 + $0x1b4] sm:$0xf0] }
 0x300   :  { %3303 = vmatpush.bf16.msrb.mxu2 %v7880_v57  ;;  %3325 = vmatpush.bf16.msra.mxu0 %v8520_v58  ;;  %v8172_v57 = vor.u32 %v10863_v47, %v8169_v33  ;;  %v10791_v26 = vld [vmem:[#allocation26 + $0x14] sm:$0xf]  ;;  %v8271_v46 = vld [vmem:[#allocation26 + $0x318] sm:$0xf] }
 0x301   :  { %v7881_v19 = vld [vmem:[#allocation26 + $0x30] sm:$0xf0]  ;;  %v10892_v14 = vld [vmem:[#allocation26 + $0x334] sm:$0xf0] }
 0x302   :  { %3362 = vmatpush.bf16.msra.mxu3 %v8332_v52  ;;  %3340 = vmatpush.bf16.msra.mxu1 %v8712_v16  ;;  %v8809_v52 = vld [vmem:[#allocation26 + $0x770] sm:$0xf0]  ;;  %v7884_v34 = vor.u32 %v10791_v26, %v7881_v19  ;;  %v8272_v53 = vor.u32 %v10892_v14, %v8271_v46 }
 0x303   :  { %3304 = vmatmul.bf16.vlgmr.msrb.gmra.mxu2 %v12467_v5  ;;  %v8812_v58 = vor.u32 %v11023_v17, %v8809_v52  ;;  %v8585_v16 = vld [vmem:[#allocation26 + $0x5b0] sm:$0xf0]  ;;  %v8080_v17 = vor.u32 %v10844_v44, %v8079_v40  ;;  %v10972_v40 = vld [vmem:[#allocation26 + $0x5b4] sm:$0xf0] }
 0x304   :  { %3348 = vmatpush.bf16.msra.mxu2 %v8108_v55  ;;  %3326 = vmatpush.bf16.msra.mxu0 %v8488_v10  ;;  %v10967_v55 = vld [vmem:[#allocation26 + $0x594] sm:$0xf]  ;;  %v8140_v10 = vor.u32 %v10855_v59, %v8137_v60  ;;  %v11044_v59 = vld [vmem:[#allocation26 + $0x7f4] sm:$0xf0] }
 0x305   :  { %v8588_v8 = vor.u32 %v10967_v55, %v8585_v16  ;;  %v8713_v31 = vld [vmem:[#allocation26 + $0x6b0] sm:$0xf0]  ;;  %v10884_v55 = vld [vmem:[#allocation26 + $0x2f4] sm:$0xf0] }
 0x306   :  { %3363 = vmatpush.bf16.msra.mxu3 %v8300_v1  ;;  %3341 = vmatpush.bf16.msra.mxu1 %v8680_v15  ;;  %v8777_v1 = vld [vmem:[#allocation26 + $0x730] sm:$0xf0]  ;;  %v8879_v16 = vld [vmem:[#allocation26 + $0x7d8] sm:$0xf] }
 0x307   :  { %v8780_v11 = vor.u32 %v11015_v61, %v8777_v1  ;;  %v10959_v15 = vld [vmem:[#allocation26 + $0x554] sm:$0xf]  ;;  %v10860_v44 = vld [vmem:[#allocation26 + $0x234] sm:$0xf0] }
 0x308   :  { %3349 = vmatpush.bf16.msra.mxu2 %v8076_v12  ;;  %3327 = vmatpush.bf16.msra.mxu0 %v8456_v7  ;;  %v7913_v12 = vld [vmem:[#allocation26 + $0x70] sm:$0xf0]  ;;  %v8556_v13 = vor.u32 %v10959_v15, %v8553_v54  ;;  %v8847_v15 = vld [vmem:[#allocation26 + $0x798] sm:$0xf] }
 0x309   :  { %v7916_v24 = vor.u32 %v10799_v9, %v7913_v12  ;;  %v10943_v36 = vld [vmem:[#allocation26 + $0x4d4] sm:$0xf]  ;;  %v8015_v9 = vld [vmem:[#allocation26 + $0x118] sm:$0xf] }
 0x30a   :  { %3364 = vmatpush.bf16.msra.mxu3 %v8268_v41  ;;  %3342 = vmatpush.bf16.msra.mxu1 %v8648_v27  ;;  %v8745_v41 = vld [vmem:[#allocation26 + $0x6f0] sm:$0xf0]  ;;  %v10876_v12 = vld [vmem:[#allocation26 + $0x2b4] sm:$0xf0] }
 0x30b   :  { %v8748_v7 = vor.u32 %v11007_v21, %v8745_v41  ;;  %v8521_v27 = vld [vmem:[#allocation26 + $0x530] sm:$0xf0]  ;;  %v11036_v54 = vld [vmem:[#allocation26 + $0x7b4] sm:$0xf0] }
 0x30c   :  { %3350 = vmatpush.bf16.msra.mxu2 %v8044_v51  ;;  %3328 = vmatpush.bf16.msra.mxu0 %v8424_v35  ;;  %v10951_v51 = vld [vmem:[#allocation26 + $0x514] sm:$0xf]  ;;  %v8848_v19 = vor.u32 %v11036_v54, %v8847_v15  ;;  %v10848_v15 = vld [vmem:[#allocation26 + $0x1dc] sm:$0xf] }
 0x30d   :  { %3343 = vmatmul.bf16.vlgmr.msra.gmra.mxu1 %v12476_v43  ;;  %v8524_v39 = vor.u32 %v10951_v51, %v8521_v27  ;;  %v10935_v33 = vld [vmem:[#allocation26 + $0x494] sm:$0xf]  ;;  %v10980_v51 = vld [vmem:[#allocation26 + $0x5f4] sm:$0xf0] }
 0x30e   :  { %3365 = vmatpush.bf16.msra.mxu3 %v8236_v30  ;;  %3387 = vmatpush.bf16.msrb.mxu1 %v8876_v20  ;;  %v10852_v30 = vld [vmem:[#allocation26 + $0x1f4] sm:$0xf0]  ;;  %v10999_v20 = vld [vmem:[#allocation26 + $0x694] sm:$0xf] }
 0x30f   :  { %v8112_v63 = vor.u32 %v10852_v30, %v8111_v28  ;;  %v8716_v35 = vor.u32 %v10999_v20, %v8713_v31  ;;  %v10983_v56 = vld [vmem:[#allocation26 + $0x614] sm:$0xf]  ;;  %v8175_v27 = vld [vmem:[#allocation26 + $0x258] sm:$0xf]  ;;  %v12503_v31 = vld [vmem:[#allocation28] sm:$0xff] }
 0x310   :  { %3351 = vmatpush.bf16.msra.mxu2 %v8012_v38  ;;  %3329 = vmatpush.bf16.msra.mxu0 %v8392_v49  ;;  %v8489_v38 = vld [vmem:[#allocation26 + $0x4f0] sm:$0xf0]  ;;  %v10868_v28 = vld [vmem:[#allocation26 + $0x274] sm:$0xf0]  ;;  %v1792_v46 = vperm.slane %v12503_v31, 0 }
 0x311   :  { %v8492_v47 = vor.u32 %v10943_v36, %v8489_v38  ;;  %v8457_v49 = vld [vmem:[#allocation26 + $0x4b0] sm:$0xf0]  ;;  %v11028_v30 = vld [vmem:[#allocation26 + $0x774] sm:$0xf0] }
 0x312   :  { %3366 = vmatpush.bf16.msra.mxu3 %v8204_v37  ;;  %3388 = vmatpush.bf16.msrb.mxu1 %v8844_v45  ;;  %v10991_v37 = vld [vmem:[#allocation26 + $0x654] sm:$0xf]  ;;  %v8460_v60 = vor.u32 %v10935_v33, %v8457_v49  ;;  %v8591_v38 = vld [vmem:[#allocation26 + $0x598] sm:$0xf]  ;;  %v8369_v33 = vld [vmem:[#allocation26 + $0x3f8] sm:$0xf0] }
 0x313   :  { %3330 = vmatmul.bf16.vlgmr.msra.gmra.mxu0 %v12480_v62  ;;  %v8681_v45 = vld [vmem:[#allocation26 + $0x670] sm:$0xf0]  ;;  %v7919_v49 = vld [vmem:[#allocation26 + $0x58] sm:$0xf] }
 0x314   :  { %3352 = vmatpush.bf16.msra.mxu2 %v7980_v50  ;;  %3374 = vmatpush.bf16.msrb.mxu0 %v8620_v25  ;;  %v8684_v52 = vor.u32 %v10991_v37, %v8681_v45  ;;  %v8047_v50 = vld [vmem:[#allocation26 + $0x158] sm:$0xf]  ;;  %v10927_v2 = vld [vmem:[#allocation26 + $0x454] sm:$0xf] }
 0x315   :  { %v10836_v25 = vld [vmem:[#allocation26 + $0x174] sm:$0xf0]  ;;  %v8425_v3 = vld [vmem:[#allocation26 + $0x470] sm:$0xf0] }
 0x316   :  { %3367 = vmatpush.bf16.msra.mxu3 %v8172_v57  ;;  %3389 = vmatpush.bf16.msrb.mxu1 %v8812_v58  ;;  %v8649_v57 = vld [vmem:[#allocation26 + $0x630] sm:$0xf0]  ;;  %v8239_v58 = vld [vmem:[#allocation26 + $0x2d8] sm:$0xf]  ;;  %v8048_v61 = vor.u32 %v10836_v25, %v8047_v50  ;;  %v8428_v21 = vor.u32 %v10927_v2, %v8425_v3 }
 0x317   :  { %v8652_v1 = vor.u32 %v10983_v56, %v8649_v57  ;;  %v10919_v41 = vld [vmem:[#allocation26 + $0x414] sm:$0xf]  ;;  %v8783_v37 = vld [vmem:[#allocation26 + $0x718] sm:$0xf] }
 0x318   :  { %3353 = vmatpush.bf16.msra.mxu2 %v7948_v4  ;;  %3375 = vmatpush.bf16.msrb.mxu0 %v8588_v8  ;;  %v8240_v4 = vor.u32 %v10884_v55, %v8239_v58  ;;  %v8880_v8 = vor.u32 %v11044_v59, %v8879_v16  ;;  %v8393_v23 = vld [vmem:[#allocation26 + $0x430] sm:$0xf0]  ;;  %v11020_v45 = vld [vmem:[#allocation26 + $0x734] sm:$0xf0] }
 0x319   :  { %v8396_v20 = vor.u32 %v10919_v41, %v8393_v23  ;;  %v10804_v56 = vld [vmem:[#allocation26 + $0x74] sm:$0xf0] }
 0x31a   :  { %3368 = vmatpush.bf16.msra.mxu3 %v8140_v10  ;;  %3390 = vmatpush.bf16.msrb.mxu1 %v8780_v11  ;;  %v10828_v10 = vld [vmem:[#allocation26 + $0x134] sm:$0xf0]  ;;  %v7920_v2 = vor.u32 %v10804_v56, %v7919_v49 }
 0x31b   :  { %v8207_v11 = vld [vmem:[#allocation26 + $0x298] sm:$0xf]  ;;  %v8016_v22 = vor.u32 %v10828_v10, %v8015_v9 }
 0x31c   :  { %3354 = vmatpush.bf16.msra.mxu2 %v7916_v24  ;;  %3376 = vmatpush.bf16.msrb.mxu0 %v8556_v13  ;;  %v7983_v24 = vld [vmem:[#allocation26 + $0xd8] sm:$0xf]  ;;  %v8208_v26 = vor.u32 %v10876_v12, %v8207_v11 }
 0x31d   :  { %3369 = vmatmul.bf16.vlgmr.msra.gmra.mxu3 %v12461_v48  ;;  %v10820_v13 = vld [vmem:[#allocation26 + $0xf4] sm:$0xf0] }
 0x31e   :  { %3413 = vmatpush.bf16.msrb.mxu3 %v8368_v18  ;;  %3391 = vmatpush.bf16.msrb.mxu1 %v8748_v7  ;;  %v8623_v7 = vld [vmem:[#allocation26 + $0x5d8] sm:$0xf]  ;;  %v7984_v32 = vor.u32 %v10820_v13, %v7983_v24  ;;  %v10896_v13 = vld [vmem:[#allocation26 + $0x35c] sm:$0xf] }
 0x31f   :  { %v8624_v0 = vor.u32 %v10980_v51, %v8623_v7  ;;  %v8559_v57 = vld [vmem:[#allocation26 + $0x558] sm:$0xf] }
 0x320   :  { %3355 = vmatpush.bf16.msra.mxu2 %v7884_v34  ;;  %3377 = vmatpush.bf16.msrb.mxu0 %v8524_v39  ;;  %v12500_v18 = vpop.f32.mrf.mxu3  ;;  %v7951_v34 = vld [vmem:[#allocation26 + $0x98] sm:$0xf] }
 0x321   :  { %v10812_v39 = vld [vmem:[#allocation26 + $0xb4] sm:$0xf0] }
 0x322   :  { %3414 = vmatpush.bf16.msrb.mxu3 %v8336_v29  ;;  %3392 = vmatpush.bf16.msrb.mxu1 %v8716_v35  ;;  %v8815_v29 = vld [vmem:[#allocation26 + $0x758] sm:$0xf]  ;;  %v8176_v35 = vor.u32 %v10868_v28, %v8175_v27 }
 0x323   :  { %3356 = vmatmul.bf16.vlgmr.msra.gmra.mxu2 %v12467_v5  ;;  %v8816_v36 = vor.u32 %v11028_v30, %v8815_v29  ;;  %v10964_v58 = vld [vmem:[#allocation26 + $0x574] sm:$0xf0] }
 0x324   :  { %3400 = vmatpush.bf16.msrb.mxu2 %v8112_v63  ;;  %3378 = vmatpush.bf16.msrb.mxu0 %v8492_v47  ;;  %v10912_v47 = vld [vmem:[#allocation26 + $0x3dc] sm:$0xf]  ;;  %v8751_v16 = vld [vmem:[#allocation26 + $0x6d8] sm:$0xf]  ;;  %v8560_v3 = vor.u32 %v10964_v58, %v8559_v57 }
 0x325   :  { %v8372_v55 = vor.u32 %v10912_v47, %v8369_v33  ;;  %v11012_v59 = vld [vmem:[#allocation26 + $0x6f4] sm:$0xf0]  ;;  %v10832_v33 = vld [vmem:[#allocation26 + $0x15c] sm:$0xf] }
 0x326   :  { %3415 = vmatpush.bf16.msrb.mxu3 %v8304_v6  ;;  %3393 = vmatpush.bf16.msrb.mxu1 %v8684_v52  ;;  %v3097_v63 = vpop.f32.mrf.mxu2  ;;  %v8143_v6 = vld [vmem:[#allocation26 + $0x218] sm:$0xf]  ;;  %v8592_v52 = vor.u32 %v10972_v40, %v8591_v38  ;;  %v8752_v10 = vor.u32 %v11012_v59, %v8751_v16  ;;  %v8273_v38 = vld [vmem:[#allocation26 + $0x338] sm:$0xf0] }
 0x327   :  { %v8144_v25 = vor.u32 %v10860_v44, %v8143_v6  ;;  %v8527_v11 = vld [vmem:[#allocation26 + $0x518] sm:$0xf]  ;;  %v8241_v57 = vld [vmem:[#allocation26 + $0x2f8] sm:$0xf0] }
 0x328   :  { %3401 = vmatpush.bf16.msrb.mxu2 %v8080_v17  ;;  %3379 = vmatpush.bf16.msrb.mxu0 %v8460_v60  ;;  %v3112_v14 = vpop.f32.mrf.mxu3  ;;  %v7952_v17 = vor.u32 %v10812_v39, %v7951_v34  ;;  %v3098_v60 = vadd.f32 %v3097_v63, %v1792_v46  ;;  %v10956_v12 = vld [vmem:[#allocation26 + $0x534] sm:$0xf0]  ;;  %v8081_v34 = vld [vmem:[#allocation26 + $0x1b8] sm:$0xf0] }
 0x329   :  { %v8719_v41 = vld [vmem:[#allocation26 + $0x698] sm:$0xf]  ;;  %v8528_v51 = vor.u32 %v10956_v12, %v8527_v11  ;;  %v11040_v58 = vld [vmem:[#allocation26 + $0x7dc] sm:$0xf] }
 0x32a   :  { %3416 = vmatpush.bf16.msrb.mxu3 %v8272_v53  ;;  %3394 = vmatpush.bf16.msrb.mxu1 %v8652_v1  ;;  %v3136_v50 = vpop.f32.mrf.mxu1  ;;  %v8784_v53 = vor.u32 %v11020_v45, %v8783_v37  ;;  %v8337_v1 = vld [vmem:[#allocation26 + $0x3b8] sm:$0xf0]  ;;  %v3111_v23 = vadd.f32 %v12500_v18, %v3098_v60  ;;  %v8687_v39 = vld [vmem:[#allocation26 + $0x658] sm:$0xf]  ;;  %v1793_v45 = vperm.slane %v12503_v31, 1 }
 0x32b   :  { %v10996_v63 = vld [vmem:[#allocation26 + $0x674] sm:$0xf0]  ;;  %v8017_v11 = vld [vmem:[#allocation26 + $0x138] sm:$0xf0] }
 0x32c   :  { %3402 = vmatpush.bf16.msrb.mxu2 %v8048_v61  ;;  %3380 = vmatpush.bf16.msrb.mxu0 %v8428_v21  ;;  %v10904_v61 = vld [vmem:[#allocation26 + $0x39c] sm:$0xf]  ;;  %v8463_v6 = vld [vmem:[#allocation26 + $0x498] sm:$0xf]  ;;  %v8688_v47 = vor.u32 %v10996_v63, %v8687_v39 }
 0x32d   :  { %3395 = vmatmul.bf16.vlgmr.msrb.gmra.mxu1 %v12476_v43  ;;  %v8340_v54 = vor.u32 %v10904_v61, %v8337_v1  ;;  %v8113_v21 = vld [vmem:[#allocation26 + $0x1f8] sm:$0xf0]  ;;  %v10940_v44 = vld [vmem:[#allocation26 + $0x4b4] sm:$0xf0] }
 0x32e   :  { %3417 = vmatpush.bf16.msrb.mxu3 %v8240_v4  ;;  %3439 = vmatpush.bf16.msra.mxu1 %v8880_v8  ;;  %v7887_v4 = vld [vmem:[#allocation26 + $0x18] sm:$0xf]  ;;  %v3099_v9 = vpop.f32.mrf.mxu2  ;;  %v8116_v29 = vor.u32 %v10848_v15, %v8113_v21  ;;  %v8464_v59 = vor.u32 %v10940_v44, %v8463_v6  ;;  %v10872_v12 = vld [vmem:[#allocation26 + $0x29c] sm:$0xf] }
 0x32f   :  { %v10796_v8 = vld [vmem:[#allocation26 + $0x34] sm:$0xf0]  ;;  %v8209_v21 = vld [vmem:[#allocation26 + $0x2b8] sm:$0xf0] }
 0x330   :  { %3403 = vmatpush.bf16.msrb.mxu2 %v8016_v22  ;;  %3381 = vmatpush.bf16.msrb.mxu0 %v8396_v20  ;;  %v11004_v22 = vld [vmem:[#allocation26 + $0x6b4] sm:$0xf0]  ;;  %v12508_v24 = vpop.f32.mrf.mxu3  ;;  %v7888_v7 = vor.u32 %v10796_v8, %v7887_v4  ;;  %v8177_v39 = vld [vmem:[#allocation26 + $0x278] sm:$0xf0] }
 0x331   :  { %v8720_v30 = vor.u32 %v11004_v22, %v8719_v41  ;;  %v8495_v20 = vld [vmem:[#allocation26 + $0x4d8] sm:$0xf]  ;;  %v11032_v41 = vld [vmem:[#allocation26 + $0x79c] sm:$0xf] }
 0x332   :  { %3418 = vmatpush.bf16.msrb.mxu3 %v8208_v26  ;;  %3440 = vmatpush.bf16.msra.mxu1 %v8848_v19  ;;  %v8305_v26 = vld [vmem:[#allocation26 + $0x378] sm:$0xf0]  ;;  %v3123_v19 = vpop.f32.mrf.mxu0  ;;  %v3138_v28 = vpop.f32.mrf.mxu1  ;;  %v8655_v49 = vld [vmem:[#allocation26 + $0x618] sm:$0xf] }
 0x333   :  { %3382 = vmatmul.bf16.vlgmr.msrb.gmra.mxu0 %v12480_v62  ;;  %v3124_v27 = vadd.f32 %v3123_v19, %v3111_v23  ;;  %v8308_v18 = vor.u32 %v10896_v13, %v8305_v26  ;;  %v10932_v4 = vld [vmem:[#allocation26 + $0x474] sm:$0xf0]  ;;  %v8849_v22 = vld [vmem:[#allocation26 + $0x7b8] sm:$0xf0] }
 0x334   :  { %3404 = vmatpush.bf16.msrb.mxu2 %v7984_v32  ;;  %3426 = vmatpush.bf16.msra.mxu0 %v8624_v0  ;;  %v10948_v32 = vld [vmem:[#allocation26 + $0x4f4] sm:$0xf0]  ;;  %v10840_v0 = vld [vmem:[#allocation26 + $0x19c] sm:$0xf] }
 0x335   :  { %v8496_v40 = vor.u32 %v10948_v32, %v8495_v20  ;;  %v8084_v14 = vor.u32 %v10840_v0, %v8081_v34  ;;  %v8399_v13 = vld [vmem:[#allocation26 + $0x418] sm:$0xf]  ;;  %v7985_v28 = vld [vmem:[#allocation26 + $0xf8] sm:$0xf0] }
 0x336   :  { %3419 = vmatpush.bf16.msrb.mxu3 %v8176_v35  ;;  %3441 = vmatpush.bf16.msra.mxu1 %v8816_v36  ;;  %v12511_v35 = vadd.f32 %v3136_v50, %v3124_v27  ;;  %v10888_v36 = vld [vmem:[#allocation26 + $0x31c] sm:$0xf]  ;;  %v3149_v46 = vpop.f32.mrf.mxu2  ;;  %v10988_v50 = vld [vmem:[#allocation26 + $0x634] sm:$0xf0] }
 0x337   :  { %v10924_v26 = vld [vmem:[#allocation26 + $0x434] sm:$0xf0]  ;;  %v10816_v27 = vld [vmem:[#allocation26 + $0xdc] sm:$0xf] }
 0x338   :  { %3405 = vmatpush.bf16.msrb.mxu2 %v7952_v17  ;;  %3427 = vmatpush.bf16.msra.mxu0 %v8592_v52  ;;  %v3506_v37 = vrot.slane %v12511_v35, 4  ;;  %v8049_v17 = vld [vmem:[#allocation26 + $0x178] sm:$0xf0]  ;;  %v8276_v52 = vor.u32 %v10888_v36, %v8273_v38  ;;  %v3164_v56 = vpop.f32.mrf.mxu3  ;;  %v8400_v6 = vor.u32 %v10924_v26, %v8399_v13  ;;  %v9279_v26 = vld [vmem:[#allocation32 + $0x310] sm:$0xf] }
 0x339   :  { %v8052_v1 = vor.u32 %v10832_v33, %v8049_v17  ;;  %v10976_v20 = vld [vmem:[#allocation26 + $0x5dc] sm:$0xf] }
 0x33a   :  { %3420 = vmatpush.bf16.msrb.mxu3 %v8144_v25  ;;  %3442 = vmatpush.bf16.msra.mxu1 %v8784_v53  ;;  %v10880_v25 = vld [vmem:[#allocation26 + $0x2dc] sm:$0xf]  ;;  %v3507_v53 = vadd.f32 %v3506_v37, %v12511_v35  ;;  %v3125_v16 = vpop.f32.mrf.mxu0  ;;  %v3188_v61 = vpop.f32.mrf.mxu1 }
 0x33b   :  { %v8244_v8 = vor.u32 %v10880_v25, %v8241_v57  ;;  %v8625_v32 = vld [vmem:[#allocation26 + $0x5f8] sm:$0xf0] }
 0x33c   :  { %3406 = vmatpush.bf16.msrb.mxu2 %v7920_v2  ;;  %3428 = vmatpush.bf16.msra.mxu0 %v8560_v3  ;;  %v3508_v60 = vrot.slane %v3507_v53, 2  ;;  %v8656_v2 = vor.u32 %v10988_v50, %v8655_v49  ;;  %v8431_v3 = vld [vmem:[#allocation26 + $0x458] sm:$0xf]  ;;  %v10864_v0 = vld [vmem:[#allocation26 + $0x25c] sm:$0xf] }
 0x33d   :  { %3421 = vmatmul.bf16.vlgmr.msrb.gmra.mxu3 %v12461_v48  ;;  %v8432_v23 = vor.u32 %v10932_v4, %v8431_v3  ;;  %v11024_v63 = vld [vmem:[#allocation26 + $0x75c] sm:$0xf] }
 0x33e   :  { %3465 = vmatpush.bf16.msra.mxu3 %v8372_v55  ;;  %3443 = vmatpush.bf16.msra.mxu1 %v8752_v10  ;;  %v8881_v55 = vld [vmem:[#allocation26 + $0x7f8] sm:$0xf0]  ;;  %v3509_v15 = vadd.f32 %v3508_v60, %v3507_v53 }
 0x33f   :  { %v8884_v9 = vor.u32 %v11040_v58, %v8881_v55  ;;  %v10824_v10 = vld [vmem:[#allocation26 + $0x11c] sm:$0xf]  ;;  %v9307_v55 = vld [vmem:[#allocation32 + $0x348] sm:$0xf] }
 0x340   :  { %3407 = vmatpush.bf16.msrb.mxu2 %v7888_v7  ;;  %3429 = vmatpush.bf16.msra.mxu0 %v8528_v51  ;;  %v3510_v19 = vrot.slane %v3509_v15, 1  ;;  %v3151_v7 = vpop.f32.mrf.mxu2  ;;  %v8020_v51 = vor.u32 %v10824_v10, %v8017_v11  ;;  %v8817_v36 = vld [vmem:[#allocation26 + $0x778] sm:$0xf0] }
 0x341   :  { %v7953_v33 = vld [vmem:[#allocation26 + $0xb8] sm:$0xf0]  ;;  %v8820_v17 = vor.u32 %v11024_v63, %v8817_v36 }
 0x342   :  { %3466 = vmatpush.bf16.msra.mxu3 %v8340_v54  ;;  %3444 = vmatpush.bf16.msra.mxu1 %v8720_v30  ;;  %v3150_v54 = vadd.f32 %v3149_v46, %v1793_v45  ;;  %v8852_v30 = vor.u32 %v11032_v41, %v8849_v22  ;;  %v3175_v38 = vpop.f32.mrf.mxu0  ;;  %v3190_v45 = vpop.f32.mrf.mxu1  ;;  %v7988_v46 = vor.u32 %v10816_v27, %v7985_v28  ;;  %v8593_v49 = vld [vmem:[#allocation26 + $0x5b8] sm:$0xf0] }
 0x343   :  { %3408 = vmatmul.bf16.vlgmr.msrb.gmra.mxu2 %v12467_v5  ;;  %v10856_v50 = vld [vmem:[#allocation26 + $0x21c] sm:$0xf]  ;;  %v11139_v45 = vld [vmem:[#allocation32 + $0x2f0] sm:$0xf0] }
 0x344   :  { %3452 = vmatpush.bf16.msra.mxu2 %v8116_v29  ;;  %3430 = vmatpush.bf16.msra.mxu0 %v8496_v40  ;;  %v8212_v29 = vor.u32 %v10872_v12, %v8209_v21  ;;  %v3163_v34 = vadd.f32 %v12508_v24, %v3150_v54  ;;  %v12518_v40 = vpop.f32.mrf.mxu3  ;;  %v8180_v24 = vor.u32 %v10864_v0, %v8177_v39  ;;  %v8145_v56 = vld [vmem:[#allocation26 + $0x238] sm:$0xf0] }
 0x345   :  { %v11016_v57 = vld [vmem:[#allocation26 + $0x71c] sm:$0xf] }
 0x346   :  { %3467 = vmatpush.bf16.msra.mxu3 %v8308_v18  ;;  %3445 = vmatpush.bf16.msra.mxu1 %v8688_v47  ;;  %v3511_v18 = vadd.f32 %v3510_v19, %v3509_v15  ;;  %v3176_v37 = vadd.f32 %v3175_v38, %v3163_v34  ;;  %v10808_v47 = vld [vmem:[#allocation26 + $0x9c] sm:$0xf]  ;;  %v1794_v15 = vperm.slane %v12503_v31, 2  ;;  %v11146_v19 = vld [vmem:[#allocation32 + $0x328] sm:$0xf0] }
 0x347   :  { %v8785_v58 = vld [vmem:[#allocation26 + $0x738] sm:$0xf0]  ;;  %v9083_v38 = vld [vmem:[#allocation32 + $0x188] sm:$0xf] }
 0x348   :  { %3453 = vmatpush.bf16.msra.mxu2 %v8084_v14  ;;  %3431 = vmatpush.bf16.msra.mxu0 %v8464_v59  ;;  %v3554_v44 = vmul.f32 %v3511_v18, %v12356_v42  ;;  %v8628_v14 = vor.u32 %v10976_v20, %v8625_v32  ;;  %v12525_v53 = vadd.f32 %v3188_v61, %v3176_v37  ;;  %v11153_v16 = vld [vmem:[#allocation32 + $0x360] sm:$0xf0]  ;;  %v9251_v37 = vld [vmem:[#allocation32 + $0x2d8] sm:$0xf] }
 0x349   :  { %v8148_v61 = vor.u32 %v10856_v50, %v8145_v56  ;;  %v8788_v4 = vor.u32 %v11016_v57, %v8785_v58  ;;  %v8561_v10 = vld [vmem:[#allocation26 + $0x578] sm:$0xf0]  ;;  %v9308_v41 = vor.u32 %v11153_v16, %v9307_v55 }
 0x34a   :  { %3468 = vmatpush.bf16.msra.mxu3 %v8276_v52  ;;  %3446 = vmatpush.bf16.msra.mxu1 %v8656_v2  ;;  %v10968_v52 = vld [vmem:[#allocation26 + $0x59c] sm:$0xf]  ;;  %v12523_v25 = vsub.f32 %v12511_v35, %v3554_v44  ;;  %v3512_v60 = vrot.slane %v12525_v53, 4  ;;  %v7956_v2 = vor.u32 %v10808_v47, %v7953_v33  ;;  %v3177_v22 = vpop.f32.mrf.mxu0  ;;  %v3240_v20 = vpop.f32.mrf.mxu1  ;;  %v9280_v44 = vor.u32 %v11146_v19, %v9279_v26  ;;  %v9195_v19 = vld [vmem:[#allocation32 + $0x268] sm:$0xf] }
 0x34b   :  { %v8596_v3 = vor.u32 %v10968_v52, %v8593_v49  ;;  %v10800_v35 = vld [vmem:[#allocation26 + $0x5c] sm:$0xf] }
 0x34c   :  { %3454 = vmatpush.bf16.msra.mxu2 %v8052_v1  ;;  %3432 = vmatpush.bf16.msra.mxu0 %v8432_v23  ;;  %v3570_v59 = vmul.f32 %v12523_v25, %v12523_v25  ;;  %v3201_v1 = vpop.f32.mrf.mxu2  ;;  %v3513_v12 = vadd.f32 %v3512_v60, %v12525_v53  ;;  %v11008_v54 = vld [vmem:[#allocation26 + $0x6dc] sm:$0xf]  ;;  %v3216_v23 = vpop.f32.mrf.mxu3  ;;  %v11090_v60 = vld [vmem:[#allocation32 + $0x168] sm:$0xf0] }
 0x34d   :  { %3447 = vmatmul.bf16.vlgmr.msra.gmra.mxu1 %v12476_v43  ;;  %v8753_v21 = vld [vmem:[#allocation26 + $0x6f8] sm:$0xf0]  ;;  %v3202_v36 = vadd.f32 %v3201_v1, %v1794_v15  ;;  %v9252_v1 = vor.u32 %v11139_v45, %v9251_v37  ;;  %v9027_v23 = vld [vmem:[#allocation32 + $0x118] sm:$0xf] }
 0x34e   :  { %3469 = vmatpush.bf16.msra.mxu3 %v8244_v8  ;;  %3491 = vmatpush.bf16.msrb.mxu1 %v8884_v9  ;;  %v7921_v8 = vld [vmem:[#allocation26 + $0x78] sm:$0xf0]  ;;  %v3578_v11 = vrot.slane %v3570_v59, 4  ;;  %v8756_v32 = vor.u32 %v11008_v54, %v8753_v21 }
 0x34f   :  { %v10960_v9 = vld [vmem:[#allocation26 + $0x55c] sm:$0xf]  ;;  %v7924_v27 = vor.u32 %v10800_v35, %v7921_v8  ;;  %v3215_v16 = vadd.f32 %v12518_v40, %v3202_v36  ;;  %v9223_v35 = vld [vmem:[#allocation32 + $0x2a0] sm:$0xf]  ;;  %v9167_v36 = vld [vmem:[#allocation32 + $0x230] sm:$0xf] }
 0x350   :  { %3455 = vmatpush.bf16.msra.mxu2 %v8020_v51  ;;  %3433 = vmatpush.bf16.msra.mxu0 %v8400_v6  ;;  %v10792_v13 = vld [vmem:[#allocation26 + $0x1c] sm:$0xf]  ;;  %v3579_v7 = vadd.f32 %v3578_v11, %v3570_v59  ;;  %v3514_v51 = vrot.slane %v3513_v12, 2  ;;  %v8564_v28 = vor.u32 %v10960_v9, %v8561_v10  ;;  %v9055_v59 = vld [vmem:[#allocation32 + $0x150] sm:$0xf] }
 0x351   :  { %v8529_v0 = vld [vmem:[#allocation26 + $0x538] sm:$0xf0] }
 0x352   :  { %3470 = vmatpush.bf16.msra.mxu3 %v8212_v29  ;;  %3492 = vmatpush.bf16.msrb.mxu1 %v8852_v30  ;;  %v7889_v29 = vld [vmem:[#allocation26 + $0x38] sm:$0xf0]  ;;  %v3580_v39 = vrot.slane %v3579_v7, 2  ;;  %v3515_v63 = vadd.f32 %v3514_v51, %v3513_v12  ;;  %v3242_v9 = vpop.f32.mrf.mxu1  ;;  %v9056_v12 = vor.u32 %v11090_v60, %v9055_v59 }
 0x353   :  { %3434 = vmatmul.bf16.vlgmr.msra.gmra.mxu0 %v12480_v62  ;;  %v10952_v30 = vld [vmem:[#allocation26 + $0x51c] sm:$0xf]  ;;  %v7892_v33 = vor.u32 %v10792_v13, %v7889_v29  ;;  %v11083_v13 = vld [vmem:[#allocation32 + $0x130] sm:$0xf0]  ;;  %v11202_v9 = vld [vmem:[#allocation32 + $0x4e8] sm:$0xf0] }
 0x354   :  { %3456 = vmatpush.bf16.msra.mxu2 %v7988_v46  ;;  %3478 = vmatpush.bf16.msrb.mxu0 %v8628_v14  ;;  %v11000_v18 = vld [vmem:[#allocation26 + $0x69c] sm:$0xf]  ;;  %v3581_v46 = vadd.f32 %v3580_v39, %v3579_v7  ;;  %v3516_v14 = vrot.slane %v3515_v63, 1  ;;  %v3203_v47 = vpop.f32.mrf.mxu2 }
 0x355   :  { %v8721_v34 = vld [vmem:[#allocation26 + $0x6b8] sm:$0xf0]  ;;  %v8971_v47 = vld [vmem:[#allocation32 + $0xa8] sm:$0xf] }
 0x356   :  { %3471 = vmatpush.bf16.msra.mxu3 %v8180_v24  ;;  %3493 = vmatpush.bf16.msrb.mxu1 %v8820_v17  ;;  %v11097_v6 = vld [vmem:[#allocation32 + $0x1a0] sm:$0xf0]  ;;  %v8532_v24 = vor.u32 %v10952_v30, %v8529_v0  ;;  %v8724_v49 = vor.u32 %v11000_v18, %v8721_v34  ;;  %v3582_v58 = vrot.slane %v3581_v46, 1  ;;  %v3517_v55 = vadd.f32 %v3516_v14, %v3515_v63  ;;  %v8999_v18 = vld [vmem:[#allocation32 + $0xe0] sm:$0xf] }
 0x357   :  { %v10944_v17 = vld [vmem:[#allocation26 + $0x4dc] sm:$0xf]  ;;  %v9084_v50 = vor.u32 %v11097_v6, %v9083_v38  ;;  %v11076_v34 = vld [vmem:[#allocation32 + $0xf8] sm:$0xf0]  ;;  %v11118_v38 = vld [vmem:[#allocation32 + $0x248] sm:$0xf0] }
 0x358   :  { %3457 = vmatpush.bf16.msra.mxu2 %v7956_v2  ;;  %3479 = vmatpush.bf16.msrb.mxu0 %v8596_v3  ;;  %v8497_v52 = vld [vmem:[#allocation26 + $0x4f8] sm:$0xf0]  ;;  %v3227_v2 = vpop.f32.mrf.mxu0  ;;  %v9000_v14 = vor.u32 %v11076_v34, %v8999_v18  ;;  %v12572_v18 = vld [vmem:[#allocation31] sm:$0xff] }
 0x359   :  { %v10992_v56 = vld [vmem:[#allocation26 + $0x65c] sm:$0xf]  ;;  %v8500_v3 = vor.u32 %v10944_v17, %v8497_v52  ;;  %v3228_v8 = vadd.f32 %v3227_v2, %v3215_v16  ;;  %v9531_v52 = vld [vmem:[#allocation32 + $0x508] sm:$0xf] }
 0x35a   :  { %3472 = vmatpush.bf16.msra.mxu3 %v8148_v61  ;;  %3494 = vmatpush.bf16.msrb.mxu1 %v8788_v4  ;;  %v8689_v57 = vld [vmem:[#allocation26 + $0x678] sm:$0xf0]  ;;  %v11132_v61 = vld [vmem:[#allocation32 + $0x2b8] sm:$0xf0]  ;;  %v3583_v4 = vadd.f32 %v3582_v58, %v3581_v46  ;;  %v11111_v58 = vld [vmem:[#allocation32 + $0x210] sm:$0xf0] }
 0x35b   :  { %v8692_v10 = vor.u32 %v10992_v56, %v8689_v57  ;;  %v10936_v11 = vld [vmem:[#allocation26 + $0x49c] sm:$0xf]  ;;  %v9224_v26 = vor.u32 %v11132_v61, %v9223_v35  ;;  %v9139_v57 = vld [vmem:[#allocation32 + $0x1f8] sm:$0xf]  ;;  %v11062_v35 = vld [vmem:[#allocation32 + $0x88] sm:$0xf0] }
 0x35c   :  { %3458 = vmatpush.bf16.msra.mxu2 %v7924_v27  ;;  %3480 = vmatpush.bf16.msrb.mxu0 %v8564_v28  ;;  %v8465_v40 = vld [vmem:[#allocation26 + $0x4b8] sm:$0xf0]  ;;  %v3626_v54 = vmul.f32 %v3583_v4, %v12356_v42 }
 0x35d   :  { %3473 = vmatmul.bf16.vlgmr.msra.gmra.mxu3 %v12461_v48  ;;  %v3555_v48 = vmul.f32 %v3517_v55, %v12356_v42  ;;  %v10984_v15 = vld [vmem:[#allocation26 + $0x61c] sm:$0xf] }
 0x35e   :  { %6657 = vmatpush.bf16.msrb.mxu3 %v9308_v41  ;;  %3495 = vmatpush.bf16.msrb.mxu1 %v8756_v32  ;;  %v12540_v41 = vadd.f32 %v3240_v20, %v3228_v8  ;;  %v8657_v22 = vld [vmem:[#allocation26 + $0x638] sm:$0xf0]  ;;  %v12543_v51 = vadd.f32 0.8, %v3626_v54  ;;  %v9028_v32 = vor.u32 %v11083_v13, %v9027_v23  ;;  %v9503_v8 = vld [vmem:[#allocation32 + $0x4d0] sm:$0xf] }
 0x35f   :  { %v12538_v21 = vsub.f32 %v12525_v53, %v3555_v48  ;;  %v11125_v7 = vld [vmem:[#allocation32 + $0x280] sm:$0xf0]  ;;  %v8468_v53 = vor.u32 %v10936_v11, %v8465_v40  ;;  %v8660_v29 = vor.u32 %v10984_v15, %v8657_v22  ;;  %v9111_v40 = vld [vmem:[#allocation32 + $0x1c0] sm:$0xf]  ;;  %v8915_v13 = vld [vmem:[#allocation32 + $0x38] sm:$0xf] }
 0x360   :  { %3459 = vmatpush.bf16.msra.mxu2 %v7892_v33  ;;  %3481 = vmatpush.bf16.msrb.mxu0 %v8532_v24  ;;  %v3518_v28 = vrot.slane %v12540_v41, 4  ;;  %v10928_v30 = vld [vmem:[#allocation26 + $0x45c] sm:$0xf]  ;;  %11542 = vrsqrt.f32 %v12543_v51  ;;  %v9196_v39 = vor.u32 %v11125_v7, %v9195_v19  ;;  %v3229_v63 = vpop.f32.mrf.mxu0  ;;  %v12550_v56 = vpop.f32.mrf.mxu3  ;;  %vm3648_vm12 = vweird.f32 %v12543_v51 }
 0x361   :  { %v3571_v27 = vmul.f32 %v12538_v21, %v12538_v21  ;;  %v8433_v20 = vld [vmem:[#allocation26 + $0x478] sm:$0xf0] }
 0x362   :  { %6658 = vmatpush.bf16.msrb.mxu3 %v9280_v44  ;;  %3496 = vmatpush.bf16.msrb.mxu1 %v8724_v49  ;;  %v3519_v0 = vadd.f32 %v3518_v28, %v12540_v41  ;;  %v8436_v37 = vor.u32 %v10928_v30, %v8433_v20  ;;  %v10920_v45 = vld [vmem:[#allocation26 + $0x41c] sm:$0xf]  ;;  %v9475_v28 = vld [vmem:[#allocation32 + $0x498] sm:$0xf]  ;;  %v12563_v30 = vld [vmem:[#allocation29] sm:$0xff] }
 0x363   :  { %3460 = vmatmul.bf16.vlgmr.msra.gmra.mxu2 %v12467_v5  ;;  %v3584_v5 = vrot.slane %v3571_v27, 4  ;;  %v8401_v46 = vld [vmem:[#allocation26 + $0x438] sm:$0xf0] }
 0x364   :  { %6644 = vmatpush.bf16.msrb.mxu2 %v9084_v50  ;;  %3482 = vmatpush.bf16.msrb.mxu0 %v8500_v3  ;;  %v3520_v44 = vrot.slane %v3519_v0, 2  ;;  %v11069_v33 = vld [vmem:[#allocation32 + $0xc0] sm:$0xf0]  ;;  %v9168_v50 = vor.u32 %v11118_v38, %v9167_v36  ;;  %v8404_v60 = vor.u32 %v10920_v45, %v8401_v46  ;;  %v8943_v3 = vld [vmem:[#allocation32 + $0x70] sm:$0xf] }
 0x365   :  { %v3585_v6 = vadd.f32 %v3584_v5, %v3571_v27  ;;  %v11209_v49 = vld [vmem:[#allocation32 + $0x520] sm:$0xf0]  ;;  %v8972_v2 = vor.u32 %v11069_v33, %v8971_v47  ;;  %v8944_v23 = vor.u32 %v11062_v35, %v8943_v3  ;;  %v11055_v27 = vld [vmem:[#allocation32 + $0x50] sm:$0xf0]  ;;  %v8887_v36 = vld [vmem:[#allocation32] sm:$0xf] }
 0x366   :  { %6659 = vmatpush.bf16.msrb.mxu3 %v9252_v1  ;;  %3497 = vmatpush.bf16.msrb.mxu1 %v8692_v10  ;;  %v3521_v17 = vadd.f32 %v3520_v44, %v3519_v0  ;;  %v12552_v55 = vpop.eup %11542  ;;  %v9532_v61 = vor.u32 %v11209_v49, %v9531_v52  ;;  %v9140_v10 = vor.u32 %v11111_v58, %v9139_v57  ;;  %v3253_v22 = vpop.f32.mrf.mxu2  ;;  %v11048_v38 = vld [vmem:[#allocation32 + $0x18] sm:$0xf0]  ;;  %v3756_v47 = vperm.slane %v12572_v18, 0  ;;  %v9419_v57 = vld [vmem:[#allocation32 + $0x428] sm:$0xf] }
 0x367   :  { %v3586_v24 = vrot.slane %v3585_v6, 2  ;;  %v3643_v1 = vmul.f32 %v12552_v55, %v12543_v51  ;;  %vm3649_vm11 = vweird.f32 %v12552_v55  ;;  %v8916_v63 = vor.u32 %v11055_v27, %v8915_v13  ;;  %v11188_v45 = vld [vmem:[#allocation32 + $0x478] sm:$0xf0]  ;;  %v11181_v58 = vld [vmem:[#allocation32 + $0x440] sm:$0xf0] }
 0x368   :  { %6645 = vmatpush.bf16.msrb.mxu2 %v9056_v12  ;;  %3483 = vmatpush.bf16.msrb.mxu0 %v8468_v53  ;;  %v3522_v59 = vrot.slane %v3521_v17, 1  ;;  %v11104_v12 = vld [vmem:[#allocation32 + $0x1d8] sm:$0xf0]  ;;  %v11195_v53 = vld [vmem:[#allocation32 + $0x4b0] sm:$0xf0]  ;;  %v3268_v5 = vpop.f32.mrf.mxu3  ;;  %vm3650_vm13 = vmor %vm3648_vm12, %vm3649_vm11  ;;  %v9420_v35 = vor.u32 %v11181_v58, %v9419_v57 }
 0x369   :  { %v3587_v16 = vadd.f32 %v3586_v24, %v3585_v6  ;;  %v3644_v11 = vmul.f32 %v12552_v55, %v3643_v1  ;;  %v9476_v6 = vor.u32 %v11195_v53, %v9475_v28  ;;  %v11167_v53 = vld [vmem:[#allocation32 + $0x3d0] sm:$0xf0]  ;;  %v3732_v5 = vperm.slane %v12563_v30, 1 }
 0x36a   :  { %6660 = vmatpush.bf16.msrb.mxu3 %v9224_v26  ;;  %3498 = vmatpush.bf16.msrb.mxu1 %v8660_v29  ;;  %v3523_v48 = vadd.f32 %v3522_v59, %v3521_v17  ;;  %v9504_v26 = vor.u32 %v11202_v9, %v9503_v8  ;;  %v9112_v29 = vor.u32 %v11104_v12, %v9111_v40 }
 0x36b   :  { %v3588_v4 = vrot.slane %v3587_v16, 1  ;;  %v3645_v54 = vmul.f32 0.5, %v3644_v11  ;;  %v8888_v17 = vor.u32 %v11048_v38, %v8887_v36  ;;  %v11265_v11 = vld [vmem:[#allocation32 + $0x6e0] sm:$0xf0]  ;;  %v9951_v36 = vld [vmem:[#allocation32 + $0x850] sm:$0xf] }
 0x36c   :  { %6646 = vmatpush.bf16.msrb.mxu2 %v9028_v32  ;;  %3484 = vmatpush.bf16.msrb.mxu0 %v8436_v37  ;;  %v3556_v15 = vmul.f32 %v3523_v48, %v12356_v42  ;;  %v1795_v32 = vperm.slane %v12503_v31, 3  ;;  %v9447_v37 = vld [vmem:[#allocation32 + $0x460] sm:$0xf]  ;;  %v11314_v38 = vld [vmem:[#allocation32 + $0x868] sm:$0xf0] }
 0x36d   :  { %3499 = vmatmul.bf16.vlgmr.msrb.gmra.mxu1 %v12476_v43  ;;  %v3589_v43 = vadd.f32 %v3588_v4, %v3587_v16  ;;  %v3646_v20 = vsub.f32 1.5, %v3645_v54  ;;  %v9448_v52 = vor.u32 %v11188_v45, %v9447_v37  ;;  %v11174_v4 = vld [vmem:[#allocation32 + $0x408] sm:$0xf0]  ;;  %v9979_v54 = vld [vmem:[#allocation32 + $0x888] sm:$0xf]  ;;  %v9952_v45 = vor.u32 %v11314_v38, %v9951_v36 }
 0x36e   :  { %6661 = vmatpush.bf16.msrb.mxu3 %v9196_v39  ;;  %v12561_v7 = vsub.f32 %v12540_v41, %v3556_v15  ;;  %v3292_v39 = vpop.f32.mrf.mxu1  ;;  %v3254_v46 = vadd.f32 %v3253_v22, %v1795_v32  ;;  %v3255_v24 = vpop.f32.mrf.mxu2  ;;  %v11321_v22 = vld [vmem:[#allocation32 + $0x8a0] sm:$0xf0]  ;;  %v9335_v37 = vld [vmem:[#allocation32 + $0x380] sm:$0xf] }
 0x36f   :  { %v3627_v19 = vmul.f32 %v3589_v43, %v12356_v42  ;;  %v3647_v34 = vmul.f32 %v12552_v55, %v3646_v20  ;;  %v9980_v27 = vor.u32 %v11321_v22, %v9979_v54  ;;  %v11258_v20 = vld [vmem:[#allocation32 + $0x6a8] sm:$0xf0]  ;;  %v9867_v22 = vld [vmem:[#allocation32 + $0x7a8] sm:$0xf] }
 0x370   :  { %6647 = vmatpush.bf16.msrb.mxu2 %v9000_v14  ;;  %3485 = vmatpush.bf16.msrb.mxu0 %v8404_v60  ;;  %v3572_v41 = vmul.f32 %v12561_v7, %v12561_v7  ;;  %v3267_v16 = vadd.f32 %v12550_v56, %v3254_v46  ;;  %v3279_v1 = vpop.f32.mrf.mxu0  ;;  %v11251_v46 = vld [vmem:[#allocation32 + $0x670] sm:$0xf0] }
 0x371   :  { %v12568_v0 = vadd.f32 0.8, %v3627_v19  ;;  %v3651_v51 = vsel %vm3650_vm13, %v12552_v55, %v3647_v34  ;;  %v9363_v19 = vld [vmem:[#allocation32 + $0x3b8] sm:$0xf] }
 0x372   :  { %6662 = vmatpush.bf16.msrb.mxu3 %v9168_v50  ;;  %v3590_v44 = vrot.slane %v3572_v41, 4  ;;  %v3722_v14 = vmul.f32 %v3651_v51, %v12523_v25  ;;  %v11160_v51 = vld [vmem:[#allocation32 + $0x398] sm:$0xf0] }
 0x373   :  { %3486 = vmatmul.bf16.vlgmr.msrb.gmra.mxu0 %v12480_v62  ;;  %v3731_v62 = vperm.slane %v12563_v30, 0  ;;  %11544 = vrsqrt.f32 %v12568_v0  ;;  %vm3658_vm0 = vweird.f32 %v12568_v0  ;;  %v9336_v58 = vor.u32 %v11160_v51, %v9335_v37  ;;  %v11223_v37 = vld [vmem:[#allocation32 + $0x590] sm:$0xf0] }
 0x374   :  { %6648 = vmatpush.bf16.msrb.mxu2 %v8972_v2  ;;  %6670 = vmatpush.bf16.msra.mxu0 %v9532_v61  ;;  %v3591_v33 = vadd.f32 %v3590_v44, %v3572_v41  ;;  %v3280_v2 = vadd.f32 %v3279_v1, %v3267_v16  ;;  %v9391_v61 = vld [vmem:[#allocation32 + $0x3f0] sm:$0xf]  ;;  %v9364_v44 = vor.u32 %v11167_v53, %v9363_v19  ;;  %v11244_v1 = vld [vmem:[#allocation32 + $0x638] sm:$0xf0] }
 0x375   :  { %v3747_v49 = vmul.f32 %v3731_v62, %v3722_v14  ;;  %v9392_v43 = vor.u32 %v11174_v4, %v9391_v61 }
 0x376   :  { %6663 = vmatpush.bf16.msrb.mxu3 %v9140_v10  ;;  %v3592_v50 = vrot.slane %v3591_v33, 2  ;;  %v3294_v3 = vpop.f32.mrf.mxu1  ;;  %v12589_v9 = vadd.f32 %v3292_v39, %v3280_v2  ;;  %v9755_v10 = vld [vmem:[#allocation32 + $0x6c8] sm:$0xf] }
 0x377   :  { %v3772_v55 = vadd.f32 %v3756_v47, %v3747_v49  ;;  %v9756_v15 = vor.u32 %v11265_v11, %v9755_v10  ;;  %v11307_v49 = vld [vmem:[#allocation32 + $0x830] sm:$0xf0] }
 0x378   :  { %6649 = vmatpush.bf16.msrb.mxu2 %v8944_v23  ;;  %6671 = vmatpush.bf16.msra.mxu0 %v9504_v26  ;;  %v3593_v60 = vadd.f32 %v3592_v50, %v3591_v33  ;;  %v3524_v26 = vrot.slane %v12589_v9, 4 }
 0x379   :  { %v12584_v59 = vpop.eup %11544  ;;  %vm3780_vm14 = vcmp.gt.f32.partialorder %v3772_v55, 0.0  ;;  %v3788_v48 = vmul.f32 0.2, %v3772_v55  ;;  %6683 = vmatpush.bf16.msra.mxu1 %v9756_v15  ;;  %v1796_v15 = vperm.slane %v12503_v31, 4 }
 0x37a   :  { %6664 = vmatpush.bf16.msrb.mxu3 %v9112_v29  ;;  %v3653_v25 = vmul.f32 %v12584_v59, %v12568_v0  ;;  %v3594_v8 = vrot.slane %v3593_v60, 1  ;;  %vm3659_vm15 = vweird.f32 %v12584_v59  ;;  %v9727_v29 = vld [vmem:[#allocation32 + $0x690] sm:$0xf]  ;;  %v3525_v41 = vadd.f32 %v3524_v26, %v12589_v9  ;;  %v9699_v0 = vld [vmem:[#allocation32 + $0x658] sm:$0xf] }
 0x37b   :  { %v3796_v40 = vsel %vm3780_vm14, %v3772_v55, %v3788_v48  ;;  %v9728_v34 = vor.u32 %v11258_v20, %v9727_v29  ;;  %vm3660_vm1 = vmor %vm3658_vm0, %vm3659_vm15  ;;  %v9700_v33 = vor.u32 %v11251_v46, %v9699_v0  ;;  %v11230_v20 = vld [vmem:[#allocation32 + $0x5c8] sm:$0xf0] }
 0x37c   :  { %6650 = vmatpush.bf16.msrb.mxu2 %v8916_v63  ;;  %6672 = vmatpush.bf16.msra.mxu0 %v9476_v6  ;;  %v3654_v56 = vmul.f32 %v12584_v59, %v3653_v25  ;;  %v3595_v12 = vadd.f32 %v3594_v8, %v3593_v60  ;;  %v12591_v23 = vpack.c.bf16 %v3796_v40, %v3796_v40  ;;  %v3281_v63 = vpop.f32.mrf.mxu0  ;;  %v3526_v62 = vrot.slane %v3525_v41, 2  ;;  %v9671_v60 = vld [vmem:[#allocation32 + $0x620] sm:$0xf] }
 0x37d   :  { %6684 = vmatpush.bf16.msra.mxu1 %v9728_v34  ;;  %v9672_v25 = vor.u32 %v11244_v1, %v9671_v60  ;;  %v9839_v34 = vld [vmem:[#allocation32 + $0x770] sm:$0xf]  ;;  %v11286_v63 = vld [vmem:[#allocation32 + $0x788] sm:$0xf0]  ;;  %v11216_v60 = vld [vmem:[#allocation32 + $0x558] sm:$0xf0] }
 0x37e   :  { %v3655_v13 = vmul.f32 0.5, %v3654_v56  ;;  %v3628_v28 = vmul.f32 %v3595_v12, %v12356_v42  ;;  %v3527_v47 = vadd.f32 %v3526_v62, %v3525_v41  ;;  %v9643_v56 = vld [vmem:[#allocation32 + $0x5e8] sm:$0xf]  ;;  %v11237_v12 = vld [vmem:[#allocation32 + $0x600] sm:$0xf0]  ;;  %v3733_v62 = vperm.slane %v12563_v30, 2 }
 0x37f   :  { %v9644_v54 = vor.u32 %v11237_v12, %v9643_v56 }
 0x380   :  { %6651 = vmatpush.bf16.msrb.mxu2 %v8888_v17  ;;  %6673 = vmatpush.bf16.msra.mxu0 %v9448_v52  ;;  %v3656_v32 = vsub.f32 1.5, %v3655_v13  ;;  %v12600_v39 = vadd.f32 0.8, %v3628_v28  ;;  %v3757_v17 = vperm.slane %v12572_v18, 1  ;;  %v9923_v52 = vld [vmem:[#allocation32 + $0x818] sm:$0xf]  ;;  %v12609_v57 = vpop.f32.mrf.mxu3 }
 0x381   :  { %v3528_v50 = vrot.slane %v3527_v47, 1  ;;  %v9924_v16 = vor.u32 %v11307_v49, %v9923_v52  ;;  %6685 = vmatpush.bf16.msra.mxu1 %v9700_v33  ;;  %v11293_v13 = vld [vmem:[#allocation32 + $0x7c0] sm:$0xf0] }
 0x382   :  { %v3657_v6 = vmul.f32 %v12584_v59, %v3656_v32  ;;  %11546 = vrsqrt.f32 %v12600_v39  ;;  %v9868_v53 = vor.u32 %v11293_v13, %v9867_v22  ;;  %vm3668_vm4 = vweird.f32 %v12600_v39 }
 0x383   :  { %6652 = vmatmul.bf16.vlgmr.msrb.gmra.mxu2 %v12591_v23 }
 0x384   :  { %6674 = vmatpush.bf16.msra.mxu0 %v9420_v35  ;;  %6696 = vmatpush.bf16.msra.mxu2 %v9980_v27  ;;  %v3661_v14 = vsel %vm3660_vm1, %v12584_v59, %v3657_v6  ;;  %v3529_v59 = vadd.f32 %v3528_v50, %v3527_v47  ;;  %v11300_v35 = vld [vmem:[#allocation32 + $0x7f8] sm:$0xf0]  ;;  %v9840_v6 = vor.u32 %v11286_v63, %v9839_v34  ;;  %v3758_v47 = vperm.slane %v12572_v18, 2 }
 0x385   :  { %v3723_v24 = vmul.f32 %v3661_v14, %v12538_v21  ;;  %v9895_v21 = vld [vmem:[#allocation32 + $0x7e0] sm:$0xf]  ;;  %6686 = vmatpush.bf16.msra.mxu1 %v9672_v25 }
 0x386   :  { %v3557_v4 = vmul.f32 %v3529_v59, %v12356_v42  ;;  %v9896_v48 = vor.u32 %v11300_v35, %v9895_v21  ;;  %v3305_v40 = vpop.f32.mrf.mxu2  ;;  %v10203_v35 = vld [vmem:[#allocation32 + $0xa48] sm:$0xf] }
 0x387   :  { %v3748_v55 = vmul.f32 %v3732_v5, %v3723_v24  ;;  %v3306_v41 = vadd.f32 %v3305_v40, %v1796_v15  ;;  %v11279_v24 = vld [vmem:[#allocation32 + $0x750] sm:$0xf0] }
 0x388   :  { %6675 = vmatpush.bf16.msra.mxu0 %v9392_v43  ;;  %6697 = vmatpush.bf16.msra.mxu2 %v9952_v45  ;;  %v11547_v2 = vpop.eup %11546  ;;  %v12614_v11 = vsub.f32 %v12589_v9, %v3557_v4  ;;  %v3320_v28 = vpop.f32.mrf.mxu3  ;;  %v9615_v9 = vld [vmem:[#allocation32 + $0x5b0] sm:$0xf]  ;;  %v11094_v4 = vld [vmem:[#allocation32 + $0x18c] sm:$0xf] }
 0x389   :  { %v3773_v3 = vadd.f32 %v3757_v17, %v3748_v55  ;;  %v3663_v61 = vmul.f32 %v11547_v2, %v12600_v39  ;;  %6687 = vmatpush.bf16.msra.mxu1 %v9644_v54  ;;  %vm3669_vm3 = vweird.f32 %v11547_v2  ;;  %v9616_v31 = vor.u32 %v11230_v20, %v9615_v9  ;;  %v9811_v39 = vld [vmem:[#allocation32 + $0x738] sm:$0xf]  ;;  %v9559_v55 = vld [vmem:[#allocation32 + $0x540] sm:$0xf]  ;;  %v9057_v9 = vld [vmem:[#allocation32 + $0x16c] sm:$0xf0] }
 0x38a   :  { %v3573_v27 = vmul.f32 %v12614_v11, %v12614_v11  ;;  %v3344_v29 = vpop.f32.mrf.mxu1  ;;  %vm3670_vm5 = vmor %vm3668_vm4, %vm3669_vm3  ;;  %v3319_v33 = vadd.f32 %v12609_v57, %v3306_v41  ;;  %v9812_v49 = vor.u32 %v11279_v24, %v9811_v39  ;;  %v9560_v59 = vor.u32 %v11216_v60, %v9559_v55  ;;  %v11080_v41 = vld [vmem:[#allocation32 + $0x11c] sm:$0xf] }
 0x38b   :  { %vm3781_vm2 = vcmp.gt.f32.partialorder %v3773_v3, 0.0  ;;  %v3789_v8 = vmul.f32 0.2, %v3773_v3  ;;  %v3664_v10 = vmul.f32 %v11547_v2, %v3663_v61  ;;  %v11377_v61 = vld [vmem:[#allocation32 + $0xa60] sm:$0xf0] }
 0x38c   :  { %6676 = vmatpush.bf16.msra.mxu0 %v9364_v44  ;;  %6698 = vmatpush.bf16.msra.mxu2 %v9924_v16  ;;  %v3596_v5 = vrot.slane %v3573_v27, 4  ;;  %v9587_v44 = vld [vmem:[#allocation32 + $0x578] sm:$0xf]  ;;  %v10204_v56 = vor.u32 %v11377_v61, %v10203_v35  ;;  %v10063_v35 = vld [vmem:[#allocation32 + $0x930] sm:$0xf] }
 0x38d   :  { %v3797_v43 = vsel %vm3781_vm2, %v3773_v3, %v3789_v8  ;;  %v3665_v19 = vmul.f32 0.5, %v3664_v10  ;;  %6688 = vmatpush.bf16.msra.mxu1 %v9616_v31  ;;  %v9588_v46 = vor.u32 %v11223_v37, %v9587_v44  ;;  %v11272_v3 = vld [vmem:[#allocation32 + $0x718] sm:$0xf0]  ;;  %v9085_v10 = vld [vmem:[#allocation32 + $0x1a4] sm:$0xf0] }
 0x38e   :  { %v12617_v26 = vpack.c.bf16 %v3797_v43, %v3797_v43  ;;  %v3597_v38 = vadd.f32 %v3596_v5, %v3573_v27  ;;  %v3307_v0 = vpop.f32.mrf.mxu2  ;;  %v9088_v12 = vor.u32 %v11094_v4, %v9085_v10  ;;  %6709 = vmatpush.bf16.msra.mxu3 %v10204_v56  ;;  %v11370_v27 = vld [vmem:[#allocation32 + $0xa28] sm:$0xf0]  ;;  %v10147_v5 = vld [vmem:[#allocation32 + $0x9d8] sm:$0xf]  ;;  %v11363_v31 = vld [vmem:[#allocation32 + $0x9f0] sm:$0xf0] }
 0x38f   :  { %v3666_v32 = vsub.f32 1.5, %v3665_v19  ;;  %v10175_v19 = vld [vmem:[#allocation32 + $0xa10] sm:$0xf]  ;;  %v10119_v37 = vld [vmem:[#allocation32 + $0x9a0] sm:$0xf] }
 0x390   :  { %6677 = vmatpush.bf16.msra.mxu0 %v9336_v58  ;;  %6699 = vmatpush.bf16.msra.mxu2 %v9896_v48  ;;  %v3598_v51 = vrot.slane %v3597_v38, 2  ;;  %v3331_v52 = vpop.f32.mrf.mxu0  ;;  %v11342_v61 = vld [vmem:[#allocation32 + $0x948] sm:$0xf0]  ;;  %v11059_v4 = vld [vmem:[#allocation32 + $0x74] sm:$0xf] }
 0x391   :  { %6665 = vmatmul.bf16.vlgmr.msrb.gmra.mxu3 %v12617_v26  ;;  %v3667_v36 = vmul.f32 %v11547_v2, %v3666_v32  ;;  %v3332_v58 = vadd.f32 %v3331_v52, %v3319_v33  ;;  %6689 = vmatpush.bf16.msra.mxu1 %v9588_v46  ;;  %v10064_v56 = vor.u32 %v11342_v61, %v10063_v35  ;;  %v8945_v10 = vld [vmem:[#allocation32 + $0x8c] sm:$0xf0] }
 0x392   :  { %v3599_v17 = vadd.f32 %v3598_v51, %v3597_v38  ;;  %v3346_v16 = vpop.f32.mrf.mxu1  ;;  %v9029_v38 = vld [vmem:[#allocation32 + $0x134] sm:$0xf0]  ;;  %v11073_v51 = vld [vmem:[#allocation32 + $0xe4] sm:$0xf] }
 0x393   :  { %v3671_v45 = vsel %vm3670_vm5, %v11547_v2, %v3667_v36  ;;  %v9783_v2 = vld [vmem:[#allocation32 + $0x700] sm:$0xf]  ;;  %v10148_v36 = vor.u32 %v11363_v31, %v10147_v5  ;;  %v11066_v16 = vld [vmem:[#allocation32 + $0xac] sm:$0xf]  ;;  %v8917_v5 = vld [vmem:[#allocation32 + $0x54] sm:$0xf0] }
 0x394   :  { %6700 = vmatpush.bf16.msra.mxu2 %v9868_v53  ;;  %v3724_v14 = vmul.f32 %v3671_v45, %v12561_v7  ;;  %v3600_v1 = vrot.slane %v3599_v17, 1  ;;  %v3345_v7 = vadd.f32 %v3344_v29, %v3332_v58  ;;  %v9784_v21 = vor.u32 %v11272_v3, %v9783_v2  ;;  %v11087_v29 = vld [vmem:[#allocation32 + $0x154] sm:$0xf]  ;;  %v11356_v45 = vld [vmem:[#allocation32 + $0x9b8] sm:$0xf0] }
 0x395   :  { %6690 = vmatpush.bf16.msra.mxu1 %v9560_v59  ;;  %v10176_v53 = vor.u32 %v11370_v27, %v10175_v19  ;;  %v9060_v20 = vor.u32 %v11087_v29, %v9057_v9  ;;  %v11349_v58 = vld [vmem:[#allocation32 + $0x980] sm:$0xf0]  ;;  %v11335_v29 = vld [vmem:[#allocation32 + $0x910] sm:$0xf0] }
 0x396   :  { %v3749_v50 = vmul.f32 %v3733_v62, %v3724_v14  ;;  %v3601_v57 = vadd.f32 %v3600_v1, %v3599_v17  ;;  %v3530_v8 = vrot.slane %v3345_v7, 4  ;;  %v10120_v14 = vor.u32 %v11356_v45, %v10119_v37  ;;  %v12638_v17 = vld [vmem:[#allocation28] sm:$0xff] }
 0x397   :  { %6710 = vmatpush.bf16.msra.mxu3 %v10176_v53  ;;  %v1797_v52 = vperm.slane %v12638_v17, 5  ;;  %v10035_v53 = vld [vmem:[#allocation32 + $0x8f8] sm:$0xf] }
 0x398   :  { %6701 = vmatpush.bf16.msra.mxu2 %v9840_v6  ;;  %v3774_v25 = vadd.f32 %v3758_v47, %v3749_v50  ;;  %v3629_v40 = vmul.f32 %v3601_v57, %v12356_v42  ;;  %v3531_v15 = vadd.f32 %v3530_v8, %v3345_v7  ;;  %v3333_v13 = vpop.f32.mrf.mxu0  ;;  %v9032_v6 = vor.u32 %v11080_v41, %v9029_v38  ;;  %v9001_v47 = vld [vmem:[#allocation32 + $0xfc] sm:$0xf0]  ;;  %v10091_v50 = vld [vmem:[#allocation32 + $0x968] sm:$0xf] }
 0x399   :  { %v9004_v33 = vor.u32 %v11073_v51, %v9001_v47  ;;  %v10092_v59 = vor.u32 %v11349_v58, %v10091_v50  ;;  %v8889_v51 = vld [vmem:[#allocation32 + $0x1c] sm:$0xf0]  ;;  %v9309_v50 = vld [vmem:[#allocation32 + $0x364] sm:$0xf0] }
 0x39a   :  { %vm3782_vm6 = vcmp.gt.f32.partialorder %v3774_v25, 0.0  ;;  %v3790_v48 = vmul.f32 0.2, %v3774_v25  ;;  %v12630_v22 = vadd.f32 0.8, %v3629_v40  ;;  %v3532_v28 = vrot.slane %v3531_v15, 2 }
 0x39b   :  { %6711 = vmatpush.bf16.msra.mxu3 %v10148_v36  ;;  %v3734_v40 = vperm.slane %v12563_v30, 3 }
 0x39c   :  { %6702 = vmatpush.bf16.msra.mxu2 %v9812_v49  ;;  %v3798_v43 = vsel %vm3782_vm6, %v3774_v25, %v3790_v48  ;;  %11548 = vrsqrt.f32 %v12630_v22  ;;  %v3533_v32 = vadd.f32 %v3532_v28, %v3531_v15  ;;  %v8973_v25 = vld [vmem:[#allocation32 + $0xc4] sm:$0xf0]  ;;  %vm3678_vm8 = vweird.f32 %v12630_v22 }
 0x39d   :  { %v12628_v54 = vpack.c.bf16 %v3798_v43, %v3798_v43  ;;  %v3759_v15 = vperm.slane %v12572_v18, 3 }
 0x39e   :  { %v3534_v34 = vrot.slane %v3533_v32, 1 }
 0x39f   :  { %6678 = vmatmul.bf16.vlgmr.msra.gmra.mxu0 %v12628_v54  ;;  %6712 = vmatpush.bf16.msra.mxu3 %v10120_v14 }
 0x3a0   :  { %6703 = vmatpush.bf16.msra.mxu2 %v9784_v21  ;;  %v3370_v63 = vpop.f32.mrf.mxu3  ;;  %v3535_v62 = vadd.f32 %v3534_v34, %v3533_v32  ;;  %v10036_v32 = vor.u32 %v11335_v29, %v10035_v53  ;;  %v11412_v53 = vld [vmem:[#allocation32 + $0xb78] sm:$0xf0]  ;;  %v11129_v29 = vld [vmem:[#allocation32 + $0x2a4] sm:$0xf] }
 0x3a2   :  { %v11549_v44 = vpop.eup %11548  ;;  %v3558_v46 = vmul.f32 %v3535_v62, %v12356_v42 }
 0x3a3   :  { %v3673_v0 = vmul.f32 %v11549_v44, %v12630_v22  ;;  %vm3679_vm7 = vweird.f32 %v11549_v44  ;;  %6713 = vmatpush.bf16.msra.mxu3 %v10092_v59  ;;  %v11052_v22 = vld [vmem:[#allocation32 + $0x3c] sm:$0xf] }
 0x3a4   :  { %6748 = vmatpush.bf16.msrb.mxu2 %v9088_v12  ;;  %v12636_v24 = vsub.f32 %v3345_v7, %v3558_v46  ;;  %v8976_v7 = vor.u32 %v11066_v16, %v8973_v25  ;;  %vm3680_vm9 = vmor %vm3678_vm8, %vm3679_vm7  ;;  %v8948_v12 = vor.u32 %v11059_v4, %v8945_v10  ;;  %v8920_v36 = vor.u32 %v11052_v22, %v8917_v5  ;;  %v11433_v46 = vld [vmem:[#allocation32 + $0xc20] sm:$0xf0] }
 0x3a5   :  { %v3674_v39 = vmul.f32 %v11549_v44, %v3673_v0  ;;  %v10427_v0 = vld [vmem:[#allocation32 + $0xc08] sm:$0xf] }
 0x3a6   :  { %v3357_v49 = vpop.f32.mrf.mxu2  ;;  %v3574_v60 = vmul.f32 %v12636_v24, %v12636_v24 }
 0x3a7   :  { %v3675_v55 = vmul.f32 0.5, %v3674_v39  ;;  %v3358_v21 = vadd.f32 %v3357_v49, %v1797_v52  ;;  %6714 = vmatpush.bf16.msra.mxu3 %v10064_v56  ;;  %v11150_v39 = vld [vmem:[#allocation32 + $0x34c] sm:$0xf]  ;;  %v10428_v49 = vor.u32 %v11433_v46, %v10427_v0  ;;  %v11419_v56 = vld [vmem:[#allocation32 + $0xbb0] sm:$0xf0] }
 0x3a8   :  { %6749 = vmatpush.bf16.msrb.mxu2 %v9060_v20  ;;  %v3372_v1 = vpop.f32.mrf.mxu3  ;;  %v3602_v57 = vrot.slane %v3574_v60, 4 }
 0x3a9   :  { %v3676_v3 = vsub.f32 1.5, %v3675_v55  ;;  %v3371_v28 = vadd.f32 %v3370_v63, %v3358_v21  ;;  %v11045_v63 = vld [vmem:[#allocation32 + $0x4] sm:$0xf]  ;;  %v9312_v55 = vor.u32 %v11150_v39, %v9309_v50  ;;  %6722 = vmatpush.bf16.msrb.mxu0 %v10428_v49  ;;  %v9281_v21 = vld [vmem:[#allocation32 + $0x32c] sm:$0xf0] }
 0x3aa   :  { %v3396_v2 = vpop.f32.mrf.mxu1  ;;  %v3603_v8 = vadd.f32 %v3602_v57, %v3574_v60  ;;  %v11143_v57 = vld [vmem:[#allocation32 + $0x314] sm:$0xf]  ;;  %v11398_v39 = vld [vmem:[#allocation32 + $0xb08] sm:$0xf0] }
 0x3ab   :  { %v3677_v48 = vmul.f32 %v11549_v44, %v3676_v3  ;;  %6715 = vmatpush.bf16.msra.mxu3 %v10036_v32  ;;  %v9284_v61 = vor.u32 %v11143_v57, %v9281_v21  ;;  %v11115_v50 = vld [vmem:[#allocation32 + $0x234] sm:$0xf]  ;;  %v10259_v21 = vld [vmem:[#allocation32 + $0xab8] sm:$0xf] }
 0x3ac   :  { %6750 = vmatpush.bf16.msrb.mxu2 %v9032_v6  ;;  %v3604_v13 = vrot.slane %v3603_v8, 2 }
 0x3ad   :  { %v3681_v43 = vsel %vm3680_vm9, %v11549_v44, %v3677_v48  ;;  %v10007_v44 = vld [vmem:[#allocation32 + $0x8c0] sm:$0xf] }
 0x3ae   :  { %v3359_v19 = vpop.f32.mrf.mxu2  ;;  %v3725_v27 = vmul.f32 %v3681_v43, %v12614_v11  ;;  %v3605_v9 = vadd.f32 %v3604_v13, %v3603_v8  ;;  %v11328_v11 = vld [vmem:[#allocation32 + $0x8d8] sm:$0xf0]  ;;  %v10371_v8 = vld [vmem:[#allocation32 + $0xb98] sm:$0xf] }
 0x3af   :  { %v10008_v45 = vor.u32 %v11328_v11, %v10007_v44  ;;  %v10372_v10 = vor.u32 %v11419_v56, %v10371_v8  ;;  %v11405_v44 = vld [vmem:[#allocation32 + $0xb40] sm:$0xf0] }
 0x3b0   :  { %6751 = vmatpush.bf16.msrb.mxu2 %v9004_v33  ;;  %v3383_v20 = vpop.f32.mrf.mxu0  ;;  %v3750_v31 = vmul.f32 %v3734_v40, %v3725_v27  ;;  %v3606_v38 = vrot.slane %v3605_v9, 1  ;;  %v8892_v33 = vor.u32 %v11045_v63, %v8889_v51  ;;  %v11136_v40 = vld [vmem:[#allocation32 + $0x2dc] sm:$0xf] }
 0x3b1   :  { %v3384_v41 = vadd.f32 %v3383_v20, %v3371_v28  ;;  %6716 = vmatpush.bf16.msra.mxu3 %v10008_v45  ;;  %v10343_v28 = vld [vmem:[#allocation32 + $0xb60] sm:$0xf]  ;;  %v9197_v45 = vld [vmem:[#allocation32 + $0x284] sm:$0xf0] }
 0x3b2   :  { %v3398_v34 = vpop.f32.mrf.mxu1  ;;  %v3775_v6 = vadd.f32 %v3759_v15, %v3750_v31  ;;  %v3607_v37 = vadd.f32 %v3606_v38, %v3605_v9  ;;  %v10344_v22 = vor.u32 %v11412_v53, %v10343_v28  ;;  %v9225_v9 = vld [vmem:[#allocation32 + $0x2bc] sm:$0xf0] }
 0x3b3   :  { %v3397_v62 = vadd.f32 %v3396_v2, %v3384_v41  ;;  %v10399_v2 = vld [vmem:[#allocation32 + $0xbd0] sm:$0xf]  ;;  %v9228_v31 = vor.u32 %v11129_v29, %v9225_v9  ;;  %v1798_v41 = vperm.slane %v12638_v17, 6 }
 0x3b4   :  { %6752 = vmatpush.bf16.msrb.mxu2 %v8976_v7  ;;  %vm3783_vm10 = vcmp.gt.f32.partialorder %v3775_v6, 0.0  ;;  %v3791_v14 = vmul.f32 0.2, %v3775_v6  ;;  %v3630_v52 = vmul.f32 %v3607_v37, %v12356_v42  ;;  %v11426_v7 = vld [vmem:[#allocation32 + $0xbe8] sm:$0xf0] }
 0x3b5   :  { %v3536_v47 = vrot.slane %v3397_v62, 4  ;;  %6761 = vmatpush.bf16.msrb.mxu3 %v9312_v55  ;;  %v10400_v3 = vor.u32 %v11426_v7, %v10399_v2  ;;  %v11122_v37 = vld [vmem:[#allocation32 + $0x26c] sm:$0xf]  ;;  %v3760_v7 = vperm.slane %v12572_v18, 4  ;;  %v9981_v18 = vld [vmem:[#allocation32 + $0x8a4] sm:$0xf0] }
 0x3b6   :  { %v3799_v58 = vsel %vm3783_vm10, %v3775_v6, %v3791_v14  ;;  %v12650_v1 = vadd.f32 0.8, %v3630_v52  ;;  %v10315_v6 = vld [vmem:[#allocation32 + $0xb28] sm:$0xf]  ;;  %v9200_v0 = vor.u32 %v11122_v37, %v9197_v45  ;;  %v3735_v52 = vperm.slane %v12563_v30, 4 }
 0x3b7   :  { %v3537_v16 = vadd.f32 %v3536_v47, %v3397_v62  ;;  %v12648_v60 = vpack.c.bf16 %v3799_v58, %v3799_v58  ;;  %6723 = vmatpush.bf16.msrb.mxu0 %v10400_v3  ;;  %v10316_v63 = vor.u32 %v11405_v44, %v10315_v6  ;;  %v9169_v58 = vld [vmem:[#allocation32 + $0x24c] sm:$0xf0]  ;;  %v9533_v6 = vld [vmem:[#allocation32 + $0x524] sm:$0xf0]  ;;  %v11311_v37 = vld [vmem:[#allocation32 + $0x854] sm:$0xf] }
 0x3b8   :  { %6753 = vmatpush.bf16.msrb.mxu2 %v8948_v12  ;;  %v3385_v59 = vpop.f32.mrf.mxu0  ;;  %11550 = vrsqrt.f32 %v12650_v1  ;;  %v9253_v12 = vld [vmem:[#allocation32 + $0x2f4] sm:$0xf0]  ;;  %vm3688_vm12 = vweird.f32 %v12650_v1  ;;  %v9953_v45 = vld [vmem:[#allocation32 + $0x86c] sm:$0xf0] }
 0x3b9   :  { %v3538_v25 = vrot.slane %v3537_v16, 2  ;;  %6691 = vmatmul.bf16.vlgmr.msra.gmra.mxu1 %v12648_v60  ;;  %6762 = vmatpush.bf16.msrb.mxu3 %v9284_v61  ;;  %v9256_v15 = vor.u32 %v11136_v40, %v9253_v12  ;;  %v11108_v61 = vld [vmem:[#allocation32 + $0x1fc] sm:$0xf] }
 0x3bb   :  { %v3539_v35 = vadd.f32 %v3538_v25, %v3537_v16  ;;  %6724 = vmatpush.bf16.msrb.mxu0 %v10372_v10  ;;  %v9172_v25 = vor.u32 %v11115_v50, %v9169_v58  ;;  %v9141_v10 = vld [vmem:[#allocation32 + $0x214] sm:$0xf0]  ;;  %v11304_v50 = vld [vmem:[#allocation32 + $0x81c] sm:$0xf] }
 0x3bc   :  { %6754 = vmatpush.bf16.msrb.mxu2 %v8920_v36  ;;  %v9144_v12 = vor.u32 %v11108_v61, %v9141_v10  ;;  %v9925_v58 = vld [vmem:[#allocation32 + $0x834] sm:$0xf0]  ;;  %v9897_v61 = vld [vmem:[#allocation32 + $0x7fc] sm:$0xf0] }
 0x3bd   :  { %v3540_v4 = vrot.slane %v3539_v35, 1  ;;  %6763 = vmatpush.bf16.msrb.mxu3 %v9256_v15  ;;  %v10567_v10 = vld [vmem:[#allocation32 + $0xd20] sm:$0xf] }
 0x3be   :  { %v11551_v13 = vpop.eup %11550 }
 0x3bf   :  { %v3541_v43 = vadd.f32 %v3540_v4, %v3539_v35  ;;  %v3683_v19 = vmul.f32 %v11551_v13, %v12650_v1  ;;  %6725 = vmatpush.bf16.msrb.mxu0 %v10344_v22  ;;  %vm3689_vm11 = vweird.f32 %v11551_v13  ;;  %v11391_v35 = vld [vmem:[#allocation32 + $0xad0] sm:$0xf0]  ;;  %v9113_v22 = vld [vmem:[#allocation32 + $0x1dc] sm:$0xf0] }
 0x3c0   :  { %6755 = vmatpush.bf16.msrb.mxu2 %v8892_v33  ;;  %v3422_v48 = vpop.f32.mrf.mxu3  ;;  %v10287_v33 = vld [vmem:[#allocation32 + $0xaf0] sm:$0xf]  ;;  %vm3690_vm13 = vmor %vm3688_vm12, %vm3689_vm11  ;;  %v10260_v56 = vor.u32 %v11391_v35, %v10259_v21  ;;  %v9928_v21 = vor.u32 %v11304_v50, %v9925_v58  ;;  %v11297_v35 = vld [vmem:[#allocation32 + $0x7e4] sm:$0xf] }
 0x3c1   :  { %v3559_v27 = vmul.f32 %v3541_v43, %v12356_v42  ;;  %v3684_v20 = vmul.f32 %v11551_v13, %v3683_v19  ;;  %6764 = vmatpush.bf16.msrb.mxu3 %v9228_v31  ;;  %v10288_v49 = vor.u32 %v11398_v39, %v10287_v33  ;;  %v11384_v19 = vld [vmem:[#allocation32 + $0xa98] sm:$0xf0]  ;;  %v9956_v39 = vor.u32 %v11311_v37, %v9953_v45  ;;  %v11283_v45 = vld [vmem:[#allocation32 + $0x774] sm:$0xf] }
 0x3c3   :  { %v12656_v32 = vsub.f32 %v3397_v62, %v3559_v27  ;;  %v3685_v34 = vmul.f32 0.5, %v3684_v20  ;;  %6726 = vmatpush.bf16.msrb.mxu0 %v10316_v63  ;;  %v11101_v27 = vld [vmem:[#allocation32 + $0x1c4] sm:$0xf] }
 0x3c4   :  { %v9116_v20 = vor.u32 %v11101_v27, %v9113_v22  ;;  %v11290_v27 = vld [vmem:[#allocation32 + $0x7ac] sm:$0xf] }
 0x3c5   :  { %v3575_v36 = vmul.f32 %v12656_v32, %v12656_v32  ;;  %v3686_v51 = vsub.f32 1.5, %v3685_v34  ;;  %6765 = vmatpush.bf16.msrb.mxu3 %v9200_v0 }
 0x3c6   :  { %v3409_v5 = vpop.f32.mrf.mxu2 }
 0x3c7   :  { %v3608_v62 = vrot.slane %v3575_v36, 4  ;;  %v3410_v46 = vadd.f32 %v3409_v5, %v1798_v41  ;;  %v3687_v14 = vmul.f32 %v11551_v13, %v3686_v51  ;;  %6727 = vmatpush.bf16.msrb.mxu0 %v10288_v49  ;;  %v10651_v5 = vld [vmem:[#allocation32 + $0xdc8] sm:$0xf]  ;;  %v9505_v49 = vld [vmem:[#allocation32 + $0x4ec] sm:$0xf0] }
 0x3c8   :  { %v3424_v38 = vpop.f32.mrf.mxu3 }
 0x3c9   :  { %v3609_v47 = vadd.f32 %v3608_v62, %v3575_v36  ;;  %v3691_v16 = vsel %vm3690_vm13, %v11551_v13, %v3687_v14  ;;  %v3423_v3 = vadd.f32 %v3422_v48, %v3410_v46  ;;  %6766 = vmatpush.bf16.msrb.mxu3 %v9172_v25  ;;  %v10231_v13 = vld [vmem:[#allocation32 + $0xa80] sm:$0xf]  ;;  %v11489_v36 = vld [vmem:[#allocation32 + $0xde0] sm:$0xf0]  ;;  %v11206_v38 = vld [vmem:[#allocation32 + $0x50c] sm:$0xf] }
 0x3ca   :  { %v3448_v11 = vpop.f32.mrf.mxu1  ;;  %v3726_v2 = vmul.f32 %v3691_v16, %v12636_v24  ;;  %v11318_v24 = vld [vmem:[#allocation32 + $0x88c] sm:$0xf]  ;;  %v10232_v29 = vor.u32 %v11384_v19, %v10231_v13  ;;  %v10652_v51 = vor.u32 %v11489_v36, %v10651_v5  ;;  %v9536_v62 = vor.u32 %v11206_v38, %v9533_v6  ;;  %v10623_v46 = vld [vmem:[#allocation32 + $0xd90] sm:$0xf]  ;;  %v10595_v25 = vld [vmem:[#allocation32 + $0xd58] sm:$0xf] }
 0x3cb   :  { %v3610_v55 = vrot.slane %v3609_v47, 2  ;;  %6728 = vmatpush.bf16.msrb.mxu0 %v10260_v56  ;;  %v9984_v34 = vor.u32 %v11318_v24, %v9981_v18  ;;  %v11482_v14 = vld [vmem:[#allocation32 + $0xda8] sm:$0xf0]  ;;  %v9449_v18 = vld [vmem:[#allocation32 + $0x47c] sm:$0xf0] }
 0x3cc   :  { %v3751_v30 = vmul.f32 %v3735_v52, %v3726_v2  ;;  %6735 = vmatpush.bf16.msrb.mxu1 %v10652_v51  ;;  %v10624_v52 = vor.u32 %v11482_v14, %v10623_v46  ;;  %v11475_v2 = vld [vmem:[#allocation32 + $0xd70] sm:$0xf0]  ;;  %v10539_v5 = vld [vmem:[#allocation32 + $0xce8] sm:$0xf]  ;;  %v11178_v36 = vld [vmem:[#allocation32 + $0x42c] sm:$0xf] }
 0x3cd   :  { %v3611_v1 = vadd.f32 %v3610_v55, %v3609_v47  ;;  %6767 = vmatpush.bf16.msrb.mxu3 %v9144_v12  ;;  %v11199_v47 = vld [vmem:[#allocation32 + $0x4d4] sm:$0xf]  ;;  %v11185_v12 = vld [vmem:[#allocation32 + $0x464] sm:$0xf]  ;;  %v9421_v38 = vld [vmem:[#allocation32 + $0x444] sm:$0xf0] }
 0x3ce   :  { %v3411_v59 = vpop.f32.mrf.mxu2  ;;  %v3776_v43 = vadd.f32 %v3760_v7, %v3751_v30  ;;  %v9508_v16 = vor.u32 %v11199_v47, %v9505_v49  ;;  %v10596_v7 = vor.u32 %v11475_v2, %v10595_v25  ;;  %v9424_v37 = vor.u32 %v11178_v36, %v9421_v38  ;;  %v9841_v51 = vld [vmem:[#allocation32 + $0x78c] sm:$0xf0]  ;;  %v11454_v14 = vld [vmem:[#allocation32 + $0xcc8] sm:$0xf0]  ;;  %v12692_v2 = vld [vmem:[#allocation31] sm:$0xff] }
 0x3cf   :  { %v3612_v40 = vrot.slane %v3611_v1, 1  ;;  %6729 = vmatpush.bf16.msrb.mxu0 %v10232_v29  ;;  %v1799_v29 = vperm.slane %v12638_v17, 7  ;;  %v10511_v46 = vld [vmem:[#allocation32 + $0xcb0] sm:$0xf]  ;;  %v9337_v36 = vld [vmem:[#allocation32 + $0x39c] sm:$0xf0] }
 0x3d0   :  { %v3435_v57 = vpop.f32.mrf.mxu0  ;;  %vm3784_vm14 = vcmp.gt.f32.partialorder %v3776_v43, 0.0  ;;  %v3792_v28 = vmul.f32 0.2, %v3776_v43  ;;  %6736 = vmatpush.bf16.msrb.mxu1 %v10624_v52  ;;  %v12687_v47 = vld [vmem:[#allocation29] sm:$0xff] }
 0x3d1   :  { %v3436_v4 = vadd.f32 %v3435_v57, %v3423_v3  ;;  %v3613_v48 = vadd.f32 %v3612_v40, %v3611_v1  ;;  %6768 = vmatpush.bf16.msrb.mxu3 %v9116_v20  ;;  %v11192_v3 = vld [vmem:[#allocation32 + $0x49c] sm:$0xf]  ;;  %v9477_v1 = vld [vmem:[#allocation32 + $0x4b4] sm:$0xf0]  ;;  %v11171_v52 = vld [vmem:[#allocation32 + $0x3f4] sm:$0xf] }
 0x3d2   :  { %v3450_v8 = vpop.f32.mrf.mxu1  ;;  %v3800_v31 = vsel %vm3784_vm14, %v3776_v43, %v3792_v28  ;;  %v9480_v30 = vor.u32 %v11192_v3, %v9477_v1  ;;  %v11468_v40 = vld [vmem:[#allocation32 + $0xd38] sm:$0xf0]  ;;  %v9900_v43 = vor.u32 %v11297_v35, %v9897_v61  ;;  %v9869_v28 = vld [vmem:[#allocation32 + $0x7c4] sm:$0xf0]  ;;  %v9393_v49 = vld [vmem:[#allocation32 + $0x40c] sm:$0xf0] }
 0x3d3   :  { %v12665_v15 = vadd.f32 %v3448_v11, %v3436_v4  ;;  %v3631_v9 = vmul.f32 %v3613_v48, %v12356_v42  ;;  %v12670_v44 = vpack.c.bf16 %v3800_v31, %v3800_v31  ;;  %6774 = vmatpush.bf16.msra.mxu0 %v9536_v62  ;;  %v10568_v24 = vor.u32 %v11468_v40, %v10567_v10  ;;  %v11461_v31 = vld [vmem:[#allocation32 + $0xd00] sm:$0xf0]  ;;  %v11276_v1 = vld [vmem:[#allocation32 + $0x73c] sm:$0xf]  ;;  %v10483_v61 = vld [vmem:[#allocation32 + $0xc78] sm:$0xf] }
 0x3d4   :  { %6737 = vmatpush.bf16.msrb.mxu1 %v10596_v7  ;;  %v3761_v7 = vperm.slane %v12692_v2, 5  ;;  %v11269_v40 = vld [vmem:[#allocation32 + $0x704] sm:$0xf] }
 0x3d5   :  { %v3542_v53 = vrot.slane %v12665_v15, 4  ;;  %v12672_v11 = vadd.f32 0.8, %v3631_v9  ;;  %6704 = vmatmul.bf16.vlgmr.msra.gmra.mxu2 %v12670_v44 }
 0x3d6   :  { %6800 = vmatpush.bf16.msra.mxu2 %v9984_v34  ;;  %v9872_v34 = vor.u32 %v11290_v27, %v9869_v28  ;;  %v10205_v28 = vld [vmem:[#allocation32 + $0xa64] sm:$0xf0] }
 0x3d7   :  { %v3543_v41 = vadd.f32 %v3542_v53, %v12665_v15  ;;  %11552 = vrsqrt.f32 %v12672_v11  ;;  %6775 = vmatpush.bf16.msra.mxu0 %v9508_v16  ;;  %v9452_v53 = vor.u32 %v11185_v12, %v9449_v18  ;;  %vm3698_vm0 = vweird.f32 %v12672_v11  ;;  %v9785_v18 = vld [vmem:[#allocation32 + $0x71c] sm:$0xf0] }
 0x3d8   :  { %v3437_v63 = vpop.f32.mrf.mxu0  ;;  %6738 = vmatpush.bf16.msrb.mxu1 %v10568_v24 }
 0x3d9   :  { %v3544_v0 = vrot.slane %v3543_v41, 2 }
 0x3da   :  { %6801 = vmatpush.bf16.msra.mxu2 %v9956_v39  ;;  %v10512_v39 = vor.u32 %v11454_v14, %v10511_v46 }
 0x3db   :  { %v3545_v33 = vadd.f32 %v3544_v0, %v3543_v41  ;;  %6776 = vmatpush.bf16.msra.mxu0 %v9480_v30  ;;  %v11447_v30 = vld [vmem:[#allocation32 + $0xc90] sm:$0xf0] }
 0x3dc   :  { %v10484_v12 = vor.u32 %v11447_v30, %v10483_v61  ;;  %v11248_v30 = vld [vmem:[#allocation32 + $0x65c] sm:$0xf] }
 0x3dd   :  { %v3546_v55 = vrot.slane %v3545_v33, 1  ;;  %v11553_v4 = vpop.eup %11552 }
 0x3de   :  { %v3693_v8 = vmul.f32 %v11553_v4, %v12672_v11  ;;  %6802 = vmatpush.bf16.msra.mxu2 %v9928_v21  ;;  %vm3699_vm15 = vweird.f32 %v11553_v4  ;;  %v9396_v11 = vor.u32 %v11171_v52, %v9393_v49  ;;  %v11091_v52 = vld [vmem:[#allocation32 + $0x170] sm:$0xf0] }
 0x3df   :  { %v3547_v57 = vadd.f32 %v3546_v55, %v3545_v33  ;;  %6777 = vmatpush.bf16.msra.mxu0 %v9452_v53  ;;  %vm3700_vm1 = vmor %vm3698_vm0, %vm3699_vm15  ;;  %v3736_v33 = vperm.slane %v12687_v47, 5  ;;  %v9844_v55 = vor.u32 %v11283_v45, %v9841_v51  ;;  %v9091_v53 = vld [vmem:[#allocation32 + $0x190] sm:$0xf] }
 0x3e0   :  { %v12676_v59 = vpop.f32.mrf.mxu3  ;;  %v3694_v48 = vmul.f32 %v11553_v4, %v3693_v8  ;;  %v10177_v51 = vld [vmem:[#allocation32 + $0xa2c] sm:$0xf0] }
 0x3e1   :  { %v3560_v56 = vmul.f32 %v3547_v57, %v12356_v42  ;;  %v9813_v57 = vld [vmem:[#allocation32 + $0x754] sm:$0xf0] }
 0x3e2   :  { %v3695_v22 = vmul.f32 0.5, %v3694_v48  ;;  %6803 = vmatpush.bf16.msra.mxu2 %v9900_v43  ;;  %v9816_v24 = vor.u32 %v11276_v1, %v9813_v57  ;;  %v11374_v48 = vld [vmem:[#allocation32 + $0xa4c] sm:$0xf]  ;;  %v10149_v1 = vld [vmem:[#allocation32 + $0x9f4] sm:$0xf0] }
 0x3e3   :  { %v12681_v13 = vsub.f32 %v12665_v15, %v3560_v56  ;;  %v10540_v15 = vor.u32 %v11461_v31, %v10539_v5  ;;  %6778 = vmatpush.bf16.msra.mxu0 %v9424_v37  ;;  %v11157_v5 = vld [vmem:[#allocation32 + $0x384] sm:$0xf]  ;;  %v9035_v57 = vld [vmem:[#allocation32 + $0x120] sm:$0xf] }
 0x3e4   :  { %v3696_v6 = vsub.f32 1.5, %v3695_v22  ;;  %v9340_v49 = vor.u32 %v11157_v5, %v9337_v36  ;;  %v10093_v5 = vld [vmem:[#allocation32 + $0x984] sm:$0xf0] }
 0x3e5   :  { %v3576_v9 = vmul.f32 %v12681_v13, %v12681_v13  ;;  %6756 = vmatmul.bf16.vlgmr.msrb.gmra.mxu2 %v12591_v23  ;;  %6739 = vmatpush.bf16.msrb.mxu1 %v10540_v15 }
 0x3e6   :  { %v3461_v19 = vpop.f32.mrf.mxu2  ;;  %v3697_v62 = vmul.f32 %v11553_v4, %v3696_v6  ;;  %6804 = vmatpush.bf16.msra.mxu2 %v9872_v34  ;;  %v9788_v6 = vor.u32 %v11269_v40, %v9785_v18  ;;  %v11353_v40 = vld [vmem:[#allocation32 + $0x9a4] sm:$0xf] }
 0x3e7   :  { %v3614_v63 = vrot.slane %v3576_v9, 4  ;;  %v3462_v17 = vadd.f32 %v3461_v19, %v1799_v29  ;;  %6779 = vmatpush.bf16.msra.mxu0 %v9396_v11  ;;  %v11098_v29 = vld [vmem:[#allocation32 + $0x1a8] sm:$0xf0] }
 0x3e8   :  { %v3476_v20 = vpop.f32.mrf.mxu3  ;;  %v3701_v50 = vsel %vm3700_vm1, %v11553_v4, %v3697_v62  ;;  %v11164_v4 = vld [vmem:[#allocation32 + $0x3bc] sm:$0xf]  ;;  %v9092_v45 = vor.u32 %v11098_v29, %v9091_v53  ;;  %v11262_v62 = vld [vmem:[#allocation32 + $0x6cc] sm:$0xf]  ;;  %v9673_v53 = vld [vmem:[#allocation32 + $0x63c] sm:$0xf0] }
 0x3e9   :  { %v3615_v0 = vadd.f32 %v3614_v63, %v3576_v9  ;;  %v3727_v25 = vmul.f32 %v3701_v50, %v12656_v32  ;;  %v3475_v3 = vadd.f32 %v12676_v59, %v3462_v17  ;;  %6740 = vmatpush.bf16.msrb.mxu1 %v10512_v39  ;;  %v9365_v32 = vld [vmem:[#allocation32 + $0x3d4] sm:$0xf0]  ;;  %v10455_v9 = vld [vmem:[#allocation32 + $0xc40] sm:$0xf]  ;;  %v11440_v20 = vld [vmem:[#allocation32 + $0xc58] sm:$0xf0]  ;;  %v10208_v17 = vor.u32 %v11374_v48, %v10205_v28 }
 0x3ea   :  { %v3500_v41 = vpop.f32.mrf.mxu1  ;;  %6805 = vmatpush.bf16.msra.mxu2 %v9844_v55  ;;  %v9368_v59 = vor.u32 %v11164_v4, %v9365_v32  ;;  %v10456_v15 = vor.u32 %v11440_v20, %v10455_v9  ;;  %v9063_v39 = vld [vmem:[#allocation32 + $0x158] sm:$0xf]  ;;  %v11241_v28 = vld [vmem:[#allocation32 + $0x624] sm:$0xf]  ;;  %v11346_v20 = vld [vmem:[#allocation32 + $0x96c] sm:$0xf] }
 0x3eb   :  { %v3616_v58 = vrot.slane %v3615_v0, 2  ;;  %v3752_v8 = vmul.f32 %v3736_v33, %v3727_v25  ;;  %v9064_v25 = vor.u32 %v11091_v52, %v9063_v39  ;;  %v9701_v4 = vld [vmem:[#allocation32 + $0x674] sm:$0xf0] }
 0x3ec   :  { %6780 = vmatpush.bf16.msra.mxu0 %v9368_v59  ;;  %v9704_v18 = vor.u32 %v11248_v30, %v9701_v4 }
 0x3ed   :  { %v3617_v21 = vadd.f32 %v3616_v58, %v3615_v0  ;;  %v3777_v19 = vadd.f32 %v3761_v7, %v3752_v8  ;;  %6741 = vmatpush.bf16.msrb.mxu1 %v10484_v12  ;;  %v9757_v0 = vld [vmem:[#allocation32 + $0x6e4] sm:$0xf0]  ;;  %v11360_v7 = vld [vmem:[#allocation32 + $0x9dc] sm:$0xf]  ;;  %v10121_v12 = vld [vmem:[#allocation32 + $0x9bc] sm:$0xf0] }
 0x3ee   :  { %v3463_v16 = vpop.f32.mrf.mxu2  ;;  %6806 = vmatpush.bf16.msra.mxu2 %v9816_v24  ;;  %v9760_v50 = vor.u32 %v11262_v62, %v9757_v0  ;;  %v11077_v24 = vld [vmem:[#allocation32 + $0x100] sm:$0xf0]  ;;  %v10065_v62 = vld [vmem:[#allocation32 + $0x94c] sm:$0xf0]  ;;  %v8951_v0 = vld [vmem:[#allocation32 + $0x78] sm:$0xf] }
 0x3ef   :  { %v3618_v43 = vrot.slane %v3617_v21, 1  ;;  %vm3785_vm2 = vcmp.gt.f32.partialorder %v3777_v19, 0.0  ;;  %v3793_v31 = vmul.f32 0.2, %v3777_v19  ;;  %v11255_v16 = vld [vmem:[#allocation32 + $0x694] sm:$0xf] }
 0x3f0   :  { %v3487_v35 = vpop.f32.mrf.mxu0  ;;  %6781 = vmatpush.bf16.msra.mxu0 %v9340_v49 }
 0x3f1   :  { %v3488_v56 = vadd.f32 %v3487_v35, %v3475_v3  ;;  %v3619_v22 = vadd.f32 %v3618_v43, %v3617_v21  ;;  %v3801_v63 = vsel %vm3785_vm2, %v3777_v19, %v3793_v31  ;;  %6742 = vmatpush.bf16.msrb.mxu1 %v10456_v15  ;;  %v9729_v3 = vld [vmem:[#allocation32 + $0x6ac] sm:$0xf0]  ;;  %v11084_v21 = vld [vmem:[#allocation32 + $0x138] sm:$0xf0]  ;;  %v9007_v43 = vld [vmem:[#allocation32 + $0xe8] sm:$0xf]  ;;  %v10124_v19 = vor.u32 %v11353_v40, %v10121_v12 }
 0x3f2   :  { %v3502_v10 = vpop.f32.mrf.mxu1  ;;  %v12701_v46 = vpack.c.bf16 %v3801_v63, %v3801_v63  ;;  %6807 = vmatpush.bf16.msra.mxu2 %v9788_v6  ;;  %v9732_v35 = vor.u32 %v11255_v16, %v9729_v3  ;;  %v9008_v9 = vor.u32 %v11077_v24, %v9007_v43  ;;  %v8979_v31 = vld [vmem:[#allocation32 + $0xb0] sm:$0xf]  ;;  %v9676_v15 = vor.u32 %v11241_v28, %v9673_v53  ;;  %v11234_v63 = vld [vmem:[#allocation32 + $0x5ec] sm:$0xf]  ;;  %v11227_v16 = vld [vmem:[#allocation32 + $0x5b4] sm:$0xf] }
 0x3f3   :  { %v12696_v27 = vadd.f32 %v3500_v41, %v3488_v56  ;;  %v3632_v38 = vmul.f32 %v3619_v22, %v12356_v42  ;;  %v11367_v41 = vld [vmem:[#allocation32 + $0xa14] sm:$0xf]  ;;  %v10152_v56 = vor.u32 %v11360_v7, %v10149_v1  ;;  %v9036_v10 = vor.u32 %v11084_v21, %v9035_v57  ;;  %v4324_v7 = vld [vmem:[#allocation34] sm:$0xff]  ;;  %v11332_v57 = vld [vmem:[#allocation32 + $0x8fc] sm:$0xf] }
 0x3f4   :  { %6717 = vmatmul.bf16.vlgmr.msra.gmra.mxu3 %v12701_v46  ;;  %v10180_v11 = vor.u32 %v11367_v41, %v10177_v51  ;;  %v10096_v41 = vor.u32 %v11346_v20, %v10093_v5  ;;  %v11339_v51 = vld [vmem:[#allocation32 + $0x934] sm:$0xf]  ;;  %v10037_v21 = vld [vmem:[#allocation32 + $0x914] sm:$0xf0]  ;;  %v11220_v40 = vld [vmem:[#allocation32 + $0x57c] sm:$0xf] }
 0x3f5   :  { %v3548_v34 = vrot.slane %v12696_v27, 4  ;;  %v12703_v14 = vadd.f32 0.8, %v3632_v38  ;;  %6813 = vmatpush.bf16.msra.mxu3 %v10208_v17  ;;  %6787 = vmatpush.bf16.msra.mxu1 %v9760_v50  ;;  %v3737_v50 = vperm.slane %v12687_v47, 6  ;;  %v10068_v3 = vor.u32 %v11339_v51, %v10065_v62  ;;  %v9589_v12 = vld [vmem:[#allocation32 + $0x594] sm:$0xf0] }
 0x3f6   :  { %6852 = vmatpush.bf16.msrb.mxu2 %v9092_v45  ;;  %v4326_v43 = vperm.slane %v4324_v7, 0  ;;  %v10040_v24 = vor.u32 %v11332_v57, %v10037_v21  ;;  %v11430_v28 = vld [vmem:[#allocation32 + $0xc0c] sm:$0xf]  ;;  %v10429_v53 = vld [vmem:[#allocation32 + $0xc24] sm:$0xf0] }
 0x3f7   :  { %v3549_v37 = vadd.f32 %v3548_v34, %v12696_v27  ;;  %11554 = vrsqrt.f32 %v12703_v14  ;;  %6808 = vmatmul.bf16.vlgmr.msra.gmra.mxu2 %v12670_v44  ;;  %v11070_v34 = vld [vmem:[#allocation32 + $0xc8] sm:$0xf0]  ;;  %vm3708_vm4 = vweird.f32 %v12703_v14  ;;  %v9315_v20 = vld [vmem:[#allocation32 + $0x350] sm:$0xf]  ;;  %v9561_v51 = vld [vmem:[#allocation32 + $0x55c] sm:$0xf0] }
 0x3f8   :  { %v3489_v33 = vpop.f32.mrf.mxu0  ;;  %v8980_v45 = vor.u32 %v11070_v34, %v8979_v31  ;;  %v11154_v5 = vld [vmem:[#allocation32 + $0x368] sm:$0xf0]  ;;  %v9987_v31 = vld [vmem:[#allocation32 + $0x890] sm:$0xf]  ;;  %v11140_v57 = vld [vmem:[#allocation32 + $0x2f8] sm:$0xf0] }
 0x3f9   :  { %v3550_v58 = vrot.slane %v3549_v37, 2  ;;  %6814 = vmatpush.bf16.msra.mxu3 %v10180_v11  ;;  %6788 = vmatpush.bf16.msra.mxu1 %v9732_v35  ;;  %v11063_v33 = vld [vmem:[#allocation32 + $0x90] sm:$0xf0]  ;;  %v8923_v35 = vld [vmem:[#allocation32 + $0x40] sm:$0xf] }
 0x3fa   :  { %6853 = vmatpush.bf16.msrb.mxu2 %v9064_v25  ;;  %v8952_v1 = vor.u32 %v11063_v33, %v8951_v0  ;;  %v9931_v21 = vld [vmem:[#allocation32 + $0x820] sm:$0xf] }
 0x3fb   :  { %v3551_v55 = vadd.f32 %v3550_v58, %v3549_v37  ;;  %v9645_v37 = vld [vmem:[#allocation32 + $0x604] sm:$0xf0]  ;;  %v3762_v58 = vperm.slane %v12692_v2, 6 }
 0x3fc   :  { %v9648_v39 = vor.u32 %v11234_v63, %v9645_v37  ;;  %v10432_v37 = vor.u32 %v11430_v28, %v10429_v53 }
 0x3fd   :  { %v3552_v61 = vrot.slane %v3551_v55, 1  ;;  %v11555_v32 = vpop.eup %11554  ;;  %6815 = vmatpush.bf16.msra.mxu3 %v10152_v56  ;;  %6789 = vmatpush.bf16.msra.mxu1 %v9704_v18 }
 0x3fe   :  { %v3703_v48 = vmul.f32 %v11555_v32, %v12703_v14  ;;  %6854 = vmatpush.bf16.msrb.mxu2 %v9036_v10  ;;  %vm3709_vm3 = vweird.f32 %v11555_v32  ;;  %v11325_v10 = vld [vmem:[#allocation32 + $0x8c4] sm:$0xf] }
 0x3ff   :  { %v3553_v8 = vadd.f32 %v3552_v61, %v3551_v55  ;;  %vm3710_vm5 = vmor %vm3708_vm4, %vm3709_vm3  ;;  %v9617_v55 = vld [vmem:[#allocation32 + $0x5cc] sm:$0xf0]  ;;  %v11056_v61 = vld [vmem:[#allocation32 + $0x58] sm:$0xf0] }
 0x400   :  { %v3704_v29 = vmul.f32 %v11555_v32, %v3703_v48  ;;  %v9620_v30 = vor.u32 %v11227_v16, %v9617_v55  ;;  %v8924_v18 = vor.u32 %v11056_v61, %v8923_v35  ;;  %v10009_v48 = vld [vmem:[#allocation32 + $0x8dc] sm:$0xf0]  ;;  %v11315_v16 = vld [vmem:[#allocation32 + $0x870] sm:$0xf0]  ;;  %v11308_v35 = vld [vmem:[#allocation32 + $0x838] sm:$0xf0] }
 0x401   :  { %v3561_v59 = vmul.f32 %v3553_v8, %v12356_v42  ;;  %6816 = vmatpush.bf16.msra.mxu3 %v10124_v19  ;;  %6790 = vmatpush.bf16.msra.mxu1 %v9676_v15  ;;  %v11049_v19 = vld [vmem:[#allocation32 + $0x20] sm:$0xf0]  ;;  %v11322_v15 = vld [vmem:[#allocation32 + $0x8a8] sm:$0xf0] }
 0x402   :  { %v3705_v36 = vmul.f32 0.5, %v3704_v29  ;;  %6855 = vmatpush.bf16.msrb.mxu2 %v9008_v9  ;;  %v9592_v29 = vor.u32 %v11220_v40, %v9589_v12  ;;  %v11133_v40 = vld [vmem:[#allocation32 + $0x2c0] sm:$0xf0] }
 0x403   :  { %v12711_v22 = vsub.f32 %v12696_v27, %v3561_v59  ;;  %v8895_v59 = vld [vmem:[#allocation32 + $0x8] sm:$0xf] }
 0x404   :  { %v3706_v27 = vsub.f32 1.5, %v3705_v36  ;;  %6769 = vmatmul.bf16.vlgmr.msrb.gmra.mxu3 %v12617_v26 }
 0x405   :  { %v3577_v38 = vmul.f32 %v12711_v22, %v12711_v22  ;;  %6817 = vmatpush.bf16.msra.mxu3 %v10096_v41  ;;  %6791 = vmatpush.bf16.msra.mxu1 %v9648_v39  ;;  %v8896_v41 = vor.u32 %v11049_v19, %v8895_v59  ;;  %v9988_v39 = vor.u32 %v11322_v15, %v9987_v31  ;;  %v11402_v19 = vld [vmem:[#allocation32 + $0xb2c] sm:$0xf] }
 0x406   :  { %v12715_v6 = vpop.f32.mrf.mxu2  ;;  %v3707_v52 = vmul.f32 %v11555_v32, %v3706_v27  ;;  %6856 = vmatpush.bf16.msrb.mxu2 %v8980_v45  ;;  %v9316_v27 = vor.u32 %v11154_v5, %v9315_v20  ;;  %v11213_v45 = vld [vmem:[#allocation32 + $0x544] sm:$0xf]  ;;  %v9203_v20 = vld [vmem:[#allocation32 + $0x270] sm:$0xf]  ;;  %v11126_v5 = vld [vmem:[#allocation32 + $0x288] sm:$0xf0] }
 0x407   :  { %v3620_v17 = vrot.slane %v3577_v38, 4  ;;  %v6654_v33 = vadd.f32 %v12715_v6, %v4326_v43  ;;  %v10345_v43 = vld [vmem:[#allocation32 + $0xb7c] sm:$0xf0]  ;;  %v11294_v15 = vld [vmem:[#allocation32 + $0x7c8] sm:$0xf0] }
 0x408   :  { %v3711_v11 = vsel %vm3710_vm5, %v11555_v32, %v3707_v52  ;;  %v9287_v52 = vld [vmem:[#allocation32 + $0x318] sm:$0xf] }
 0x409   :  { %v3621_v49 = vadd.f32 %v3620_v17, %v3577_v38  ;;  %v3728_v14 = vmul.f32 %v3711_v11, %v12681_v13  ;;  %6818 = vmatpush.bf16.msra.mxu3 %v10068_v3  ;;  %6792 = vmatpush.bf16.msra.mxu1 %v9620_v30  ;;  %v10012_v38 = vor.u32 %v11325_v10, %v10009_v48  ;;  %v11423_v17 = vld [vmem:[#allocation32 + $0xbd4] sm:$0xf]  ;;  %v11416_v3 = vld [vmem:[#allocation32 + $0xb9c] sm:$0xf]  ;;  %v9231_v10 = vld [vmem:[#allocation32 + $0x2a8] sm:$0xf] }
 0x40a   :  { %6857 = vmatpush.bf16.msrb.mxu2 %v8952_v1  ;;  %v9564_v11 = vor.u32 %v11213_v45, %v9561_v51  ;;  %v9259_v1 = vld [vmem:[#allocation32 + $0x2e0] sm:$0xf]  ;;  %v10289_v51 = vld [vmem:[#allocation32 + $0xb0c] sm:$0xf0] }
 0x40b   :  { %v3622_v25 = vrot.slane %v3621_v49, 2  ;;  %v3753_v8 = vmul.f32 %v3737_v50, %v3728_v14  ;;  %v10401_v50 = vld [vmem:[#allocation32 + $0xbec] sm:$0xf0]  ;;  %v10373_v14 = vld [vmem:[#allocation32 + $0xbb4] sm:$0xf0]  ;;  %v9260_v61 = vor.u32 %v11140_v57, %v9259_v1 }
 0x40c   :  { %v10404_v6 = vor.u32 %v11423_v17, %v10401_v50  ;;  %v11119_v17 = vld [vmem:[#allocation32 + $0x250] sm:$0xf0]  ;;  %v11381_v57 = vld [vmem:[#allocation32 + $0xa84] sm:$0xf] }
 0x40d   :  { %v3623_v4 = vadd.f32 %v3622_v25, %v3621_v49  ;;  %v3778_v13 = vadd.f32 %v3762_v58, %v3753_v8  ;;  %6819 = vmatpush.bf16.msra.mxu3 %v10040_v24  ;;  %6793 = vmatpush.bf16.msra.mxu1 %v9592_v29  ;;  %v9959_v58 = vld [vmem:[#allocation32 + $0x858] sm:$0xf]  ;;  %v9932_v8 = vor.u32 %v11308_v35, %v9931_v21  ;;  %v9903_v24 = vld [vmem:[#allocation32 + $0x7e8] sm:$0xf]  ;;  %v11105_v35 = vld [vmem:[#allocation32 + $0x1e0] sm:$0xf0] }
 0x40e   :  { %v6655_v56 = vpop.f32.mrf.mxu2  ;;  %6858 = vmatpush.bf16.msrb.mxu2 %v8924_v18  ;;  %v9960_v7 = vor.u32 %v11315_v16, %v9959_v58  ;;  %v11301_v18 = vld [vmem:[#allocation32 + $0x800] sm:$0xf0]  ;;  %v9119_v21 = vld [vmem:[#allocation32 + $0x1c8] sm:$0xf] }
 0x40f   :  { %v3624_v32 = vrot.slane %v3623_v4, 1  ;;  %vm3786_vm6 = vcmp.gt.f32.partialorder %v3778_v13, 0.0  ;;  %v3794_v34 = vmul.f32 0.2, %v3778_v13  ;;  %v11409_v56 = vld [vmem:[#allocation32 + $0xb64] sm:$0xf]  ;;  %v9904_v29 = vor.u32 %v11301_v18, %v9903_v24 }
 0x410   :  { %v10348_v53 = vor.u32 %v11409_v56, %v10345_v43  ;;  %v11486_v56 = vld [vmem:[#allocation32 + $0xdcc] sm:$0xf]  ;;  %v10211_v43 = vld [vmem:[#allocation32 + $0xa50] sm:$0xf]  ;;  %v9120_v24 = vor.u32 %v11105_v35, %v9119_v21  ;;  %v9009_v21 = vld [vmem:[#allocation32 + $0x104] sm:$0xf0] }
 0x411   :  { %v3625_v9 = vadd.f32 %v3624_v32, %v3623_v4  ;;  %v3802_v63 = vsel %vm3786_vm6, %v3778_v13, %v3794_v34  ;;  %6820 = vmatpush.bf16.msra.mxu3 %v10012_v38  ;;  %6794 = vmatpush.bf16.msra.mxu1 %v9564_v11  ;;  %v10376_v4 = vor.u32 %v11416_v3, %v10373_v14  ;;  %v9875_v34 = vld [vmem:[#allocation32 + $0x7b0] sm:$0xf]  ;;  %v11388_v11 = vld [vmem:[#allocation32 + $0xabc] sm:$0xf]  ;;  %v9819_v3 = vld [vmem:[#allocation32 + $0x740] sm:$0xf] }
 0x412   :  { %v12723_v62 = vpack.c.bf16 %v3802_v63, %v3802_v63  ;;  %6859 = vmatpush.bf16.msrb.mxu2 %v8896_v41  ;;  %v9232_v13 = vor.u32 %v11133_v40, %v9231_v10  ;;  %v9204_v38 = vor.u32 %v11126_v5, %v9203_v20  ;;  %v9876_v63 = vor.u32 %v11294_v15, %v9875_v34  ;;  %v10233_v14 = vld [vmem:[#allocation32 + $0xa9c] sm:$0xf0]  ;;  %v10653_v10 = vld [vmem:[#allocation32 + $0xde4] sm:$0xf0]  ;;  %v9539_v40 = vld [vmem:[#allocation32 + $0x510] sm:$0xf] }
 0x413   :  { %v3633_v36 = vmul.f32 %v3625_v9, %v12356_v42  ;;  %v11147_v42 = vld [vmem:[#allocation32 + $0x330] sm:$0xf0]  ;;  %v10317_v9 = vld [vmem:[#allocation32 + $0xb44] sm:$0xf0]  ;;  %v11378_v18 = vld [vmem:[#allocation32 + $0xa68] sm:$0xf0] }
 0x414   :  { %v6666_v49 = vpop.f32.mrf.mxu3  ;;  %6730 = vmatmul.bf16.vlgmr.msrb.gmra.mxu0 %v12723_v62  ;;  %v9288_v25 = vor.u32 %v11147_v42, %v9287_v52  ;;  %6821 = vmatmul.bf16.vlgmr.msra.gmra.mxu3 %v12701_v46  ;;  %v10320_v41 = vor.u32 %v11402_v19, %v10317_v9  ;;  %v3738_v52 = vperm.slane %v12687_v47, 7  ;;  %v11280_v47 = vld [vmem:[#allocation32 + $0x758] sm:$0xf0]  ;;  %v10236_v19 = vor.u32 %v11381_v57, %v10233_v14  ;;  %v11479_v5 = vld [vmem:[#allocation32 + $0xd94] sm:$0xf] }
 0x415   :  { %v12725_v0 = vadd.f32 0.8, %v3633_v36  ;;  %v6667_v55 = vadd.f32 %v6666_v49, %v6654_v33  ;;  %6865 = vmatpush.bf16.msrb.mxu3 %v9316_v27  ;;  %6826 = vmatpush.bf16.msrb.mxu0 %v10432_v37  ;;  %v11395_v37 = vld [vmem:[#allocation32 + $0xaf4] sm:$0xf]  ;;  %v9175_v27 = vld [vmem:[#allocation32 + $0x238] sm:$0xf]  ;;  %v10656_v9 = vor.u32 %v11486_v56, %v10653_v10  ;;  %v10212_v34 = vor.u32 %v11378_v18, %v10211_v43 }
 0x416   :  { %6904 = vmatpush.bf16.msra.mxu2 %v9988_v39  ;;  %v9847_v33 = vld [vmem:[#allocation32 + $0x778] sm:$0xf]  ;;  %v11287_v39 = vld [vmem:[#allocation32 + $0x790] sm:$0xf0]  ;;  %v3763_v49 = vperm.slane %v12692_v2, 7  ;;  %v9176_v58 = vor.u32 %v11119_v17, %v9175_v27 }
 0x417   :  { %11556 = vrsqrt.f32 %v12725_v0  ;;  %6860 = vmatmul.bf16.vlgmr.msrb.gmra.mxu2 %v12591_v23  ;;  %vm3718_vm8 = vweird.f32 %v12725_v0  ;;  %v9065_v27 = vld [vmem:[#allocation32 + $0x174] sm:$0xf0]  ;;  %v11357_v57 = vld [vmem:[#allocation32 + $0x9c0] sm:$0xf0]  ;;  %v11074_v14 = vld [vmem:[#allocation32 + $0xec] sm:$0xf] }
 0x418   :  { %v9012_v10 = vor.u32 %v11074_v14, %v9009_v21  ;;  %v11350_v43 = vld [vmem:[#allocation32 + $0x988] sm:$0xf0]  ;;  %v8981_v18 = vld [vmem:[#allocation32 + $0xcc] sm:$0xf0]  ;;  %v11151_v21 = vld [vmem:[#allocation32 + $0x354] sm:$0xf] }
 0x419   :  { %6866 = vmatpush.bf16.msrb.mxu3 %v9288_v25  ;;  %6827 = vmatpush.bf16.msrb.mxu0 %v10404_v6  ;;  %v9147_v25 = vld [vmem:[#allocation32 + $0x200] sm:$0xf]  ;;  %v11112_v6 = vld [vmem:[#allocation32 + $0x218] sm:$0xf0]  ;;  %v11434_v14 = vld [vmem:[#allocation32 + $0xc28] sm:$0xf0] }
 0x41a   :  { %6905 = vmatpush.bf16.msra.mxu2 %v9960_v7  ;;  %v10261_v7 = vld [vmem:[#allocation32 + $0xad4] sm:$0xf0]  ;;  %v9148_v2 = vor.u32 %v11112_v6, %v9147_v25  ;;  %v11465_v25 = vld [vmem:[#allocation32 + $0xd24] sm:$0xf]  ;;  %v10569_v6 = vld [vmem:[#allocation32 + $0xd3c] sm:$0xf0] }
 0x41c   :  { %v6668_v32 = vpop.f32.mrf.mxu3  ;;  %v6679_v59 = vpop.f32.mrf.mxu0 }
 0x41d   :  { %v11557_v30 = vpop.eup %11556  ;;  %6867 = vmatpush.bf16.msrb.mxu3 %v9260_v61  ;;  %6828 = vmatpush.bf16.msrb.mxu0 %v10376_v4  ;;  %v12733_v28 = vadd.f32 %v6679_v59, %v6667_v55  ;;  %v9848_v55 = vor.u32 %v11287_v39, %v9847_v33  ;;  %v9791_v4 = vld [vmem:[#allocation32 + $0x708] sm:$0xf]  ;;  %v9093_v59 = vld [vmem:[#allocation32 + $0x1ac] sm:$0xf0]  ;;  %v10597_v33 = vld [vmem:[#allocation32 + $0xd74] sm:$0xf0] }
 0x41e   :  { %v3713_v12 = vmul.f32 %v11557_v30, %v12725_v0  ;;  %6906 = vmatpush.bf16.msra.mxu2 %v9932_v8  ;;  %vm3719_vm7 = vweird.f32 %v11557_v30  ;;  %v10292_v0 = vor.u32 %v11395_v37, %v10289_v51  ;;  %v11273_v8 = vld [vmem:[#allocation32 + $0x720] sm:$0xf0]  ;;  %v11088_v37 = vld [vmem:[#allocation32 + $0x15c] sm:$0xf] }
 0x41f   :  { %vm3720_vm9 = vmor %vm3718_vm8, %vm3719_vm7  ;;  %v11472_v51 = vld [vmem:[#allocation32 + $0xd5c] sm:$0xf] }
 0x420   :  { %v3714_v48 = vmul.f32 %v11557_v30, %v3713_v12  ;;  %v11210_v12 = vld [vmem:[#allocation32 + $0x528] sm:$0xf0] }
 0x421   :  { %6868 = vmatpush.bf16.msrb.mxu3 %v9232_v13  ;;  %6829 = vmatpush.bf16.msrb.mxu0 %v10348_v53  ;;  %v9792_v53 = vor.u32 %v11273_v8, %v9791_v4  ;;  %v9540_v20 = vor.u32 %v11210_v12, %v9539_v40  ;;  %v11458_v4 = vld [vmem:[#allocation32 + $0xcec] sm:$0xf]  ;;  %v10541_v8 = vld [vmem:[#allocation32 + $0xd04] sm:$0xf0]  ;;  %v9427_v40 = vld [vmem:[#allocation32 + $0x430] sm:$0xf] }
 0x422   :  { %v3715_v31 = vmul.f32 0.5, %v3714_v48  ;;  %6907 = vmatpush.bf16.msra.mxu2 %v9904_v29  ;;  %v11095_v48 = vld [vmem:[#allocation32 + $0x194] sm:$0xf]  ;;  %v11182_v12 = vld [vmem:[#allocation32 + $0x448] sm:$0xf0] }
 0x423   :  { %v9096_v15 = vor.u32 %v11095_v48, %v9093_v59  ;;  %v10544_v48 = vor.u32 %v11458_v4, %v10541_v8  ;;  %v9428_v59 = vor.u32 %v11182_v12, %v9427_v40  ;;  %v11319_v4 = vld [vmem:[#allocation32 + $0x894] sm:$0xf]  ;;  %v9989_v8 = vld [vmem:[#allocation32 + $0x8ac] sm:$0xf0] }
 0x424   :  { %v3716_v36 = vsub.f32 1.5, %v3715_v31  ;;  %6782 = vmatmul.bf16.vlgmr.msra.gmra.mxu0 %v12628_v54  ;;  %v6681_v50 = vpop.f32.mrf.mxu0  ;;  %v10625_v31 = vld [vmem:[#allocation32 + $0xdac] sm:$0xf0] }
 0x425   :  { %6869 = vmatpush.bf16.msrb.mxu3 %v9204_v38  ;;  %6830 = vmatpush.bf16.msrb.mxu0 %v10320_v41  ;;  %v11203_v38 = vld [vmem:[#allocation32 + $0x4f0] sm:$0xf0]  ;;  %v10183_v41 = vld [vmem:[#allocation32 + $0xa18] sm:$0xf]  ;;  %v10628_v17 = vor.u32 %v11479_v5, %v10625_v31  ;;  %v10155_v50 = vld [vmem:[#allocation32 + $0x9e0] sm:$0xf] }
 0x426   :  { %v3717_v45 = vmul.f32 %v11557_v30, %v3716_v36  ;;  %6908 = vmatpush.bf16.msra.mxu2 %v9876_v63  ;;  %v9511_v36 = vld [vmem:[#allocation32 + $0x4d8] sm:$0xf]  ;;  %v11371_v63 = vld [vmem:[#allocation32 + $0xa30] sm:$0xf0] }
 0x427   :  { %v10184_v39 = vor.u32 %v11371_v63, %v10183_v41  ;;  %v10071_v5 = vld [vmem:[#allocation32 + $0x938] sm:$0xf]  ;;  %v11343_v31 = vld [vmem:[#allocation32 + $0x950] sm:$0xf0]  ;;  %v11444_v63 = vld [vmem:[#allocation32 + $0xc7c] sm:$0xf] }
 0x428   :  { %v3721_v42 = vsel %vm3720_vm9, %v11557_v30, %v3717_v45  ;;  %v9820_v30 = vor.u32 %v11280_v47, %v9819_v3  ;;  %v9512_v45 = vor.u32 %v11203_v38, %v9511_v36  ;;  %v9455_v47 = vld [vmem:[#allocation32 + $0x468] sm:$0xf] }
 0x429   :  { %v3729_v16 = vmul.f32 %v3721_v42, %v12711_v22  ;;  %6870 = vmatpush.bf16.msrb.mxu3 %v9176_v58  ;;  %6831 = vmatpush.bf16.msrb.mxu0 %v10292_v0  ;;  %v10264_v22 = vor.u32 %v11388_v11, %v10261_v7  ;;  %v9483_v42 = vld [vmem:[#allocation32 + $0x4a0] sm:$0xf]  ;;  %v11364_v58 = vld [vmem:[#allocation32 + $0x9f8] sm:$0xf0] }
 0x42a   :  { %6909 = vmatpush.bf16.msra.mxu2 %v9848_v55  ;;  %v9037_v0 = vld [vmem:[#allocation32 + $0x13c] sm:$0xf0]  ;;  %v10600_v55 = vor.u32 %v11472_v51, %v10597_v33  ;;  %v10156_v7 = vor.u32 %v11364_v58, %v10155_v50  ;;  %v11168_v51 = vld [vmem:[#allocation32 + $0x3d8] sm:$0xf0] }
 0x42b   :  { %v3754_v1 = vmul.f32 %v3738_v52, %v3729_v16  ;;  %v9068_v52 = vor.u32 %v11088_v37, %v9065_v27  ;;  %v11081_v16 = vld [vmem:[#allocation32 + $0x124] sm:$0xf]  ;;  %v10485_v37 = vld [vmem:[#allocation32 + $0xc94] sm:$0xf0]  ;;  %v10072_v27 = vor.u32 %v11343_v31, %v10071_v5  ;;  %v10043_v33 = vld [vmem:[#allocation32 + $0x900] sm:$0xf] }
 0x42c   :  { %v9040_v3 = vor.u32 %v11081_v16, %v9037_v0  ;;  %v10488_v50 = vor.u32 %v11444_v63, %v10485_v37  ;;  %v10457_v16 = vld [vmem:[#allocation32 + $0xc5c] sm:$0xf0]  ;;  %v9343_v0 = vld [vmem:[#allocation32 + $0x388] sm:$0xf]  ;;  %v11252_v31 = vld [vmem:[#allocation32 + $0x678] sm:$0xf0] }
 0x42d   :  { %v3779_v61 = vadd.f32 %v3763_v49, %v3754_v1  ;;  %6871 = vmatpush.bf16.msrb.mxu3 %v9148_v2  ;;  %6832 = vmatpush.bf16.msrb.mxu0 %v10264_v22  ;;  %v11196_v49 = vld [vmem:[#allocation32 + $0x4b8] sm:$0xf0]  ;;  %v11189_v1 = vld [vmem:[#allocation32 + $0x480] sm:$0xf0]  ;;  %v10127_v2 = vld [vmem:[#allocation32 + $0x9a8] sm:$0xf]  ;;  %v10572_v22 = vor.u32 %v11465_v25, %v10569_v6 }
 0x42e   :  { %6910 = vmatpush.bf16.msra.mxu2 %v9820_v30  ;;  %v9484_v11 = vor.u32 %v11196_v49, %v9483_v42  ;;  %v9456_v30 = vor.u32 %v11189_v1, %v9455_v47  ;;  %v10128_v56 = vor.u32 %v11357_v57, %v10127_v2  ;;  %v8925_v42 = vld [vmem:[#allocation32 + $0x5c] sm:$0xf0]  ;;  %v11437_v49 = vld [vmem:[#allocation32 + $0xc44] sm:$0xf]  ;;  %v10015_v6 = vld [vmem:[#allocation32 + $0x8c8] sm:$0xf] }
 0x42f   :  { %vm3787_vm10 = vcmp.gt.f32.partialorder %v3779_v61, 0.0  ;;  %v3795_v32 = vmul.f32 0.2, %v3779_v61  ;;  %v8897_v47 = vld [vmem:[#allocation32 + $0x24] sm:$0xf0] }
 0x430   :  { %v9763_v1 = vld [vmem:[#allocation32 + $0x6d0] sm:$0xf]  ;;  %v11266_v2 = vld [vmem:[#allocation32 + $0x6e8] sm:$0xf0]  ;;  %v9707_v5 = vld [vmem:[#allocation32 + $0x660] sm:$0xf] }
 0x431   :  { %v3803_v13 = vsel %vm3787_vm10, %v3779_v61, %v3795_v32  ;;  %6872 = vmatpush.bf16.msrb.mxu3 %v9120_v24  ;;  %6833 = vmatpush.bf16.msrb.mxu0 %v10236_v19  ;;  %v10099_v32 = vld [vmem:[#allocation32 + $0x970] sm:$0xf]  ;;  %v11067_v24 = vld [vmem:[#allocation32 + $0xb4] sm:$0xf]  ;;  %v9764_v40 = vor.u32 %v11266_v2, %v9763_v1  ;;  %v9261_v63 = vld [vmem:[#allocation32 + $0x2fc] sm:$0xf0] }
 0x432   :  { %v12741_v29 = vpack.c.bf16 %v3803_v13, %v3803_v13  ;;  %6911 = vmatpush.bf16.msra.mxu2 %v9792_v53  ;;  %v10513_v13 = vld [vmem:[#allocation32 + $0xccc] sm:$0xf0]  ;;  %v10100_v19 = vor.u32 %v11350_v43, %v10099_v32  ;;  %v8984_v53 = vor.u32 %v11067_v24, %v8981_v18  ;;  %v9735_v32 = vld [vmem:[#allocation32 + $0x698] sm:$0xf]  ;;  %v11259_v43 = vld [vmem:[#allocation32 + $0x6b0] sm:$0xf0]  ;;  %v9992_v18 = vor.u32 %v11319_v4, %v9989_v8 }
 0x433   :  { %v10435_v57 = vld [vmem:[#allocation32 + $0xc10] sm:$0xf]  ;;  %v11305_v37 = vld [vmem:[#allocation32 + $0x824] sm:$0xf]  ;;  %v11406_v1 = vld [vmem:[#allocation32 + $0xb48] sm:$0xf0] }
 0x434   :  { %6743 = vmatmul.bf16.vlgmr.msrb.gmra.mxu1 %v12741_v29  ;;  %6873 = vmatmul.bf16.vlgmr.msrb.gmra.mxu3 %v12617_v26  ;;  %v10436_v12 = vor.u32 %v11434_v14, %v10435_v57  ;;  %v11123_v2 = vld [vmem:[#allocation32 + $0x274] sm:$0xf]  ;;  %v9205_v57 = vld [vmem:[#allocation32 + $0x28c] sm:$0xf0]  ;;  %v9623_v4 = vld [vmem:[#allocation32 + $0x5b8] sm:$0xf] }
 0x435   :  { %6839 = vmatpush.bf16.msrb.mxu1 %v10656_v9  ;;  %6878 = vmatpush.bf16.msra.mxu0 %v9540_v20  ;;  %v9399_v9 = vld [vmem:[#allocation32 + $0x3f8] sm:$0xf]  ;;  %v11175_v20 = vld [vmem:[#allocation32 + $0x410] sm:$0xf0] }
 0x436   :  { %6917 = vmatpush.bf16.msra.mxu3 %v10212_v34  ;;  %6956 = vmatpush.bf16.msrb.mxu2 %v9096_v15  ;;  %v6692_v35 = vpop.f32.mrf.mxu1  ;;  %v11060_v34 = vld [vmem:[#allocation32 + $0x7c] sm:$0xf]  ;;  %v8953_v15 = vld [vmem:[#allocation32 + $0x94] sm:$0xf0]  ;;  %v9400_v41 = vor.u32 %v11175_v20, %v9399_v9  ;;  %v9736_v9 = vor.u32 %v11259_v43, %v9735_v32  ;;  %v11291_v14 = vld [vmem:[#allocation32 + $0x7b4] sm:$0xf] }
 0x437   :  { %6912 = vmatmul.bf16.vlgmr.msra.gmra.mxu2 %v12670_v44  ;;  %6834 = vmatmul.bf16.vlgmr.msrb.gmra.mxu0 %v12723_v62  ;;  %v12748_v61 = vadd.f32 %v6692_v35, %v12733_v28  ;;  %v11451_v28 = vld [vmem:[#allocation32 + $0xcb4] sm:$0xf]  ;;  %v10460_v35 = vor.u32 %v11437_v49, %v10457_v16  ;;  %v11413_v49 = vld [vmem:[#allocation32 + $0xb80] sm:$0xf0]  ;;  %v11298_v16 = vld [vmem:[#allocation32 + $0x7ec] sm:$0xf] }
 0x438   :  { %v10516_v38 = vor.u32 %v11451_v28, %v10513_v13  ;;  %v11144_v28 = vld [vmem:[#allocation32 + $0x31c] sm:$0xf]  ;;  %v9289_v13 = vld [vmem:[#allocation32 + $0x334] sm:$0xf0]  ;;  %v11231_v8 = vld [vmem:[#allocation32 + $0x5d0] sm:$0xf0] }
 0x439   :  { %6840 = vmatpush.bf16.msrb.mxu1 %v10628_v17  ;;  %6879 = vmatpush.bf16.msra.mxu0 %v9512_v45  ;;  %v8956_v17 = vor.u32 %v11060_v34, %v8953_v15  ;;  %v9371_v45 = vld [vmem:[#allocation32 + $0x3c0] sm:$0xf]  ;;  %v9292_v34 = vor.u32 %v11144_v28, %v9289_v13  ;;  %v11399_v32 = vld [vmem:[#allocation32 + $0xb10] sm:$0xf0]  ;;  %v11116_v43 = vld [vmem:[#allocation32 + $0x23c] sm:$0xf] }
 0x43a   :  { %6918 = vmatpush.bf16.msra.mxu3 %v10184_v39  ;;  %6957 = vmatpush.bf16.msrb.mxu2 %v9068_v52  ;;  %v11336_v39 = vld [vmem:[#allocation32 + $0x918] sm:$0xf0]  ;;  %v11053_v52 = vld [vmem:[#allocation32 + $0x44] sm:$0xf]  ;;  %v9372_v58 = vor.u32 %v11168_v51, %v9371_v45  ;;  %v9679_v51 = vld [vmem:[#allocation32 + $0x628] sm:$0xf] }
 0x43b   :  { %v8928_v25 = vor.u32 %v11053_v52, %v8925_v42  ;;  %v10351_v42 = vld [vmem:[#allocation32 + $0xb68] sm:$0xf]  ;;  %v9595_v13 = vld [vmem:[#allocation32 + $0x580] sm:$0xf] }
 0x43d   :  { %6841 = vmatpush.bf16.msrb.mxu1 %v10600_v55  ;;  %6880 = vmatpush.bf16.msra.mxu0 %v9484_v11  ;;  %v11161_v55 = vld [vmem:[#allocation32 + $0x3a0] sm:$0xf0]  ;;  %v10044_v11 = vor.u32 %v11336_v39, %v10043_v33 }
 0x43e   :  { %6919 = vmatpush.bf16.msra.mxu3 %v10156_v7  ;;  %6958 = vmatpush.bf16.msrb.mxu2 %v9040_v3  ;;  %v6694_v36 = vpop.f32.mrf.mxu1  ;;  %v11329_v7 = vld [vmem:[#allocation32 + $0x8e0] sm:$0xf0]  ;;  %v11046_v3 = vld [vmem:[#allocation32 + $0xc] sm:$0xf] }
 0x43f   :  { %v10379_v36 = vld [vmem:[#allocation32 + $0xba0] sm:$0xf]  ;;  %v11245_v33 = vld [vmem:[#allocation32 + $0x640] sm:$0xf0] }
 0x441   :  { %6842 = vmatpush.bf16.msrb.mxu1 %v10572_v22  ;;  %6881 = vmatpush.bf16.msra.mxu0 %v9456_v30  ;;  %v9344_v22 = vor.u32 %v11161_v55, %v9343_v0  ;;  %v9317_v30 = vld [vmem:[#allocation32 + $0x36c] sm:$0xf0]  ;;  %v9905_v0 = vld [vmem:[#allocation32 + $0x804] sm:$0xf0]  ;;  %v9680_v55 = vor.u32 %v11245_v33, %v9679_v51  ;;  %v11102_v33 = vld [vmem:[#allocation32 + $0x1cc] sm:$0xf] }
 0x442   :  { %6920 = vmatpush.bf16.msra.mxu3 %v10128_v56  ;;  %6959 = vmatpush.bf16.msrb.mxu2 %v9012_v10  ;;  %v10016_v56 = vor.u32 %v11329_v7, %v10015_v6  ;;  %v8900_v10 = vor.u32 %v11046_v3, %v8897_v47  ;;  %v9320_v24 = vor.u32 %v11151_v21, %v9317_v30  ;;  %v11238_v6 = vld [vmem:[#allocation32 + $0x608] sm:$0xf0]  ;;  %v10323_v47 = vld [vmem:[#allocation32 + $0xb30] sm:$0xf] }
 0x443   :  { %v9908_v3 = vor.u32 %v11298_v16, %v9905_v0  ;;  %v9877_v21 = vld [vmem:[#allocation32 + $0x7cc] sm:$0xf0]  ;;  %v10324_v30 = vor.u32 %v11406_v1, %v10323_v47  ;;  %v11375_v0 = vld [vmem:[#allocation32 + $0xa54] sm:$0xf] }
 0x444   :  { %6795 = vmatmul.bf16.vlgmr.msra.gmra.mxu1 %v12648_v60  ;;  %v9541_v16 = vld [vmem:[#allocation32 + $0x52c] sm:$0xf0] }
 0x445   :  { %6843 = vmatpush.bf16.msrb.mxu1 %v10544_v48  ;;  %6882 = vmatpush.bf16.msra.mxu0 %v9428_v59  ;;  %v10407_v48 = vld [vmem:[#allocation32 + $0xbd8] sm:$0xf]  ;;  %v11427_v59 = vld [vmem:[#allocation32 + $0xbf0] sm:$0xf0] }
 0x446   :  { %6921 = vmatpush.bf16.msra.mxu3 %v10100_v19  ;;  %6960 = vmatpush.bf16.msrb.mxu2 %v8984_v53  ;;  %v11312_v19 = vld [vmem:[#allocation32 + $0x85c] sm:$0xf]  ;;  %v9961_v53 = vld [vmem:[#allocation32 + $0x874] sm:$0xf0]  ;;  %v10408_v20 = vor.u32 %v11427_v59, %v10407_v48  ;;  %v9624_v59 = vor.u32 %v11231_v8, %v9623_v4 }
 0x447   :  { %v9964_v15 = vor.u32 %v11312_v19, %v9961_v53  ;;  %v9849_v48 = vld [vmem:[#allocation32 + $0x794] sm:$0xf0]  ;;  %v11224_v19 = vld [vmem:[#allocation32 + $0x598] sm:$0xf0] }
 0x448   :  { %v11368_v4 = vld [vmem:[#allocation32 + $0xa1c] sm:$0xf] }
 0x449   :  { %6844 = vmatpush.bf16.msrb.mxu1 %v10516_v38  ;;  %6883 = vmatpush.bf16.msra.mxu0 %v9400_v41  ;;  %v11420_v38 = vld [vmem:[#allocation32 + $0xbb8] sm:$0xf0]  ;;  %v11137_v41 = vld [vmem:[#allocation32 + $0x2e4] sm:$0xf] }
 0x44a   :  { %6922 = vmatpush.bf16.msra.mxu3 %v10072_v27  ;;  %6961 = vmatpush.bf16.msrb.mxu2 %v8956_v17  ;;  %v9933_v27 = vld [vmem:[#allocation32 + $0x83c] sm:$0xf0]  ;;  %v9708_v17 = vor.u32 %v11252_v31, %v9707_v5  ;;  %v10380_v45 = vor.u32 %v11420_v38, %v10379_v36  ;;  %v9264_v39 = vor.u32 %v11137_v41, %v9261_v63  ;;  %v11109_v5 = vld [vmem:[#allocation32 + $0x204] sm:$0xf]  ;;  %v9567_v36 = vld [vmem:[#allocation32 + $0x548] sm:$0xf] }
 0x44b   :  { %v9936_v52 = vor.u32 %v11305_v37, %v9933_v27  ;;  %v9149_v31 = vld [vmem:[#allocation32 + $0x21c] sm:$0xf0]  ;;  %v9596_v41 = vor.u32 %v11224_v19, %v9595_v13  ;;  %v11217_v37 = vld [vmem:[#allocation32 + $0x560] sm:$0xf0]  ;;  %v10239_v27 = vld [vmem:[#allocation32 + $0xa88] sm:$0xf] }
 0x44c   :  { %v9485_v13 = vld [vmem:[#allocation32 + $0x4bc] sm:$0xf0]  ;;  %v11361_v19 = vld [vmem:[#allocation32 + $0x9e4] sm:$0xf] }
 0x44d   :  { %6845 = vmatpush.bf16.msrb.mxu1 %v10488_v50  ;;  %6884 = vmatpush.bf16.msra.mxu0 %v9372_v58  ;;  %v11130_v50 = vld [vmem:[#allocation32 + $0x2ac] sm:$0xf]  ;;  %v9233_v58 = vld [vmem:[#allocation32 + $0x2c4] sm:$0xf0] }
 0x44e   :  { %6923 = vmatpush.bf16.msra.mxu3 %v10044_v11  ;;  %6962 = vmatpush.bf16.msrb.mxu2 %v8928_v25  ;;  %v10352_v11 = vor.u32 %v11413_v49, %v10351_v42  ;;  %v9651_v25 = vld [vmem:[#allocation32 + $0x5f0] sm:$0xf]  ;;  %v9236_v7 = vor.u32 %v11130_v50, %v9233_v58  ;;  %v9793_v42 = vld [vmem:[#allocation32 + $0x724] sm:$0xf0]  ;;  %v11490_v50 = vld [vmem:[#allocation32 + $0xde8] sm:$0xf0] }
 0x44f   :  { %v10659_v49 = vld [vmem:[#allocation32 + $0xdd0] sm:$0xf]  ;;  %v11207_v58 = vld [vmem:[#allocation32 + $0x514] sm:$0xf] }
 0x450   :  { %v10660_v1 = vor.u32 %v11490_v50, %v10659_v49  ;;  %v11179_v50 = vld [vmem:[#allocation32 + $0x434] sm:$0xf] }
 0x451   :  { %6846 = vmatpush.bf16.msrb.mxu1 %v10460_v35  ;;  %6885 = vmatpush.bf16.msra.mxu0 %v9344_v22  ;;  %v9652_v22 = vor.u32 %v11238_v6, %v9651_v25  ;;  %v10213_v25 = vld [vmem:[#allocation32 + $0xa6c] sm:$0xf0]  ;;  %v9099_v6 = vld [vmem:[#allocation32 + $0x198] sm:$0xf] }
 0x452   :  { %6924 = vmatpush.bf16.msra.mxu3 %v10016_v56  ;;  %6963 = vmatpush.bf16.msrb.mxu2 %v8900_v10  ;;  %v9208_v10 = vor.u32 %v11123_v2, %v9205_v57  ;;  %v9544_v2 = vor.u32 %v11207_v58, %v9541_v16  ;;  %v10631_v57 = vld [vmem:[#allocation32 + $0xd98] sm:$0xf]  ;;  %v9429_v58 = vld [vmem:[#allocation32 + $0x44c] sm:$0xf0]  ;;  %v11347_v16 = vld [vmem:[#allocation32 + $0x974] sm:$0xf] }
 0x454   :  { %6886 = vmatmul.bf16.vlgmr.msra.gmra.mxu0 %v12628_v54  ;;  %6847 = vmatmul.bf16.vlgmr.msrb.gmra.mxu1 %v12741_v29 }
 0x455   :  { %6891 = vmatpush.bf16.msra.mxu1 %v9764_v40  ;;  %6930 = vmatpush.bf16.msrb.mxu0 %v10436_v12  ;;  %v9880_v40 = vor.u32 %v11291_v14, %v9877_v21  ;;  %v10295_v12 = vld [vmem:[#allocation32 + $0xaf8] sm:$0xf]  ;;  %v11483_v14 = vld [vmem:[#allocation32 + $0xdb0] sm:$0xf0]  ;;  %v10216_v21 = vor.u32 %v11375_v0, %v10213_v25  ;;  %v10101_v0 = vld [vmem:[#allocation32 + $0x98c] sm:$0xf0] }
 0x456   :  { %6969 = vmatpush.bf16.msrb.mxu3 %v9320_v24  ;;  %7008 = vmatpush.bf16.msra.mxu2 %v9992_v18  ;;  %v9177_v24 = vld [vmem:[#allocation32 + $0x254] sm:$0xf0]  ;;  %v11284_v18 = vld [vmem:[#allocation32 + $0x77c] sm:$0xf]  ;;  %v10296_v28 = vor.u32 %v11399_v32, %v10295_v12  ;;  %v10632_v32 = vor.u32 %v11483_v14, %v10631_v57 }
 0x457   :  { %6925 = vmatmul.bf16.vlgmr.msra.gmra.mxu3 %v12701_v46  ;;  %6964 = vmatmul.bf16.vlgmr.msrb.gmra.mxu2 %v12591_v23  ;;  %v9180_v53 = vor.u32 %v11116_v43, %v9177_v24  ;;  %v11092_v12 = vld [vmem:[#allocation32 + $0x178] sm:$0xf0]  ;;  %v10603_v24 = vld [vmem:[#allocation32 + $0xd60] sm:$0xf]  ;;  %v9401_v14 = vld [vmem:[#allocation32 + $0x414] sm:$0xf0] }
 0x458   :  { %v6705_v35 = vpop.f32.mrf.mxu2  ;;  %v11172_v57 = vld [vmem:[#allocation32 + $0x3fc] sm:$0xf] }
 0x459   :  { %6892 = vmatpush.bf16.msra.mxu1 %v9736_v9  ;;  %6931 = vmatpush.bf16.msrb.mxu0 %v10408_v20  ;;  %v12756_v56 = vadd.f32 %v6705_v35, %v12748_v61  ;;  %v9852_v9 = vor.u32 %v11284_v18, %v9849_v48  ;;  %v10267_v61 = vld [vmem:[#allocation32 + $0xac0] sm:$0xf]  ;;  %v11392_v20 = vld [vmem:[#allocation32 + $0xad8] sm:$0xf0] }
 0x45a   :  { %6970 = vmatpush.bf16.msrb.mxu3 %v9292_v34  ;;  %7009 = vmatpush.bf16.msra.mxu2 %v9964_v15  ;;  %v11277_v34 = vld [vmem:[#allocation32 + $0x744] sm:$0xf]  ;;  %v9821_v15 = vld [vmem:[#allocation32 + $0x75c] sm:$0xf0]  ;;  %v10268_v63 = vor.u32 %v11392_v20, %v10267_v61  ;;  %v11476_v18 = vld [vmem:[#allocation32 + $0xd78] sm:$0xf0] }
 0x45b   :  { %v9824_v51 = vor.u32 %v11277_v34, %v9821_v15  ;;  %v11085_v61 = vld [vmem:[#allocation32 + $0x140] sm:$0xf0]  ;;  %v10604_v20 = vor.u32 %v11476_v18, %v10603_v24 }
 0x45c   :  { %v11469_v34 = vld [vmem:[#allocation32 + $0xd40] sm:$0xf0] }
 0x45d   :  { %6893 = vmatpush.bf16.msra.mxu1 %v9708_v17  ;;  %6932 = vmatpush.bf16.msrb.mxu0 %v10380_v45  ;;  %v11385_v17 = vld [vmem:[#allocation32 + $0xaa0] sm:$0xf0]  ;;  %v9152_v45 = vor.u32 %v11109_v5, %v9149_v31  ;;  %v10575_v31 = vld [vmem:[#allocation32 + $0xd28] sm:$0xf] }
 0x45e   :  { %6971 = vmatpush.bf16.msrb.mxu3 %v9264_v39  ;;  %7010 = vmatpush.bf16.msra.mxu2 %v9936_v52  ;;  %v9121_v39 = vld [vmem:[#allocation32 + $0x1e4] sm:$0xf0]  ;;  %v11270_v52 = vld [vmem:[#allocation32 + $0x70c] sm:$0xf]  ;;  %v11165_v18 = vld [vmem:[#allocation32 + $0x3c4] sm:$0xf] }
 0x45f   :  { %v9796_v47 = vor.u32 %v11270_v52, %v9793_v42  ;;  %v11462_v52 = vld [vmem:[#allocation32 + $0xd08] sm:$0xf0] }
 0x460   :  { %v6707_v38 = vpop.f32.mrf.mxu2 }
 0x461   :  { %6894 = vmatpush.bf16.msra.mxu1 %v9680_v55  ;;  %6933 = vmatpush.bf16.msrb.mxu0 %v10352_v11  ;;  %v9568_v55 = vor.u32 %v11217_v37, %v9567_v36  ;;  %v10240_v11 = vor.u32 %v11385_v17, %v10239_v27  ;;  %v11186_v38 = vld [vmem:[#allocation32 + $0x46c] sm:$0xf]  ;;  %v10129_v27 = vld [vmem:[#allocation32 + $0x9c4] sm:$0xf0]  ;;  %v9015_v17 = vld [vmem:[#allocation32 + $0xf0] sm:$0xf] }
 0x462   :  { %6972 = vmatpush.bf16.msrb.mxu3 %v9236_v7  ;;  %7011 = vmatpush.bf16.msra.mxu2 %v9908_v3  ;;  %v11099_v7 = vld [vmem:[#allocation32 + $0x1b0] sm:$0xf0]  ;;  %v9124_v3 = vor.u32 %v11102_v33, %v9121_v39  ;;  %v10547_v39 = vld [vmem:[#allocation32 + $0xcf0] sm:$0xf] }
 0x463   :  { %v9100_v35 = vor.u32 %v11099_v7, %v9099_v6  ;;  %v10548_v6 = vor.u32 %v11462_v52, %v10547_v39  ;;  %v9432_v7 = vor.u32 %v11179_v50, %v9429_v58  ;;  %v9323_v39 = vld [vmem:[#allocation32 + $0x358] sm:$0xf]  ;;  %v11323_v58 = vld [vmem:[#allocation32 + $0x8b0] sm:$0xf0] }
 0x464   :  { %v9995_v50 = vld [vmem:[#allocation32 + $0x898] sm:$0xf] }
 0x465   :  { %6895 = vmatpush.bf16.msra.mxu1 %v9652_v22  ;;  %6934 = vmatpush.bf16.msrb.mxu0 %v10324_v30  ;;  %v11200_v22 = vld [vmem:[#allocation32 + $0x4dc] sm:$0xf]  ;;  %v9513_v30 = vld [vmem:[#allocation32 + $0x4f4] sm:$0xf0] }
 0x466   :  { %6973 = vmatpush.bf16.msrb.mxu3 %v9208_v10  ;;  %7012 = vmatpush.bf16.msra.mxu2 %v9880_v40  ;;  %v10185_v10 = vld [vmem:[#allocation32 + $0xa34] sm:$0xf0]  ;;  %v9071_v40 = vld [vmem:[#allocation32 + $0x160] sm:$0xf]  ;;  %v9516_v43 = vor.u32 %v11200_v22, %v9513_v30 }
 0x467   :  { %v10188_v48 = vor.u32 %v11368_v4, %v10185_v10  ;;  %v10073_v22 = vld [vmem:[#allocation32 + $0x954] sm:$0xf0]  ;;  %v8959_v30 = vld [vmem:[#allocation32 + $0x80] sm:$0xf]  ;;  %v11064_v4 = vld [vmem:[#allocation32 + $0x98] sm:$0xf0] }
 0x468   :  { %v12758_v8 = vpop.f32.mrf.mxu2  ;;  %v8960_v24 = vor.u32 %v11064_v4, %v8959_v30  ;;  %v11316_v30 = vld [vmem:[#allocation32 + $0x878] sm:$0xf0] }
 0x469   :  { %6896 = vmatpush.bf16.msra.mxu1 %v9624_v59  ;;  %6935 = vmatpush.bf16.msrb.mxu0 %v10296_v28  ;;  %v9072_v59 = vor.u32 %v11092_v12, %v9071_v40  ;;  %v11193_v28 = vld [vmem:[#allocation32 + $0x4a4] sm:$0xf]  ;;  %v9404_v40 = vor.u32 %v11172_v57, %v9401_v14  ;;  %v10491_v12 = vld [vmem:[#allocation32 + $0xc80] sm:$0xf]  ;;  %v10409_v57 = vld [vmem:[#allocation32 + $0xbf4] sm:$0xf0] }
 0x46a   :  { %6974 = vmatpush.bf16.msrb.mxu3 %v9180_v53  ;;  %7013 = vmatpush.bf16.msra.mxu2 %v9852_v9  ;;  %v10157_v53 = vld [vmem:[#allocation32 + $0x9fc] sm:$0xf0]  ;;  %v9043_v9 = vld [vmem:[#allocation32 + $0x128] sm:$0xf]  ;;  %v9488_v5 = vor.u32 %v11193_v28, %v9485_v13 }
 0x46b   :  { %v10160_v15 = vor.u32 %v11361_v19, %v10157_v53  ;;  %v9044_v36 = vor.u32 %v11085_v61, %v9043_v9  ;;  %v10045_v28 = vld [vmem:[#allocation32 + $0x91c] sm:$0xf0]  ;;  %v8931_v13 = vld [vmem:[#allocation32 + $0x48] sm:$0xf]  ;;  %v11057_v19 = vld [vmem:[#allocation32 + $0x60] sm:$0xf0] }
 0x46c   :  { %v10463_v9 = vld [vmem:[#allocation32 + $0xc48] sm:$0xf]  ;;  %v9295_v14 = vld [vmem:[#allocation32 + $0x320] sm:$0xf] }
 0x46d   :  { %6897 = vmatpush.bf16.msra.mxu1 %v9596_v41  ;;  %6936 = vmatpush.bf16.msrb.mxu0 %v10268_v63  ;;  %v9457_v41 = vld [vmem:[#allocation32 + $0x484] sm:$0xf0]  ;;  %v11354_v63 = vld [vmem:[#allocation32 + $0x9ac] sm:$0xf] }
 0x46e   :  { %6975 = vmatpush.bf16.msrb.mxu3 %v9152_v45  ;;  %7014 = vmatpush.bf16.msra.mxu2 %v9824_v51  ;;  %v11078_v45 = vld [vmem:[#allocation32 + $0x108] sm:$0xf0]  ;;  %v10576_v51 = vor.u32 %v11469_v34, %v10575_v31  ;;  %v9460_v33 = vor.u32 %v11186_v38, %v9457_v41  ;;  %v10132_v42 = vor.u32 %v11354_v63, %v10129_v27  ;;  %v9345_v34 = vld [vmem:[#allocation32 + $0x3a4] sm:$0xf0]  ;;  %v8903_v63 = vld [vmem:[#allocation32 + $0x10] sm:$0xf] }
 0x46f   :  { %v9016_v49 = vor.u32 %v11078_v45, %v9015_v17  ;;  %v11158_v31 = vld [vmem:[#allocation32 + $0x38c] sm:$0xf]  ;;  %v10017_v41 = vld [vmem:[#allocation32 + $0x8e4] sm:$0xf0]  ;;  %v11263_v17 = vld [vmem:[#allocation32 + $0x6d4] sm:$0xf] }
 0x470   :  { %v6759_v37 = vpop.f32.mrf.mxu2  ;;  %v11326_v38 = vld [vmem:[#allocation32 + $0x8cc] sm:$0xf]  ;;  %v9765_v45 = vld [vmem:[#allocation32 + $0x6ec] sm:$0xf0] }
 0x471   :  { %6898 = vmatpush.bf16.msra.mxu1 %v9568_v55  ;;  %6937 = vmatpush.bf16.msrb.mxu0 %v10240_v11  ;;  %v8987_v55 = vld [vmem:[#allocation32 + $0xb8] sm:$0xf]  ;;  %v11071_v11 = vld [vmem:[#allocation32 + $0xd0] sm:$0xf0]  ;;  %v11050_v27 = vld [vmem:[#allocation32 + $0x28] sm:$0xf0] }
 0x472   :  { %6976 = vmatpush.bf16.msrb.mxu3 %v9124_v3  ;;  %7015 = vmatpush.bf16.msra.mxu2 %v9796_v47  ;;  %v10519_v3 = vld [vmem:[#allocation32 + $0xcb8] sm:$0xf]  ;;  %v11455_v47 = vld [vmem:[#allocation32 + $0xcd0] sm:$0xf0] }
 0x473   :  { %v10520_v10 = vor.u32 %v11455_v47, %v10519_v3  ;;  %v9996_v47 = vor.u32 %v11323_v58, %v9995_v50  ;;  %v11127_v50 = vld [vmem:[#allocation32 + $0x290] sm:$0xf0]  ;;  %v9883_v58 = vld [vmem:[#allocation32 + $0x7b8] sm:$0xf] }
 0x474   :  { %6899 = vmatmul.bf16.vlgmr.msra.gmra.mxu1 %v12648_v60  ;;  %6938 = vmatmul.bf16.vlgmr.msrb.gmra.mxu0 %v12723_v62 }
 0x475   :  { %6943 = vmatpush.bf16.msrb.mxu1 %v10660_v1  ;;  %6982 = vmatpush.bf16.msra.mxu0 %v9544_v2  ;;  %v10104_v1 = vor.u32 %v11347_v16, %v10101_v0  ;;  %v8988_v2 = vor.u32 %v11071_v11, %v8987_v55  ;;  %v10020_v16 = vor.u32 %v11326_v38, %v10017_v41  ;;  %v9239_v38 = vld [vmem:[#allocation32 + $0x2b0] sm:$0xf]  ;;  %v11134_v41 = vld [vmem:[#allocation32 + $0x2c8] sm:$0xf0] }
 0x476   :  { %7021 = vmatpush.bf16.msra.mxu3 %v10216_v21  ;;  %7060 = vmatpush.bf16.msrb.mxu2 %v9100_v35  ;;  %v11340_v21 = vld [vmem:[#allocation32 + $0x93c] sm:$0xf]  ;;  %v8904_v0 = vor.u32 %v11050_v27, %v8903_v63  ;;  %v9768_v55 = vor.u32 %v11263_v17, %v9765_v45  ;;  %v9911_v63 = vld [vmem:[#allocation32 + $0x7f0] sm:$0xf]  ;;  %v11235_v45 = vld [vmem:[#allocation32 + $0x5f4] sm:$0xf] }
 0x477   :  { %6977 = vmatmul.bf16.vlgmr.msrb.gmra.mxu3 %v12617_v26  ;;  %7016 = vmatmul.bf16.vlgmr.msra.gmra.mxu2 %v12670_v44  ;;  %v12764_v25 = vpop.f32.mrf.mxu3 }
 0x479   :  { %6944 = vmatpush.bf16.msrb.mxu1 %v10632_v32  ;;  %6983 = vmatpush.bf16.msra.mxu0 %v9516_v43  ;;  %v11448_v32 = vld [vmem:[#allocation32 + $0xc98] sm:$0xf0]  ;;  %v10076_v43 = vor.u32 %v11340_v21, %v10073_v22  ;;  %v9967_v22 = vld [vmem:[#allocation32 + $0x860] sm:$0xf] }
 0x47a   :  { %7022 = vmatpush.bf16.msra.mxu3 %v10188_v48  ;;  %7061 = vmatpush.bf16.msrb.mxu2 %v9072_v59  ;;  %v12766_v35 = vpop.f32.mrf.mxu2  ;;  %v9373_v48 = vld [vmem:[#allocation32 + $0x3dc] sm:$0xf0]  ;;  %v11333_v59 = vld [vmem:[#allocation32 + $0x904] sm:$0xf]  ;;  %v10492_v61 = vor.u32 %v11448_v32, %v10491_v12  ;;  %v11148_v21 = vld [vmem:[#allocation32 + $0x338] sm:$0xf0] }
 0x47b   :  { %v9709_v12 = vld [vmem:[#allocation32 + $0x67c] sm:$0xf0]  ;;  %v9296_v32 = vor.u32 %v11148_v21, %v9295_v14  ;;  %v10297_v14 = vld [vmem:[#allocation32 + $0xb14] sm:$0xf0] }
 0x47c   :  { %v9183_v21 = vld [vmem:[#allocation32 + $0x240] sm:$0xf] }
 0x47d   :  { %6945 = vmatpush.bf16.msrb.mxu1 %v10604_v20  ;;  %6984 = vmatpush.bf16.msra.mxu0 %v9488_v5  ;;  %v9376_v20 = vor.u32 %v11165_v18, %v9373_v48  ;;  %v11441_v5 = vld [vmem:[#allocation32 + $0xc60] sm:$0xf0]  ;;  %v10381_v18 = vld [vmem:[#allocation32 + $0xbbc] sm:$0xf0]  ;;  %v9267_v48 = vld [vmem:[#allocation32 + $0x2e8] sm:$0xf] }
 0x47e   :  { %7023 = vmatpush.bf16.msra.mxu3 %v10160_v15  ;;  %7062 = vmatpush.bf16.msrb.mxu2 %v9044_v36  ;;  %v10048_v15 = vor.u32 %v11333_v59, %v10045_v28  ;;  %v8932_v36 = vor.u32 %v11057_v19, %v8931_v13  ;;  %v10464_v52 = vor.u32 %v11441_v5, %v10463_v9  ;;  %v11141_v59 = vld [vmem:[#allocation32 + $0x300] sm:$0xf0]  ;;  %v9939_v28 = vld [vmem:[#allocation32 + $0x828] sm:$0xf]  ;;  %v11242_v9 = vld [vmem:[#allocation32 + $0x62c] sm:$0xf] }
 0x47f   :  { %v6720_v53 = vpop.f32.mrf.mxu3  ;;  %v11309_v13 = vld [vmem:[#allocation32 + $0x840] sm:$0xf0] }
 0x480   :  { %v9940_v5 = vor.u32 %v11309_v13, %v9939_v28  ;;  %v9155_v28 = vld [vmem:[#allocation32 + $0x208] sm:$0xf]  ;;  %v11113_v13 = vld [vmem:[#allocation32 + $0x220] sm:$0xf0] }
 0x481   :  { %6946 = vmatpush.bf16.msrb.mxu1 %v10576_v51  ;;  %6985 = vmatpush.bf16.msra.mxu0 %v9460_v33  ;;  %v11431_v51 = vld [vmem:[#allocation32 + $0xc14] sm:$0xf]  ;;  %v10437_v33 = vld [vmem:[#allocation32 + $0xc2c] sm:$0xf0] }
 0x482   :  { %7024 = vmatpush.bf16.msra.mxu3 %v10132_v42  ;;  %7063 = vmatpush.bf16.msrb.mxu2 %v9016_v49  ;;  %v6811_v37 = vpop.f32.mrf.mxu2  ;;  %v9348_v42 = vor.u32 %v11158_v31, %v9345_v34  ;;  %v11155_v49 = vld [vmem:[#allocation32 + $0x370] sm:$0xf0]  ;;  %v10440_v11 = vor.u32 %v11431_v51, %v10437_v33  ;;  %v9653_v51 = vld [vmem:[#allocation32 + $0x60c] sm:$0xf0]  ;;  %v9240_v33 = vor.u32 %v11134_v41, %v9239_v38 }
 0x483   :  { %v9324_v3 = vor.u32 %v11155_v49, %v9323_v39  ;;  %v11302_v37 = vld [vmem:[#allocation32 + $0x808] sm:$0xf0]  ;;  %v9211_v49 = vld [vmem:[#allocation32 + $0x278] sm:$0xf] }
 0x484   :  { %v9912_v39 = vor.u32 %v11302_v37, %v9911_v63  ;;  %v9127_v37 = vld [vmem:[#allocation32 + $0x1d0] sm:$0xf] }
 0x485   :  { %6947 = vmatpush.bf16.msrb.mxu1 %v10548_v6  ;;  %6986 = vmatpush.bf16.msra.mxu0 %v9432_v7  ;;  %v11256_v6 = vld [vmem:[#allocation32 + $0x69c] sm:$0xf]  ;;  %v9737_v7 = vld [vmem:[#allocation32 + $0x6b4] sm:$0xf0] }
 0x486   :  { %7025 = vmatpush.bf16.msra.mxu3 %v10104_v1  ;;  %7064 = vmatpush.bf16.msrb.mxu2 %v8988_v2  ;;  %v11424_v2 = vld [vmem:[#allocation32 + $0xbdc] sm:$0xf]  ;;  %v9740_v4 = vor.u32 %v11256_v6, %v9737_v7  ;;  %v9625_v6 = vld [vmem:[#allocation32 + $0x5d4] sm:$0xf0]  ;;  %v9212_v7 = vor.u32 %v11127_v50, %v9211_v49 }
 0x487   :  { %v12768_v1 = vpop.f32.mrf.mxu3  ;;  %v10219_v49 = vld [vmem:[#allocation32 + $0xa58] sm:$0xf] }
 0x489   :  { %6948 = vmatpush.bf16.msrb.mxu1 %v10520_v10  ;;  %6987 = vmatpush.bf16.msra.mxu0 %v9404_v40  ;;  %v10412_v10 = vor.u32 %v11424_v2, %v10409_v57  ;;  %v11249_v40 = vld [vmem:[#allocation32 + $0x664] sm:$0xf]  ;;  %v11396_v57 = vld [vmem:[#allocation32 + $0xafc] sm:$0xf] }
 0x48a   :  { %7026 = vmatpush.bf16.msra.mxu3 %v10076_v43  ;;  %7065 = vmatpush.bf16.msrb.mxu2 %v8960_v24  ;;  %v9968_v43 = vor.u32 %v11316_v30, %v9967_v22  ;;  %v11417_v24 = vld [vmem:[#allocation32 + $0xba4] sm:$0xf]  ;;  %v9712_v19 = vor.u32 %v11249_v40, %v9709_v12  ;;  %v11120_v30 = vld [vmem:[#allocation32 + $0x258] sm:$0xf0]  ;;  %v10300_v12 = vor.u32 %v11396_v57, %v10297_v14  ;;  %v10633_v57 = vld [vmem:[#allocation32 + $0xdb4] sm:$0xf0] }
 0x48b   :  { %v10384_v53 = vor.u32 %v11417_v24, %v10381_v18  ;;  %v9184_v24 = vor.u32 %v11120_v30, %v9183_v21  ;;  %v9519_v30 = vld [vmem:[#allocation32 + $0x4e0] sm:$0xf] }
 0x48d   :  { %6949 = vmatpush.bf16.msrb.mxu1 %v10492_v61  ;;  %6988 = vmatpush.bf16.msra.mxu0 %v9376_v20  ;;  %v9681_v61 = vld [vmem:[#allocation32 + $0x644] sm:$0xf0]  ;;  %v9268_v20 = vor.u32 %v11141_v59, %v9267_v48  ;;  %v11389_v48 = vld [vmem:[#allocation32 + $0xac4] sm:$0xf]  ;;  %v10269_v59 = vld [vmem:[#allocation32 + $0xadc] sm:$0xf0] }
 0x48e   :  { %7027 = vmatpush.bf16.msra.mxu3 %v10048_v15  ;;  %7066 = vmatpush.bf16.msrb.mxu2 %v8932_v36  ;;  %v11410_v15 = vld [vmem:[#allocation32 + $0xb6c] sm:$0xf]  ;;  %v10353_v36 = vld [vmem:[#allocation32 + $0xb84] sm:$0xf0]  ;;  %v9684_v27 = vor.u32 %v11242_v9, %v9681_v61 }
 0x48f   :  { %v6772_v34 = vpop.f32.mrf.mxu3  ;;  %v10356_v17 = vor.u32 %v11410_v15, %v10353_v36  ;;  %v11214_v9 = vld [vmem:[#allocation32 + $0x54c] sm:$0xf]  ;;  %v10241_v15 = vld [vmem:[#allocation32 + $0xaa4] sm:$0xf0]  ;;  %v9156_v36 = vor.u32 %v11113_v13, %v9155_v28  ;;  %v10605_v28 = vld [vmem:[#allocation32 + $0xd7c] sm:$0xf0] }
 0x490   :  { %v11382_v34 = vld [vmem:[#allocation32 + $0xa8c] sm:$0xf] }
 0x491   :  { %6950 = vmatpush.bf16.msrb.mxu1 %v10464_v52  ;;  %6989 = vmatpush.bf16.msra.mxu0 %v9348_v42  ;;  %v12774_v31 = vpop.f32.mrf.mxu0  ;;  %v11403_v52 = vld [vmem:[#allocation32 + $0xb34] sm:$0xf]  ;;  %v10325_v42 = vld [vmem:[#allocation32 + $0xb4c] sm:$0xf0] }
 0x492   :  { %7028 = vmatpush.bf16.msra.mxu3 %v10020_v16  ;;  %7067 = vmatpush.bf16.msrb.mxu2 %v8904_v0  ;;  %v11295_v16 = vld [vmem:[#allocation32 + $0x7d0] sm:$0xf0]  ;;  %v9656_v0 = vor.u32 %v11235_v45, %v9653_v51  ;;  %v11274_v51 = vld [vmem:[#allocation32 + $0x728] sm:$0xf0] }
 0x494   :  { %6951 = vmatmul.bf16.vlgmr.msrb.gmra.mxu1 %v12741_v29  ;;  %6990 = vmatmul.bf16.vlgmr.msra.gmra.mxu0 %v12628_v54 }
 0x495   :  { %6995 = vmatpush.bf16.msra.mxu1 %v9768_v55  ;;  %7034 = vmatpush.bf16.msrb.mxu0 %v10440_v11  ;;  %v10328_v55 = vor.u32 %v11403_v52, %v10325_v42  ;;  %v11228_v11 = vld [vmem:[#allocation32 + $0x5bc] sm:$0xf]  ;;  %v9547_v52 = vld [vmem:[#allocation32 + $0x518] sm:$0xf]  ;;  %v11211_v42 = vld [vmem:[#allocation32 + $0x530] sm:$0xf0] }
 0x496   :  { %7073 = vmatpush.bf16.msrb.mxu3 %v9324_v3  ;;  %7112 = vmatpush.bf16.msra.mxu2 %v9996_v47  ;;  %v9884_v3 = vor.u32 %v11295_v16, %v9883_v58  ;;  %v9628_v40 = vor.u32 %v11228_v11, %v9625_v6  ;;  %v10244_v58 = vor.u32 %v11382_v34, %v10241_v15  ;;  %v11379_v16 = vld [vmem:[#allocation32 + $0xa70] sm:$0xf0] }
 0x497   :  { %7029 = vmatmul.bf16.vlgmr.msra.gmra.mxu3 %v12701_v46  ;;  %7068 = vmatmul.bf16.vlgmr.msrb.gmra.mxu2 %v12591_v23  ;;  %v12778_v22 = vpop.f32.mrf.mxu3  ;;  %v10220_v14 = vor.u32 %v11379_v16, %v10219_v49 }
 0x499   :  { %6996 = vmatpush.bf16.msra.mxu1 %v9740_v4  ;;  %7035 = vmatpush.bf16.msrb.mxu0 %v10412_v10  ;;  %v6733_v47 = vpop.f32.mrf.mxu0  ;;  %v9855_v4 = vld [vmem:[#allocation32 + $0x780] sm:$0xf]  ;;  %v11288_v10 = vld [vmem:[#allocation32 + $0x798] sm:$0xf0] }
 0x49a   :  { %7074 = vmatpush.bf16.msrb.mxu3 %v9296_v32  ;;  %7113 = vmatpush.bf16.msra.mxu2 %v9968_v43  ;;  %v12776_v2 = vpop.f32.mrf.mxu2  ;;  %v11221_v32 = vld [vmem:[#allocation32 + $0x584] sm:$0xf]  ;;  %v9597_v43 = vld [vmem:[#allocation32 + $0x59c] sm:$0xf0]  ;;  %v9856_v18 = vor.u32 %v11288_v10, %v9855_v4  ;;  %v11480_v47 = vld [vmem:[#allocation32 + $0xd9c] sm:$0xf] }
 0x49b   :  { %v9600_v61 = vor.u32 %v11221_v32, %v9597_v43  ;;  %v11204_v4 = vld [vmem:[#allocation32 + $0x4f8] sm:$0xf0]  ;;  %v10191_v10 = vld [vmem:[#allocation32 + $0xa20] sm:$0xf] }
 0x49c   :  { %v9073_v32 = vld [vmem:[#allocation32 + $0x17c] sm:$0xf0] }
 0x49d   :  { %6997 = vmatpush.bf16.msra.mxu1 %v9712_v19  ;;  %7036 = vmatpush.bf16.msrb.mxu0 %v10384_v53  ;;  %v9827_v19 = vld [vmem:[#allocation32 + $0x748] sm:$0xf]  ;;  %v11281_v53 = vld [vmem:[#allocation32 + $0x760] sm:$0xf0] }
 0x49e   :  { %7075 = vmatpush.bf16.msrb.mxu3 %v9268_v20  ;;  %7114 = vmatpush.bf16.msra.mxu2 %v9940_v5  ;;  %v10272_v20 = vor.u32 %v11389_v48, %v10269_v59  ;;  %v9569_v5 = vld [vmem:[#allocation32 + $0x564] sm:$0xf0]  ;;  %v9828_v38 = vor.u32 %v11281_v53, %v9827_v19  ;;  %v9520_v48 = vor.u32 %v11204_v4, %v9519_v30  ;;  %v11473_v59 = vld [vmem:[#allocation32 + $0xd64] sm:$0xf]  ;;  %v8989_v30 = vld [vmem:[#allocation32 + $0xd4] sm:$0xf0] }
 0x49f   :  { %v6824_v45 = vpop.f32.mrf.mxu3  ;;  %v9572_v50 = vor.u32 %v11214_v9, %v9569_v5  ;;  %v9491_v53 = vld [vmem:[#allocation32 + $0x4a8] sm:$0xf]  ;;  %v11197_v9 = vld [vmem:[#allocation32 + $0x4c0] sm:$0xf0]  ;;  %v10608_v15 = vor.u32 %v11473_v59, %v10605_v28 }
 0x4a0   :  { %v9045_v5 = vld [vmem:[#allocation32 + $0x144] sm:$0xf0]  ;;  %v11190_v45 = vld [vmem:[#allocation32 + $0x488] sm:$0xf0] }
 0x4a1   :  { %6998 = vmatpush.bf16.msra.mxu1 %v9684_v27  ;;  %7037 = vmatpush.bf16.msrb.mxu0 %v10356_v17  ;;  %v12780_v41 = vpop.f32.mrf.mxu0  ;;  %v11106_v27 = vld [vmem:[#allocation32 + $0x1e8] sm:$0xf0]  ;;  %v9799_v17 = vld [vmem:[#allocation32 + $0x710] sm:$0xf] }
 0x4a2   :  { %7076 = vmatpush.bf16.msrb.mxu3 %v9240_v33  ;;  %7115 = vmatpush.bf16.msra.mxu2 %v9912_v39  ;;  %v6863_v63 = vpop.f32.mrf.mxu2  ;;  %v11487_v33 = vld [vmem:[#allocation32 + $0xdd4] sm:$0xf]  ;;  %v10661_v39 = vld [vmem:[#allocation32 + $0xdec] sm:$0xf0]  ;;  %v9128_v11 = vor.u32 %v11106_v27, %v9127_v37  ;;  %v9800_v6 = vor.u32 %v11274_v51, %v9799_v17  ;;  %v10577_v37 = vld [vmem:[#allocation32 + $0xd44] sm:$0xf0] }
 0x4a3   :  { %v11466_v63 = vld [vmem:[#allocation32 + $0xd2c] sm:$0xf]  ;;  %v9463_v17 = vld [vmem:[#allocation32 + $0x470] sm:$0xf] }
 0x4a4   :  { %v10135_v51 = vld [vmem:[#allocation32 + $0x9b0] sm:$0xf]  ;;  %v10580_v16 = vor.u32 %v11466_v63, %v10577_v37 }
 0x4a5   :  { %6999 = vmatpush.bf16.msra.mxu1 %v9656_v0  ;;  %7038 = vmatpush.bf16.msrb.mxu0 %v10328_v55  ;;  %v11096_v0 = vld [vmem:[#allocation32 + $0x19c] sm:$0xf]  ;;  %v9101_v55 = vld [vmem:[#allocation32 + $0x1b4] sm:$0xf0] }
 0x4a6   :  { %7077 = vmatpush.bf16.msrb.mxu3 %v9212_v7  ;;  %7116 = vmatpush.bf16.msra.mxu2 %v9884_v3  ;;  %v10664_v7 = vor.u32 %v11487_v33, %v10661_v39  ;;  %v9548_v3 = vor.u32 %v11211_v42, %v9547_v52  ;;  %v9104_v21 = vor.u32 %v11096_v0, %v9101_v55  ;;  %v11358_v33 = vld [vmem:[#allocation32 + $0x9c8] sm:$0xf0]  ;;  %v11075_v39 = vld [vmem:[#allocation32 + $0xf4] sm:$0xf]  ;;  %v9017_v52 = vld [vmem:[#allocation32 + $0x10c] sm:$0xf0] }
 0x4a7   :  { %v12789_v42 = vld [vmem:[#allocation34] sm:$0xff]  ;;  %v9464_v0 = vor.u32 %v11190_v45, %v9463_v17  ;;  %v11459_v55 = vld [vmem:[#allocation32 + $0xcf4] sm:$0xf] }
 0x4a8   :  { %v4327_v49 = vperm.slane %v12789_v42, 1  ;;  %v11337_v45 = vld [vmem:[#allocation32 + $0x920] sm:$0xf0] }
 0x4a9   :  { %7000 = vmatpush.bf16.msra.mxu1 %v9628_v40  ;;  %7039 = vmatpush.bf16.msrb.mxu0 %v10300_v12  ;;  %v11372_v40 = vld [vmem:[#allocation32 + $0xa38] sm:$0xf0]  ;;  %v11089_v12 = vld [vmem:[#allocation32 + $0x164] sm:$0xf]  ;;  %v6785_v43 = vpop.f32.mrf.mxu0 }
 0x4aa   :  { %7078 = vmatpush.bf16.msrb.mxu3 %v9184_v24  ;;  %7117 = vmatpush.bf16.msra.mxu2 %v9856_v18  ;;  %v6719_v24 = vadd.f32 %v12764_v25, %v12756_v56  ;;  %v10636_v18 = vor.u32 %v11480_v47, %v10633_v57  ;;  %v10192_v13 = vor.u32 %v11372_v40, %v10191_v10  ;;  %v11365_v56 = vld [vmem:[#allocation32 + $0xa00] sm:$0xf0]  ;;  %v11082_v25 = vld [vmem:[#allocation32 + $0x12c] sm:$0xf]  ;;  %v11183_v47 = vld [vmem:[#allocation32 + $0x450] sm:$0xf0] }
 0x4ab   :  { %v9076_v19 = vor.u32 %v11089_v12, %v9073_v32  ;;  %v9048_v27 = vor.u32 %v11082_v25, %v9045_v5  ;;  %v10107_v57 = vld [vmem:[#allocation32 + $0x978] sm:$0xf]  ;;  %v11452_v43 = vld [vmem:[#allocation32 + $0xcbc] sm:$0xf] }
 0x4ad   :  { %7001 = vmatpush.bf16.msra.mxu1 %v9600_v61  ;;  %7040 = vmatpush.bf16.msrb.mxu0 %v10272_v20  ;;  %v10163_v61 = vld [vmem:[#allocation32 + $0x9e8] sm:$0xf]  ;;  %v6732_v20 = vadd.f32 %v12774_v31, %v6719_v24  ;;  %v10521_v24 = vld [vmem:[#allocation32 + $0xcd4] sm:$0xf0] }
 0x4ae   :  { %7079 = vmatpush.bf16.msrb.mxu3 %v9156_v36  ;;  %7118 = vmatpush.bf16.msra.mxu2 %v9828_v38  ;;  %v9492_v36 = vor.u32 %v11197_v9, %v9491_v53  ;;  %v10164_v31 = vor.u32 %v11365_v56, %v10163_v61  ;;  %v10079_v53 = vld [vmem:[#allocation32 + $0x940] sm:$0xf]  ;;  %v6758_v9 = vadd.f32 %v12758_v8, %v4327_v49  ;;  %v11344_v61 = vld [vmem:[#allocation32 + $0x958] sm:$0xf0]  ;;  %v11169_v8 = vld [vmem:[#allocation32 + $0x3e0] sm:$0xf0] }
 0x4af   :  { %v8961_v56 = vld [vmem:[#allocation32 + $0x9c] sm:$0xf0]  ;;  %v10080_v63 = vor.u32 %v11344_v61, %v10079_v53 }
 0x4b0   :  { %v6771_v25 = vadd.f32 %v12768_v1, %v6758_v9  ;;  %v11260_v9 = vld [vmem:[#allocation32 + $0x6b8] sm:$0xf0] }
 0x4b1   :  { %7002 = vmatpush.bf16.msra.mxu1 %v9572_v50  ;;  %7041 = vmatpush.bf16.msrb.mxu0 %v10244_v58  ;;  %v6744_v34 = vpop.f32.mrf.mxu1  ;;  %v4328_v50 = vperm.slane %v12789_v42, 2 }
 0x4b2   :  { %7080 = vmatpush.bf16.msrb.mxu3 %v9128_v11  ;;  %7119 = vmatpush.bf16.msra.mxu2 %v9800_v6  ;;  %v6745_v38 = vadd.f32 %v6744_v34, %v6732_v20  ;;  %v10549_v11 = vld [vmem:[#allocation32 + $0xd0c] sm:$0xf0]  ;;  %v10136_v6 = vor.u32 %v11358_v33, %v10135_v51  ;;  %v11061_v20 = vld [vmem:[#allocation32 + $0x84] sm:$0xf]  ;;  %v10524_v34 = vor.u32 %v11452_v43, %v10521_v24  ;;  %v11054_v51 = vld [vmem:[#allocation32 + $0x4c] sm:$0xf] }
 0x4b3   :  { %v6862_v40 = vadd.f32 %v12776_v2, %v4328_v50  ;;  %v10552_v12 = vor.u32 %v11459_v55, %v10549_v11  ;;  %v8964_v37 = vor.u32 %v11061_v20, %v8961_v56  ;;  %v6784_v17 = vadd.f32 %v12780_v41, %v6771_v25  ;;  %v8933_v33 = vld [vmem:[#allocation32 + $0x64] sm:$0xf0]  ;;  %v11162_v55 = vld [vmem:[#allocation32 + $0x3a8] sm:$0xf0]  ;;  %v10023_v41 = vld [vmem:[#allocation32 + $0x8d0] sm:$0xf] }
 0x4b4   :  { %7003 = vmatmul.bf16.vlgmr.msra.gmra.mxu1 %v12648_v60  ;;  %7042 = vmatmul.bf16.vlgmr.msrb.gmra.mxu0 %v12723_v62  ;;  %11558 = vtanh.f32 %v6745_v38  ;;  %v12793_v58 = vpop.f32.mrf.mxu0  ;;  %v10493_v38 = vld [vmem:[#allocation32 + $0xc9c] sm:$0xf0]  ;;  %v9325_v24 = vld [vmem:[#allocation32 + $0x374] sm:$0xf0] }
 0x4b5   :  { %7047 = vmatpush.bf16.msrb.mxu1 %v10664_v7  ;;  %7086 = vmatpush.bf16.msra.mxu0 %v9548_v3  ;;  %v9020_v7 = vor.u32 %v11075_v39, %v9017_v52  ;;  %v9435_v3 = vld [vmem:[#allocation32 + $0x438] sm:$0xf]  ;;  %v11438_v39 = vld [vmem:[#allocation32 + $0xc4c] sm:$0xf]  ;;  %v10415_v25 = vld [vmem:[#allocation32 + $0xbe0] sm:$0xf] }
 0x4b6   :  { %7125 = vmatpush.bf16.msra.mxu3 %v10220_v14  ;;  %7164 = vmatpush.bf16.msrb.mxu2 %v9104_v21  ;;  %v11351_v14 = vld [vmem:[#allocation32 + $0x990] sm:$0xf0]  ;;  %v11068_v21 = vld [vmem:[#allocation32 + $0xbc] sm:$0xf]  ;;  %v9436_v32 = vor.u32 %v11183_v47, %v9435_v3  ;;  %v11330_v47 = vld [vmem:[#allocation32 + $0x8e8] sm:$0xf0] }
 0x4b7   :  { %7081 = vmatmul.bf16.vlgmr.msrb.gmra.mxu3 %v12617_v26  ;;  %7120 = vmatmul.bf16.vlgmr.msra.gmra.mxu2 %v12670_v44  ;;  %v8992_v59 = vor.u32 %v11068_v21, %v8989_v30  ;;  %v6874_v28 = vpop.f32.mrf.mxu3  ;;  %v8905_v21 = vld [vmem:[#allocation32 + $0x2c] sm:$0xf0]  ;;  %v9771_v30 = vld [vmem:[#allocation32 + $0x6d8] sm:$0xf] }
 0x4b8   :  { %v12799_v2 = vadd.f32 %v6874_v28, %v6862_v40  ;;  %v11435_v40 = vld [vmem:[#allocation32 + $0xc30] sm:$0xf0] }
 0x4b9   :  { %7048 = vmatpush.bf16.msrb.mxu1 %v10636_v18  ;;  %7087 = vmatpush.bf16.msra.mxu0 %v9520_v48  ;;  %v6746_v4 = vpop.f32.mrf.mxu1  ;;  %v9407_v18 = vld [vmem:[#allocation32 + $0x400] sm:$0xf]  ;;  %v10108_v48 = vor.u32 %v11351_v14, %v10107_v57  ;;  %v11047_v57 = vld [vmem:[#allocation32 + $0x14] sm:$0xf] }
 0x4ba   :  { %7126 = vmatpush.bf16.msra.mxu3 %v10192_v13  ;;  %7165 = vmatpush.bf16.msrb.mxu2 %v9076_v19  ;;  %v11559_v10 = vpop.eup %11558  ;;  %v12796_v13 = vpop.f32.mrf.mxu2  ;;  %v11176_v19 = vld [vmem:[#allocation32 + $0x418] sm:$0xf0]  ;;  %v11267_v4 = vld [vmem:[#allocation32 + $0x6f0] sm:$0xf0]  ;;  %v8908_v28 = vor.u32 %v11047_v57, %v8905_v21  ;;  %v9913_v21 = vld [vmem:[#allocation32 + $0x80c] sm:$0xf0] }
 0x4bb   :  { %7379 = vst [vmem:[#allocation35] sm:$0xff] %v11559_v10  ;;  %v10443_v10 = vld [vmem:[#allocation32 + $0xc18] sm:$0xf]  ;;  %v11299_v57 = vld [vmem:[#allocation32 + $0x7f4] sm:$0xf] }
 0x4bc   :  { %v6837_v5 = vpop.f32.mrf.mxu0  ;;  %v10444_v53 = vor.u32 %v11435_v40, %v10443_v10  ;;  %v9659_v40 = vld [vmem:[#allocation32 + $0x5f8] sm:$0xf] }
 0x4bd   :  { %7049 = vmatpush.bf16.msrb.mxu1 %v10608_v15  ;;  %7088 = vmatpush.bf16.msra.mxu0 %v9492_v36  ;;  %v9408_v15 = vor.u32 %v11176_v19, %v9407_v18  ;;  %v11445_v36 = vld [vmem:[#allocation32 + $0xc84] sm:$0xf]  ;;  %v11320_v18 = vld [vmem:[#allocation32 + $0x89c] sm:$0xf]  ;;  %v9772_v19 = vor.u32 %v11267_v4, %v9771_v30 }
 0x4be   :  { %7127 = vmatpush.bf16.msra.mxu3 %v10164_v31  ;;  %7166 = vmatpush.bf16.msrb.mxu2 %v9048_v27  ;;  %v9379_v31 = vld [vmem:[#allocation32 + $0x3c8] sm:$0xf]  ;;  %v10496_v52 = vor.u32 %v11445_v36, %v10493_v38  ;;  %v11428_v5 = vld [vmem:[#allocation32 + $0xbf8] sm:$0xf0]  ;;  %v11313_v36 = vld [vmem:[#allocation32 + $0x864] sm:$0xf] }
 0x4bf   :  { %v10051_v27 = vld [vmem:[#allocation32 + $0x908] sm:$0xf]  ;;  %v9380_v49 = vor.u32 %v11169_v8, %v9379_v31  ;;  %v9969_v38 = vld [vmem:[#allocation32 + $0x87c] sm:$0xf0]  ;;  %v11253_v8 = vld [vmem:[#allocation32 + $0x680] sm:$0xf0] }
 0x4c0   :  { %v10052_v11 = vor.u32 %v11337_v45, %v10051_v27  ;;  %v9715_v31 = vld [vmem:[#allocation32 + $0x668] sm:$0xf] }
 0x4c1   :  { %7050 = vmatpush.bf16.msrb.mxu1 %v10580_v16  ;;  %7089 = vmatpush.bf16.msra.mxu0 %v9464_v0  ;;  %v6796_v1 = vpop.f32.mrf.mxu1  ;;  %v10465_v16 = vld [vmem:[#allocation32 + $0xc64] sm:$0xf0]  ;;  %v9351_v0 = vld [vmem:[#allocation32 + $0x390] sm:$0xf] }
 0x4c2   :  { %7128 = vmatpush.bf16.msra.mxu3 %v10136_v6  ;;  %7167 = vmatpush.bf16.msrb.mxu2 %v9020_v7  ;;  %v6797_v50 = vadd.f32 %v6796_v1, %v6784_v17  ;;  %v8936_v6 = vor.u32 %v11054_v51, %v8933_v33  ;;  %v6876_v7 = vpop.f32.mrf.mxu3  ;;  %v6915_v3 = vpop.f32.mrf.mxu2  ;;  %v9352_v43 = vor.u32 %v11162_v55, %v9351_v0  ;;  %v10387_v45 = vld [vmem:[#allocation32 + $0xba8] sm:$0xf]  ;;  %v11421_v51 = vld [vmem:[#allocation32 + $0xbc0] sm:$0xf0]  ;;  %v11138_v33 = vld [vmem:[#allocation32 + $0x2ec] sm:$0xf] }
 0x4c3   :  { %v9972_v17 = vor.u32 %v11313_v36, %v9969_v38  ;;  %v9269_v1 = vld [vmem:[#allocation32 + $0x304] sm:$0xf0]  ;;  %v9687_v0 = vld [vmem:[#allocation32 + $0x630] sm:$0xf]  ;;  %v11246_v55 = vld [vmem:[#allocation32 + $0x648] sm:$0xf0] }
 0x4c4   :  { %v6810_v14 = vadd.f32 %v12766_v35, %v6797_v50  ;;  %v9743_v35 = vld [vmem:[#allocation32 + $0x6a0] sm:$0xf]  ;;  %v9716_v50 = vor.u32 %v11253_v8, %v9715_v31  ;;  %v10359_v7 = vld [vmem:[#allocation32 + $0xb70] sm:$0xf]  ;;  %v11414_v3 = vld [vmem:[#allocation32 + $0xb88] sm:$0xf0]  ;;  %v9688_v4 = vor.u32 %v11246_v55, %v9687_v0 }
 0x4c5   :  { %7051 = vmatpush.bf16.msrb.mxu1 %v10552_v12  ;;  %7090 = vmatpush.bf16.msra.mxu0 %v9436_v32  ;;  %v11152_v12 = vld [vmem:[#allocation32 + $0x35c] sm:$0xf]  ;;  %v10468_v32 = vor.u32 %v11438_v39, %v10465_v16  ;;  %v11306_v39 = vld [vmem:[#allocation32 + $0x82c] sm:$0xf]  ;;  %v10388_v16 = vor.u32 %v11421_v51, %v10387_v45  ;;  %v10360_v10 = vor.u32 %v11414_v3, %v10359_v7  ;;  %v9185_v38 = vld [vmem:[#allocation32 + $0x25c] sm:$0xf0] }
 0x4c6   :  { %7129 = vmatpush.bf16.msra.mxu3 %v10108_v48  ;;  %7168 = vmatpush.bf16.msrb.mxu2 %v8992_v59  ;;  %v9997_v48 = vld [vmem:[#allocation32 + $0x8b4] sm:$0xf0]  ;;  %v10024_v59 = vor.u32 %v11330_v47, %v10023_v41  ;;  %v9328_v61 = vor.u32 %v11152_v12, %v9325_v24  ;;  %v11131_v41 = vld [vmem:[#allocation32 + $0x2b4] sm:$0xf]  ;;  %v9241_v47 = vld [vmem:[#allocation32 + $0x2cc] sm:$0xf0]  ;;  %v9916_v24 = vor.u32 %v11299_v57, %v9913_v21 }
 0x4c7   :  { %v10000_v20 = vor.u32 %v11320_v18, %v9997_v48  ;;  %v11239_v12 = vld [vmem:[#allocation32 + $0x610] sm:$0xf0]  ;;  %v10331_v18 = vld [vmem:[#allocation32 + $0xb38] sm:$0xf]  ;;  %v9603_v45 = vld [vmem:[#allocation32 + $0x588] sm:$0xf] }
 0x4c8   :  { %v11407_v48 = vld [vmem:[#allocation32 + $0xb50] sm:$0xf0]  ;;  %v11225_v51 = vld [vmem:[#allocation32 + $0x5a0] sm:$0xf0]  ;;  %v11278_v0 = vld [vmem:[#allocation32 + $0x74c] sm:$0xf] }
 0x4c9   :  { %7052 = vmatpush.bf16.msrb.mxu1 %v10524_v34  ;;  %7091 = vmatpush.bf16.msra.mxu0 %v9408_v15  ;;  %v6798_v56 = vpop.f32.mrf.mxu1  ;;  %v11145_v34 = vld [vmem:[#allocation32 + $0x324] sm:$0xf]  ;;  %v9297_v15 = vld [vmem:[#allocation32 + $0x33c] sm:$0xf0]  ;;  %v9829_v55 = vld [vmem:[#allocation32 + $0x764] sm:$0xf0] }
 0x4ca   :  { %7130 = vmatpush.bf16.msra.mxu3 %v10080_v63  ;;  %7169 = vmatpush.bf16.msrb.mxu2 %v8964_v37  ;;  %v9744_v63 = vor.u32 %v11260_v9, %v9743_v35  ;;  %v10416_v37 = vor.u32 %v11428_v5, %v10415_v25  ;;  %v9300_v27 = vor.u32 %v11145_v34, %v9297_v15  ;;  %v9631_v9 = vld [vmem:[#allocation32 + $0x5c0] sm:$0xf]  ;;  %v11400_v34 = vld [vmem:[#allocation32 + $0xb18] sm:$0xf0]  ;;  %v11117_v15 = vld [vmem:[#allocation32 + $0x244] sm:$0xf] }
 0x4cb   :  { %v10332_v35 = vor.u32 %v11407_v48, %v10331_v18  ;;  %v10303_v5 = vld [vmem:[#allocation32 + $0xb00] sm:$0xf]  ;;  %v11218_v3 = vld [vmem:[#allocation32 + $0x568] sm:$0xf0]  ;;  %v9832_v21 = vor.u32 %v11278_v0, %v9829_v55  ;;  %v9549_v18 = vld [vmem:[#allocation32 + $0x534] sm:$0xf0] }
 0x4cc   :  { %v11376_v48 = vld [vmem:[#allocation32 + $0xa5c] sm:$0xf]  ;;  %v9051_v0 = vld [vmem:[#allocation32 + $0x130] sm:$0xf]  ;;  %v11086_v55 = vld [vmem:[#allocation32 + $0x148] sm:$0xf0] }
 0x4cd   :  { %7053 = vmatpush.bf16.msrb.mxu1 %v10496_v52  ;;  %7092 = vmatpush.bf16.msra.mxu0 %v9380_v49  ;;  %v9941_v52 = vld [vmem:[#allocation32 + $0x844] sm:$0xf0]  ;;  %v6823_v49 = vadd.f32 %v12778_v22, %v6810_v14 }
 0x4ce   :  { %7131 = vmatpush.bf16.msra.mxu3 %v10052_v11  ;;  %7170 = vmatpush.bf16.msrb.mxu2 %v8936_v6  ;;  %v9272_v11 = vor.u32 %v11138_v33, %v9269_v1  ;;  %v9944_v6 = vor.u32 %v11306_v39, %v9941_v52  ;;  %v10275_v33 = vld [vmem:[#allocation32 + $0xac8] sm:$0xf]  ;;  %v9188_v39 = vor.u32 %v11117_v15, %v9185_v38  ;;  %v11201_v38 = vld [vmem:[#allocation32 + $0x4e4] sm:$0xf] }
 0x4cf   :  { %v6836_v22 = vadd.f32 %v12793_v58, %v6823_v49  ;;  %v9660_v58 = vor.u32 %v11239_v12, %v9659_v40  ;;  %v11393_v49 = vld [vmem:[#allocation32 + $0xae0] sm:$0xf0]  ;;  %v9801_v12 = vld [vmem:[#allocation32 + $0x72c] sm:$0xf0] }
 0x4d0   :  { %v10276_v7 = vor.u32 %v11393_v49, %v10275_v33  ;;  %v11477_v33 = vld [vmem:[#allocation32 + $0xd80] sm:$0xf0]  ;;  %v9493_v49 = vld [vmem:[#allocation32 + $0x4c4] sm:$0xf0] }
 0x4d1   :  { %7054 = vmatpush.bf16.msrb.mxu1 %v10468_v32  ;;  %7093 = vmatpush.bf16.msra.mxu0 %v9352_v43  ;;  %v12809_v30 = vpop.f32.mrf.mxu0  ;;  %v6848_v14 = vpop.f32.mrf.mxu1  ;;  %v9244_v43 = vor.u32 %v11131_v41, %v9241_v47  ;;  %v10247_v41 = vld [vmem:[#allocation32 + $0xa90] sm:$0xf]  ;;  %v11386_v47 = vld [vmem:[#allocation32 + $0xaa8] sm:$0xf0] }
 0x4d2   :  { %7132 = vmatpush.bf16.msra.mxu3 %v10024_v59  ;;  %7171 = vmatpush.bf16.msrb.mxu2 %v8908_v28  ;;  %v6849_v32 = vadd.f32 %v6848_v14, %v6836_v22  ;;  %v11124_v59 = vld [vmem:[#allocation32 + $0x27c] sm:$0xf]  ;;  %v9213_v28 = vld [vmem:[#allocation32 + $0x294] sm:$0xf0]  ;;  %v11103_v14 = vld [vmem:[#allocation32 + $0x1d4] sm:$0xf] }
 0x4d4   :  { %7055 = vmatmul.bf16.vlgmr.msrb.gmra.mxu1 %v12741_v29  ;;  %7094 = vmatmul.bf16.vlgmr.msra.gmra.mxu0 %v12628_v54  ;;  %11560 = vtanh.f32 %v6849_v32  ;;  %v10667_v32 = vld [vmem:[#allocation32 + $0xdd8] sm:$0xf] }
 0x4d5   :  { %7099 = vmatpush.bf16.msra.mxu1 %v9772_v19  ;;  %7138 = vmatpush.bf16.msrb.mxu0 %v10444_v53  ;;  %v11292_v19 = vld [vmem:[#allocation32 + $0x7bc] sm:$0xf]  ;;  %v9885_v53 = vld [vmem:[#allocation32 + $0x7d4] sm:$0xf0] }
 0x4d6   :  { %7177 = vmatpush.bf16.msrb.mxu3 %v9328_v61  ;;  %7216 = vmatpush.bf16.msra.mxu2 %v10000_v20  ;;  %v11232_v61 = vld [vmem:[#allocation32 + $0x5d8] sm:$0xf0]  ;;  %v9216_v20 = vor.u32 %v11124_v59, %v9213_v28  ;;  %v9888_v56 = vor.u32 %v11292_v19, %v9885_v53  ;;  %v10248_v28 = vor.u32 %v11386_v47, %v10247_v41  ;;  %v10221_v19 = vld [vmem:[#allocation32 + $0xa74] sm:$0xf0]  ;;  %v9107_v53 = vld [vmem:[#allocation32 + $0x1a0] sm:$0xf] }
 0x4d7   :  { %7133 = vmatmul.bf16.vlgmr.msra.gmra.mxu3 %v12701_v46  ;;  %7172 = vmatmul.bf16.vlgmr.msrb.gmra.mxu2 %v12591_v23  ;;  %v9052_v47 = vor.u32 %v11086_v55, %v9051_v0  ;;  %v11166_v55 = vld [vmem:[#allocation32 + $0x3cc] sm:$0xf] }
 0x4d9   :  { %7100 = vmatpush.bf16.msra.mxu1 %v9744_v63  ;;  %7139 = vmatpush.bf16.msrb.mxu0 %v10416_v37  ;;  %v11285_v63 = vld [vmem:[#allocation32 + $0x784] sm:$0xf]  ;;  %v9857_v37 = vld [vmem:[#allocation32 + $0x79c] sm:$0xf0]  ;;  %v6889_v31 = vpop.f32.mrf.mxu0  ;;  %v6850_v8 = vpop.f32.mrf.mxu1 }
 0x4da   :  { %7178 = vmatpush.bf16.msrb.mxu3 %v9300_v27  ;;  %7217 = vmatpush.bf16.msra.mxu2 %v9972_v17  ;;  %v12812_v25 = vpop.f32.mrf.mxu3  ;;  %v12814_v36 = vpop.f32.mrf.mxu2  ;;  %v9632_v27 = vor.u32 %v11232_v61, %v9631_v9  ;;  %v10304_v17 = vor.u32 %v11400_v34, %v10303_v5  ;;  %v9860_v52 = vor.u32 %v11285_v63, %v9857_v37  ;;  %v11484_v5 = vld [vmem:[#allocation32 + $0xdb8] sm:$0xf0]  ;;  %v9521_v63 = vld [vmem:[#allocation32 + $0x4fc] sm:$0xf0]  ;;  %v11369_v37 = vld [vmem:[#allocation32 + $0xa24] sm:$0xf] }
 0x4db   :  { %v11561_v1 = vpop.eup %11560  ;;  %v10224_v34 = vor.u32 %v11376_v48, %v10221_v19  ;;  %v10193_v31 = vld [vmem:[#allocation32 + $0xa3c] sm:$0xf0]  ;;  %v9079_v8 = vld [vmem:[#allocation32 + $0x168] sm:$0xf] }
 0x4dc   :  { %7380 = vst [vmem:[#allocation35 + $0x8] sm:$0xff] %v11561_v1  ;;  %v10196_v1 = vor.u32 %v11369_v37, %v10193_v31  ;;  %v11173_v37 = vld [vmem:[#allocation32 + $0x404] sm:$0xf]  ;;  %v9409_v31 = vld [vmem:[#allocation32 + $0x41c] sm:$0xf0] }
 0x4dd   :  { %7101 = vmatpush.bf16.msra.mxu1 %v9716_v50  ;;  %7140 = vmatpush.bf16.msrb.mxu0 %v10388_v16  ;;  %v11110_v50 = vld [vmem:[#allocation32 + $0x20c] sm:$0xf]  ;;  %v9157_v16 = vld [vmem:[#allocation32 + $0x224] sm:$0xf0] }
 0x4de   :  { %7179 = vmatpush.bf16.msrb.mxu3 %v9272_v11  ;;  %7218 = vmatpush.bf16.msra.mxu2 %v9944_v6  ;;  %v9575_v11 = vld [vmem:[#allocation32 + $0x550] sm:$0xf]  ;;  %v9604_v6 = vor.u32 %v11225_v51, %v9603_v45  ;;  %v9160_v57 = vor.u32 %v11110_v50, %v9157_v16  ;;  %v9524_v45 = vor.u32 %v11201_v38, %v9521_v63  ;;  %v10611_v51 = vld [vmem:[#allocation32 + $0xd68] sm:$0xf]  ;;  %v11362_v50 = vld [vmem:[#allocation32 + $0x9ec] sm:$0xf] }
 0x4df   :  { %v9576_v59 = vor.u32 %v11218_v3, %v9575_v11  ;;  %v10165_v16 = vld [vmem:[#allocation32 + $0xa04] sm:$0xf0]  ;;  %v10612_v11 = vor.u32 %v11477_v33, %v10611_v51  ;;  %v11470_v3 = vld [vmem:[#allocation32 + $0xd48] sm:$0xf0]  ;;  %v11065_v51 = vld [vmem:[#allocation32 + $0xa0] sm:$0xf0] }
 0x4e0   :  { %v10168_v41 = vor.u32 %v11362_v50, %v10165_v16  ;;  %v11449_v50 = vld [vmem:[#allocation32 + $0xca0] sm:$0xf0] }
 0x4e1   :  { %7102 = vmatpush.bf16.msra.mxu1 %v9688_v4  ;;  %7141 = vmatpush.bf16.msrb.mxu0 %v10360_v10  ;;  %v9129_v4 = vld [vmem:[#allocation32 + $0x1ec] sm:$0xf0]  ;;  %v11271_v10 = vld [vmem:[#allocation32 + $0x714] sm:$0xf] }
 0x4e2   :  { %7180 = vmatpush.bf16.msrb.mxu3 %v9244_v43  ;;  %7219 = vmatpush.bf16.msra.mxu2 %v9916_v24  ;;  %v6928_v22 = vpop.f32.mrf.mxu3  ;;  %v6967_v40 = vpop.f32.mrf.mxu2  ;;  %v11491_v43 = vld [vmem:[#allocation32 + $0xdf0] sm:$0xf0]  ;;  %v11208_v24 = vld [vmem:[#allocation32 + $0x51c] sm:$0xf]  ;;  %v9804_v9 = vor.u32 %v11271_v10, %v9801_v12  ;;  %v9023_v10 = vld [vmem:[#allocation32 + $0xf8] sm:$0xf] }
 0x4e3   :  { %v10668_v61 = vor.u32 %v11491_v43, %v10667_v32  ;;  %v11355_v22 = vld [vmem:[#allocation32 + $0x9b4] sm:$0xf]  ;;  %v4329_v43 = vperm.slane %v12789_v42, 3  ;;  %v11072_v42 = vld [vmem:[#allocation32 + $0xd8] sm:$0xf0] }
 0x4e4   :  { %v11079_v40 = vld [vmem:[#allocation32 + $0x110] sm:$0xf0] }
 0x4e5   :  { %7103 = vmatpush.bf16.msra.mxu1 %v9660_v58  ;;  %7142 = vmatpush.bf16.msrb.mxu0 %v10332_v35  ;;  %v11100_v58 = vld [vmem:[#allocation32 + $0x1b8] sm:$0xf0]  ;;  %v9132_v35 = vor.u32 %v11103_v14, %v9129_v4  ;;  %v6888_v14 = vadd.f32 %v12809_v30, %v12799_v2  ;;  %v10137_v4 = vld [vmem:[#allocation32 + $0x9cc] sm:$0xf0]  ;;  %v9437_v30 = vld [vmem:[#allocation32 + $0x454] sm:$0xf0] }
 0x4e6   :  { %7181 = vmatpush.bf16.msrb.mxu3 %v9216_v20  ;;  %7220 = vmatpush.bf16.msra.mxu2 %v9888_v56  ;;  %v9552_v20 = vor.u32 %v11208_v24, %v9549_v18  ;;  %v10639_v56 = vld [vmem:[#allocation32 + $0xda0] sm:$0xf]  ;;  %v9108_v15 = vor.u32 %v11100_v58, %v9107_v53  ;;  %v10140_v19 = vor.u32 %v11355_v22, %v10137_v4  ;;  %v11180_v2 = vld [vmem:[#allocation32 + $0x43c] sm:$0xf]  ;;  %v11442_v22 = vld [vmem:[#allocation32 + $0xc68] sm:$0xf0] }
 0x4e7   :  { %v9024_v53 = vor.u32 %v11079_v40, %v9023_v10  ;;  %v11348_v58 = vld [vmem:[#allocation32 + $0x97c] sm:$0xf]  ;;  %v9353_v4 = vld [vmem:[#allocation32 + $0x3ac] sm:$0xf0] }
 0x4e9   :  { %7104 = vmatpush.bf16.msra.mxu1 %v9632_v27  ;;  %7143 = vmatpush.bf16.msrb.mxu0 %v10304_v17  ;;  %v11093_v27 = vld [vmem:[#allocation32 + $0x180] sm:$0xf0]  ;;  %v10640_v17 = vor.u32 %v11484_v5, %v10639_v56  ;;  %v9440_v56 = vor.u32 %v11180_v2, %v9437_v30  ;;  %v10527_v5 = vld [vmem:[#allocation32 + $0xcc0] sm:$0xf]  ;;  %v10445_v2 = vld [vmem:[#allocation32 + $0xc34] sm:$0xf0] }
 0x4ea   :  { %7182 = vmatpush.bf16.msrb.mxu3 %v9188_v39  ;;  %7221 = vmatpush.bf16.msra.mxu2 %v9860_v52  ;;  %v9080_v39 = vor.u32 %v11093_v27, %v9079_v8  ;;  %v11194_v52 = vld [vmem:[#allocation32 + $0x4ac] sm:$0xf]  ;;  %v11341_v8 = vld [vmem:[#allocation32 + $0x944] sm:$0xf]  ;;  %v9331_v30 = vld [vmem:[#allocation32 + $0x360] sm:$0xf] }
 0x4ed   :  { %7105 = vmatpush.bf16.msra.mxu1 %v9604_v6  ;;  %7144 = vmatpush.bf16.msrb.mxu0 %v10276_v7  ;;  %v9496_v6 = vor.u32 %v11194_v52, %v9493_v49  ;;  %v10583_v7 = vld [vmem:[#allocation32 + $0xd30] sm:$0xf]  ;;  %v9412_v52 = vor.u32 %v11173_v37, %v9409_v31  ;;  %v10499_v49 = vld [vmem:[#allocation32 + $0xc88] sm:$0xf] }
 0x4ee   :  { %7183 = vmatpush.bf16.msrb.mxu3 %v9160_v57  ;;  %7222 = vmatpush.bf16.msra.mxu2 %v9832_v21  ;;  %v11187_v57 = vld [vmem:[#allocation32 + $0x474] sm:$0xf]  ;;  %v9465_v21 = vld [vmem:[#allocation32 + $0x48c] sm:$0xf0]  ;;  %v10584_v18 = vor.u32 %v11470_v3, %v10583_v7  ;;  %v10053_v7 = vld [vmem:[#allocation32 + $0x924] sm:$0xf0] }
 0x4ef   :  { %v9468_v48 = vor.u32 %v11187_v57, %v9465_v21  ;;  %v8939_v3 = vld [vmem:[#allocation32 + $0x50] sm:$0xf]  ;;  %v10500_v57 = vor.u32 %v11449_v50, %v10499_v49  ;;  %v9717_v49 = vld [vmem:[#allocation32 + $0x684] sm:$0xf0] }
 0x4f1   :  { %7106 = vmatpush.bf16.msra.mxu1 %v9576_v59  ;;  %7145 = vmatpush.bf16.msrb.mxu0 %v10248_v28  ;;  %v6900_v12 = vpop.f32.mrf.mxu1  ;;  %v12822_v32 = vpop.f32.mrf.mxu0  ;;  %v10555_v59 = vld [vmem:[#allocation32 + $0xcf8] sm:$0xf]  ;;  %v11463_v28 = vld [vmem:[#allocation32 + $0xd10] sm:$0xf0] }
 0x4f2   :  { %7184 = vmatpush.bf16.msrb.mxu3 %v9132_v35  ;;  %7223 = vmatpush.bf16.msra.mxu2 %v9804_v9  ;;  %v6901_v24 = vadd.f32 %v6900_v12, %v6888_v14  ;;  %v10109_v9 = vld [vmem:[#allocation32 + $0x994] sm:$0xf0]  ;;  %v11159_v14 = vld [vmem:[#allocation32 + $0x394] sm:$0xf] }
 0x4f3   :  { %v10112_v38 = vor.u32 %v11348_v58, %v10109_v9  ;;  %v11327_v12 = vld [vmem:[#allocation32 + $0x8d4] sm:$0xf]  ;;  %v9356_v9 = vor.u32 %v11159_v14, %v9353_v4  ;;  %v10361_v4 = vld [vmem:[#allocation32 + $0xb8c] sm:$0xf0] }
 0x4f4   :  { %7107 = vmatmul.bf16.vlgmr.msra.gmra.mxu1 %v12648_v60  ;;  %7146 = vmatmul.bf16.vlgmr.msrb.gmra.mxu0 %v12723_v62  ;;  %v12826_v35 = vadd.f32 %v12796_v13, %v6901_v24  ;;  %v8911_v24 = vld [vmem:[#allocation32 + $0x18] sm:$0xf]  ;;  %v11411_v14 = vld [vmem:[#allocation32 + $0xb74] sm:$0xf] }
 0x4f5   :  { %7151 = vmatpush.bf16.msrb.mxu1 %v10668_v61  ;;  %7190 = vmatpush.bf16.msra.mxu0 %v9552_v20  ;;  %v8995_v61 = vld [vmem:[#allocation32 + $0xc0] sm:$0xf]  ;;  %v10556_v20 = vor.u32 %v11463_v28, %v10555_v59  ;;  %v11051_v59 = vld [vmem:[#allocation32 + $0x30] sm:$0xf0]  ;;  %v11264_v28 = vld [vmem:[#allocation32 + $0x6dc] sm:$0xf] }
 0x4f6   :  { %7229 = vmatpush.bf16.msra.mxu3 %v10224_v34  ;;  %7268 = vmatpush.bf16.msrb.mxu2 %v9108_v15  ;;  %v11456_v34 = vld [vmem:[#allocation32 + $0xcd8] sm:$0xf0]  ;;  %v6966_v15 = vadd.f32 %v12814_v36, %v4329_v43  ;;  %v8996_v63 = vor.u32 %v11072_v42, %v8995_v61  ;;  %v10025_v43 = vld [vmem:[#allocation32 + $0x8ec] sm:$0xf0]  ;;  %v10003_v42 = vld [vmem:[#allocation32 + $0x8a0] sm:$0xf] }
 0x4f7   :  { %7185 = vmatmul.bf16.vlgmr.msrb.gmra.mxu3 %v12617_v26  ;;  %7224 = vmatmul.bf16.vlgmr.msra.gmra.mxu2 %v12670_v44  ;;  %v10528_v36 = vor.u32 %v11456_v34, %v10527_v5  ;;  %v11156_v61 = vld [vmem:[#allocation32 + $0x378] sm:$0xf0]  ;;  %v8912_v5 = vor.u32 %v11051_v59, %v8911_v24  ;;  %v11303_v24 = vld [vmem:[#allocation32 + $0x810] sm:$0xf0] }
 0x4f8   :  { %v9332_v37 = vor.u32 %v11156_v61, %v9331_v30  ;;  %v11128_v61 = vld [vmem:[#allocation32 + $0x298] sm:$0xf0] }
 0x4f9   :  { %7152 = vmatpush.bf16.msrb.mxu1 %v10640_v17  ;;  %7191 = vmatpush.bf16.msra.mxu0 %v9524_v45  ;;  %v10081_v17 = vld [vmem:[#allocation32 + $0x95c] sm:$0xf0]  ;;  %v8967_v45 = vld [vmem:[#allocation32 + $0x88] sm:$0xf] }
 0x4fa   :  { %7230 = vmatpush.bf16.msra.mxu3 %v10196_v1  ;;  %7269 = vmatpush.bf16.msrb.mxu2 %v9080_v39  ;;  %v6978_v13 = vpop.f32.mrf.mxu3  ;;  %v12829_v27 = vpop.f32.mrf.mxu2  ;;  %v10084_v16 = vor.u32 %v11341_v8, %v10081_v17  ;;  %v8968_v0 = vor.u32 %v11065_v51, %v8967_v45  ;;  %v11425_v8 = vld [vmem:[#allocation32 + $0xbe4] sm:$0xf]  ;;  %v9303_v17 = vld [vmem:[#allocation32 + $0x328] sm:$0xf] }
 0x4fb   :  { %v12831_v33 = vadd.f32 %v6978_v13, %v6966_v15  ;;  %v6902_v1 = vpop.f32.mrf.mxu1  ;;  %v6941_v39 = vpop.f32.mrf.mxu0  ;;  %v10417_v13 = vld [vmem:[#allocation32 + $0xbfc] sm:$0xf0]  ;;  %v11149_v45 = vld [vmem:[#allocation32 + $0x340] sm:$0xf0]  ;;  %v9975_v51 = vld [vmem:[#allocation32 + $0x868] sm:$0xf] }
 0x4fc   :  { %v11317_v1 = vld [vmem:[#allocation32 + $0x880] sm:$0xf0]  ;;  %v9304_v50 = vor.u32 %v11149_v45, %v9303_v17 }
 0x4fd   :  { %7153 = vmatpush.bf16.msrb.mxu1 %v10612_v11  ;;  %7192 = vmatpush.bf16.msra.mxu0 %v9496_v6  ;;  %v9381_v11 = vld [vmem:[#allocation32 + $0x3e4] sm:$0xf0]  ;;  %v11334_v6 = vld [vmem:[#allocation32 + $0x90c] sm:$0xf]  ;;  %v11121_v45 = vld [vmem:[#allocation32 + $0x260] sm:$0xf0] }
 0x4fe   :  { %7231 = vmatpush.bf16.msra.mxu3 %v10168_v41  ;;  %7270 = vmatpush.bf16.msrb.mxu2 %v9052_v47  ;;  %v11058_v41 = vld [vmem:[#allocation32 + $0x68] sm:$0xf0]  ;;  %v10471_v47 = vld [vmem:[#allocation32 + $0xc50] sm:$0xf]  ;;  %v9384_v21 = vor.u32 %v11166_v55, %v9381_v11  ;;  %v10056_v10 = vor.u32 %v11334_v6, %v10053_v7  ;;  %v10389_v55 = vld [vmem:[#allocation32 + $0xbc4] sm:$0xf0]  ;;  %v6927_v6 = vadd.f32 %v12812_v25, %v12826_v35 }
 0x4ff   :  { %v8940_v40 = vor.u32 %v11058_v41, %v8939_v3  ;;  %v10472_v58 = vor.u32 %v11442_v22, %v10471_v47  ;;  %v9275_v11 = vld [vmem:[#allocation32 + $0x2f0] sm:$0xf]  ;;  %v11142_v7 = vld [vmem:[#allocation32 + $0x308] sm:$0xf0] }
 0x500   :  { %v9947_v3 = vld [vmem:[#allocation32 + $0x830] sm:$0xf]  ;;  %v11310_v41 = vld [vmem:[#allocation32 + $0x848] sm:$0xf0]  ;;  %v9276_v25 = vor.u32 %v11142_v7, %v9275_v11  ;;  %v10277_v7 = vld [vmem:[#allocation32 + $0xae4] sm:$0xf0] }
 0x501   :  { %7154 = vmatpush.bf16.msrb.mxu1 %v10584_v18  ;;  %7193 = vmatpush.bf16.msra.mxu0 %v9468_v48  ;;  %v9689_v22 = vld [vmem:[#allocation32 + $0x64c] sm:$0xf0]  ;;  %v9948_v35 = vor.u32 %v11310_v41, %v9947_v3  ;;  %v11114_v41 = vld [vmem:[#allocation32 + $0x228] sm:$0xf0] }
 0x502   :  { %7232 = vmatpush.bf16.msra.mxu3 %v10140_v19  ;;  %7271 = vmatpush.bf16.msrb.mxu2 %v9024_v53  ;;  %v6980_v18 = vpop.f32.mrf.mxu3  ;;  %v7019_v48 = vpop.f32.mrf.mxu2  ;;  %v9773_v19 = vld [vmem:[#allocation32 + $0x6f4] sm:$0xf0]  ;;  %v11432_v53 = vld [vmem:[#allocation32 + $0xc1c] sm:$0xf]  ;;  %v9163_v3 = vld [vmem:[#allocation32 + $0x210] sm:$0xf] }
 0x503   :  { %v9776_v34 = vor.u32 %v11264_v28, %v9773_v19  ;;  %v10448_v15 = vor.u32 %v11432_v53, %v10445_v2  ;;  %v10364_v28 = vor.u32 %v11411_v14, %v10361_v4  ;;  %v11236_v19 = vld [vmem:[#allocation32 + $0x5fc] sm:$0xf]  ;;  %v9661_v53 = vld [vmem:[#allocation32 + $0x614] sm:$0xf0]  ;;  %v11383_v14 = vld [vmem:[#allocation32 + $0xa94] sm:$0xf]  ;;  %v9164_v4 = vor.u32 %v11114_v41, %v9163_v3 }
 0x504   :  { %v11191_v3 = vld [vmem:[#allocation32 + $0x490] sm:$0xf0] }
 0x505   :  { %7155 = vmatpush.bf16.msrb.mxu1 %v10556_v20  ;;  %7194 = vmatpush.bf16.msra.mxu0 %v9440_v56  ;;  %v11324_v20 = vld [vmem:[#allocation32 + $0x8b8] sm:$0xf0]  ;;  %v10028_v56 = vor.u32 %v11327_v12, %v10025_v43  ;;  %v11135_v12 = vld [vmem:[#allocation32 + $0x2d0] sm:$0xf0]  ;;  %v9919_v43 = vld [vmem:[#allocation32 + $0x7f8] sm:$0xf] }
 0x506   :  { %7233 = vmatpush.bf16.msra.mxu3 %v10112_v38  ;;  %7272 = vmatpush.bf16.msrb.mxu2 %v8996_v63  ;;  %v11257_v38 = vld [vmem:[#allocation32 + $0x6a4] sm:$0xf]  ;;  %v9745_v63 = vld [vmem:[#allocation32 + $0x6bc] sm:$0xf0]  ;;  %v10004_v31 = vor.u32 %v11324_v20, %v10003_v42  ;;  %v9920_v30 = vor.u32 %v11303_v24, %v9919_v43  ;;  %v11296_v20 = vld [vmem:[#allocation32 + $0x7d8] sm:$0xf0] }
 0x507   :  { %v9748_v39 = vor.u32 %v11257_v38, %v9745_v63  ;;  %v9891_v42 = vld [vmem:[#allocation32 + $0x7c0] sm:$0xf]  ;;  %v11107_v43 = vld [vmem:[#allocation32 + $0x1f0] sm:$0xf0] }
 0x508   :  { %v9892_v63 = vor.u32 %v11296_v20, %v9891_v42 }
 0x509   :  { %7156 = vmatpush.bf16.msrb.mxu1 %v10528_v36  ;;  %7195 = vmatpush.bf16.msra.mxu0 %v9412_v52  ;;  %v10420_v36 = vor.u32 %v11425_v8, %v10417_v13  ;;  %v11250_v52 = vld [vmem:[#allocation32 + $0x66c] sm:$0xf]  ;;  %v9191_v8 = vld [vmem:[#allocation32 + $0x248] sm:$0xf] }
 0x50a   :  { %7234 = vmatpush.bf16.msra.mxu3 %v10084_v16  ;;  %7273 = vmatpush.bf16.msrb.mxu2 %v8968_v0  ;;  %v9976_v16 = vor.u32 %v11317_v1, %v9975_v51  ;;  %v11418_v0 = vld [vmem:[#allocation32 + $0xbac] sm:$0xf]  ;;  %v9720_v47 = vor.u32 %v11250_v52, %v9717_v49  ;;  %v9863_v51 = vld [vmem:[#allocation32 + $0x788] sm:$0xf]  ;;  %v11289_v1 = vld [vmem:[#allocation32 + $0x7a0] sm:$0xf0]  ;;  %v9192_v11 = vor.u32 %v11121_v45, %v9191_v8 }
 0x50d   :  { %7157 = vmatpush.bf16.msrb.mxu1 %v10500_v57  ;;  %7196 = vmatpush.bf16.msra.mxu0 %v9384_v21  ;;  %v10392_v57 = vor.u32 %v11418_v0, %v10389_v55  ;;  %v11243_v21 = vld [vmem:[#allocation32 + $0x634] sm:$0xf]  ;;  %v9605_v0 = vld [vmem:[#allocation32 + $0x5a4] sm:$0xf0]  ;;  %v11390_v55 = vld [vmem:[#allocation32 + $0xacc] sm:$0xf] }
 0x50e   :  { %7235 = vmatpush.bf16.msra.mxu3 %v10056_v10  ;;  %7274 = vmatpush.bf16.msrb.mxu2 %v8940_v40  ;;  %v9247_v10 = vld [vmem:[#allocation32 + $0x2b8] sm:$0xf]  ;;  %v6940_v40 = vadd.f32 %v12822_v32, %v6927_v6  ;;  %v9692_v59 = vor.u32 %v11243_v21, %v9689_v22  ;;  %v9219_v32 = vld [vmem:[#allocation32 + $0x280] sm:$0xf]  ;;  %v9864_v6 = vor.u32 %v11289_v1, %v9863_v51  ;;  %v11474_v51 = vld [vmem:[#allocation32 + $0xd6c] sm:$0xf] }
 0x50f   :  { %v9248_v2 = vor.u32 %v11135_v12, %v9247_v10  ;;  %v9220_v38 = vor.u32 %v11128_v61, %v9219_v32  ;;  %v10280_v22 = vor.u32 %v11390_v55, %v10277_v7  ;;  %v9135_v12 = vld [vmem:[#allocation32 + $0x1d8] sm:$0xf]  ;;  %v11380_v32 = vld [vmem:[#allocation32 + $0xa78] sm:$0xf0]  ;;  %v11467_v55 = vld [vmem:[#allocation32 + $0xd34] sm:$0xf] }
 0x510   :  { %v9136_v61 = vor.u32 %v11107_v43, %v9135_v12  ;;  %v9471_v7 = vld [vmem:[#allocation32 + $0x478] sm:$0xf]  ;;  %v9443_v12 = vld [vmem:[#allocation32 + $0x440] sm:$0xf] }
 0x511   :  { %7158 = vmatpush.bf16.msrb.mxu1 %v10472_v58  ;;  %7197 = vmatpush.bf16.msra.mxu0 %v9356_v9  ;;  %v6952_v18 = vpop.f32.mrf.mxu1  ;;  %v11404_v58 = vld [vmem:[#allocation32 + $0xb3c] sm:$0xf]  ;;  %v10333_v9 = vld [vmem:[#allocation32 + $0xb54] sm:$0xf0]  ;;  %v10115_v43 = vld [vmem:[#allocation32 + $0x980] sm:$0xf] }
 0x512   :  { %7236 = vmatpush.bf16.msra.mxu3 %v10028_v56  ;;  %7275 = vmatpush.bf16.msrb.mxu2 %v8912_v5  ;;  %v6953_v48 = vadd.f32 %v6952_v18, %v6940_v40  ;;  %v9664_v56 = vor.u32 %v11236_v19, %v9661_v53  ;;  %v10336_v5 = vor.u32 %v11404_v58, %v10333_v9  ;;  %v10249_v40 = vld [vmem:[#allocation32 + $0xaac] sm:$0xf0]  ;;  %v10669_v19 = vld [vmem:[#allocation32 + $0xdf4] sm:$0xf0]  ;;  %v9555_v53 = vld [vmem:[#allocation32 + $0x520] sm:$0xf] }
 0x513   :  { %v10252_v58 = vor.u32 %v11383_v14, %v10249_v40  ;;  %v10227_v9 = vld [vmem:[#allocation32 + $0xa60] sm:$0xf]  ;;  %v9472_v14 = vor.u32 %v11191_v3, %v9471_v7  ;;  %v10557_v40 = vld [vmem:[#allocation32 + $0xd14] sm:$0xf0]  ;;  %v11436_v7 = vld [vmem:[#allocation32 + $0xc38] sm:$0xf0] }
 0x514   :  { %7159 = vmatmul.bf16.vlgmr.msrb.gmra.mxu1 %v12741_v29  ;;  %7198 = vmatmul.bf16.vlgmr.msra.gmra.mxu0 %v12628_v54  ;;  %11562 = vtanh.f32 %v6953_v48  ;;  %v9807_v48 = vld [vmem:[#allocation32 + $0x718] sm:$0xf] }
 0x515   :  { %7203 = vmatpush.bf16.msra.mxu1 %v9776_v34  ;;  %7242 = vmatpush.bf16.msrb.mxu0 %v10448_v15  ;;  %v11229_v34 = vld [vmem:[#allocation32 + $0x5c4] sm:$0xf]  ;;  %v9633_v15 = vld [vmem:[#allocation32 + $0x5dc] sm:$0xf0] }
 0x516   :  { %7281 = vmatpush.bf16.msrb.mxu3 %v9332_v37  ;;  %7320 = vmatpush.bf16.msra.mxu2 %v10004_v31  ;;  %v11397_v37 = vld [vmem:[#allocation32 + $0xb04] sm:$0xf]  ;;  %v10305_v31 = vld [vmem:[#allocation32 + $0xb1c] sm:$0xf0]  ;;  %v9636_v49 = vor.u32 %v11229_v34, %v9633_v15  ;;  %v10228_v34 = vor.u32 %v11380_v32, %v10227_v9  ;;  %v10087_v32 = vld [vmem:[#allocation32 + $0x948] sm:$0xf] }
 0x517   :  { %7237 = vmatmul.bf16.vlgmr.msra.gmra.mxu3 %v12701_v46  ;;  %7276 = vmatmul.bf16.vlgmr.msrb.gmra.mxu2 %v12591_v23  ;;  %v12840_v23 = vpop.f32.mrf.mxu0  ;;  %v10641_v15 = vld [vmem:[#allocation32 + $0xdbc] sm:$0xf0] }
 0x518   :  { %v6992_v41 = vadd.f32 %v12840_v23, %v12831_v33  ;;  %v11184_v33 = vld [vmem:[#allocation32 + $0x458] sm:$0xf0] }
 0x519   :  { %7204 = vmatpush.bf16.msra.mxu1 %v9748_v39  ;;  %7243 = vmatpush.bf16.msrb.mxu0 %v10420_v36  ;;  %v6954_v39 = vpop.f32.mrf.mxu1 }
 0x51a   :  { %7282 = vmatpush.bf16.msrb.mxu3 %v9304_v50  ;;  %7321 = vmatpush.bf16.msra.mxu2 %v9976_v16  ;;  %v12842_v13 = vpop.f32.mrf.mxu3  ;;  %v12844_v17 = vpop.f32.mrf.mxu2  ;;  %v10308_v50 = vor.u32 %v11397_v37, %v10305_v31  ;;  %v11222_v16 = vld [vmem:[#allocation32 + $0x58c] sm:$0xf]  ;;  %v10199_v37 = vld [vmem:[#allocation32 + $0xa28] sm:$0xf]  ;;  %v11373_v31 = vld [vmem:[#allocation32 + $0xa40] sm:$0xf0] }
 0x51b   :  { %v11563_v52 = vpop.eup %11562  ;;  %v9608_v21 = vor.u32 %v11222_v16, %v9605_v0  ;;  %v10200_v1 = vor.u32 %v11373_v31, %v10199_v37  ;;  %v10613_v39 = vld [vmem:[#allocation32 + $0xd84] sm:$0xf0]  ;;  %v10059_v37 = vld [vmem:[#allocation32 + $0x910] sm:$0xf]  ;;  %v11338_v31 = vld [vmem:[#allocation32 + $0x928] sm:$0xf0] }
 0x51c   :  { %7381 = vst [vmem:[#allocation35 + $0x10] sm:$0xff] %v11563_v52  ;;  %v11198_v52 = vld [vmem:[#allocation32 + $0x4c8] sm:$0xf0]  ;;  %v10616_v16 = vor.u32 %v11474_v51, %v10613_v39  ;;  %v11439_v51 = vld [vmem:[#allocation32 + $0xc54] sm:$0xf]  ;;  %v10060_v39 = vor.u32 %v11338_v31, %v10059_v37 }
 0x51d   :  { %7205 = vmatpush.bf16.msra.mxu1 %v9720_v47  ;;  %7244 = vmatpush.bf16.msrb.mxu0 %v10392_v57  ;;  %v9835_v47 = vld [vmem:[#allocation32 + $0x750] sm:$0xf]  ;;  %v11282_v57 = vld [vmem:[#allocation32 + $0x768] sm:$0xf0] }
 0x51e   :  { %7283 = vmatpush.bf16.msrb.mxu3 %v9276_v25  ;;  %7322 = vmatpush.bf16.msra.mxu2 %v9948_v35  ;;  %v11215_v25 = vld [vmem:[#allocation32 + $0x554] sm:$0xf]  ;;  %v9577_v35 = vld [vmem:[#allocation32 + $0x56c] sm:$0xf0]  ;;  %v9836_v10 = vor.u32 %v11282_v57, %v9835_v47  ;;  %v10143_v47 = vld [vmem:[#allocation32 + $0x9b8] sm:$0xf] }
 0x51f   :  { %v6993_v36 = vpop.f32.mrf.mxu0  ;;  %v11359_v57 = vld [vmem:[#allocation32 + $0x9d0] sm:$0xf0] }
 0x520   :  { %v9499_v36 = vld [vmem:[#allocation32 + $0x4b0] sm:$0xf] }
 0x521   :  { %7206 = vmatpush.bf16.msra.mxu1 %v9692_v59  ;;  %7245 = vmatpush.bf16.msrb.mxu0 %v10364_v28  ;;  %v11275_v59 = vld [vmem:[#allocation32 + $0x730] sm:$0xf0]  ;;  %v11488_v28 = vld [vmem:[#allocation32 + $0xddc] sm:$0xf]  ;;  %v9500_v0 = vor.u32 %v11198_v52, %v9499_v36  ;;  %v9359_v36 = vld [vmem:[#allocation32 + $0x398] sm:$0xf] }
 0x522   :  { %7284 = vmatpush.bf16.msrb.mxu3 %v9248_v2  ;;  %7323 = vmatpush.bf16.msra.mxu2 %v9920_v30  ;;  %v7032_v24 = vpop.f32.mrf.mxu3  ;;  %v7071_v18 = vpop.f32.mrf.mxu2  ;;  %v11212_v2 = vld [vmem:[#allocation32 + $0x538] sm:$0xf0]  ;;  %v9580_v30 = vor.u32 %v11215_v25, %v9577_v35  ;;  %v9808_v42 = vor.u32 %v11275_v59, %v9807_v48  ;;  %v10672_v20 = vor.u32 %v11488_v28, %v10669_v19  ;;  %v11453_v59 = vld [vmem:[#allocation32 + $0xcc4] sm:$0xf]  ;;  %v11163_v52 = vld [vmem:[#allocation32 + $0x3b0] sm:$0xf0] }
 0x523   :  { %v11352_v24 = vld [vmem:[#allocation32 + $0x998] sm:$0xf0]  ;;  %v9444_v48 = vor.u32 %v11184_v33, %v9443_v12  ;;  %v11254_v12 = vld [vmem:[#allocation32 + $0x688] sm:$0xf0]  ;;  %v10395_v33 = vld [vmem:[#allocation32 + $0xbb0] sm:$0xf] }
 0x524   :  { %v10116_v19 = vor.u32 %v11352_v24, %v10115_v43  ;;  %v11422_v43 = vld [vmem:[#allocation32 + $0xbc8] sm:$0xf0] }
 0x525   :  { %7207 = vmatpush.bf16.msra.mxu1 %v9664_v56  ;;  %7246 = vmatpush.bf16.msrb.mxu0 %v10336_v5  ;;  %v9556_v56 = vor.u32 %v11212_v2, %v9555_v53  ;;  %v11481_v5 = vld [vmem:[#allocation32 + $0xda4] sm:$0xf]  ;;  %v10529_v53 = vld [vmem:[#allocation32 + $0xcdc] sm:$0xf0]  ;;  %v9415_v2 = vld [vmem:[#allocation32 + $0x408] sm:$0xf] }
 0x526   :  { %7285 = vmatpush.bf16.msrb.mxu3 %v9220_v38  ;;  %7324 = vmatpush.bf16.msra.mxu2 %v9892_v63  ;;  %v9527_v38 = vld [vmem:[#allocation32 + $0x4e8] sm:$0xf]  ;;  %v11205_v63 = vld [vmem:[#allocation32 + $0x500] sm:$0xf0]  ;;  %v10644_v8 = vor.u32 %v11481_v5, %v10641_v15 }
 0x527   :  { %v9528_v45 = vor.u32 %v11205_v63, %v9527_v38  ;;  %v10501_v15 = vld [vmem:[#allocation32 + $0xca4] sm:$0xf0]  ;;  %v9387_v38 = vld [vmem:[#allocation32 + $0x3d0] sm:$0xf]  ;;  %v11170_v63 = vld [vmem:[#allocation32 + $0x3e8] sm:$0xf0] }
 0x529   :  { %7208 = vmatpush.bf16.msra.mxu1 %v9636_v49  ;;  %7247 = vmatpush.bf16.msrb.mxu0 %v10308_v50  ;;  %v10171_v49 = vld [vmem:[#allocation32 + $0x9f0] sm:$0xf]  ;;  %v11366_v50 = vld [vmem:[#allocation32 + $0xa08] sm:$0xf0] }
 0x52a   :  { %7286 = vmatpush.bf16.msrb.mxu3 %v9192_v11  ;;  %7325 = vmatpush.bf16.msra.mxu2 %v9864_v6  ;;  %v10172_v11 = vor.u32 %v11366_v50, %v10171_v49  ;;  %v10585_v6 = vld [vmem:[#allocation32 + $0xd4c] sm:$0xf0]  ;;  %v10031_v49 = vld [vmem:[#allocation32 + $0x8d8] sm:$0xf] }
 0x52b   :  { %v10588_v35 = vor.u32 %v11467_v55, %v10585_v6  ;;  %v9779_v55 = vld [vmem:[#allocation32 + $0x6e0] sm:$0xf] }
 0x52c   :  { %v10451_v6 = vld [vmem:[#allocation32 + $0xc20] sm:$0xf] }
 0x52d   :  { %7209 = vmatpush.bf16.msra.mxu1 %v9608_v21  ;;  %7248 = vmatpush.bf16.msrb.mxu0 %v10280_v22  ;;  %v12854_v22 = vld [vmem:[#allocation34] sm:$0xff] }
 0x52e   :  { %7287 = vmatpush.bf16.msrb.mxu3 %v9164_v4  ;;  %7326 = vmatpush.bf16.msra.mxu2 %v9836_v10  ;;  %v11460_v4 = vld [vmem:[#allocation32 + $0xcfc] sm:$0xf]  ;;  %v10144_v10 = vor.u32 %v11359_v57, %v10143_v47 }
 0x52f   :  { %v10560_v18 = vor.u32 %v11460_v4, %v10557_v40  ;;  %v9723_v40 = vld [vmem:[#allocation32 + $0x670] sm:$0xf] }
 0x531   :  { %7210 = vmatpush.bf16.msra.mxu1 %v9580_v30  ;;  %7249 = vmatpush.bf16.msrb.mxu0 %v10252_v58  ;;  %v12852_v21 = vpop.f32.mrf.mxu0  ;;  %v11177_v30 = vld [vmem:[#allocation32 + $0x420] sm:$0xf0] }
 0x532   :  { %7288 = vmatpush.bf16.msrb.mxu3 %v9136_v61  ;;  %7327 = vmatpush.bf16.msra.mxu2 %v9808_v42  ;;  %v9416_v5 = vor.u32 %v11177_v30, %v9415_v2 }
 0x534   :  { %7211 = vmatmul.bf16.vlgmr.msra.gmra.mxu1 %v12648_v60  ;;  %7250 = vmatmul.bf16.vlgmr.msrb.gmra.mxu0 %v12723_v62 }
 0x535   :  { %7255 = vmatpush.bf16.msrb.mxu1 %v10672_v20  ;;  %7294 = vmatpush.bf16.msra.mxu0 %v9556_v56  ;;  %v10532_v56 = vor.u32 %v11453_v59, %v10529_v53  ;;  %v9695_v59 = vld [vmem:[#allocation32 + $0x638] sm:$0xf]  ;;  %v11415_v53 = vld [vmem:[#allocation32 + $0xb90] sm:$0xf0] }
 0x536   :  { %7333 = vmatpush.bf16.msra.mxu3 %v10228_v34  ;;  %7328 = vmatmul.bf16.vlgmr.msra.gmra.mxu2 %v12670_v44  ;;  %v4330_v44 = vperm.slane %v12854_v22, 4  ;;  %v11446_v34 = vld [vmem:[#allocation32 + $0xc8c] sm:$0xf] }
 0x537   :  { %7289 = vmatmul.bf16.vlgmr.msrb.gmra.mxu3 %v12617_v26  ;;  %v7004_v26 = vpop.f32.mrf.mxu1 }
 0x538   :  { %v7005_v25 = vadd.f32 %v7004_v26, %v6992_v41  ;;  %v7070_v28 = vadd.f32 %v12844_v17, %v4330_v44  ;;  %v9360_v41 = vor.u32 %v11163_v52, %v9359_v36  ;;  %v10452_v26 = vor.u32 %v11436_v7, %v10451_v6  ;;  %v9751_v44 = vld [vmem:[#allocation32 + $0x6a8] sm:$0xf]  ;;  %v11394_v36 = vld [vmem:[#allocation32 + $0xae8] sm:$0xf0]  ;;  %v11492_v6 = vld [vmem:[#allocation32 + $0xdf8] sm:$0xf0] }
 0x539   :  { %7256 = vmatpush.bf16.msrb.mxu1 %v10644_v8  ;;  %7295 = vmatpush.bf16.msra.mxu0 %v9528_v45  ;;  %v7045_v20 = vpop.f32.mrf.mxu0  ;;  %v10504_v8 = vor.u32 %v11446_v34, %v10501_v15  ;;  %v9388_v45 = vor.u32 %v11170_v63, %v9387_v38  ;;  %v11233_v34 = vld [vmem:[#allocation32 + $0x5e0] sm:$0xf0] }
 0x53a   :  { %7334 = vmatpush.bf16.msra.mxu3 %v10200_v1  ;;  %v12858_v23 = vadd.f32 %v12829_v27, %v7005_v25  ;;  %v7082_v58 = vpop.f32.mrf.mxu3  ;;  %v12861_v9 = vpop.f32.mrf.mxu2  ;;  %v11345_v27 = vld [vmem:[#allocation32 + $0x960] sm:$0xf0]  ;;  %v10473_v1 = vld [vmem:[#allocation32 + $0xc6c] sm:$0xf0] }
 0x53b   :  { %v12863_v61 = vadd.f32 %v7082_v58, %v7070_v28  ;;  %v10088_v17 = vor.u32 %v11345_v27, %v10087_v32  ;;  %v10476_v3 = vor.u32 %v11439_v51, %v10473_v1  ;;  %v11261_v25 = vld [vmem:[#allocation32 + $0x6c0] sm:$0xf0]  ;;  %v11247_v28 = vld [vmem:[#allocation32 + $0x650] sm:$0xf0]  ;;  %v10339_v27 = vld [vmem:[#allocation32 + $0xb40] sm:$0xf] }
 0x53c   :  { %v9752_v4 = vor.u32 %v11261_v25, %v9751_v44  ;;  %v7031_v24 = vadd.f32 %v12842_v13, %v12858_v23  ;;  %v9696_v58 = vor.u32 %v11247_v28, %v9695_v59  ;;  %v9667_v23 = vld [vmem:[#allocation32 + $0x600] sm:$0xf]  ;;  %v9611_v51 = vld [vmem:[#allocation32 + $0x590] sm:$0xf]  ;;  %v11226_v1 = vld [vmem:[#allocation32 + $0x5a8] sm:$0xf0] }
 0x53d   :  { %7257 = vmatpush.bf16.msrb.mxu1 %v10616_v16  ;;  %7296 = vmatpush.bf16.msra.mxu0 %v9500_v0  ;;  %v11331_v0 = vld [vmem:[#allocation32 + $0x8f0] sm:$0xf0]  ;;  %v9612_v52 = vor.u32 %v11226_v1, %v9611_v51  ;;  %v11485_v44 = vld [vmem:[#allocation32 + $0xdc0] sm:$0xf0]  ;;  %v4331_v28 = vperm.slane %v12854_v22, 5 }
 0x53e   :  { %7335 = vmatpush.bf16.msra.mxu3 %v10172_v11  ;;  %v11268_v11 = vld [vmem:[#allocation32 + $0x6f8] sm:$0xf0]  ;;  %v10032_v47 = vor.u32 %v11331_v0, %v10031_v49  ;;  %v7044_v2 = vadd.f32 %v12852_v21, %v7031_v24  ;;  %v10311_v21 = vld [vmem:[#allocation32 + $0xb08] sm:$0xf]  ;;  %v10255_v0 = vld [vmem:[#allocation32 + $0xa98] sm:$0xf] }
 0x53f   :  { %v7006_v42 = vpop.f32.mrf.mxu1  ;;  %v9780_v57 = vor.u32 %v11268_v11, %v9779_v55  ;;  %v11387_v55 = vld [vmem:[#allocation32 + $0xab0] sm:$0xf0]  ;;  %v10675_v11 = vld [vmem:[#allocation32 + $0xde0] sm:$0xf] }
 0x540   :  { %v11408_v42 = vld [vmem:[#allocation32 + $0xb58] sm:$0xf0] }
 0x541   :  { %7258 = vmatpush.bf16.msrb.mxu1 %v10588_v35  ;;  %7297 = vmatpush.bf16.msra.mxu0 %v9472_v14  ;;  %v10423_v35 = vld [vmem:[#allocation32 + $0xbe8] sm:$0xf]  ;;  %v11429_v14 = vld [vmem:[#allocation32 + $0xc00] sm:$0xf0] }
 0x542   :  { %7336 = vmatpush.bf16.msra.mxu3 %v10144_v10  ;;  %v7084_v50 = vpop.f32.mrf.mxu3  ;;  %v7123_v16 = vpop.f32.mrf.mxu2  ;;  %v10424_v10 = vor.u32 %v11429_v14, %v10423_v35  ;;  %v10619_v35 = vld [vmem:[#allocation32 + $0xd70] sm:$0xf]  ;;  %v11478_v14 = vld [vmem:[#allocation32 + $0xd88] sm:$0xf0] }
 0x543   :  { %v9583_v50 = vld [vmem:[#allocation32 + $0x558] sm:$0xf]  ;;  %v11219_v16 = vld [vmem:[#allocation32 + $0x570] sm:$0xf0] }
 0x545   :  { %7259 = vmatpush.bf16.msrb.mxu1 %v10560_v18  ;;  %7298 = vmatpush.bf16.msra.mxu0 %v9444_v48  ;;  %v9724_v18 = vor.u32 %v11254_v12, %v9723_v40  ;;  %v10396_v48 = vor.u32 %v11422_v43, %v10395_v33  ;;  %v11471_v40 = vld [vmem:[#allocation32 + $0xd50] sm:$0xf0] }
 0x546   :  { %7337 = vmatpush.bf16.msra.mxu3 %v10116_v19  ;;  %v10367_v19 = vld [vmem:[#allocation32 + $0xb78] sm:$0xf] }
 0x547   :  { %v10368_v13 = vor.u32 %v11415_v53, %v10367_v19  ;;  %v10535_v19 = vld [vmem:[#allocation32 + $0xcc8] sm:$0xf]  ;;  %v11457_v53 = vld [vmem:[#allocation32 + $0xce0] sm:$0xf0] }
 0x549   :  { %7260 = vmatpush.bf16.msrb.mxu1 %v10532_v56  ;;  %7299 = vmatpush.bf16.msra.mxu0 %v9416_v5  ;;  %v10340_v56 = vor.u32 %v11408_v42, %v10339_v27  ;;  %v9639_v5 = vld [vmem:[#allocation32 + $0x5c8] sm:$0xf]  ;;  %v10479_v42 = vld [vmem:[#allocation32 + $0xc58] sm:$0xf] }
 0x54a   :  { %7338 = vmatpush.bf16.msra.mxu3 %v10088_v17  ;;  %v11401_v17 = vld [vmem:[#allocation32 + $0xb20] sm:$0xf0]  ;;  %v9640_v31 = vor.u32 %v11233_v34, %v9639_v5 }
 0x54d   :  { %7261 = vmatpush.bf16.msrb.mxu1 %v10504_v8  ;;  %7300 = vmatpush.bf16.msra.mxu0 %v9388_v45  ;;  %v10312_v45 = vor.u32 %v11401_v17, %v10311_v21 }
 0x54e   :  { %7339 = vmatpush.bf16.msra.mxu3 %v10060_v39  ;;  %v10283_v39 = vld [vmem:[#allocation32 + $0xad0] sm:$0xf] }
 0x54f   :  { %v10284_v49 = vor.u32 %v11394_v36, %v10283_v39 }
 0x551   :  { %7262 = vmatpush.bf16.msrb.mxu1 %v10476_v3  ;;  %7301 = vmatpush.bf16.msra.mxu0 %v9360_v41  ;;  %v7056_v30 = vpop.f32.mrf.mxu1  ;;  %v9584_v41 = vor.u32 %v11219_v16, %v9583_v50 }
 0x552   :  { %7340 = vmatpush.bf16.msra.mxu3 %v10032_v47  ;;  %v7057_v32 = vadd.f32 %v7056_v30, %v7044_v2  ;;  %v10256_v47 = vor.u32 %v11387_v55, %v10255_v0 }
 0x554   :  { %7263 = vmatmul.bf16.vlgmr.msrb.gmra.mxu1 %v12741_v29  ;;  %7302 = vmatmul.bf16.vlgmr.msra.gmra.mxu0 %v12628_v54  ;;  %v12871_v54 = vpop.f32.mrf.mxu0  ;;  %11564 = vtanh.f32 %v7057_v32 }
 0x555   :  { %7307 = vmatpush.bf16.msra.mxu1 %v9780_v57  ;;  %7346 = vmatpush.bf16.msrb.mxu0 %v10452_v26  ;;  %v10676_v57 = vor.u32 %v11492_v6, %v10675_v11  ;;  %v10647_v26 = vld [vmem:[#allocation32 + $0xda8] sm:$0xf]  ;;  %v7096_v12 = vadd.f32 %v12871_v54, %v12863_v61  ;;  %v10536_v61 = vor.u32 %v11457_v53, %v10535_v19 }
 0x556   :  { %7341 = vmatmul.bf16.vlgmr.msra.gmra.mxu3 %v12701_v46  ;;  %v11240_v46 = vld [vmem:[#allocation32 + $0x618] sm:$0xf0]  ;;  %v10648_v25 = vor.u32 %v11485_v44, %v10647_v26 }
 0x557   :  { %v9668_v20 = vor.u32 %v11240_v46, %v9667_v23  ;;  %v10507_v23 = vld [vmem:[#allocation32 + $0xc90] sm:$0xf]  ;;  %v11450_v46 = vld [vmem:[#allocation32 + $0xca8] sm:$0xf0] }
 0x558   :  { %v10508_v27 = vor.u32 %v11450_v46, %v10507_v23 }
 0x559   :  { %7308 = vmatpush.bf16.msra.mxu1 %v9752_v4  ;;  %7347 = vmatpush.bf16.msrb.mxu0 %v10424_v10  ;;  %v7058_v63 = vpop.f32.mrf.mxu1  ;;  %v10620_v4 = vor.u32 %v11478_v14, %v10619_v35  ;;  %v10591_v10 = vld [vmem:[#allocation32 + $0xd38] sm:$0xf] }
 0x55a   :  { %v12873_v15 = vpop.f32.mrf.mxu3  ;;  %v7173_v38 = vpop.f32.mrf.mxu2  ;;  %v10592_v33 = vor.u32 %v11471_v40, %v10591_v10 }
 0x55b   :  { %v11565_v8 = vpop.eup %11564  ;;  %v7174_v2 = vadd.f32 %v7173_v38, %v4331_v28 }
 0x55c   :  { %v7097_v37 = vpop.f32.mrf.mxu0  ;;  %7382 = vst [vmem:[#allocation35 + $0x18] sm:$0xff] %v11565_v8 }
 0x55d   :  { %7309 = vmatpush.bf16.msra.mxu1 %v9724_v18  ;;  %7348 = vmatpush.bf16.msrb.mxu0 %v10396_v48  ;;  %v10563_v18 = vld [vmem:[#allocation32 + $0xd00] sm:$0xf]  ;;  %v11464_v48 = vld [vmem:[#allocation32 + $0xd18] sm:$0xf0] }
 0x561   :  { %7310 = vmatpush.bf16.msra.mxu1 %v9696_v58  ;;  %7349 = vmatpush.bf16.msrb.mxu0 %v10368_v13 }
 0x562   :  { %v7136_v7 = vpop.f32.mrf.mxu3  ;;  %v7175_v3 = vpop.f32.mrf.mxu2 }
 0x565   :  { %7311 = vmatpush.bf16.msra.mxu1 %v9668_v20  ;;  %7350 = vmatpush.bf16.msrb.mxu0 %v10340_v56  ;;  %v11443_v20 = vld [vmem:[#allocation32 + $0xc70] sm:$0xf0] }
 0x566   :  { %v10480_v5 = vor.u32 %v11443_v20, %v10479_v42 }
 0x569   :  { %7312 = vmatpush.bf16.msra.mxu1 %v9640_v31  ;;  %7351 = vmatpush.bf16.msrb.mxu0 %v10312_v45 }
 0x56d   :  { %7313 = vmatpush.bf16.msra.mxu1 %v9612_v52  ;;  %7352 = vmatpush.bf16.msrb.mxu0 %v10284_v49 }
 0x571   :  { %7314 = vmatpush.bf16.msra.mxu1 %v9584_v41  ;;  %7353 = vmatpush.bf16.msrb.mxu0 %v10256_v47  ;;  %v7108_v43 = vpop.f32.mrf.mxu1  ;;  %v7147_v24 = vpop.f32.mrf.mxu0 }
 0x572   :  { %v7109_v59 = vadd.f32 %v7108_v43, %v7096_v12 }
 0x574   :  { %7315 = vmatmul.bf16.vlgmr.msra.gmra.mxu1 %v12648_v60  ;;  %7354 = vmatmul.bf16.vlgmr.msrb.gmra.mxu0 %v12723_v62  ;;  %v7122_v60 = vadd.f32 %v12861_v9, %v7109_v59  ;;  %v10564_v62 = vor.u32 %v11464_v48, %v10563_v18 }
 0x575   :  { %7359 = vmatpush.bf16.msrb.mxu1 %v10676_v57 }
 0x576   :  { %v7135_v34 = vadd.f32 %v12873_v15, %v7122_v60 }
 0x578   :  { %v7148_v21 = vadd.f32 %v7147_v24, %v7135_v34 }
 0x579   :  { %7360 = vmatpush.bf16.msrb.mxu1 %v10648_v25  ;;  %v7110_v32 = vpop.f32.mrf.mxu1  ;;  %v7149_v13 = vpop.f32.mrf.mxu0 }
 0x57a   :  { %v7186_v30 = vpop.f32.mrf.mxu3  ;;  %v7225_v58 = vpop.f32.mrf.mxu2 }
 0x57b   :  { %v7187_v54 = vadd.f32 %v7186_v30, %v7174_v2 }
 0x57d   :  { %7361 = vmatpush.bf16.msrb.mxu1 %v10620_v4 }
 0x581   :  { %7362 = vmatpush.bf16.msrb.mxu1 %v10592_v33 }
 0x582   :  { %v7188_v9 = vpop.f32.mrf.mxu3  ;;  %v7227_v56 = vpop.f32.mrf.mxu2 }
 0x585   :  { %7363 = vmatpush.bf16.msrb.mxu1 %v10564_v62 }
 0x589   :  { %7364 = vmatpush.bf16.msrb.mxu1 %v10536_v61 }
 0x58d   :  { %7365 = vmatpush.bf16.msrb.mxu1 %v10508_v27 }
 0x591   :  { %7366 = vmatpush.bf16.msrb.mxu1 %v10480_v5  ;;  %v7160_v17 = vpop.f32.mrf.mxu1  ;;  %v7199_v38 = vpop.f32.mrf.mxu0 }
 0x592   :  { %v7161_v63 = vadd.f32 %v7160_v17, %v7148_v21  ;;  %v7200_v36 = vadd.f32 %v7199_v38, %v7187_v54 }
 0x594   :  { %7367 = vmatmul.bf16.vlgmr.msrb.gmra.mxu1 %v12741_v29  ;;  %11566 = vtanh.f32 %v7161_v63  ;;  %v4332_v29 = vperm.slane %v12854_v22, 6 }
 0x599   :  { %v7162_v8 = vpop.f32.mrf.mxu1  ;;  %v7201_v45 = vpop.f32.mrf.mxu0 }
 0x59a   :  { %v7238_v37 = vpop.f32.mrf.mxu3  ;;  %v7277_v31 = vpop.f32.mrf.mxu2 }
 0x59b   :  { %v11567_v51 = vpop.eup %11566  ;;  %v7278_v16 = vadd.f32 %v7277_v31, %v4332_v29 }
 0x59c   :  { %7383 = vst [vmem:[#allocation35 + $0x20] sm:$0xff] %v11567_v51 }
 0x5a2   :  { %v7240_v1 = vpop.f32.mrf.mxu3  ;;  %v7279_v39 = vpop.f32.mrf.mxu2 }
 0x5b1   :  { %v7212_v52 = vpop.f32.mrf.mxu1  ;;  %v7251_v50 = vpop.f32.mrf.mxu0 }
 0x5b2   :  { %v7213_v49 = vadd.f32 %v7212_v52, %v7200_v36 }
 0x5b4   :  { %v7226_v15 = vadd.f32 %v7225_v58, %v7213_v49 }
 0x5b6   :  { %v7239_v47 = vadd.f32 %v7238_v37, %v7226_v15 }
 0x5b8   :  { %v7252_v57 = vadd.f32 %v7251_v50, %v7239_v47 }
 0x5b9   :  { %v7329_v11 = vpop.f32.mrf.mxu2  ;;  %v7214_v6 = vpop.f32.mrf.mxu1 }
 0x5ba   :  { %v7290_v0 = vpop.f32.mrf.mxu3  ;;  %v7253_v7 = vpop.f32.mrf.mxu0 }
 0x5bb   :  { %v7291_v55 = vadd.f32 %v7290_v0, %v7278_v16 }
 0x5c1   :  { %v7331_v41 = vpop.f32.mrf.mxu2 }
 0x5c2   :  { %v7292_v3 = vpop.f32.mrf.mxu3 }
 0x5d1   :  { %v7264_v26 = vpop.f32.mrf.mxu1  ;;  %v7303_v44 = vpop.f32.mrf.mxu0 }
 0x5d2   :  { %v7265_v25 = vadd.f32 %v7264_v26, %v7252_v57  ;;  %v7304_v40 = vadd.f32 %v7303_v44, %v7291_v55 }
 0x5d4   :  { %11568 = vtanh.f32 %v7265_v25 }
 0x5d9   :  { %v7342_v35 = vpop.f32.mrf.mxu3  ;;  %v7266_v14 = vpop.f32.mrf.mxu1 }
 0x5da   :  { %v7305_v4 = vpop.f32.mrf.mxu0  ;;  %v11569_v10 = vpop.eup %11568 }
 0x5db   :  { %7384 = vst [vmem:[#allocation35 + $0x28] sm:$0xff] %v11569_v10 }
 0x5e1   :  { %v7344_v22 = vpop.f32.mrf.mxu3 }
 0x5f1   :  { %v7316_v12 = vpop.f32.mrf.mxu1  ;;  %v7355_v43 = vpop.f32.mrf.mxu0 }
 0x5f2   :  { %v7317_v33 = vadd.f32 %v7316_v12, %v7304_v40 }
 0x5f4   :  { %v7330_v24 = vadd.f32 %v7329_v11, %v7317_v33 }
 0x5f6   :  { %v7343_v59 = vadd.f32 %v7342_v35, %v7330_v24 }
 0x5f8   :  { %v7356_v28 = vadd.f32 %v7355_v43, %v7343_v59 }
 0x5f9   :  { %v7318_v18 = vpop.f32.mrf.mxu1  ;;  %v7357_v48 = vpop.f32.mrf.mxu0 }
 0x611   :  { %v7368_v60 = vpop.f32.mrf.mxu1 }
 0x612   :  { %v7369_v62 = vadd.f32 %v7368_v60, %v7356_v28 }
 0x614   :  { %11570 = vtanh.f32 %v7369_v62 }
 0x619   :  { %v7370_v19 = vpop.f32.mrf.mxu1 }
 0x61a   :  { %v11571_v53 = vpop.eup %11570 }
 0x61b   :  { %7385 = vst [vmem:[#allocation35 + $0x30] sm:$0xff] %v11571_v53 }
 0x61c   :  { %7396 = dma.vmem_to_hbm [thread:$0]  %s7392_s19, 896, %s7394_s13, [#allocation4]  }
 0x61d   :  { %12127 = dma.done.wait [#allocation4], 896  }
 0x61e   :  { %12128 = vsyncadd [#allocation4], 4294966400 }
 0x61f   :  { %7401 = vsyncpa [#allocation3], 1 }
 0x620   :  { %7402 = vsyncpa [#allocation6], 1 }
 0x621   :  { %7403 = vsyncpa [#allocation9], 1 }
 0x622   :  { %7404 = vsyncpa [#allocation12], 1 }
 0x623   :  { %7405 = vsyncpa [#allocation15], 1 }
 0x624   :  { %7406 = vsyncpa [#allocation18], 1 }
 0x625   :  { %7407 = vsyncpa [#allocation21], 1 }
 0x626   :  { %7408 = vsyncpa [#allocation24], 1 }
 0x627   :  { %7409 = vsyncpa [#allocation27], 1 }
 0x628   :  { %7410 = vsyncpa [#allocation30], 1 }
 0x629   :  { %7411 = vsyncpa [#allocation33], 1 }
 0x62a   :  { %7412 = vsyncpa [#allocation4], 1 }

</bundles_post_ra>
